<compile_context>
chip_gen: v7x
topology: tpu7x:2x2x1
jax: 0.10.0
libtpu: 0.0.40
codegen_flags: <defaults>
</compile_context>

<pallas_src>
import functools

import jax
import jax.numpy as jnp
from jax.experimental import pallas as pl
from jax.experimental.pallas import tpu as pltpu

EPS = 1e-3
_VMEM_LIMIT = 32 * 1024 * 1024  # explicit scoped-VMEM budget (fits v5e/v6e/v7x)


def _round_up(x, m):
    return (x + m - 1) // m * m


def _choose_tiles(m_rows):
    """Return (padded_M, tile_M). One big tile when it fits comfortably."""
    mp = _round_up(m_rows, 8)
    if mp <= 1024:
        return mp, mp          # single M tile -> grid=(2,1), no extra padding copy
    mp = _round_up(m_rows, 512)
    return mp, 512
    # TODO(synk): at production Inception sizes (K ~ 9k) add a K grid axis with a
    # (tm, co) f32 accumulator so tiles stay inside v7x's 64 MiB VMEM.


# ----------------------------------------------------------------------------
# Fused conv(matmul) + batch-stats + BN + ReLU kernel (2-phase grid)
# ----------------------------------------------------------------------------
def _fused_conv_bn_relu_kernel(a_ref, b_ref, gamma_ref, beta_ref, o_ref,
                               y_sc, st_sc, *, m_total, eps, tm):
    # a_ref: (tm, K) bf16 patches; b_ref: (K, Co) bf16 weights
    # y_sc : (Mp, Co) f32 conv output (VMEM resident between the two phases)
    # st_sc: (8, Co) f32; rows 0/1 = sum / sum(y*y); rows 2/3 = scale / shift
    phase = pl.program_id(0)
    i = pl.program_id(1)
    row = pl.multiple_of(i * tm, 8)

    @pl.when(phase == 0)
    def _():
        @pl.when(i == 0)
        def _():
            st_sc[...] = jnp.zeros_like(st_sc)

        y = jnp.dot(a_ref[...], b_ref[...], preferred_element_type=jnp.float32)
        y_sc[pl.ds(row, tm), :] = y
        st_sc[0:1, :] += jnp.sum(y, axis=0, keepdims=True)
        st_sc[1:2, :] += jnp.sum(y * y, axis=0, keepdims=True)

    @pl.when(phase == 1)
    def _():
        @pl.when(i == 0)
        def _():
            # Training-mode BatchNorm2d stats over the full M = N*Ho*Wo extent.
            inv_m = 1.0 / float(m_total)
            mean = st_sc[0:1, :] * inv_m
            var = jnp.maximum(st_sc[1:2, :] * inv_m - mean * mean, 0.0)
            scale = gamma_ref[...] * jax.lax.rsqrt(var + eps)
            st_sc[2:3, :] = scale
            st_sc[3:4, :] = beta_ref[...] - mean * scale

        y = y_sc[pl.ds(row, tm), :]
        o_ref[...] = jnp.maximum(
            y * st_sc[2:3, :] + st_sc[3:4, :], 0.0).astype(o_ref.dtype)


def _conv_bn_relu(a, b, gamma, beta, m_real, out_dtype):
    # a: (M, K) bf16 patches; b: (K, Co) bf16 weights; gamma/beta: (1, Co) f32.
    m_rows, k_dim = a.shape
    _, co = b.shape
    assert co % 128 == 0

    mp, tm = _choose_tiles(m_rows)
    if mp != m_rows:
        a = jnp.pad(a, ((0, mp - m_rows), (0, 0)))   # zero rows: no effect on stats
    mt = mp // tm

    out = pl.pallas_call(
        functools.partial(_fused_conv_bn_relu_kernel,
                          m_total=m_real, eps=EPS, tm=tm),
        out_shape=jax.ShapeDtypeStruct((mp, co), out_dtype),
        grid=(2, mt),
        in_specs=[
            pl.BlockSpec((tm, k_dim), lambda p, i: (i * (1 - p), 0)),  # pin in phase 1
            pl.BlockSpec((k_dim, co), lambda p, i: (0, 0)),            # resident weights
            pl.BlockSpec((1, co), lambda p, i: (0, 0)),
            pl.BlockSpec((1, co), lambda p, i: (0, 0)),
        ],
        # phase 0: stay on block 0 (never written back); phase 1: tile i.
        out_specs=pl.BlockSpec((tm, co), lambda p, i: (i * p, 0)),
        scratch_shapes=[
            pltpu.VMEM((mp, co), jnp.float32),   # conv output, VMEM resident
            pltpu.VMEM((8, co), jnp.float32),    # stats + hoisted scale/shift
        ],
        compiler_params=pltpu.CompilerParams(
            dimension_semantics=("arbitrary", "arbitrary"),
            vmem_limit_bytes=_VMEM_LIMIT,
        ),
    )(a, b, gamma, beta)
    return out[:m_real]


def basic_conv2d(x_nhwc, w, gamma, beta, *, stride, pad, out_dtype=jnp.float32):
    # x: NHWC (channels possibly zero-padded); w: PyTorch (Cout, Cin, KH, KW).
    # Returns NHWC with Cout zero-padded up to a multiple of 128.
    n, h, wdt, cin_x = x_nhwc.shape
    cout, cin_w, kh, kw = w.shape
    x_nhwc = x_nhwc.astype(jnp.bfloat16)   # patches materialize in bf16

    if cin_x != cin_w:   # input channels zero-padded upstream -> pad weight Cin
        w = jnp.pad(w, ((0, 0), (0, cin_x - cin_w), (0, 0), (0, 0)))
    co_p = _round_up(cout, 128)
    if co_p != cout:     # lane-dense output stores; padded channels stay exactly 0
        w = jnp.pad(w, ((0, co_p - cout), (0, 0), (0, 0), (0, 0)))
        gamma = jnp.pad(gamma, (0, co_p - cout))
        beta = jnp.pad(beta, (0, co_p - cout))

    if kh == 1 and kw == 1 and stride == 1 and pad == 0:
        ho, wo = h, wdt
        a = x_nhwc.reshape(n * h * wdt, cin_x)
        b = jnp.transpose(w.reshape(co_p, cin_x)).astype(jnp.bfloat16)
    else:
        # One fused XLA gather; feature ordering is channel-major (cin, kh, kw).
        patches = jax.lax.conv_general_dilated_patches(
            x_nhwc,
            filter_shape=(kh, kw),
            window_strides=(stride, stride),
            padding=((pad, pad), (pad, pad)),
            dimension_numbers=("NHWC", "HWIO", "NHWC"),
        )
        ho, wo = patches.shape[1], patches.shape[2]
        a = patches.reshape(n * ho * wo, cin_x * kh * kw)
        b = jnp.transpose(w, (1, 2, 3, 0)).reshape(
            cin_x * kh * kw, co_p).astype(jnp.bfloat16)

    m_real = n * ho * wo
    y = _conv_bn_relu(a, b,
                      gamma.reshape(1, co_p).astype(jnp.float32),
                      beta.reshape(1, co_p).astype(jnp.float32),
                      m_real, out_dtype)
    return y.reshape(n, ho, wo, co_p)


# ----------------------------------------------------------------------------
# MaxPool2d((3,3), stride 2): one block per batch image, input read once.
# ----------------------------------------------------------------------------
def _maxpool_kernel(x_ref, o_ref, *, ho, wo):
    # x_ref: (H, W, C); o_ref: (ho, wo, C)
    # Horizontal 3-tap max at stride 2 via strided sublane reads.
    c0 = x_ref[:, pl.ds(0, wo, stride=2), :]
    c1 = x_ref[:, pl.ds(1, wo, stride=2), :]
    c2 = x_ref[:, pl.ds(2, wo, stride=2), :]
    hmax = jnp.maximum(jnp.maximum(c0, c1), c2)          # (H, wo, C)
    # Vertical 3-tap max at stride 2 via a major-dim regroup (rows 2j,2j+1,2j+2).
    c = hmax.shape[-1]
    ev = hmax[0:2 * ho].reshape(ho, 2, wo, c)
    nx = hmax[1:2 * ho + 1].reshape(ho, 2, wo, c)
    o_ref[...] = jnp.maximum(jnp.maximum(ev[:, 0], ev[:, 1]), nx[:, 1])


def maxpool_3x3_s2(x_nhwc):
    n, h, w, c = x_nhwc.shape
    ho = (h - 3) // 2 + 1
    wo = (w - 3) // 2 + 1
    return pl.pallas_call(
        functools.partial(_maxpool_kernel, ho=ho, wo=wo),
        out_shape=jax.ShapeDtypeStruct((n, ho, wo, c), x_nhwc.dtype),
        grid=(n,),
        in_specs=[pl.BlockSpec((None, h, w, c), lambda b: (b, 0, 0, 0))],
        out_specs=pl.BlockSpec((None, ho, wo, c), lambda b: (b, 0, 0, 0)),
        compiler_params=pltpu.CompilerParams(
            dimension_semantics=("parallel",),
        ),
    )(x_nhwc)


# ----------------------------------------------------------------------------
# ReductionA forward (architecture config is static; params are arrays only)
# ----------------------------------------------------------------------------
def reduction_a(x_nchw, params):
    x = jnp.transpose(x_nchw, (0, 2, 3, 1))  # NCHW -> NHWC (f32)

    # branch_0: 3x3 stride-2 conv
    wt, ga, be = params["branch_0"][0]
    n_ch = wt.shape[0]
    b0 = basic_conv2d(x, wt, ga, be, stride=2, pad=0)[..., :n_ch]

    # branch_1: 1x1 s1 -> 3x3 s1 p1 -> 3x3 s2 (bf16 intermediate activations)
    strides_pads = ((1, 0), (1, 1), (2, 0))
    h1 = x
    n_layers = len(params["branch_1"])
    for li, ((wt, ga, be), (s, p)) in enumerate(zip(params["branch_1"], strides_pads)):
        last = li == n_layers - 1
        h1 = basic_conv2d(h1, wt, ga, be, stride=s, pad=p,
                          out_dtype=jnp.float32 if last else jnp.bfloat16)
    m_ch = params["branch_1"][-1][0].shape[0]
    b1 = h1[..., :m_ch]

    # branch_2: MaxPool2d((3,3), stride 2) on the original f32 input
    b2 = maxpool_3x3_s2(x)

    # TODO(synk): each branch could write directly into its channel slice of a
    # preallocated NHWC buffer (out_spec channel offset) to drop this concat copy.
    out = jnp.concatenate([b0, b1, b2], axis=-1)
    return jnp.transpose(out, (0, 3, 1, 2))  # back to NCHW


# ----------------------------------------------------------------------------
# Plain-JAX reference mirroring the Pallas numerics (bf16 matmul / bf16
# intermediates / f32 BN) for validation.
# ----------------------------------------------------------------------------
def _reference_forward(x_nchw, params):
    x = jnp.transpose(x_nchw, (0, 2, 3, 1))

    def conv_bn_relu(h, w, gamma, beta, stride, pad, out_dtype=jnp.float32):
        y = jax.lax.conv_general_dilated(
            h.astype(jnp.bfloat16),
            jnp.transpose(w, (2, 3, 1, 0)).astype(jnp.bfloat16),
            window_strides=(stride, stride),
            padding=((pad, pad), (pad, pad)),
            dimension_numbers=("NHWC", "HWIO", "NHWC"),
            preferred_element_type=jnp.float32,
        )
        mean = jnp.mean(y, axis=(0, 1, 2), keepdims=True)
        var = jnp.mean((y - mean) ** 2, axis=(0, 1, 2), keepdims=True)
        yhat = (y - mean) * jax.lax.rsqrt(var + EPS)
        return jnp.maximum(yhat * gamma + beta, 0.0).astype(out_dtype)

    wt, ga, be = params["branch_0"][0]
    b0 = conv_bn_relu(x, wt, ga, be, 2, 0)
    h1 = x
    sp = ((1, 0), (1, 1), (2, 0))
    for li, ((wt, ga, be), (s, p)) in enumerate(zip(params["branch_1"], sp)):
        last = li == len(params["branch_1"]) - 1
        h1 = conv_bn_relu(h1, wt, ga, be, s, p,
                          jnp.float32 if last else jnp.bfloat16)
    b2 = jax.lax.reduce_window(x, -jnp.inf, jax.lax.max,
                               (1, 3, 3, 1), (1, 2, 2, 1), "VALID")
    out = jnp.concatenate([b0, h1.astype(jnp.float32), b2], axis=-1)
    return jnp.transpose(out, (0, 3, 1, 2))


# ----------------------------------------------------------------------------
# Deterministic parameters + smoke test
# ----------------------------------------------------------------------------
def make_params(key, in_channels, k, l, m, n):
    def conv_bn(kk, cin, cout, kh, kw):
        k1, k2, k3 = jax.random.split(kk, 3)
        w = jax.random.normal(k1, (cout, cin, kh, kw), jnp.float32) * 0.05
        gamma = 1.0 + 0.1 * jax.random.normal(k2, (cout,), jnp.float32)
        beta = 0.1 * jax.random.normal(k3, (cout,), jnp.float32)
        return (w, gamma, beta)

    keys = jax.random.split(key, 5)
    params = {
        "branch_0": [conv_bn(keys[0], in_channels, n, 3, 3)],
        "branch_1": [
            conv_bn(keys[1], in_channels, k, 1, 1),
            conv_bn(keys[2], k, l, 3, 3),
            conv_bn(keys[3], l, m, 3, 3),
        ],
    }
    return params, keys[4]


if __name__ == "__main__":
    batch, in_channels, spatial = 2, 64, 17
    k, l, m, n = 64, 96, 128, 128

    key = jax.random.PRNGKey(0)
    params, key_x = make_params(key, in_channels, k, l, m, n)
    x = jax.random.normal(key_x, (batch, in_channels, spatial, spatial), jnp.float32)

    out = jax.block_until_ready(jax.jit(reduction_a)(x, params))

    ho = (spatial - 3) // 2 + 1
    expected = (batch, n + m + in_channels, ho, ho)
    assert out.shape == expected, (out.shape, expected)
    assert bool(jnp.all(jnp.isfinite(out)))

    ref = jax.block_until_ready(jax.jit(_reference_forward)(x, params))
    max_err = float(jnp.max(jnp.abs(out - ref)))
    assert max_err < 0.25, f"max abs error vs reference: {max_err}"

    print("KERNEL_OK")
</pallas_src>

<mosaic_0001>
module attributes {stable_mosaic.version = 11 : i64} {
  func.func @_fused_conv_bn_relu_kernel(%arg0: i32, %arg1: i32, %arg2: memref<584x64xbf16, #tpu.memory_space<vmem>>, %arg3: memref<64x128xbf16, #tpu.memory_space<vmem>>, %arg4: memref<1x128xf32, #tpu.memory_space<vmem>>, %arg5: memref<1x128xf32, #tpu.memory_space<vmem>>, %arg6: memref<584x128xbf16, #tpu.memory_space<vmem>>, %arg7: memref<584x128xf32, #tpu.memory_space<vmem>>, %arg8: memref<8x128xf32, #tpu.memory_space<vmem>>) attributes {dimension_semantics = [#tpu.dimension_semantics<arbitrary>, #tpu.dimension_semantics<arbitrary>], iteration_bounds = array<i64: 2, 1>, scalar_prefetch = 0 : i64, scratch_operands = 2 : i64, tpu.core_type = #tpu.core_type<tc>, window_params = [{transform_indices = @transform_0, window_bounds = array<i64: 584, 64>}, {pipeline_mode = #tpu.pipeline_mode<synchronous>, transform_indices = @transform_1, window_bounds = array<i64: 64, 128>}, {pipeline_mode = #tpu.pipeline_mode<synchronous>, transform_indices = @transform_2, window_bounds = array<i64: 1, 128>}, {pipeline_mode = #tpu.pipeline_mode<synchronous>, transform_indices = @transform_3, window_bounds = array<i64: 1, 128>}, {transform_indices = @transform_4, window_bounds = array<i64: 584, 128>}]} {
    %c584_i32 = arith.constant 584 : i32
    %0 = arith.muli %arg1, %c584_i32 : i32
    %1 = tpu.assume_multiple %0, 8 : i32
    %c0_i32 = arith.constant 0 : i32
    %2 = arith.cmpi eq, %arg0, %c0_i32 : i32
    %3 = arith.extui %2 : i1 to i32
    %c0_i32_0 = arith.constant 0 : i32
    %4 = arith.cmpi ne, %3, %c0_i32_0 : i32
    scf.if %4 {
      %c0_i32_2 = arith.constant 0 : i32
      %8 = arith.cmpi eq, %arg1, %c0_i32_2 : i32
      %9 = arith.extui %8 : i1 to i32
      %c0_i32_3 = arith.constant 0 : i32
      %10 = arith.cmpi ne, %9, %c0_i32_3 : i32
      scf.if %10 {
        %cst_17 = arith.constant 0.000000e+00 : f32
        %27 = vector.broadcast %cst_17 : f32 to vector<8x128xf32>
        %c0_18 = arith.constant 0 : index
        %c0_19 = arith.constant 0 : index
        %28 = vector.load %arg8[%c0_18, %c0_19] : memref<8x128xf32, #tpu.memory_space<vmem>>, vector<8x128xf32>
        tpu.vector_store %arg8[%c0_18, %c0_19], %27 {strides = array<i32>} : memref<8x128xf32, #tpu.memory_space<vmem>>, vector<8x128xf32>,
      } else {
      }
      %c0 = arith.constant 0 : index
      %c0_4 = arith.constant 0 : index
      %11 = vector.load %arg2[%c0, %c0_4] : memref<584x64xbf16, #tpu.memory_space<vmem>>, vector<584x64xbf16>
      %c0_5 = arith.constant 0 : index
      %c0_6 = arith.constant 0 : index
      %12 = vector.load %arg3[%c0_5, %c0_6] : memref<64x128xbf16, #tpu.memory_space<vmem>>, vector<64x128xbf16>
      %cst = arith.constant dense<0.000000e+00> : vector<584x128xf32>
      %13 = tpu.matmul %11, %12, %cst {dimension_numbers = #tpu.dot_dimension_numbers<[1], [0], [0], [1], [0, 0, 1, 1], [], []>} : vector<584x64xbf16>, vector<64x128xbf16>, vector<584x128xf32> -> vector<584x128xf32>
      %14 = arith.index_cast %1 : i32 to index
      %c0_7 = arith.constant 0 : index
      %15 = vector.load %arg7[%14, %c0_7] : memref<584x128xf32, #tpu.memory_space<vmem>>, vector<584x128xf32>
      tpu.vector_store %arg7[%14, %c0_7], %13 {strides = array<i32>} : memref<584x128xf32, #tpu.memory_space<vmem>>, vector<584x128xf32>,
      %c0_8 = arith.constant 0 : index
      %c0_9 = arith.constant 0 : index
      %16 = vector.load %arg8[%c0_8, %c0_9] : memref<8x128xf32, #tpu.memory_space<vmem>>, vector<1x128xf32>
      %cst_10 = arith.constant dense<0.000000e+00> : vector<128xf32>
      %17 = vector.multi_reduction <add>, %13, %cst_10 [0] : vector<584x128xf32> to vector<128xf32>
      %18 = vector.shape_cast %17 : vector<128xf32> to vector<1x128xf32>
      %19 = arith.addf %16, %18 : vector<1x128xf32>
      %c0_11 = arith.constant 0 : index
      %c0_12 = arith.constant 0 : index
      %20 = vector.load %arg8[%c0_11, %c0_12] : memref<8x128xf32, #tpu.memory_space<vmem>>, vector<1x128xf32>
      tpu.vector_store %arg8[%c0_11, %c0_12], %19 {strides = array<i32>} : memref<8x128xf32, #tpu.memory_space<vmem>>, vector<1x128xf32>,
      %c1 = arith.constant 1 : index
      %c0_13 = arith.constant 0 : index
      %21 = vector.load %arg8[%c1, %c0_13] : memref<8x128xf32, #tpu.memory_space<vmem>>, vector<1x128xf32>
      %22 = arith.mulf %13, %13 : vector<584x128xf32>
      %cst_14 = arith.constant dense<0.000000e+00> : vector<128xf32>
      %23 = vector.multi_reduction <add>, %22, %cst_14 [0] : vector<584x128xf32> to vector<128xf32>
      %24 = vector.shape_cast %23 : vector<128xf32> to vector<1x128xf32>
      %25 = arith.addf %21, %24 : vector<1x128xf32>
      %c1_15 = arith.constant 1 : index
      %c0_16 = arith.constant 0 : index
      %26 = vector.load %arg8[%c1_15, %c0_16] : memref<8x128xf32, #tpu.memory_space<vmem>>, vector<1x128xf32>
      tpu.vector_store %arg8[%c1_15, %c0_16], %25 {strides = array<i32>} : memref<8x128xf32, #tpu.memory_space<vmem>>, vector<1x128xf32>,
    } else {
    }
    %c1_i32 = arith.constant 1 : i32
    %5 = arith.cmpi eq, %arg0, %c1_i32 : i32
    %6 = arith.extui %5 : i1 to i32
    %c0_i32_1 = arith.constant 0 : i32
    %7 = arith.cmpi ne, %6, %c0_i32_1 : i32
    scf.if %7 {
      %c0_i32_2 = arith.constant 0 : i32
      %8 = arith.cmpi eq, %arg1, %c0_i32_2 : i32
      %9 = arith.extui %8 : i1 to i32
      %c0_i32_3 = arith.constant 0 : i32
      %10 = arith.cmpi ne, %9, %c0_i32_3 : i32
      scf.if %10 {
        %c0_8 = arith.constant 0 : index
        %c0_9 = arith.constant 0 : index
        %23 = vector.load %arg8[%c0_8, %c0_9] : memref<8x128xf32, #tpu.memory_space<vmem>>, vector<1x128xf32>
        %cst_10 = arith.constant 0.00173010386 : f32
        %24 = vector.broadcast %cst_10 : f32 to vector<1x128xf32>
        %25 = arith.mulf %23, %24 : vector<1x128xf32>
        %c1 = arith.constant 1 : index
        %c0_11 = arith.constant 0 : index
        %26 = vector.load %arg8[%c1, %c0_11] : memref<8x128xf32, #tpu.memory_space<vmem>>, vector<1x128xf32>
        %cst_12 = arith.constant 0.00173010386 : f32
        %27 = vector.broadcast %cst_12 : f32 to vector<1x128xf32>
        %28 = arith.mulf %26, %27 : vector<1x128xf32>
        %29 = arith.mulf %25, %25 : vector<1x128xf32>
        %30 = arith.subf %28, %29 : vector<1x128xf32>
        %cst_13 = arith.constant 0.000000e+00 : f32
        %31 = vector.broadcast %cst_13 : f32 to vector<1x128xf32>
        %32 = arith.maximumf %30, %31 : vector<1x128xf32>
        %c0_14 = arith.constant 0 : index
        %c0_15 = arith.constant 0 : index
        %33 = vector.load %arg4[%c0_14, %c0_15] : memref<1x128xf32, #tpu.memory_space<vmem>>, vector<1x128xf32>
        %cst_16 = arith.constant 1.000000e-03 : f32
        %34 = vector.broadcast %cst_16 : f32 to vector<1x128xf32>
        %35 = arith.addf %32, %34 : vector<1x128xf32>
        %36 = math.rsqrt %35 : vector<1x128xf32>
        %37 = arith.mulf %33, %36 : vector<1x128xf32>
        %c2_17 = arith.constant 2 : index
        %c0_18 = arith.constant 0 : index
        %38 = vector.load %arg8[%c2_17, %c0_18] : memref<8x128xf32, #tpu.memory_space<vmem>>, vector<1x128xf32>
        tpu.vector_store %arg8[%c2_17, %c0_18], %37 {strides = array<i32>} : memref<8x128xf32, #tpu.memory_space<vmem>>, vector<1x128xf32>,
        %c0_19 = arith.constant 0 : index
        %c0_20 = arith.constant 0 : index
        %39 = vector.load %arg5[%c0_19, %c0_20] : memref<1x128xf32, #tpu.memory_space<vmem>>, vector<1x128xf32>
        %40 = arith.mulf %25, %37 : vector<1x128xf32>
        %41 = arith.subf %39, %40 : vector<1x128xf32>
        %c3_21 = arith.constant 3 : index
        %c0_22 = arith.constant 0 : index
        %42 = vector.load %arg8[%c3_21, %c0_22] : memref<8x128xf32, #tpu.memory_space<vmem>>, vector<1x128xf32>
        tpu.vector_store %arg8[%c3_21, %c0_22], %41 {strides = array<i32>} : memref<8x128xf32, #tpu.memory_space<vmem>>, vector<1x128xf32>,
      } else {
      }
      %11 = arith.index_cast %1 : i32 to index
      %c0 = arith.constant 0 : index
      %12 = vector.load %arg7[%11, %c0] : memref<584x128xf32, #tpu.memory_space<vmem>>, vector<584x128xf32>
      %c2 = arith.constant 2 : index
      %c0_4 = arith.constant 0 : index
      %13 = vector.load %arg8[%c2, %c0_4] : memref<8x128xf32, #tpu.memory_space<vmem>>, vector<1x128xf32>
      %14 = vector.broadcast %13 : vector<1x128xf32> to vector<584x128xf32>
      %15 = arith.mulf %12, %14 : vector<584x128xf32>
      %c3 = arith.constant 3 : index
      %c0_5 = arith.constant 0 : index
      %16 = vector.load %arg8[%c3, %c0_5] : memref<8x128xf32, #tpu.memory_space<vmem>>, vector<1x128xf32>
      %17 = vector.broadcast %16 : vector<1x128xf32> to vector<584x128xf32>
      %18 = arith.addf %15, %17 : vector<584x128xf32>
      %cst = arith.constant 0.000000e+00 : f32
      %19 = vector.broadcast %cst : f32 to vector<584x128xf32>
      %20 = arith.maximumf %18, %19 : vector<584x128xf32>
      %21 = arith.truncf %20 : vector<584x128xf32> to vector<584x128xbf16>
      %c0_6 = arith.constant 0 : index
      %c0_7 = arith.constant 0 : index
      %22 = vector.load %arg6[%c0_6, %c0_7] : memref<584x128xbf16, #tpu.memory_space<vmem>>, vector<584x128xbf16>
      tpu.vector_store %arg6[%c0_6, %c0_7], %21 {strides = array<i32>} : memref<584x128xbf16, #tpu.memory_space<vmem>>, vector<584x128xbf16>,
    } else {
    }
    return
  }
  func.func @transform_0(%arg0: i32, %arg1: i32) -> (i32, i32) {
    %c1_i32 = arith.constant 1 : i32
    %0 = arith.subi %c1_i32, %arg0 : i32
    %1 = arith.muli %arg1, %0 : i32
    %c0_i32 = arith.constant 0 : i32
    %c0_i32_0 = arith.constant 0 : i32
    return %1, %c0_i32 : i32, i32
  }
  func.func @transform_1(%arg0: i32, %arg1: i32) -> (i32, i32) {
    %c0_i32 = arith.constant 0 : i32
    %c0_i32_0 = arith.constant 0 : i32
    %c0_i32_1 = arith.constant 0 : i32
    return %c0_i32, %c0_i32_0 : i32, i32
  }
  func.func @transform_2(%arg0: i32, %arg1: i32) -> (i32, i32) {
    %c0_i32 = arith.constant 0 : i32
    %c0_i32_0 = arith.constant 0 : i32
    %c0_i32_1 = arith.constant 0 : i32
    return %c0_i32, %c0_i32_0 : i32, i32
  }
  func.func @transform_3(%arg0: i32, %arg1: i32) -> (i32, i32) {
    %c0_i32 = arith.constant 0 : i32
    %c0_i32_0 = arith.constant 0 : i32
    %c0_i32_1 = arith.constant 0 : i32
    return %c0_i32, %c0_i32_0 : i32, i32
  }
  func.func @transform_4(%arg0: i32, %arg1: i32) -> (i32, i32) {
    %0 = arith.muli %arg1, %arg0 : i32
    %c0_i32 = arith.constant 0 : i32
    %c0_i32_0 = arith.constant 0 : i32
    return %0, %c0_i32 : i32, i32
  }
}

module attributes {stable_mosaic.version = 11 : i64} {
  func.func @_fused_conv_bn_relu_kernel(%arg0: i32, %arg1: i32, %arg2: memref<584x1152xbf16, #tpu.memory_space<vmem>>, %arg3: memref<1152x128xbf16, #tpu.memory_space<vmem>>, %arg4: memref<1x128xf32, #tpu.memory_space<vmem>>, %arg5: memref<1x128xf32, #tpu.memory_space<vmem>>, %arg6: memref<584x128xbf16, #tpu.memory_space<vmem>>, %arg7: memref<584x128xf32, #tpu.memory_space<vmem>>, %arg8: memref<8x128xf32, #tpu.memory_space<vmem>>) attributes {dimension_semantics = [#tpu.dimension_semantics<arbitrary>, #tpu.dimension_semantics<arbitrary>], iteration_bounds = array<i64: 2, 1>, scalar_prefetch = 0 : i64, scratch_operands = 2 : i64, tpu.core_type = #tpu.core_type<tc>, window_params = [{transform_indices = @transform_0, window_bounds = array<i64: 584, 1152>}, {pipeline_mode = #tpu.pipeline_mode<synchronous>, transform_indices = @transform_1, window_bounds = array<i64: 1152, 128>}, {pipeline_mode = #tpu.pipeline_mode<synchronous>, transform_indices = @transform_2, window_bounds = array<i64: 1, 128>}, {pipeline_mode = #tpu.pipeline_mode<synchronous>, transform_indices = @transform_3, window_bounds = array<i64: 1, 128>}, {transform_indices = @transform_4, window_bounds = array<i64: 584, 128>}]} {
    %c584_i32 = arith.constant 584 : i32
    %0 = arith.muli %arg1, %c584_i32 : i32
    %1 = tpu.assume_multiple %0, 8 : i32
    %c0_i32 = arith.constant 0 : i32
    %2 = arith.cmpi eq, %arg0, %c0_i32 : i32
    %3 = arith.extui %2 : i1 to i32
    %c0_i32_0 = arith.constant 0 : i32
    %4 = arith.cmpi ne, %3, %c0_i32_0 : i32
    scf.if %4 {
      %c0_i32_2 = arith.constant 0 : i32
      %8 = arith.cmpi eq, %arg1, %c0_i32_2 : i32
      %9 = arith.extui %8 : i1 to i32
      %c0_i32_3 = arith.constant 0 : i32
      %10 = arith.cmpi ne, %9, %c0_i32_3 : i32
      scf.if %10 {
        %cst_17 = arith.constant 0.000000e+00 : f32
        %27 = vector.broadcast %cst_17 : f32 to vector<8x128xf32>
        %c0_18 = arith.constant 0 : index
        %c0_19 = arith.constant 0 : index
        %28 = vector.load %arg8[%c0_18, %c0_19] : memref<8x128xf32, #tpu.memory_space<vmem>>, vector<8x128xf32>
        tpu.vector_store %arg8[%c0_18, %c0_19], %27 {strides = array<i32>} : memref<8x128xf32, #tpu.memory_space<vmem>>, vector<8x128xf32>,
      } else {
      }
      %c0 = arith.constant 0 : index
      %c0_4 = arith.constant 0 : index
      %11 = vector.load %arg2[%c0, %c0_4] : memref<584x1152xbf16, #tpu.memory_space<vmem>>, vector<584x1152xbf16>
      %c0_5 = arith.constant 0 : index
      %c0_6 = arith.constant 0 : index
      %12 = vector.load %arg3[%c0_5, %c0_6] : memref<1152x128xbf16, #tpu.memory_space<vmem>>, vector<1152x128xbf16>
      %cst = arith.constant dense<0.000000e+00> : vector<584x128xf32>
      %13 = tpu.matmul %11, %12, %cst {dimension_numbers = #tpu.dot_dimension_numbers<[1], [0], [0], [1], [0, 0, 1, 1], [], []>} : vector<584x1152xbf16>, vector<1152x128xbf16>, vector<584x128xf32> -> vector<584x128xf32>
      %14 = arith.index_cast %1 : i32 to index
      %c0_7 = arith.constant 0 : index
      %15 = vector.load %arg7[%14, %c0_7] : memref<584x128xf32, #tpu.memory_space<vmem>>, vector<584x128xf32>
      tpu.vector_store %arg7[%14, %c0_7], %13 {strides = array<i32>} : memref<584x128xf32, #tpu.memory_space<vmem>>, vector<584x128xf32>,
      %c0_8 = arith.constant 0 : index
      %c0_9 = arith.constant 0 : index
      %16 = vector.load %arg8[%c0_8, %c0_9] : memref<8x128xf32, #tpu.memory_space<vmem>>, vector<1x128xf32>
      %cst_10 = arith.constant dense<0.000000e+00> : vector<128xf32>
      %17 = vector.multi_reduction <add>, %13, %cst_10 [0] : vector<584x128xf32> to vector<128xf32>
      %18 = vector.shape_cast %17 : vector<128xf32> to vector<1x128xf32>
      %19 = arith.addf %16, %18 : vector<1x128xf32>
      %c0_11 = arith.constant 0 : index
      %c0_12 = arith.constant 0 : index
      %20 = vector.load %arg8[%c0_11, %c0_12] : memref<8x128xf32, #tpu.memory_space<vmem>>, vector<1x128xf32>
      tpu.vector_store %arg8[%c0_11, %c0_12], %19 {strides = array<i32>} : memref<8x128xf32, #tpu.memory_space<vmem>>, vector<1x128xf32>,
      %c1 = arith.constant 1 : index
      %c0_13 = arith.constant 0 : index
      %21 = vector.load %arg8[%c1, %c0_13] : memref<8x128xf32, #tpu.memory_space<vmem>>, vector<1x128xf32>
      %22 = arith.mulf %13, %13 : vector<584x128xf32>
      %cst_14 = arith.constant dense<0.000000e+00> : vector<128xf32>
      %23 = vector.multi_reduction <add>, %22, %cst_14 [0] : vector<584x128xf32> to vector<128xf32>
      %24 = vector.shape_cast %23 : vector<128xf32> to vector<1x128xf32>
      %25 = arith.addf %21, %24 : vector<1x128xf32>
      %c1_15 = arith.constant 1 : index
      %c0_16 = arith.constant 0 : index
      %26 = vector.load %arg8[%c1_15, %c0_16] : memref<8x128xf32, #tpu.memory_space<vmem>>, vector<1x128xf32>
      tpu.vector_store %arg8[%c1_15, %c0_16], %25 {strides = array<i32>} : memref<8x128xf32, #tpu.memory_space<vmem>>, vector<1x128xf32>,
    } else {
    }
    %c1_i32 = arith.constant 1 : i32
    %5 = arith.cmpi eq, %arg0, %c1_i32 : i32
    %6 = arith.extui %5 : i1 to i32
    %c0_i32_1 = arith.constant 0 : i32
    %7 = arith.cmpi ne, %6, %c0_i32_1 : i32
    scf.if %7 {
      %c0_i32_2 = arith.constant 0 : i32
      %8 = arith.cmpi eq, %arg1, %c0_i32_2 : i32
      %9 = arith.extui %8 : i1 to i32
      %c0_i32_3 = arith.constant 0 : i32
      %10 = arith.cmpi ne, %9, %c0_i32_3 : i32
      scf.if %10 {
        %c0_8 = arith.constant 0 : index
        %c0_9 = arith.constant 0 : index
        %23 = vector.load %arg8[%c0_8, %c0_9] : memref<8x128xf32, #tpu.memory_space<vmem>>, vector<1x128xf32>
        %cst_10 = arith.constant 0.00173010386 : f32
        %24 = vector.broadcast %cst_10 : f32 to vector<1x128xf32>
        %25 = arith.mulf %23, %24 : vector<1x128xf32>
        %c1 = arith.constant 1 : index
        %c0_11 = arith.constant 0 : index
        %26 = vector.load %arg8[%c1, %c0_11] : memref<8x128xf32, #tpu.memory_space<vmem>>, vector<1x128xf32>
        %cst_12 = arith.constant 0.00173010386 : f32
        %27 = vector.broadcast %cst_12 : f32 to vector<1x128xf32>
        %28 = arith.mulf %26, %27 : vector<1x128xf32>
        %29 = arith.mulf %25, %25 : vector<1x128xf32>
        %30 = arith.subf %28, %29 : vector<1x128xf32>
        %cst_13 = arith.constant 0.000000e+00 : f32
        %31 = vector.broadcast %cst_13 : f32 to vector<1x128xf32>
        %32 = arith.maximumf %30, %31 : vector<1x128xf32>
        %c0_14 = arith.constant 0 : index
        %c0_15 = arith.constant 0 : index
        %33 = vector.load %arg4[%c0_14, %c0_15] : memref<1x128xf32, #tpu.memory_space<vmem>>, vector<1x128xf32>
        %cst_16 = arith.constant 1.000000e-03 : f32
        %34 = vector.broadcast %cst_16 : f32 to vector<1x128xf32>
        %35 = arith.addf %32, %34 : vector<1x128xf32>
        %36 = math.rsqrt %35 : vector<1x128xf32>
        %37 = arith.mulf %33, %36 : vector<1x128xf32>
        %c2_17 = arith.constant 2 : index
        %c0_18 = arith.constant 0 : index
        %38 = vector.load %arg8[%c2_17, %c0_18] : memref<8x128xf32, #tpu.memory_space<vmem>>, vector<1x128xf32>
        tpu.vector_store %arg8[%c2_17, %c0_18], %37 {strides = array<i32>} : memref<8x128xf32, #tpu.memory_space<vmem>>, vector<1x128xf32>,
        %c0_19 = arith.constant 0 : index
        %c0_20 = arith.constant 0 : index
        %39 = vector.load %arg5[%c0_19, %c0_20] : memref<1x128xf32, #tpu.memory_space<vmem>>, vector<1x128xf32>
        %40 = arith.mulf %25, %37 : vector<1x128xf32>
        %41 = arith.subf %39, %40 : vector<1x128xf32>
        %c3_21 = arith.constant 3 : index
        %c0_22 = arith.constant 0 : index
        %42 = vector.load %arg8[%c3_21, %c0_22] : memref<8x128xf32, #tpu.memory_space<vmem>>, vector<1x128xf32>
        tpu.vector_store %arg8[%c3_21, %c0_22], %41 {strides = array<i32>} : memref<8x128xf32, #tpu.memory_space<vmem>>, vector<1x128xf32>,
      } else {
      }
      %11 = arith.index_cast %1 : i32 to index
      %c0 = arith.constant 0 : index
      %12 = vector.load %arg7[%11, %c0] : memref<584x128xf32, #tpu.memory_space<vmem>>, vector<584x128xf32>
      %c2 = arith.constant 2 : index
      %c0_4 = arith.constant 0 : index
      %13 = vector.load %arg8[%c2, %c0_4] : memref<8x128xf32, #tpu.memory_space<vmem>>, vector<1x128xf32>
      %14 = vector.broadcast %13 : vector<1x128xf32> to vector<584x128xf32>
      %15 = arith.mulf %12, %14 : vector<584x128xf32>
      %c3 = arith.constant 3 : index
      %c0_5 = arith.constant 0 : index
      %16 = vector.load %arg8[%c3, %c0_5] : memref<8x128xf32, #tpu.memory_space<vmem>>, vector<1x128xf32>
      %17 = vector.broadcast %16 : vector<1x128xf32> to vector<584x128xf32>
      %18 = arith.addf %15, %17 : vector<584x128xf32>
      %cst = arith.constant 0.000000e+00 : f32
      %19 = vector.broadcast %cst : f32 to vector<584x128xf32>
      %20 = arith.maximumf %18, %19 : vector<584x128xf32>
      %21 = arith.truncf %20 : vector<584x128xf32> to vector<584x128xbf16>
      %c0_6 = arith.constant 0 : index
      %c0_7 = arith.constant 0 : index
      %22 = vector.load %arg6[%c0_6, %c0_7] : memref<584x128xbf16, #tpu.memory_space<vmem>>, vector<584x128xbf16>
      tpu.vector_store %arg6[%c0_6, %c0_7], %21 {strides = array<i32>} : memref<584x128xbf16, #tpu.memory_space<vmem>>, vector<584x128xbf16>,
    } else {
    }
    return
  }
  func.func @transform_0(%arg0: i32, %arg1: i32) -> (i32, i32) {
    %c1_i32 = arith.constant 1 : i32
    %0 = arith.subi %c1_i32, %arg0 : i32
    %1 = arith.muli %arg1, %0 : i32
    %c0_i32 = arith.constant 0 : i32
    %c0_i32_0 = arith.constant 0 : i32
    return %1, %c0_i32 : i32, i32
  }
  func.func @transform_1(%arg0: i32, %arg1: i32) -> (i32, i32) {
    %c0_i32 = arith.constant 0 : i32
    %c0_i32_0 = arith.constant 0 : i32
    %c0_i32_1 = arith.constant 0 : i32
    return %c0_i32, %c0_i32_0 : i32, i32
  }
  func.func @transform_2(%arg0: i32, %arg1: i32) -> (i32, i32) {
    %c0_i32 = arith.constant 0 : i32
    %c0_i32_0 = arith.constant 0 : i32
    %c0_i32_1 = arith.constant 0 : i32
    return %c0_i32, %c0_i32_0 : i32, i32
  }
  func.func @transform_3(%arg0: i32, %arg1: i32) -> (i32, i32) {
    %c0_i32 = arith.constant 0 : i32
    %c0_i32_0 = arith.constant 0 : i32
    %c0_i32_1 = arith.constant 0 : i32
    return %c0_i32, %c0_i32_0 : i32, i32
  }
  func.func @transform_4(%arg0: i32, %arg1: i32) -> (i32, i32) {
    %0 = arith.muli %arg1, %arg0 : i32
    %c0_i32 = arith.constant 0 : i32
    %c0_i32_0 = arith.constant 0 : i32
    return %0, %c0_i32 : i32, i32
  }
}

module attributes {stable_mosaic.version = 11 : i64} {
  func.func @_fused_conv_bn_relu_kernel(%arg0: i32, %arg1: i32, %arg2: memref<128x1152xbf16, #tpu.memory_space<vmem>>, %arg3: memref<1152x128xbf16, #tpu.memory_space<vmem>>, %arg4: memref<1x128xf32, #tpu.memory_space<vmem>>, %arg5: memref<1x128xf32, #tpu.memory_space<vmem>>, %arg6: memref<128x128xf32, #tpu.memory_space<vmem>>, %arg7: memref<128x128xf32, #tpu.memory_space<vmem>>, %arg8: memref<8x128xf32, #tpu.memory_space<vmem>>) attributes {dimension_semantics = [#tpu.dimension_semantics<arbitrary>, #tpu.dimension_semantics<arbitrary>], iteration_bounds = array<i64: 2, 1>, scalar_prefetch = 0 : i64, scratch_operands = 2 : i64, tpu.core_type = #tpu.core_type<tc>, window_params = [{transform_indices = @transform_0, window_bounds = array<i64: 128, 1152>}, {pipeline_mode = #tpu.pipeline_mode<synchronous>, transform_indices = @transform_1, window_bounds = array<i64: 1152, 128>}, {pipeline_mode = #tpu.pipeline_mode<synchronous>, transform_indices = @transform_2, window_bounds = array<i64: 1, 128>}, {pipeline_mode = #tpu.pipeline_mode<synchronous>, transform_indices = @transform_3, window_bounds = array<i64: 1, 128>}, {transform_indices = @transform_4, window_bounds = array<i64: 128, 128>}]} {
    %c128_i32 = arith.constant 128 : i32
    %0 = arith.muli %arg1, %c128_i32 : i32
    %1 = tpu.assume_multiple %0, 8 : i32
    %c0_i32 = arith.constant 0 : i32
    %2 = arith.cmpi eq, %arg0, %c0_i32 : i32
    %3 = arith.extui %2 : i1 to i32
    %c0_i32_0 = arith.constant 0 : i32
    %4 = arith.cmpi ne, %3, %c0_i32_0 : i32
    scf.if %4 {
      %c0_i32_2 = arith.constant 0 : i32
      %8 = arith.cmpi eq, %arg1, %c0_i32_2 : i32
      %9 = arith.extui %8 : i1 to i32
      %c0_i32_3 = arith.constant 0 : i32
      %10 = arith.cmpi ne, %9, %c0_i32_3 : i32
      scf.if %10 {
        %cst_17 = arith.constant 0.000000e+00 : f32
        %27 = vector.broadcast %cst_17 : f32 to vector<8x128xf32>
        %c0_18 = arith.constant 0 : index
        %c0_19 = arith.constant 0 : index
        %28 = vector.load %arg8[%c0_18, %c0_19] : memref<8x128xf32, #tpu.memory_space<vmem>>, vector<8x128xf32>
        tpu.vector_store %arg8[%c0_18, %c0_19], %27 {strides = array<i32>} : memref<8x128xf32, #tpu.memory_space<vmem>>, vector<8x128xf32>,
      } else {
      }
      %c0 = arith.constant 0 : index
      %c0_4 = arith.constant 0 : index
      %11 = vector.load %arg2[%c0, %c0_4] : memref<128x1152xbf16, #tpu.memory_space<vmem>>, vector<128x1152xbf16>
      %c0_5 = arith.constant 0 : index
      %c0_6 = arith.constant 0 : index
      %12 = vector.load %arg3[%c0_5, %c0_6] : memref<1152x128xbf16, #tpu.memory_space<vmem>>, vector<1152x128xbf16>
      %cst = arith.constant dense<0.000000e+00> : vector<128x128xf32>
      %13 = tpu.matmul %11, %12, %cst {dimension_numbers = #tpu.dot_dimension_numbers<[1], [0], [0], [1], [0, 0, 1, 1], [], []>} : vector<128x1152xbf16>, vector<1152x128xbf16>, vector<128x128xf32> -> vector<128x128xf32>
      %14 = arith.index_cast %1 : i32 to index
      %c0_7 = arith.constant 0 : index
      %15 = vector.load %arg7[%14, %c0_7] : memref<128x128xf32, #tpu.memory_space<vmem>>, vector<128x128xf32>
      tpu.vector_store %arg7[%14, %c0_7], %13 {strides = array<i32>} : memref<128x128xf32, #tpu.memory_space<vmem>>, vector<128x128xf32>,
      %c0_8 = arith.constant 0 : index
      %c0_9 = arith.constant 0 : index
      %16 = vector.load %arg8[%c0_8, %c0_9] : memref<8x128xf32, #tpu.memory_space<vmem>>, vector<1x128xf32>
      %cst_10 = arith.constant dense<0.000000e+00> : vector<128xf32>
      %17 = vector.multi_reduction <add>, %13, %cst_10 [0] : vector<128x128xf32> to vector<128xf32>
      %18 = vector.shape_cast %17 : vector<128xf32> to vector<1x128xf32>
      %19 = arith.addf %16, %18 : vector<1x128xf32>
      %c0_11 = arith.constant 0 : index
      %c0_12 = arith.constant 0 : index
      %20 = vector.load %arg8[%c0_11, %c0_12] : memref<8x128xf32, #tpu.memory_space<vmem>>, vector<1x128xf32>
      tpu.vector_store %arg8[%c0_11, %c0_12], %19 {strides = array<i32>} : memref<8x128xf32, #tpu.memory_space<vmem>>, vector<1x128xf32>,
      %c1 = arith.constant 1 : index
      %c0_13 = arith.constant 0 : index
      %21 = vector.load %arg8[%c1, %c0_13] : memref<8x128xf32, #tpu.memory_space<vmem>>, vector<1x128xf32>
      %22 = arith.mulf %13, %13 : vector<128x128xf32>
      %cst_14 = arith.constant dense<0.000000e+00> : vector<128xf32>
      %23 = vector.multi_reduction <add>, %22, %cst_14 [0] : vector<128x128xf32> to vector<128xf32>
      %24 = vector.shape_cast %23 : vector<128xf32> to vector<1x128xf32>
      %25 = arith.addf %21, %24 : vector<1x128xf32>
      %c1_15 = arith.constant 1 : index
      %c0_16 = arith.constant 0 : index
      %26 = vector.load %arg8[%c1_15, %c0_16] : memref<8x128xf32, #tpu.memory_space<vmem>>, vector<1x128xf32>
      tpu.vector_store %arg8[%c1_15, %c0_16], %25 {strides = array<i32>} : memref<8x128xf32, #tpu.memory_space<vmem>>, vector<1x128xf32>,
    } else {
    }
    %c1_i32 = arith.constant 1 : i32
    %5 = arith.cmpi eq, %arg0, %c1_i32 : i32
    %6 = arith.extui %5 : i1 to i32
    %c0_i32_1 = arith.constant 0 : i32
    %7 = arith.cmpi ne, %6, %c0_i32_1 : i32
    scf.if %7 {
      %c0_i32_2 = arith.constant 0 : i32
      %8 = arith.cmpi eq, %arg1, %c0_i32_2 : i32
      %9 = arith.extui %8 : i1 to i32
      %c0_i32_3 = arith.constant 0 : i32
      %10 = arith.cmpi ne, %9, %c0_i32_3 : i32
      scf.if %10 {
        %c0_8 = arith.constant 0 : index
        %c0_9 = arith.constant 0 : index
        %22 = vector.load %arg8[%c0_8, %c0_9] : memref<8x128xf32, #tpu.memory_space<vmem>>, vector<1x128xf32>
        %cst_10 = arith.constant 7.812500e-03 : f32
        %23 = vector.broadcast %cst_10 : f32 to vector<1x128xf32>
        %24 = arith.mulf %22, %23 : vector<1x128xf32>
        %c1 = arith.constant 1 : index
        %c0_11 = arith.constant 0 : index
        %25 = vector.load %arg8[%c1, %c0_11] : memref<8x128xf32, #tpu.memory_space<vmem>>, vector<1x128xf32>
        %cst_12 = arith.constant 7.812500e-03 : f32
        %26 = vector.broadcast %cst_12 : f32 to vector<1x128xf32>
        %27 = arith.mulf %25, %26 : vector<1x128xf32>
        %28 = arith.mulf %24, %24 : vector<1x128xf32>
        %29 = arith.subf %27, %28 : vector<1x128xf32>
        %cst_13 = arith.constant 0.000000e+00 : f32
        %30 = vector.broadcast %cst_13 : f32 to vector<1x128xf32>
        %31 = arith.maximumf %29, %30 : vector<1x128xf32>
        %c0_14 = arith.constant 0 : index
        %c0_15 = arith.constant 0 : index
        %32 = vector.load %arg4[%c0_14, %c0_15] : memref<1x128xf32, #tpu.memory_space<vmem>>, vector<1x128xf32>
        %cst_16 = arith.constant 1.000000e-03 : f32
        %33 = vector.broadcast %cst_16 : f32 to vector<1x128xf32>
        %34 = arith.addf %31, %33 : vector<1x128xf32>
        %35 = math.rsqrt %34 : vector<1x128xf32>
        %36 = arith.mulf %32, %35 : vector<1x128xf32>
        %c2_17 = arith.constant 2 : index
        %c0_18 = arith.constant 0 : index
        %37 = vector.load %arg8[%c2_17, %c0_18] : memref<8x128xf32, #tpu.memory_space<vmem>>, vector<1x128xf32>
        tpu.vector_store %arg8[%c2_17, %c0_18], %36 {strides = array<i32>} : memref<8x128xf32, #tpu.memory_space<vmem>>, vector<1x128xf32>,
        %c0_19 = arith.constant 0 : index
        %c0_20 = arith.constant 0 : index
        %38 = vector.load %arg5[%c0_19, %c0_20] : memref<1x128xf32, #tpu.memory_space<vmem>>, vector<1x128xf32>
        %39 = arith.mulf %24, %36 : vector<1x128xf32>
        %40 = arith.subf %38, %39 : vector<1x128xf32>
        %c3_21 = arith.constant 3 : index
        %c0_22 = arith.constant 0 : index
        %41 = vector.load %arg8[%c3_21, %c0_22] : memref<8x128xf32, #tpu.memory_space<vmem>>, vector<1x128xf32>
        tpu.vector_store %arg8[%c3_21, %c0_22], %40 {strides = array<i32>} : memref<8x128xf32, #tpu.memory_space<vmem>>, vector<1x128xf32>,
      } else {
      }
      %11 = arith.index_cast %1 : i32 to index
      %c0 = arith.constant 0 : index
      %12 = vector.load %arg7[%11, %c0] : memref<128x128xf32, #tpu.memory_space<vmem>>, vector<128x128xf32>
      %c2 = arith.constant 2 : index
      %c0_4 = arith.constant 0 : index
      %13 = vector.load %arg8[%c2, %c0_4] : memref<8x128xf32, #tpu.memory_space<vmem>>, vector<1x128xf32>
      %14 = vector.broadcast %13 : vector<1x128xf32> to vector<128x128xf32>
      %15 = arith.mulf %12, %14 : vector<128x128xf32>
      %c3 = arith.constant 3 : index
      %c0_5 = arith.constant 0 : index
      %16 = vector.load %arg8[%c3, %c0_5] : memref<8x128xf32, #tpu.memory_space<vmem>>, vector<1x128xf32>
      %17 = vector.broadcast %16 : vector<1x128xf32> to vector<128x128xf32>
      %18 = arith.addf %15, %17 : vector<128x128xf32>
      %cst = arith.constant 0.000000e+00 : f32
      %19 = vector.broadcast %cst : f32 to vector<128x128xf32>
      %20 = arith.maximumf %18, %19 : vector<128x128xf32>
      %c0_6 = arith.constant 0 : index
      %c0_7 = arith.constant 0 : index
      %21 = vector.load %arg6[%c0_6, %c0_7] : memref<128x128xf32, #tpu.memory_space<vmem>>, vector<128x128xf32>
      tpu.vector_store %arg6[%c0_6, %c0_7], %20 {strides = array<i32>} : memref<128x128xf32, #tpu.memory_space<vmem>>, vector<128x128xf32>,
    } else {
    }
    return
  }
  func.func @transform_0(%arg0: i32, %arg1: i32) -> (i32, i32) {
    %c1_i32 = arith.constant 1 : i32
    %0 = arith.subi %c1_i32, %arg0 : i32
    %1 = arith.muli %arg1, %0 : i32
    %c0_i32 = arith.constant 0 : i32
    %c0_i32_0 = arith.constant 0 : i32
    return %1, %c0_i32 : i32, i32
  }
  func.func @transform_1(%arg0: i32, %arg1: i32) -> (i32, i32) {
    %c0_i32 = arith.constant 0 : i32
    %c0_i32_0 = arith.constant 0 : i32
    %c0_i32_1 = arith.constant 0 : i32
    return %c0_i32, %c0_i32_0 : i32, i32
  }
  func.func @transform_2(%arg0: i32, %arg1: i32) -> (i32, i32) {
    %c0_i32 = arith.constant 0 : i32
    %c0_i32_0 = arith.constant 0 : i32
    %c0_i32_1 = arith.constant 0 : i32
    return %c0_i32, %c0_i32_0 : i32, i32
  }
  func.func @transform_3(%arg0: i32, %arg1: i32) -> (i32, i32) {
    %c0_i32 = arith.constant 0 : i32
    %c0_i32_0 = arith.constant 0 : i32
    %c0_i32_1 = arith.constant 0 : i32
    return %c0_i32, %c0_i32_0 : i32, i32
  }
  func.func @transform_4(%arg0: i32, %arg1: i32) -> (i32, i32) {
    %0 = arith.muli %arg1, %arg0 : i32
    %c0_i32 = arith.constant 0 : i32
    %c0_i32_0 = arith.constant 0 : i32
    return %0, %c0_i32 : i32, i32
  }
}

module attributes {stable_mosaic.version = 11 : i64} {
  func.func @_fused_conv_bn_relu_kernel(%arg0: i32, %arg1: i32, %arg2: memref<128x576xbf16, #tpu.memory_space<vmem>>, %arg3: memref<576x128xbf16, #tpu.memory_space<vmem>>, %arg4: memref<1x128xf32, #tpu.memory_space<vmem>>, %arg5: memref<1x128xf32, #tpu.memory_space<vmem>>, %arg6: memref<128x128xf32, #tpu.memory_space<vmem>>, %arg7: memref<128x128xf32, #tpu.memory_space<vmem>>, %arg8: memref<8x128xf32, #tpu.memory_space<vmem>>) attributes {dimension_semantics = [#tpu.dimension_semantics<arbitrary>, #tpu.dimension_semantics<arbitrary>], iteration_bounds = array<i64: 2, 1>, scalar_prefetch = 0 : i64, scratch_operands = 2 : i64, tpu.core_type = #tpu.core_type<tc>, window_params = [{transform_indices = @transform_0, window_bounds = array<i64: 128, 576>}, {pipeline_mode = #tpu.pipeline_mode<synchronous>, transform_indices = @transform_1, window_bounds = array<i64: 576, 128>}, {pipeline_mode = #tpu.pipeline_mode<synchronous>, transform_indices = @transform_2, window_bounds = array<i64: 1, 128>}, {pipeline_mode = #tpu.pipeline_mode<synchronous>, transform_indices = @transform_3, window_bounds = array<i64: 1, 128>}, {transform_indices = @transform_4, window_bounds = array<i64: 128, 128>}]} {
    %c128_i32 = arith.constant 128 : i32
    %0 = arith.muli %arg1, %c128_i32 : i32
    %1 = tpu.assume_multiple %0, 8 : i32
    %c0_i32 = arith.constant 0 : i32
    %2 = arith.cmpi eq, %arg0, %c0_i32 : i32
    %3 = arith.extui %2 : i1 to i32
    %c0_i32_0 = arith.constant 0 : i32
    %4 = arith.cmpi ne, %3, %c0_i32_0 : i32
    scf.if %4 {
      %c0_i32_2 = arith.constant 0 : i32
      %8 = arith.cmpi eq, %arg1, %c0_i32_2 : i32
      %9 = arith.extui %8 : i1 to i32
      %c0_i32_3 = arith.constant 0 : i32
      %10 = arith.cmpi ne, %9, %c0_i32_3 : i32
      scf.if %10 {
        %cst_17 = arith.constant 0.000000e+00 : f32
        %27 = vector.broadcast %cst_17 : f32 to vector<8x128xf32>
        %c0_18 = arith.constant 0 : index
        %c0_19 = arith.constant 0 : index
        %28 = vector.load %arg8[%c0_18, %c0_19] : memref<8x128xf32, #tpu.memory_space<vmem>>, vector<8x128xf32>
        tpu.vector_store %arg8[%c0_18, %c0_19], %27 {strides = array<i32>} : memref<8x128xf32, #tpu.memory_space<vmem>>, vector<8x128xf32>,
      } else {
      }
      %c0 = arith.constant 0 : index
      %c0_4 = arith.constant 0 : index
      %11 = vector.load %arg2[%c0, %c0_4] : memref<128x576xbf16, #tpu.memory_space<vmem>>, vector<128x576xbf16>
      %c0_5 = arith.constant 0 : index
      %c0_6 = arith.constant 0 : index
      %12 = vector.load %arg3[%c0_5, %c0_6] : memref<576x128xbf16, #tpu.memory_space<vmem>>, vector<576x128xbf16>
      %cst = arith.constant dense<0.000000e+00> : vector<128x128xf32>
      %13 = tpu.matmul %11, %12, %cst {dimension_numbers = #tpu.dot_dimension_numbers<[1], [0], [0], [1], [0, 0, 1, 1], [], []>} : vector<128x576xbf16>, vector<576x128xbf16>, vector<128x128xf32> -> vector<128x128xf32>
      %14 = arith.index_cast %1 : i32 to index
      %c0_7 = arith.constant 0 : index
      %15 = vector.load %arg7[%14, %c0_7] : memref<128x128xf32, #tpu.memory_space<vmem>>, vector<128x128xf32>
      tpu.vector_store %arg7[%14, %c0_7], %13 {strides = array<i32>} : memref<128x128xf32, #tpu.memory_space<vmem>>, vector<128x128xf32>,
      %c0_8 = arith.constant 0 : index
      %c0_9 = arith.constant 0 : index
      %16 = vector.load %arg8[%c0_8, %c0_9] : memref<8x128xf32, #tpu.memory_space<vmem>>, vector<1x128xf32>
      %cst_10 = arith.constant dense<0.000000e+00> : vector<128xf32>
      %17 = vector.multi_reduction <add>, %13, %cst_10 [0] : vector<128x128xf32> to vector<128xf32>
      %18 = vector.shape_cast %17 : vector<128xf32> to vector<1x128xf32>
      %19 = arith.addf %16, %18 : vector<1x128xf32>
      %c0_11 = arith.constant 0 : index
      %c0_12 = arith.constant 0 : index
      %20 = vector.load %arg8[%c0_11, %c0_12] : memref<8x128xf32, #tpu.memory_space<vmem>>, vector<1x128xf32>
      tpu.vector_store %arg8[%c0_11, %c0_12], %19 {strides = array<i32>} : memref<8x128xf32, #tpu.memory_space<vmem>>, vector<1x128xf32>,
      %c1 = arith.constant 1 : index
      %c0_13 = arith.constant 0 : index
      %21 = vector.load %arg8[%c1, %c0_13] : memref<8x128xf32, #tpu.memory_space<vmem>>, vector<1x128xf32>
      %22 = arith.mulf %13, %13 : vector<128x128xf32>
      %cst_14 = arith.constant dense<0.000000e+00> : vector<128xf32>
      %23 = vector.multi_reduction <add>, %22, %cst_14 [0] : vector<128x128xf32> to vector<128xf32>
      %24 = vector.shape_cast %23 : vector<128xf32> to vector<1x128xf32>
      %25 = arith.addf %21, %24 : vector<1x128xf32>
      %c1_15 = arith.constant 1 : index
      %c0_16 = arith.constant 0 : index
      %26 = vector.load %arg8[%c1_15, %c0_16] : memref<8x128xf32, #tpu.memory_space<vmem>>, vector<1x128xf32>
      tpu.vector_store %arg8[%c1_15, %c0_16], %25 {strides = array<i32>} : memref<8x128xf32, #tpu.memory_space<vmem>>, vector<1x128xf32>,
    } else {
    }
    %c1_i32 = arith.constant 1 : i32
    %5 = arith.cmpi eq, %arg0, %c1_i32 : i32
    %6 = arith.extui %5 : i1 to i32
    %c0_i32_1 = arith.constant 0 : i32
    %7 = arith.cmpi ne, %6, %c0_i32_1 : i32
    scf.if %7 {
      %c0_i32_2 = arith.constant 0 : i32
      %8 = arith.cmpi eq, %arg1, %c0_i32_2 : i32
      %9 = arith.extui %8 : i1 to i32
      %c0_i32_3 = arith.constant 0 : i32
      %10 = arith.cmpi ne, %9, %c0_i32_3 : i32
      scf.if %10 {
        %c0_8 = arith.constant 0 : index
        %c0_9 = arith.constant 0 : index
        %22 = vector.load %arg8[%c0_8, %c0_9] : memref<8x128xf32, #tpu.memory_space<vmem>>, vector<1x128xf32>
        %cst_10 = arith.constant 7.812500e-03 : f32
        %23 = vector.broadcast %cst_10 : f32 to vector<1x128xf32>
        %24 = arith.mulf %22, %23 : vector<1x128xf32>
        %c1 = arith.constant 1 : index
        %c0_11 = arith.constant 0 : index
        %25 = vector.load %arg8[%c1, %c0_11] : memref<8x128xf32, #tpu.memory_space<vmem>>, vector<1x128xf32>
        %cst_12 = arith.constant 7.812500e-03 : f32
        %26 = vector.broadcast %cst_12 : f32 to vector<1x128xf32>
        %27 = arith.mulf %25, %26 : vector<1x128xf32>
        %28 = arith.mulf %24, %24 : vector<1x128xf32>
        %29 = arith.subf %27, %28 : vector<1x128xf32>
        %cst_13 = arith.constant 0.000000e+00 : f32
        %30 = vector.broadcast %cst_13 : f32 to vector<1x128xf32>
        %31 = arith.maximumf %29, %30 : vector<1x128xf32>
        %c0_14 = arith.constant 0 : index
        %c0_15 = arith.constant 0 : index
        %32 = vector.load %arg4[%c0_14, %c0_15] : memref<1x128xf32, #tpu.memory_space<vmem>>, vector<1x128xf32>
        %cst_16 = arith.constant 1.000000e-03 : f32
        %33 = vector.broadcast %cst_16 : f32 to vector<1x128xf32>
        %34 = arith.addf %31, %33 : vector<1x128xf32>
        %35 = math.rsqrt %34 : vector<1x128xf32>
        %36 = arith.mulf %32, %35 : vector<1x128xf32>
        %c2_17 = arith.constant 2 : index
        %c0_18 = arith.constant 0 : index
        %37 = vector.load %arg8[%c2_17, %c0_18] : memref<8x128xf32, #tpu.memory_space<vmem>>, vector<1x128xf32>
        tpu.vector_store %arg8[%c2_17, %c0_18], %36 {strides = array<i32>} : memref<8x128xf32, #tpu.memory_space<vmem>>, vector<1x128xf32>,
        %c0_19 = arith.constant 0 : index
        %c0_20 = arith.constant 0 : index
        %38 = vector.load %arg5[%c0_19, %c0_20] : memref<1x128xf32, #tpu.memory_space<vmem>>, vector<1x128xf32>
        %39 = arith.mulf %24, %36 : vector<1x128xf32>
        %40 = arith.subf %38, %39 : vector<1x128xf32>
        %c3_21 = arith.constant 3 : index
        %c0_22 = arith.constant 0 : index
        %41 = vector.load %arg8[%c3_21, %c0_22] : memref<8x128xf32, #tpu.memory_space<vmem>>, vector<1x128xf32>
        tpu.vector_store %arg8[%c3_21, %c0_22], %40 {strides = array<i32>} : memref<8x128xf32, #tpu.memory_space<vmem>>, vector<1x128xf32>,
      } else {
      }
      %11 = arith.index_cast %1 : i32 to index
      %c0 = arith.constant 0 : index
      %12 = vector.load %arg7[%11, %c0] : memref<128x128xf32, #tpu.memory_space<vmem>>, vector<128x128xf32>
      %c2 = arith.constant 2 : index
      %c0_4 = arith.constant 0 : index
      %13 = vector.load %arg8[%c2, %c0_4] : memref<8x128xf32, #tpu.memory_space<vmem>>, vector<1x128xf32>
      %14 = vector.broadcast %13 : vector<1x128xf32> to vector<128x128xf32>
      %15 = arith.mulf %12, %14 : vector<128x128xf32>
      %c3 = arith.constant 3 : index
      %c0_5 = arith.constant 0 : index
      %16 = vector.load %arg8[%c3, %c0_5] : memref<8x128xf32, #tpu.memory_space<vmem>>, vector<1x128xf32>
      %17 = vector.broadcast %16 : vector<1x128xf32> to vector<128x128xf32>
      %18 = arith.addf %15, %17 : vector<128x128xf32>
      %cst = arith.constant 0.000000e+00 : f32
      %19 = vector.broadcast %cst : f32 to vector<128x128xf32>
      %20 = arith.maximumf %18, %19 : vector<128x128xf32>
      %c0_6 = arith.constant 0 : index
      %c0_7 = arith.constant 0 : index
      %21 = vector.load %arg6[%c0_6, %c0_7] : memref<128x128xf32, #tpu.memory_space<vmem>>, vector<128x128xf32>
      tpu.vector_store %arg6[%c0_6, %c0_7], %20 {strides = array<i32>} : memref<128x128xf32, #tpu.memory_space<vmem>>, vector<128x128xf32>,
    } else {
    }
    return
  }
  func.func @transform_0(%arg0: i32, %arg1: i32) -> (i32, i32) {
    %c1_i32 = arith.constant 1 : i32
    %0 = arith.subi %c1_i32, %arg0 : i32
    %1 = arith.muli %arg1, %0 : i32
    %c0_i32 = arith.constant 0 : i32
    %c0_i32_0 = arith.constant 0 : i32
    return %1, %c0_i32 : i32, i32
  }
  func.func @transform_1(%arg0: i32, %arg1: i32) -> (i32, i32) {
    %c0_i32 = arith.constant 0 : i32
    %c0_i32_0 = arith.constant 0 : i32
    %c0_i32_1 = arith.constant 0 : i32
    return %c0_i32, %c0_i32_0 : i32, i32
  }
  func.func @transform_2(%arg0: i32, %arg1: i32) -> (i32, i32) {
    %c0_i32 = arith.constant 0 : i32
    %c0_i32_0 = arith.constant 0 : i32
    %c0_i32_1 = arith.constant 0 : i32
    return %c0_i32, %c0_i32_0 : i32, i32
  }
  func.func @transform_3(%arg0: i32, %arg1: i32) -> (i32, i32) {
    %c0_i32 = arith.constant 0 : i32
    %c0_i32_0 = arith.constant 0 : i32
    %c0_i32_1 = arith.constant 0 : i32
    return %c0_i32, %c0_i32_0 : i32, i32
  }
  func.func @transform_4(%arg0: i32, %arg1: i32) -> (i32, i32) {
    %0 = arith.muli %arg1, %arg0 : i32
    %c0_i32 = arith.constant 0 : i32
    %c0_i32_0 = arith.constant 0 : i32
    return %0, %c0_i32 : i32, i32
  }
}

module attributes {stable_mosaic.version = 11 : i64} {
  func.func @_maxpool_kernel(%arg0: i32, %arg1: memref<1x17x17x64xf32, #tpu.memory_space<vmem>>, %arg2: memref<1x8x8x64xf32, #tpu.memory_space<vmem>>) attributes {dimension_semantics = [#tpu.dimension_semantics<parallel>], iteration_bounds = array<i64: 2>, scalar_prefetch = 0 : i64, scratch_operands = 0 : i64, tpu.core_type = #tpu.core_type<tc>, window_params = [{transform_indices = @transform_0, window_bounds = array<i64: 1, 17, 17, 64>}, {transform_indices = @transform_1, window_bounds = array<i64: 1, 8, 8, 64>}]} {
    %c0 = arith.constant 0 : index
    %c0_0 = arith.constant 0 : index
    %c0_1 = arith.constant 0 : index
    %c0_2 = arith.constant 0 : index
    %0 = tpu.strided_load %arg1[%c0, %c0_0, %c0_1, %c0_2] {strides = array<i32: 1, 1, 2, 1>} : memref<1x17x17x64xf32, #tpu.memory_space<vmem>>, vector<1x17x8x64xf32>
    %1 = vector.shape_cast %0 : vector<1x17x8x64xf32> to vector<17x8x64xf32>
    %c0_3 = arith.constant 0 : index
    %c0_4 = arith.constant 0 : index
    %c1 = arith.constant 1 : index
    %c0_5 = arith.constant 0 : index
    %2 = tpu.strided_load %arg1[%c0_3, %c0_4, %c1, %c0_5] {strides = array<i32: 1, 1, 2, 1>} : memref<1x17x17x64xf32, #tpu.memory_space<vmem>>, vector<1x17x8x64xf32>
    %3 = vector.shape_cast %2 : vector<1x17x8x64xf32> to vector<17x8x64xf32>
    %c0_6 = arith.constant 0 : index
    %c0_7 = arith.constant 0 : index
    %c2 = arith.constant 2 : index
    %c0_8 = arith.constant 0 : index
    %4 = tpu.strided_load %arg1[%c0_6, %c0_7, %c2, %c0_8] {strides = array<i32: 1, 1, 2, 1>} : memref<1x17x17x64xf32, #tpu.memory_space<vmem>>, vector<1x17x8x64xf32>
    %5 = vector.shape_cast %4 : vector<1x17x8x64xf32> to vector<17x8x64xf32>
    %6 = arith.maximumf %1, %3 : vector<17x8x64xf32>
    %7 = arith.maximumf %6, %5 : vector<17x8x64xf32>
    %8 = vector.extract_strided_slice %7 {offsets = [0, 0, 0], sizes = [16, 8, 64], strides = [1, 1, 1]} : vector<17x8x64xf32> to vector<16x8x64xf32>
    %9 = vector.shape_cast %8 : vector<16x8x64xf32> to vector<8x2x8x64xf32>
    %10 = vector.extract_strided_slice %7 {offsets = [1, 0, 0], sizes = [16, 8, 64], strides = [1, 1, 1]} : vector<17x8x64xf32> to vector<16x8x64xf32>
    %11 = vector.shape_cast %10 : vector<16x8x64xf32> to vector<8x2x8x64xf32>
    %12 = vector.extract_strided_slice %9 {offsets = [0, 0, 0, 0], sizes = [8, 1, 8, 64], strides = [1, 1, 1, 1]} : vector<8x2x8x64xf32> to vector<8x1x8x64xf32>
    %13 = vector.shape_cast %12 : vector<8x1x8x64xf32> to vector<8x8x64xf32>
    %14 = vector.extract_strided_slice %9 {offsets = [0, 1, 0, 0], sizes = [8, 1, 8, 64], strides = [1, 1, 1, 1]} : vector<8x2x8x64xf32> to vector<8x1x8x64xf32>
    %15 = vector.shape_cast %14 : vector<8x1x8x64xf32> to vector<8x8x64xf32>
    %16 = arith.maximumf %13, %15 : vector<8x8x64xf32>
    %17 = vector.extract_strided_slice %11 {offsets = [0, 1, 0, 0], sizes = [8, 1, 8, 64], strides = [1, 1, 1, 1]} : vector<8x2x8x64xf32> to vector<8x1x8x64xf32>
    %18 = vector.shape_cast %17 : vector<8x1x8x64xf32> to vector<8x8x64xf32>
    %19 = arith.maximumf %16, %18 : vector<8x8x64xf32>
    %c0_9 = arith.constant 0 : index
    %c0_10 = arith.constant 0 : index
    %c0_11 = arith.constant 0 : index
    %c0_12 = arith.constant 0 : index
    %20 = vector.load %arg2[%c0_9, %c0_10, %c0_11, %c0_12] : memref<1x8x8x64xf32, #tpu.memory_space<vmem>>, vector<1x8x8x64xf32>
    %21 = vector.shape_cast %20 : vector<1x8x8x64xf32> to vector<8x8x64xf32>
    %22 = vector.shape_cast %19 : vector<8x8x64xf32> to vector<1x8x8x64xf32>
    tpu.vector_store %arg2[%c0_9, %c0_10, %c0_11, %c0_12], %22 {strides = array<i32>} : memref<1x8x8x64xf32, #tpu.memory_space<vmem>>, vector<1x8x8x64xf32>,
    return
  }
  func.func @transform_0(%arg0: i32) -> (i32, i32, i32, i32) {
    %c0_i32 = arith.constant 0 : i32
    %c0_i32_0 = arith.constant 0 : i32
    %c0_i32_1 = arith.constant 0 : i32
    %c0_i32_2 = arith.constant 0 : i32
    return %arg0, %c0_i32, %c0_i32_0, %c0_i32_1 : i32, i32, i32, i32
  }
  func.func @transform_1(%arg0: i32) -> (i32, i32, i32, i32) {
    %c0_i32 = arith.constant 0 : i32
    %c0_i32_0 = arith.constant 0 : i32
    %c0_i32_1 = arith.constant 0 : i32
    %c0_i32_2 = arith.constant 0 : i32
    return %arg0, %c0_i32, %c0_i32_0, %c0_i32_1 : i32, i32, i32, i32
  }
}

</mosaic_0001>

<bundles_post_ra>
// kernel: reduction_a.6
= control target key start
LH: loop header
LB: loop body
LE: loop exit
PB: predicated region body
PF: predicated region fallthrough
CT: control target
= control target key end

     0   :  { %s2823_s15 = smov 0   ;;  %s2825_s16 = smov 0   ;;  %s3574_s0 = inlined_call_operand.vmem [shape: bf16[584,64], index: 0, kind: input, shape index: {}]   ;;  %s3575_s1 = inlined_call_operand.vmem [shape: bf16[64,128], index: 1, kind: input, shape index: {}]   ;;  %s3576_s2 = inlined_call_operand.vmem [shape: f32[1,128], index: 2, kind: input, shape index: {}]   ;;  %s3577_s3 = inlined_call_operand.vmem [shape: f32[1,128], index: 3, kind: input, shape index: {}]   ;;  %s3578_s4 = inlined_call_operand.vmem [shape: bf16[584,128], index: 4, kind: output, shape index: {}]  }
   0x1   :  { %s2827_s17 = smov 0  }
   0x2 LB: > { %s26_s18 = sadd.s32 1, %s2790_s16  ;;  %p2050_p0 = scmp.ge.s32.totalorder %s2794_s17, 1  ;;  %s2794_s17 = sphi %s2827_s17, %s14_s17   ;;  %s2790_s16 = sphi %s2825_s16, %s3580_s16   ;;  %s2786_s15 = sphi %s2823_s15, %s3579_s15  }
   0x3   : > { %p28_p1 = scmp.ge.s32.totalorder %s26_s18, 2  ;;  %p185_p2 = scmp.lt.s32.totalorder %s2794_s17, 3 }
   0x5   : > { %s3582_s18 = smov (%p28_p1, %s26_s18), 0  ;;  %p186_p3 = pnand %p2050_p0, %p185_p2 }
   0x6   : > { %p2051_p4 = scmp.ne.s32.totalorder (!%p186_p3), %s2786_s15, 0 }
   0x7   : > { %189 = sbr.rel (%p186_p3) target bundleno = 583 (0x247), region = 36 }
   0xe   : > { %237 = sbr.rel (%p2051_p4) target bundleno = 478 (0x1de), region = 40  ;;  %v2729_v0 = vld [vmem:[%s3575_s1] sm:$0xff] (!%p2051_p4)   ;;  %v2796_v1 = vmov (!%p2051_p4), 0.0   ;;  %v2730_v2 = vld [vmem:[%s3575_s1 + $0x8] sm:$0xff] (!%p2051_p4)   ;;  %vm2797_vm0 = vmmov (!%p2051_p4), 0   ;;  %v2731_v3 = vld [vmem:[%s3575_s1 + $0x10] sm:$0xff] (!%p2051_p4)  }
   0xf   : > { %2539 = vmatprep.subr.bf16.mxu0 (!%p2051_p4), %v2796_v1  ;;  %242 = vst [vmem:[#allocation3] sm:$0xff] (!%p2051_p4), %v2796_v1  ;;  %2695 = vmatprep.subr.bf16.mxu1 (!%p2051_p4), %v2796_v1  ;;  %v2732_v4 = vld [vmem:[%s3575_s1 + $0x18] sm:$0xff] (!%p2051_p4)   ;;  %v2733_v5 = vld [vmem:[%s3574_s0] sm:$0xff] (!%p2051_p4)   ;;  %vm531_vm1 = vcmask (!%p2051_p4), 523264   ;;  %v2734_v7 = vld [vmem:[%s3574_s0 + $0x8] sm:$0xff] (!%p2051_p4)  }
  0x10   : > { %2540 = vmatpush3.bf16.msra.mxu0 (!%p2051_p4), %v2729_v0  ;;  %2547 = vmatprep.mubr.msk.bf16.mxu0 (!%p2051_p4), %vm2797_vm0, %v2796_v1  ;;  %v2743_v6 = vld [vmem:[%s3574_s0 + $0x98] sm:$0xff] (!%p2051_p4)   ;;  %v2745_v8 = vld [vmem:[%s3574_s0 + $0xa0] sm:$0xff] (!%p2051_p4)   ;;  %v2735_v9 = vld [vmem:[%s3574_s0 + $0x10] sm:$0xff] (!%p2051_p4)  }
  0x11   : > { %2541 = vmatprep.subr.bf16.mxu0 (!%p2051_p4), %v2796_v1  ;;  %2699 = vmatpush3.bf16.msra.mxu1 (!%p2051_p4), %v2729_v0  ;;  %v2747_v10 = vld [vmem:[%s3574_s0 + $0xa8] sm:$0xff] (!%p2051_p4)   ;;  %v2736_v11 = vld [vmem:[%s3574_s0 + $0x18] sm:$0xff] (!%p2051_p4)   ;;  %v2749_v12 = vld [vmem:[%s3574_s0 + $0xb0] sm:$0xff] (!%p2051_p4)  }
  0x12   : > { %2696 = vmatprep.subr.bf16.mxu1 (!%p2051_p4), %v2796_v1  ;;  %2623 = vmatprep.mubr.msk.bf16.mxu1 (!%p2051_p4), %vm2797_vm0, %v2796_v1  ;;  %v2737_v13 = vld [vmem:[%s3574_s0 + $0x20] sm:$0xff] (!%p2051_p4)   ;;  %v2751_v14 = vld [vmem:[%s3574_s0 + $0xb8] sm:$0xff] (!%p2051_p4)   ;;  %v2738_v15 = vld [vmem:[%s3574_s0 + $0x28] sm:$0xff] (!%p2051_p4)  }
  0x13   : > { %v2753_v16 = vld [vmem:[%s3574_s0 + $0xc0] sm:$0xff] (!%p2051_p4)   ;;  %v2739_v17 = vld [vmem:[%s3574_s0 + $0x30] sm:$0xff] (!%p2051_p4)   ;;  %v2755_v18 = vld [vmem:[%s3574_s0 + $0xc8] sm:$0xff] (!%p2051_p4)  }
  0x14   : > { %2542 = vmatpush3.bf16.msra.mxu0 (!%p2051_p4), %v2730_v2  ;;  %v2740_v19 = vld [vmem:[%s3574_s0 + $0x38] sm:$0xff] (!%p2051_p4)   ;;  %v2757_v20 = vld [vmem:[%s3574_s0 + $0xd0] sm:$0xff] (!%p2051_p4)   ;;  %v2741_v21 = vld [vmem:[%s3574_s0 + $0x40] sm:$0xff] (!%p2051_p4)  }
  0x15   : > { %2543 = vmatprep.subr.bf16.mxu0 %v2796_v1  ;;  %2700 = vmatpush3.bf16.msra.mxu1 %v2730_v2  ;;  %v2759_v22 = vld [vmem:[%s3574_s0 + $0xd8] sm:$0xff]   ;;  %v2742_v23 = vld [vmem:[%s3574_s0 + $0x48] sm:$0xff]   ;;  %v2761_v24 = vld [vmem:[%s3574_s0 + $0xe0] sm:$0xff]  }
  0x16   : > { %2697 = vmatprep.subr.bf16.mxu1 %v2796_v1  ;;  %v2744_v25 = vld [vmem:[%s3574_s0 + $0x50] sm:$0xff]   ;;  %v2762_v26 = vld [vmem:[%s3574_s0 + $0xe8] sm:$0xff]   ;;  %v2746_v27 = vld [vmem:[%s3574_s0 + $0x58] sm:$0xff]  }
  0x17   : > { %v2763_v28 = vld [vmem:[%s3574_s0 + $0xf0] sm:$0xff]   ;;  %v2748_v29 = vld [vmem:[%s3574_s0 + $0x60] sm:$0xff]   ;;  %v2764_v30 = vld [vmem:[%s3574_s0 + $0xf8] sm:$0xff]  }
  0x18   : > { %2544 = vmatpush3.bf16.msra.mxu0 %v2731_v3  ;;  %v2750_v31 = vld [vmem:[%s3574_s0 + $0x68] sm:$0xff]   ;;  %v2765_v32 = vld [vmem:[%s3574_s0 + $0x100] sm:$0xff]   ;;  %v2752_v33 = vld [vmem:[%s3574_s0 + $0x70] sm:$0xff]  }
  0x19   : > { %2545 = vmatprep.subr.bf16.mxu0 %v2796_v1  ;;  %2701 = vmatpush3.bf16.msra.mxu1 %v2731_v3  ;;  %v2766_v34 = vld [vmem:[%s3574_s0 + $0x108] sm:$0xff]   ;;  %v2754_v35 = vld [vmem:[%s3574_s0 + $0x78] sm:$0xff]   ;;  %v2767_v36 = vld [vmem:[%s3574_s0 + $0x110] sm:$0xff]  }
  0x1a   : > { %2698 = vmatprep.subr.bf16.mxu1 %v2796_v1  ;;  %v2756_v37 = vld [vmem:[%s3574_s0 + $0x80] sm:$0xff]   ;;  %v2768_v38 = vld [vmem:[%s3574_s0 + $0x118] sm:$0xff]   ;;  %v2758_v39 = vld [vmem:[%s3574_s0 + $0x88] sm:$0xff]  }
  0x1b   : > { %v2769_v40 = vld [vmem:[%s3574_s0 + $0x120] ss:$0 sps:$4 sm:$0xff]   ;;  %v2760_v41 = vld [vmem:[%s3574_s0 + $0x90] sm:$0xff]  }
  0x1c   : > { %2546 = vmatpush3.bf16.msra.mxu0 %v2732_v4 }
  0x1d   : > { %2702 = vmatpush3.bf16.msra.mxu1 %v2732_v4 }
  0x1f   : > { %2548 = vmatmul.mubr.msk.bf16.vlgmr.msra.gmra.mrb[0].mxu0 %vm531_vm1, %v2733_v5 }
  0x20   : > { %2551 = vmatprep.mubr.msk.bf16.mxu0 %vm2797_vm0, %v2796_v1  ;;  %2624 = vmatmul.mubr.msk.bf16.vlgmr.msra.gmra.mrb[0].mxu1 %vm531_vm1, %v2743_v6 }
  0x21   : > { %2627 = vmatprep.mubr.msk.bf16.mxu1 %vm2797_vm0, %v2796_v1 }
  0x27   : > { %2552 = vmatmul.mubr.msk.bf16.gmra.mrb[4].mxu0 %vm531_vm1, %v2734_v7 }
  0x28   : > { %2555 = vmatprep.mubr.msk.bf16.mxu0 %vm2797_vm0, %v2796_v1  ;;  %2628 = vmatmul.mubr.msk.bf16.gmra.mrb[4].mxu1 %vm531_vm1, %v2745_v8 }
  0x29   : > { %2631 = vmatprep.mubr.msk.bf16.mxu1 %vm2797_vm0, %v2796_v1 }
  0x2f   : > { %2556 = vmatmul.mubr.msk.bf16.gmra.mrb[8].mxu0 %vm531_vm1, %v2735_v9 }
  0x30   : > { %2559 = vmatprep.mubr.msk.bf16.mxu0 %vm2797_vm0, %v2796_v1  ;;  %2632 = vmatmul.mubr.msk.bf16.gmra.mrb[8].mxu1 %vm531_vm1, %v2747_v10 }
  0x31   : > { %2635 = vmatprep.mubr.msk.bf16.mxu1 %vm2797_vm0, %v2796_v1 }
  0x37   : > { %2560 = vmatmul.mubr.msk.bf16.gmra.mrb[12].mxu0 %vm531_vm1, %v2736_v11 }
  0x38   : > { %2563 = vmatprep.mubr.msk.bf16.mxu0 %vm2797_vm0, %v2796_v1  ;;  %2636 = vmatmul.mubr.msk.bf16.gmra.mrb[12].mxu1 %vm531_vm1, %v2749_v12 }
  0x39   : > { %2639 = vmatprep.mubr.msk.bf16.mxu1 %vm2797_vm0, %v2796_v1 }
  0x3f   : > { %2564 = vmatmul.mubr.msk.bf16.gmra.mrb[16].mxu0 %vm531_vm1, %v2737_v13 }
  0x40   : > { %2567 = vmatprep.mubr.msk.bf16.mxu0 %vm2797_vm0, %v2796_v1  ;;  %2640 = vmatmul.mubr.msk.bf16.gmra.mrb[16].mxu1 %vm531_vm1, %v2751_v14 }
  0x41   : > { %2643 = vmatprep.mubr.msk.bf16.mxu1 %vm2797_vm0, %v2796_v1 }
  0x47   : > { %2568 = vmatmul.mubr.msk.bf16.gmra.mrb[20].mxu0 %vm531_vm1, %v2738_v15 }
  0x48   : > { %2571 = vmatprep.mubr.msk.bf16.mxu0 %vm2797_vm0, %v2796_v1  ;;  %2644 = vmatmul.mubr.msk.bf16.gmra.mrb[20].mxu1 %vm531_vm1, %v2753_v16 }
  0x49   : > { %2647 = vmatprep.mubr.msk.bf16.mxu1 %vm2797_vm0, %v2796_v1 }
  0x4f   : > { %2572 = vmatmul.mubr.msk.bf16.gmra.mrb[24].mxu0 %vm531_vm1, %v2739_v17 }
  0x50   : > { %2575 = vmatprep.mubr.msk.bf16.mxu0 %vm2797_vm0, %v2796_v1  ;;  %2648 = vmatmul.mubr.msk.bf16.gmra.mrb[24].mxu1 %vm531_vm1, %v2755_v18 }
  0x51   : > { %2651 = vmatprep.mubr.msk.bf16.mxu1 %vm2797_vm0, %v2796_v1 }
  0x57   : > { %2576 = vmatmul.mubr.msk.bf16.gmra.mrb[28].mxu0 %vm531_vm1, %v2740_v19 }
  0x58   : > { %2579 = vmatprep.mubr.msk.bf16.mxu0 %vm2797_vm0, %v2796_v1  ;;  %2652 = vmatmul.mubr.msk.bf16.gmra.mrb[28].mxu1 %vm531_vm1, %v2757_v20 }
  0x59   : > { %2655 = vmatprep.mubr.msk.bf16.mxu1 %vm2797_vm0, %v2796_v1 }
  0x5f   : > { %2580 = vmatmul.mubr.msk.bf16.gmra.mrb[32].mxu0 %vm531_vm1, %v2741_v21 }
  0x60   : > { %2583 = vmatprep.mubr.msk.bf16.mxu0 %vm2797_vm0, %v2796_v1  ;;  %2656 = vmatmul.mubr.msk.bf16.gmra.mrb[32].mxu1 %vm531_vm1, %v2759_v22 }
  0x61   : > { %2659 = vmatprep.mubr.msk.bf16.mxu1 %vm2797_vm0, %v2796_v1 }
  0x67   : > { %2584 = vmatmul.mubr.msk.bf16.gmra.mrb[36].mxu0 %vm531_vm1, %v2742_v23 }
  0x68   : > { %2587 = vmatprep.mubr.msk.bf16.mxu0 %vm2797_vm0, %v2796_v1  ;;  %2660 = vmatmul.mubr.msk.bf16.gmra.mrb[36].mxu1 %vm531_vm1, %v2761_v24 }
  0x69   : > { %2663 = vmatprep.mubr.msk.bf16.mxu1 %vm2797_vm0, %v2796_v1 }
  0x6f   : > { %2588 = vmatmul.mubr.msk.bf16.gmra.mrb[40].mxu0 %vm531_vm1, %v2744_v25 }
  0x70   : > { %2591 = vmatprep.mubr.msk.bf16.mxu0 %vm2797_vm0, %v2796_v1  ;;  %2664 = vmatmul.mubr.msk.bf16.gmra.mrb[40].mxu1 %vm531_vm1, %v2762_v26 }
  0x71   : > { %2667 = vmatprep.mubr.msk.bf16.mxu1 %vm2797_vm0, %v2796_v1 }
  0x77   : > { %2592 = vmatmul.mubr.msk.bf16.gmra.mrb[44].mxu0 %vm531_vm1, %v2746_v27 }
  0x78   : > { %2595 = vmatprep.mubr.msk.bf16.mxu0 %vm2797_vm0, %v2796_v1  ;;  %2668 = vmatmul.mubr.msk.bf16.gmra.mrb[44].mxu1 %vm531_vm1, %v2763_v28 }
  0x79   : > { %2671 = vmatprep.mubr.msk.bf16.mxu1 %vm2797_vm0, %v2796_v1 }
  0x7f   : > { %2596 = vmatmul.mubr.msk.bf16.gmra.mrb[48].mxu0 %vm531_vm1, %v2748_v29 }
  0x80   : > { %2599 = vmatprep.mubr.msk.bf16.mxu0 %vm2797_vm0, %v2796_v1  ;;  %2672 = vmatmul.mubr.msk.bf16.gmra.mrb[48].mxu1 %vm531_vm1, %v2764_v30 }
  0x81   : > { %2675 = vmatprep.mubr.msk.bf16.mxu1 %vm2797_vm0, %v2796_v1 }
  0x87   : > { %2600 = vmatmul.mubr.msk.bf16.gmra.mrb[52].mxu0 %vm531_vm1, %v2750_v31 }
  0x88   : > { %2603 = vmatprep.mubr.msk.bf16.mxu0 %vm2797_vm0, %v2796_v1  ;;  %2676 = vmatmul.mubr.msk.bf16.gmra.mrb[52].mxu1 %vm531_vm1, %v2765_v32 }
  0x89   : > { %2679 = vmatprep.mubr.msk.bf16.mxu1 %vm2797_vm0, %v2796_v1 }
  0x8f   : > { %2604 = vmatmul.mubr.msk.bf16.gmra.mrb[56].mxu0 %vm531_vm1, %v2752_v33 }
  0x90   : > { %2607 = vmatprep.mubr.msk.bf16.mxu0 %vm2797_vm0, %v2796_v1  ;;  %2680 = vmatmul.mubr.msk.bf16.gmra.mrb[56].mxu1 %vm531_vm1, %v2766_v34 }
  0x91   : > { %2683 = vmatprep.mubr.msk.bf16.mxu1 %vm2797_vm0, %v2796_v1 }
  0x97   : > { %2608 = vmatmul.mubr.msk.bf16.gmra.mrb[60].mxu0 %vm531_vm1, %v2754_v35 }
  0x98   : > { %2611 = vmatprep.mubr.msk.bf16.mxu0 %vm2797_vm0, %v2796_v1  ;;  %2684 = vmatmul.mubr.msk.bf16.gmra.mrb[60].mxu1 %vm531_vm1, %v2767_v36 }
  0x99   : > { %2687 = vmatprep.mubr.msk.bf16.mxu1 %vm2797_vm0, %v2796_v1 }
  0x9f   : > { %2612 = vmatmul.mubr.msk.bf16.gmra.mrb[64].mxu0 %vm531_vm1, %v2756_v37 }
  0xa0   : > { %2615 = vmatprep.mubr.msk.bf16.mxu0 %vm2797_vm0, %v2796_v1  ;;  %2688 = vmatmul.mubr.msk.bf16.gmra.mrb[64].mxu1 %vm531_vm1, %v2768_v38 }
  0xa1   : > { %2691 = vmatprep.mubr.msk.bf16.mxu1 %vm2797_vm0, %v2796_v1 }
  0xa7   : > { %2616 = vmatmul.mubr.msk.bf16.gmra.mrb[68].mxu0 %vm531_vm1, %v2758_v39 }
  0xa8   : > { %2619 = vmatprep.mubr.msk.bf16.mxu0 %vm2797_vm0, %v2796_v1  ;;  %2692 = vmatmul.mubr.msk.bf16.gmra.mrb[68].mxu1 %vm531_vm1, %v2769_v40 }
  0xaf   : > { %2620 = vmatmul.mubr.msk.bf16.gmra.mrb[72].mxu0 %vm531_vm1, %v2760_v41 }
  0xf2   : > { %v677_v42 = vpop.f32.mrb[0].mxu0 }
  0xf3   : > { %972 = vst [vmem:[#allocation2] sm:$0xff] %v677_v42  ;;  %v2549_v43 = vpop.f32.mrb[1].mxu0  ;;  %v3087_v44 = vpop.f32.mrb[0].mxu1  ;;  %v1127_v47 = vmul.f32 %v677_v42, %v677_v42 }
  0xf4   : > { %v680_v45 = vpop.f32.mrb[2].mxu0  ;;  %1010 = vst [vmem:[#allocation2 + $0x130] sm:$0xff] %v3087_v44  ;;  %v2625_v46 = vpop.f32.mrb[1].mxu1 }
  0xf5   : > { %973 = vst [vmem:[#allocation2 + $0x8] sm:$0xff] %v680_v45  ;;  %v1046_v48 = vadd.f32 %v680_v45, %v677_v42  ;;  %v1128_v49 = vmul.f32 %v680_v45, %v680_v45  ;;  %v2550_v50 = vpop.f32.mrb[3].mxu0  ;;  %v3090_v51 = vpop.f32.mrb[2].mxu1 }
  0xf6   : > { %1011 = vst [vmem:[#allocation2 + $0x138] sm:$0xff] %v3090_v51  ;;  %v2626_v52 = vpop.f32.mrb[3].mxu1 }
  0xf7   : > { %v1200_v53 = vadd.f32 %v1128_v49, %v1127_v47 }
  0xfa   : > { %v685_v54 = vpop.f32.mrb[4].mxu0 }
  0xfb   : > { %974 = vst [vmem:[#allocation2 + $0x10] sm:$0xff] %v685_v54  ;;  %v1047_v55 = vadd.f32 %v1046_v48, %v685_v54  ;;  %v1129_v56 = vmul.f32 %v685_v54, %v685_v54  ;;  %v2553_v57 = vpop.f32.mrb[5].mxu0  ;;  %v3093_v58 = vpop.f32.mrb[4].mxu1 }
  0xfc   : > { %v688_v59 = vpop.f32.mrb[6].mxu0  ;;  %1012 = vst [vmem:[#allocation2 + $0x140] sm:$0xff] %v3093_v58  ;;  %v2629_v60 = vpop.f32.mrb[5].mxu1 }
  0xfd   : > { %v1201_v61 = vadd.f32 %v1200_v53, %v1129_v56  ;;  %975 = vst [vmem:[#allocation2 + $0x18] sm:$0xff] %v688_v59  ;;  %v1048_v62 = vadd.f32 %v1047_v55, %v688_v59  ;;  %v1130_v63 = vmul.f32 %v688_v59, %v688_v59  ;;  %v2554_v0 = vpop.f32.mrb[7].mxu0  ;;  %v3096_v1 = vpop.f32.mrb[6].mxu1 }
  0xfe   : > { %1013 = vst [vmem:[#allocation2 + $0x148] sm:$0xff] %v3096_v1  ;;  %v2630_v2 = vpop.f32.mrb[7].mxu1 }
  0xff   : > { %v1202_v3 = vadd.f32 %v1201_v61, %v1130_v63 }
 0x102   : > { %v693_v4 = vpop.f32.mrb[8].mxu0 }
 0x103   : > { %976 = vst [vmem:[#allocation2 + $0x20] sm:$0xff] %v693_v4  ;;  %v1049_v5 = vadd.f32 %v1048_v62, %v693_v4  ;;  %v1131_v6 = vmul.f32 %v693_v4, %v693_v4  ;;  %v2557_v7 = vpop.f32.mrb[9].mxu0  ;;  %v3099_v8 = vpop.f32.mrb[8].mxu1 }
 0x104   : > { %v696_v9 = vpop.f32.mrb[10].mxu0  ;;  %1014 = vst [vmem:[#allocation2 + $0x150] sm:$0xff] %v3099_v8  ;;  %v2633_v10 = vpop.f32.mrb[9].mxu1 }
 0x105   : > { %v1203_v11 = vadd.f32 %v1202_v3, %v1131_v6  ;;  %977 = vst [vmem:[#allocation2 + $0x28] sm:$0xff] %v696_v9  ;;  %v1050_v12 = vadd.f32 %v1049_v5, %v696_v9  ;;  %v1132_v13 = vmul.f32 %v696_v9, %v696_v9  ;;  %v2558_v14 = vpop.f32.mrb[11].mxu0  ;;  %v3102_v15 = vpop.f32.mrb[10].mxu1 }
 0x106   : > { %1015 = vst [vmem:[#allocation2 + $0x158] sm:$0xff] %v3102_v15  ;;  %v2634_v16 = vpop.f32.mrb[11].mxu1 }
 0x107   : > { %v1204_v17 = vadd.f32 %v1203_v11, %v1132_v13 }
 0x10a   : > { %v701_v18 = vpop.f32.mrb[12].mxu0 }
 0x10b   : > { %978 = vst [vmem:[#allocation2 + $0x30] sm:$0xff] %v701_v18  ;;  %v1051_v19 = vadd.f32 %v1050_v12, %v701_v18  ;;  %v1133_v20 = vmul.f32 %v701_v18, %v701_v18  ;;  %v2561_v21 = vpop.f32.mrb[13].mxu0  ;;  %v3105_v22 = vpop.f32.mrb[12].mxu1 }
 0x10c   : > { %v704_v23 = vpop.f32.mrb[14].mxu0  ;;  %1016 = vst [vmem:[#allocation2 + $0x160] sm:$0xff] %v3105_v22  ;;  %v2637_v24 = vpop.f32.mrb[13].mxu1 }
 0x10d   : > { %v1205_v25 = vadd.f32 %v1204_v17, %v1133_v20  ;;  %979 = vst [vmem:[#allocation2 + $0x38] sm:$0xff] %v704_v23  ;;  %v1052_v26 = vadd.f32 %v1051_v19, %v704_v23  ;;  %v1134_v27 = vmul.f32 %v704_v23, %v704_v23  ;;  %v2562_v28 = vpop.f32.mrb[15].mxu0  ;;  %v3108_v29 = vpop.f32.mrb[14].mxu1 }
 0x10e   : > { %1017 = vst [vmem:[#allocation2 + $0x168] sm:$0xff] %v3108_v29  ;;  %v2638_v30 = vpop.f32.mrb[15].mxu1 }
 0x10f   : > { %v1206_v31 = vadd.f32 %v1205_v25, %v1134_v27 }
 0x112   : > { %v709_v32 = vpop.f32.mrb[16].mxu0 }
 0x113   : > { %980 = vst [vmem:[#allocation2 + $0x40] sm:$0xff] %v709_v32  ;;  %v1053_v33 = vadd.f32 %v1052_v26, %v709_v32  ;;  %v1135_v34 = vmul.f32 %v709_v32, %v709_v32  ;;  %v2565_v35 = vpop.f32.mrb[17].mxu0  ;;  %v3111_v36 = vpop.f32.mrb[16].mxu1 }
 0x114   : > { %v712_v37 = vpop.f32.mrb[18].mxu0  ;;  %1018 = vst [vmem:[#allocation2 + $0x170] sm:$0xff] %v3111_v36  ;;  %v2641_v38 = vpop.f32.mrb[17].mxu1 }
 0x115   : > { %v1207_v39 = vadd.f32 %v1206_v31, %v1135_v34  ;;  %981 = vst [vmem:[#allocation2 + $0x48] sm:$0xff] %v712_v37  ;;  %v1054_v40 = vadd.f32 %v1053_v33, %v712_v37  ;;  %v1136_v41 = vmul.f32 %v712_v37, %v712_v37  ;;  %v2566_v42 = vpop.f32.mrb[19].mxu0  ;;  %v3114_v43 = vpop.f32.mrb[18].mxu1 }
 0x116   : > { %1019 = vst [vmem:[#allocation2 + $0x178] sm:$0xff] %v3114_v43  ;;  %v2642_v45 = vpop.f32.mrb[19].mxu1 }
 0x117   : > { %v1208_v46 = vadd.f32 %v1207_v39, %v1136_v41 }
 0x11a   : > { %v717_v47 = vpop.f32.mrb[20].mxu0 }
 0x11b   : > { %982 = vst [vmem:[#allocation2 + $0x50] sm:$0xff] %v717_v47  ;;  %v1055_v48 = vadd.f32 %v1054_v40, %v717_v47  ;;  %v1137_v49 = vmul.f32 %v717_v47, %v717_v47  ;;  %v2569_v50 = vpop.f32.mrb[21].mxu0  ;;  %v3117_v52 = vpop.f32.mrb[20].mxu1 }
 0x11c   : > { %v720_v53 = vpop.f32.mrb[22].mxu0  ;;  %1020 = vst [vmem:[#allocation2 + $0x180] sm:$0xff] %v3117_v52  ;;  %v2645_v54 = vpop.f32.mrb[21].mxu1 }
 0x11d   : > { %v1209_v55 = vadd.f32 %v1208_v46, %v1137_v49  ;;  %983 = vst [vmem:[#allocation2 + $0x58] sm:$0xff] %v720_v53  ;;  %v1056_v56 = vadd.f32 %v1055_v48, %v720_v53  ;;  %v1138_v57 = vmul.f32 %v720_v53, %v720_v53  ;;  %v2570_v59 = vpop.f32.mrb[23].mxu0  ;;  %v3120_v60 = vpop.f32.mrb[22].mxu1 }
 0x11e   : > { %1021 = vst [vmem:[#allocation2 + $0x188] sm:$0xff] %v3120_v60  ;;  %v2646_v61 = vpop.f32.mrb[23].mxu1 }
 0x11f   : > { %v1210_v62 = vadd.f32 %v1209_v55, %v1138_v57 }
 0x122   : > { %v725_v63 = vpop.f32.mrb[24].mxu0 }
 0x123   : > { %984 = vst [vmem:[#allocation2 + $0x60] sm:$0xff] %v725_v63  ;;  %v1057_v0 = vadd.f32 %v1056_v56, %v725_v63  ;;  %v1139_v2 = vmul.f32 %v725_v63, %v725_v63  ;;  %v2573_v3 = vpop.f32.mrb[25].mxu0  ;;  %v3123_v4 = vpop.f32.mrb[24].mxu1 }
 0x124   : > { %v728_v5 = vpop.f32.mrb[26].mxu0  ;;  %1022 = vst [vmem:[#allocation2 + $0x190] sm:$0xff] %v3123_v4  ;;  %v2649_v6 = vpop.f32.mrb[25].mxu1 }
 0x125   : > { %v1211_v7 = vadd.f32 %v1210_v62, %v1139_v2  ;;  %985 = vst [vmem:[#allocation2 + $0x68] sm:$0xff] %v728_v5  ;;  %v1058_v9 = vadd.f32 %v1057_v0, %v728_v5  ;;  %v1140_v10 = vmul.f32 %v728_v5, %v728_v5  ;;  %v2574_v11 = vpop.f32.mrb[27].mxu0  ;;  %v3126_v12 = vpop.f32.mrb[26].mxu1 }
 0x126   : > { %1023 = vst [vmem:[#allocation2 + $0x198] sm:$0xff] %v3126_v12  ;;  %v2650_v13 = vpop.f32.mrb[27].mxu1 }
 0x127   : > { %v1212_v14 = vadd.f32 %v1211_v7, %v1140_v10 }
 0x12a   : > { %v733_v16 = vpop.f32.mrb[28].mxu0 }
 0x12b   : > { %986 = vst [vmem:[#allocation2 + $0x70] sm:$0xff] %v733_v16  ;;  %v1059_v17 = vadd.f32 %v1058_v9, %v733_v16  ;;  %v1141_v18 = vmul.f32 %v733_v16, %v733_v16  ;;  %v2577_v19 = vpop.f32.mrb[29].mxu0  ;;  %v3129_v20 = vpop.f32.mrb[28].mxu1 }
 0x12c   : > { %v736_v21 = vpop.f32.mrb[30].mxu0  ;;  %1024 = vst [vmem:[#allocation2 + $0x1a0] sm:$0xff] %v3129_v20  ;;  %v2653_v23 = vpop.f32.mrb[29].mxu1 }
 0x12d   : > { %v1213_v24 = vadd.f32 %v1212_v14, %v1141_v18  ;;  %987 = vst [vmem:[#allocation2 + $0x78] sm:$0xff] %v736_v21  ;;  %v1060_v25 = vadd.f32 %v1059_v17, %v736_v21  ;;  %v1142_v26 = vmul.f32 %v736_v21, %v736_v21  ;;  %v2578_v27 = vpop.f32.mrb[31].mxu0  ;;  %v3132_v28 = vpop.f32.mrb[30].mxu1 }
 0x12e   : > { %1025 = vst [vmem:[#allocation2 + $0x1a8] sm:$0xff] %v3132_v28  ;;  %v2654_v30 = vpop.f32.mrb[31].mxu1 }
 0x12f   : > { %v1214_v31 = vadd.f32 %v1213_v24, %v1142_v26 }
 0x132   : > { %v741_v32 = vpop.f32.mrb[32].mxu0 }
 0x133   : > { %988 = vst [vmem:[#allocation2 + $0x80] sm:$0xff] %v741_v32  ;;  %v1061_v33 = vadd.f32 %v1060_v25, %v741_v32  ;;  %v1143_v34 = vmul.f32 %v741_v32, %v741_v32  ;;  %v2581_v35 = vpop.f32.mrb[33].mxu0  ;;  %v3135_v37 = vpop.f32.mrb[32].mxu1 }
 0x134   : > { %v744_v38 = vpop.f32.mrb[34].mxu0  ;;  %1026 = vst [vmem:[#allocation2 + $0x1b0] sm:$0xff] %v3135_v37  ;;  %v2657_v39 = vpop.f32.mrb[33].mxu1 }
 0x135   : > { %v1215_v40 = vadd.f32 %v1214_v31, %v1143_v34  ;;  %989 = vst [vmem:[#allocation2 + $0x88] sm:$0xff] %v744_v38  ;;  %v1062_v41 = vadd.f32 %v1061_v33, %v744_v38  ;;  %v1144_v42 = vmul.f32 %v744_v38, %v744_v38  ;;  %v2582_v45 = vpop.f32.mrb[35].mxu0  ;;  %v3138_v46 = vpop.f32.mrb[34].mxu1 }
 0x136   : > { %1027 = vst [vmem:[#allocation2 + $0x1b8] sm:$0xff] %v3138_v46  ;;  %v2658_v47 = vpop.f32.mrb[35].mxu1 }
 0x137   : > { %v1216_v48 = vadd.f32 %v1215_v40, %v1144_v42 }
 0x13a   : > { %v749_v49 = vpop.f32.mrb[36].mxu0 }
 0x13b   : > { %990 = vst [vmem:[#allocation2 + $0x90] sm:$0xff] %v749_v49  ;;  %v1063_v50 = vadd.f32 %v1062_v41, %v749_v49  ;;  %v1145_v53 = vmul.f32 %v749_v49, %v749_v49  ;;  %v2585_v54 = vpop.f32.mrb[37].mxu0  ;;  %v3141_v55 = vpop.f32.mrb[36].mxu1 }
 0x13c   : > { %v752_v56 = vpop.f32.mrb[38].mxu0  ;;  %1028 = vst [vmem:[#allocation2 + $0x1c0] sm:$0xff] %v3141_v55  ;;  %v2661_v57 = vpop.f32.mrb[37].mxu1 }
 0x13d   : > { %v1217_v59 = vadd.f32 %v1216_v48, %v1145_v53  ;;  %991 = vst [vmem:[#allocation2 + $0x98] sm:$0xff] %v752_v56  ;;  %v1064_v61 = vadd.f32 %v1063_v50, %v752_v56  ;;  %v1146_v62 = vmul.f32 %v752_v56, %v752_v56  ;;  %v2586_v63 = vpop.f32.mrb[39].mxu0  ;;  %v3144_v0 = vpop.f32.mrb[38].mxu1 }
 0x13e   : > { %1029 = vst [vmem:[#allocation2 + $0x1c8] sm:$0xff] %v3144_v0  ;;  %v2662_v2 = vpop.f32.mrb[39].mxu1 }
 0x13f   : > { %v1218_v3 = vadd.f32 %v1217_v59, %v1146_v62 }
 0x142   : > { %v757_v5 = vpop.f32.mrb[40].mxu0 }
 0x143   : > { %992 = vst [vmem:[#allocation2 + $0xa0] sm:$0xff] %v757_v5  ;;  %v1065_v6 = vadd.f32 %v1064_v61, %v757_v5  ;;  %v1147_v7 = vmul.f32 %v757_v5, %v757_v5  ;;  %v2589_v9 = vpop.f32.mrb[41].mxu0  ;;  %v3147_v10 = vpop.f32.mrb[40].mxu1 }
 0x144   : > { %v760_v11 = vpop.f32.mrb[42].mxu0  ;;  %1030 = vst [vmem:[#allocation2 + $0x1d0] sm:$0xff] %v3147_v10  ;;  %v2665_v13 = vpop.f32.mrb[41].mxu1 }
 0x145   : > { %v1219_v14 = vadd.f32 %v1218_v3, %v1147_v7  ;;  %993 = vst [vmem:[#allocation2 + $0xa8] sm:$0xff] %v760_v11  ;;  %v1066_v16 = vadd.f32 %v1065_v6, %v760_v11  ;;  %v1148_v17 = vmul.f32 %v760_v11, %v760_v11  ;;  %v2590_v18 = vpop.f32.mrb[43].mxu0  ;;  %v3150_v19 = vpop.f32.mrb[42].mxu1 }
 0x146   : > { %1031 = vst [vmem:[#allocation2 + $0x1d8] sm:$0xff] %v3150_v19  ;;  %v2666_v21 = vpop.f32.mrb[43].mxu1 }
 0x147   : > { %v1220_v23 = vadd.f32 %v1219_v14, %v1148_v17 }
 0x14a   : > { %v765_v24 = vpop.f32.mrb[44].mxu0 }
 0x14b   : > { %994 = vst [vmem:[#allocation2 + $0xb0] sm:$0xff] %v765_v24  ;;  %v1067_v25 = vadd.f32 %v1066_v16, %v765_v24  ;;  %v1149_v26 = vmul.f32 %v765_v24, %v765_v24  ;;  %v2593_v27 = vpop.f32.mrb[45].mxu0  ;;  %v3153_v30 = vpop.f32.mrb[44].mxu1 }
 0x14c   : > { %v768_v31 = vpop.f32.mrb[46].mxu0  ;;  %1032 = vst [vmem:[#allocation2 + $0x1e0] sm:$0xff] %v3153_v30  ;;  %v2669_v32 = vpop.f32.mrb[45].mxu1 }
 0x14d   : > { %v1221_v33 = vadd.f32 %v1220_v23, %v1149_v26  ;;  %995 = vst [vmem:[#allocation2 + $0xb8] sm:$0xff] %v768_v31  ;;  %v1068_v34 = vadd.f32 %v1067_v25, %v768_v31  ;;  %v1150_v35 = vmul.f32 %v768_v31, %v768_v31  ;;  %v2594_v38 = vpop.f32.mrb[47].mxu0  ;;  %v3156_v39 = vpop.f32.mrb[46].mxu1 }
 0x14e   : > { %1033 = vst [vmem:[#allocation2 + $0x1e8] sm:$0xff] %v3156_v39  ;;  %v2670_v40 = vpop.f32.mrb[47].mxu1 }
 0x14f   : > { %v1222_v41 = vadd.f32 %v1221_v33, %v1150_v35 }
 0x152   : > { %v773_v42 = vpop.f32.mrb[48].mxu0 }
 0x153   : > { %996 = vst [vmem:[#allocation2 + $0xc0] sm:$0xff] %v773_v42  ;;  %v1069_v45 = vadd.f32 %v1068_v34, %v773_v42  ;;  %v1151_v47 = vmul.f32 %v773_v42, %v773_v42  ;;  %v2597_v48 = vpop.f32.mrb[49].mxu0  ;;  %v3159_v49 = vpop.f32.mrb[48].mxu1 }
 0x154   : > { %v776_v50 = vpop.f32.mrb[50].mxu0  ;;  %1034 = vst [vmem:[#allocation2 + $0x1f0] sm:$0xff] %v3159_v49  ;;  %v2673_v53 = vpop.f32.mrb[49].mxu1 }
 0x155   : > { %v1223_v54 = vadd.f32 %v1222_v41, %v1151_v47  ;;  %997 = vst [vmem:[#allocation2 + $0xc8] sm:$0xff] %v776_v50  ;;  %v1070_v56 = vadd.f32 %v1069_v45, %v776_v50  ;;  %v1152_v57 = vmul.f32 %v776_v50, %v776_v50  ;;  %v2598_v59 = vpop.f32.mrb[51].mxu0  ;;  %v3162_v61 = vpop.f32.mrb[50].mxu1 }
 0x156   : > { %1035 = vst [vmem:[#allocation2 + $0x1f8] sm:$0xff] %v3162_v61  ;;  %v2674_v62 = vpop.f32.mrb[51].mxu1 }
 0x157   : > { %v1224_v63 = vadd.f32 %v1223_v54, %v1152_v57 }
 0x15a   : > { %v781_v2 = vpop.f32.mrb[52].mxu0 }
 0x15b   : > { %998 = vst [vmem:[#allocation2 + $0xd0] sm:$0xff] %v781_v2  ;;  %v1071_v3 = vadd.f32 %v1070_v56, %v781_v2  ;;  %v1153_v5 = vmul.f32 %v781_v2, %v781_v2  ;;  %v2601_v6 = vpop.f32.mrb[53].mxu0  ;;  %v3165_v7 = vpop.f32.mrb[52].mxu1 }
 0x15c   : > { %v784_v9 = vpop.f32.mrb[54].mxu0  ;;  %1036 = vst [vmem:[#allocation2 + $0x200] sm:$0xff] %v3165_v7  ;;  %v2677_v11 = vpop.f32.mrb[53].mxu1 }
 0x15d   : > { %v1225_v13 = vadd.f32 %v1224_v63, %v1153_v5  ;;  %999 = vst [vmem:[#allocation2 + $0xd8] sm:$0xff] %v784_v9  ;;  %v1072_v14 = vadd.f32 %v1071_v3, %v784_v9  ;;  %v1154_v16 = vmul.f32 %v784_v9, %v784_v9  ;;  %v2602_v17 = vpop.f32.mrb[55].mxu0  ;;  %v3168_v18 = vpop.f32.mrb[54].mxu1 }
 0x15e   : > { %1037 = vst [vmem:[#allocation2 + $0x208] sm:$0xff] %v3168_v18  ;;  %v2678_v21 = vpop.f32.mrb[55].mxu1 }
 0x15f   : > { %v1226_v23 = vadd.f32 %v1225_v13, %v1154_v16 }
 0x162   : > { %v789_v24 = vpop.f32.mrb[56].mxu0 }
 0x163   : > { %1000 = vst [vmem:[#allocation2 + $0xe0] sm:$0xff] %v789_v24  ;;  %v1073_v25 = vadd.f32 %v1072_v14, %v789_v24  ;;  %v1155_v26 = vmul.f32 %v789_v24, %v789_v24  ;;  %v2605_v27 = vpop.f32.mrb[57].mxu0  ;;  %v3171_v31 = vpop.f32.mrb[56].mxu1 }
 0x164   : > { %v792_v32 = vpop.f32.mrb[58].mxu0  ;;  %1038 = vst [vmem:[#allocation2 + $0x210] sm:$0xff] %v3171_v31  ;;  %v2681_v33 = vpop.f32.mrb[57].mxu1 }
 0x165   : > { %v1227_v34 = vadd.f32 %v1226_v23, %v1155_v26  ;;  %1001 = vst [vmem:[#allocation2 + $0xe8] sm:$0xff] %v792_v32  ;;  %v1074_v35 = vadd.f32 %v1073_v25, %v792_v32  ;;  %v1156_v38 = vmul.f32 %v792_v32, %v792_v32  ;;  %v2606_v40 = vpop.f32.mrb[59].mxu0  ;;  %v3174_v41 = vpop.f32.mrb[58].mxu1 }
 0x166   : > { %1039 = vst [vmem:[#allocation2 + $0x218] sm:$0xff] %v3174_v41  ;;  %v2682_v42 = vpop.f32.mrb[59].mxu1 }
 0x167   : > { %v1228_v45 = vadd.f32 %v1227_v34, %v1156_v38 }
 0x16a   : > { %v797_v47 = vpop.f32.mrb[60].mxu0 }
 0x16b   : > { %1002 = vst [vmem:[#allocation2 + $0xf0] sm:$0xff] %v797_v47  ;;  %v1075_v48 = vadd.f32 %v1074_v35, %v797_v47  ;;  %v1157_v50 = vmul.f32 %v797_v47, %v797_v47  ;;  %v2609_v53 = vpop.f32.mrb[61].mxu0  ;;  %v3177_v54 = vpop.f32.mrb[60].mxu1 }
 0x16c   : > { %v800_v56 = vpop.f32.mrb[62].mxu0  ;;  %1040 = vst [vmem:[#allocation2 + $0x220] sm:$0xff] %v3177_v54  ;;  %v2685_v57 = vpop.f32.mrb[61].mxu1 }
 0x16d   : > { %v1229_v59 = vadd.f32 %v1228_v45, %v1157_v50  ;;  %1003 = vst [vmem:[#allocation2 + $0xf8] sm:$0xff] %v800_v56  ;;  %v1076_v62 = vadd.f32 %v1075_v48, %v800_v56  ;;  %v1158_v63 = vmul.f32 %v800_v56, %v800_v56  ;;  %v2610_v2 = vpop.f32.mrb[63].mxu0  ;;  %v3180_v3 = vpop.f32.mrb[62].mxu1 }
 0x16e   : > { %1041 = vst [vmem:[#allocation2 + $0x228] sm:$0xff] %v3180_v3  ;;  %v2686_v5 = vpop.f32.mrb[63].mxu1 }
 0x16f   : > { %v1230_v6 = vadd.f32 %v1229_v59, %v1158_v63 }
 0x172   : > { %v805_v9 = vpop.f32.mrb[64].mxu0 }
 0x173   : > { %1004 = vst [vmem:[#allocation2 + $0x100] sm:$0xff] %v805_v9  ;;  %v1077_v11 = vadd.f32 %v1076_v62, %v805_v9  ;;  %v1159_v13 = vmul.f32 %v805_v9, %v805_v9  ;;  %v2613_v14 = vpop.f32.mrb[65].mxu0  ;;  %v3183_v16 = vpop.f32.mrb[64].mxu1 }
 0x174   : > { %v808_v17 = vpop.f32.mrb[66].mxu0  ;;  %1042 = vst [vmem:[#allocation2 + $0x230] sm:$0xff] %v3183_v16  ;;  %v2689_v21 = vpop.f32.mrb[65].mxu1 }
 0x175   : > { %v1231_v23 = vadd.f32 %v1230_v6, %v1159_v13  ;;  %1005 = vst [vmem:[#allocation2 + $0x108] sm:$0xff] %v808_v17  ;;  %v1078_v24 = vadd.f32 %v1077_v11, %v808_v17  ;;  %v1160_v25 = vmul.f32 %v808_v17, %v808_v17  ;;  %v2614_v26 = vpop.f32.mrb[67].mxu0  ;;  %v3186_v27 = vpop.f32.mrb[66].mxu1  ;;  %v1165_v21 = vmul.f32 %v3087_v44, %v3087_v44 }
 0x176   : > { %1043 = vst [vmem:[#allocation2 + $0x238] sm:$0xff] %v3186_v27  ;;  %v2690_v32 = vpop.f32.mrb[67].mxu1 }
 0x177   : > { %v1232_v33 = vadd.f32 %v1231_v23, %v1160_v25  ;;  %v1166_v25 = vmul.f32 %v3090_v51, %v3090_v51 }
 0x17a   : > { %v813_v34 = vpop.f32.mrb[68].mxu0 }
 0x17b   : > { %1006 = vst [vmem:[#allocation2 + $0x110] sm:$0xff] %v813_v34  ;;  %v1079_v35 = vadd.f32 %v1078_v24, %v813_v34  ;;  %v1161_v38 = vmul.f32 %v813_v34, %v813_v34  ;;  %v2617_v40 = vpop.f32.mrb[69].mxu0  ;;  %v3189_v42 = vpop.f32.mrb[68].mxu1 }
 0x17c   : > { %v816_v45 = vpop.f32.mrb[70].mxu0  ;;  %1044 = vst [vmem:[#allocation2 + $0x240] sm:$0xff] %v3189_v42  ;;  %v2693_v47 = vpop.f32.mrb[69].mxu1 }
 0x17d   : > { %v1233_v48 = vadd.f32 %v1232_v33, %v1161_v38  ;;  %1007 = vst [vmem:[#allocation2 + $0x118] sm:$0xff] %v816_v45  ;;  %v1080_v50 = vadd.f32 %v1079_v35, %v816_v45  ;;  %v1162_v53 = vmul.f32 %v816_v45, %v816_v45  ;;  %v2618_v56 = vpop.f32.mrb[71].mxu0  ;;  %v968_v57 = vpop.f32.mrb[70].mxu1  ;;  %v1167_v33 = vmul.f32 %v3093_v58, %v3093_v58 }
 0x17e   : > { %v2694_v59 = vpop.f32.mrb[71].mxu1  ;;  %v1168_v38 = vmul.f32 %v3096_v1, %v3096_v1 }
 0x17f   : > { %v1234_v62 = vadd.f32 %v1233_v48, %v1162_v53 }
 0x182   : > { %v821_v63 = vpop.f32.mrb[72].mxu0 }
 0x183   : > { %1008 = vst [vmem:[#allocation2 + $0x120] sm:$0xff] %v821_v63  ;;  %v1081_v2 = vadd.f32 %v1080_v50, %v821_v63  ;;  %v1163_v5 = vmul.f32 %v821_v63, %v821_v63  ;;  %v2621_v6 = vpop.f32.mrb[73].mxu0 }
 0x184   : > { %v824_v9 = vpop.f32.mrb[74].mxu0 }
 0x185   : > { %v1235_v11 = vadd.f32 %v1234_v62, %v1163_v5  ;;  %1009 = vst [vmem:[#allocation2 + $0x128] sm:$0xff] %v824_v9  ;;  %v1082_v13 = vadd.f32 %v1081_v2, %v824_v9  ;;  %v1164_v14 = vmul.f32 %v824_v9, %v824_v9  ;;  %v2622_v17 = vpop.f32.mrb[75].mxu0 }
 0x187   : > { %v1083_v23 = vadd.f32 %v1082_v13, %v3087_v44  ;;  %v1236_v24 = vadd.f32 %v1235_v11, %v1164_v14  ;;  %v1169_v44 = vmul.f32 %v3099_v8, %v3099_v8 }
 0x189   : > { %v1084_v26 = vadd.f32 %v1083_v23, %v3090_v51  ;;  %v1237_v32 = vadd.f32 %v1236_v24, %v1165_v21  ;;  %v1170_v51 = vmul.f32 %v3102_v15, %v3102_v15 }
 0x18b   : > { %v1085_v34 = vadd.f32 %v1084_v26, %v3093_v58  ;;  %v1238_v35 = vadd.f32 %v1237_v32, %v1166_v25  ;;  %v1171_v58 = vmul.f32 %v3105_v22, %v3105_v22 }
 0x18d   : > { %v1086_v40 = vadd.f32 %v1085_v34, %v3096_v1  ;;  %v1239_v45 = vadd.f32 %v1238_v35, %v1167_v33  ;;  %v1172_v1 = vmul.f32 %v3108_v29, %v3108_v29 }
 0x18f   : > { %v1087_v47 = vadd.f32 %v1086_v40, %v3099_v8  ;;  %v1240_v48 = vadd.f32 %v1239_v45, %v1168_v38  ;;  %v1173_v8 = vmul.f32 %v3111_v36, %v3111_v36  ;;  %v1183_v45 = vmul.f32 %v3141_v55, %v3141_v55 }
 0x191   : > { %v1088_v50 = vadd.f32 %v1087_v47, %v3102_v15  ;;  %v1241_v53 = vadd.f32 %v1240_v48, %v1169_v44  ;;  %v1174_v15 = vmul.f32 %v3114_v43, %v3114_v43  ;;  %v1184_v48 = vmul.f32 %v3144_v0, %v3144_v0 }
 0x193   : > { %v1089_v56 = vadd.f32 %v1088_v50, %v3105_v22  ;;  %v1242_v57 = vadd.f32 %v1241_v53, %v1170_v51  ;;  %v1175_v22 = vmul.f32 %v3117_v52, %v3117_v52  ;;  %v1185_v50 = vmul.f32 %v3147_v10, %v3147_v10 }
 0x195   : > { %v1090_v59 = vadd.f32 %v1089_v56, %v3108_v29  ;;  %v1243_v62 = vadd.f32 %v1242_v57, %v1171_v58  ;;  %v1176_v29 = vmul.f32 %v3120_v60, %v3120_v60  ;;  %v1186_v58 = vmul.f32 %v3150_v19, %v3150_v19 }
 0x196   : > { %v1187_v57 = vmul.f32 %v3153_v30, %v3153_v30 }
 0x197   : > { %v1091_v63 = vadd.f32 %v1090_v59, %v3111_v36  ;;  %v1244_v2 = vadd.f32 %v1243_v62, %v1172_v1  ;;  %v1177_v36 = vmul.f32 %v3123_v4, %v3123_v4  ;;  %v1188_v59 = vmul.f32 %v3156_v39, %v3156_v39 }
 0x199   : > { %v1245_v5 = vadd.f32 %v1244_v2, %v1173_v8  ;;  %v1092_v6 = vadd.f32 %v1091_v63, %v3114_v43  ;;  %v1178_v43 = vmul.f32 %v3126_v12, %v3126_v12  ;;  %v1189_v8 = vmul.f32 %v3159_v49, %v3159_v49 }
 0x19a   : > { %v1190_v2 = vmul.f32 %v3162_v61, %v3162_v61 }
 0x19b   : > { %v1093_v9 = vadd.f32 %v1092_v6, %v3117_v52  ;;  %v1246_v11 = vadd.f32 %v1245_v5, %v1174_v15  ;;  %v1179_v52 = vmul.f32 %v3129_v20, %v3129_v20  ;;  %v1191_v5 = vmul.f32 %v3165_v7, %v3165_v7 }
 0x19d   : > { %v1094_v13 = vadd.f32 %v1093_v9, %v3120_v60  ;;  %v1247_v14 = vadd.f32 %v1246_v11, %v1175_v22  ;;  %v1180_v60 = vmul.f32 %v3132_v28, %v3132_v28  ;;  %v1192_v22 = vmul.f32 %v3168_v18, %v3168_v18 }
 0x19e   : > { %v1193_v11 = vmul.f32 %v3171_v31, %v3171_v31 }
 0x19f   : > { %v1095_v17 = vadd.f32 %v1094_v13, %v3123_v4  ;;  %v1248_v21 = vadd.f32 %v1247_v14, %v1176_v29  ;;  %v1181_v4 = vmul.f32 %v3135_v37, %v3135_v37  ;;  %v1194_v13 = vmul.f32 %v3174_v41, %v3174_v41 }
 0x1a1   : > { %v1096_v23 = vadd.f32 %v1095_v17, %v3126_v12  ;;  %v1249_v24 = vadd.f32 %v1248_v21, %v1177_v36  ;;  %v1182_v12 = vmul.f32 %v3138_v46, %v3138_v46  ;;  %v1195_v36 = vmul.f32 %v3177_v54, %v3177_v54 }
 0x1a2   : > { %v1196_v21 = vmul.f32 %v3180_v3, %v3180_v3 }
 0x1a3   : > { %v1097_v25 = vadd.f32 %v1096_v23, %v3129_v20  ;;  %v1250_v26 = vadd.f32 %v1249_v24, %v1178_v43  ;;  %v1197_v23 = vmul.f32 %v3183_v16, %v3183_v16 }
 0x1a5   : > { %v1098_v32 = vadd.f32 %v1097_v25, %v3132_v28  ;;  %v1251_v33 = vadd.f32 %v1250_v26, %v1179_v52  ;;  %v1198_v52 = vmul.f32 %v3186_v27, %v3186_v27 }
 0x1a7   : > { %v1099_v34 = vadd.f32 %v1098_v32, %v3135_v37  ;;  %v1252_v35 = vadd.f32 %v1251_v33, %v1180_v60 }
 0x1a9   : > { %v1100_v38 = vadd.f32 %v1099_v34, %v3138_v46  ;;  %v1253_v40 = vadd.f32 %v1252_v35, %v1181_v4 }
 0x1ab   : > { %v1101_v20 = vadd.f32 %v1100_v38, %v3141_v55  ;;  %v1254_v44 = vadd.f32 %v1253_v40, %v1182_v12  ;;  %v1045_v40 = vld [vmem:[#allocation3] sm:$0x1] }
 0x1ad   : > { %v1255_v28 = vadd.f32 %v1254_v44, %v1183_v45  ;;  %v1102_v47 = vadd.f32 %v1101_v20, %v3144_v0 }
 0x1af   : > { %v1256_v37 = vadd.f32 %v1255_v28, %v1184_v48  ;;  %v1103_v51 = vadd.f32 %v1102_v47, %v3147_v10 }
 0x1b1   : > { %v1257_v46 = vadd.f32 %v1256_v37, %v1185_v50  ;;  %v1104_v53 = vadd.f32 %v1103_v51, %v3150_v19 }
 0x1b3   : > { %v1258_v55 = vadd.f32 %v1257_v46, %v1186_v58  ;;  %v1105_v56 = vadd.f32 %v1104_v53, %v3153_v30 }
 0x1b5   : > { %v1259_v1 = vadd.f32 %v1258_v55, %v1187_v57  ;;  %v1106_v0 = vadd.f32 %v1105_v56, %v3156_v39 }
 0x1b7   : > { %v1260_v62 = vadd.f32 %v1259_v1, %v1188_v59  ;;  %v1107_v10 = vadd.f32 %v1106_v0, %v3159_v49 }
 0x1b9   : > { %v1261_v63 = vadd.f32 %v1260_v62, %v1189_v8  ;;  %v1108_v19 = vadd.f32 %v1107_v10, %v3162_v61 }
 0x1bb   : > { %v1262_v15 = vadd.f32 %v1261_v63, %v1190_v2  ;;  %v1109_v30 = vadd.f32 %v1108_v19, %v3165_v7 }
 0x1bd   : > { %v1263_v6 = vadd.f32 %v1262_v15, %v1191_v5  ;;  %v1110_v39 = vadd.f32 %v1109_v30, %v3168_v18 }
 0x1bf   : > { %v1264_v9 = vadd.f32 %v1263_v6, %v1192_v22  ;;  %v1111_v49 = vadd.f32 %v1110_v39, %v3171_v31 }
 0x1c1   : > { %v1265_v29 = vadd.f32 %v1264_v9, %v1193_v11  ;;  %v1112_v61 = vadd.f32 %v1111_v49, %v3174_v41 }
 0x1c3   : > { %v1266_v14 = vadd.f32 %v1265_v29, %v1194_v13  ;;  %v1113_v7 = vadd.f32 %v1112_v61, %v3177_v54  ;;  %v1199_v54 = vmul.f32 %v3189_v42, %v3189_v42 }
 0x1c5   : > { %v1267_v17 = vadd.f32 %v1266_v14, %v1195_v36  ;;  %v1114_v18 = vadd.f32 %v1113_v7, %v3180_v3 }
 0x1c7   : > { %v1268_v43 = vadd.f32 %v1267_v17, %v1196_v21  ;;  %v1115_v31 = vadd.f32 %v1114_v18, %v3183_v16 }
 0x1c9   : > { %v1269_v24 = vadd.f32 %v1268_v43, %v1197_v23  ;;  %v1116_v41 = vadd.f32 %v1115_v31, %v3186_v27  ;;  %v1126_v27 = vld [vmem:[#allocation3 + $0x1] sm:$0x1] }
 0x1cb   : > { %v1270_v25 = vadd.f32 %v1269_v24, %v1198_v52  ;;  %v1117_v26 = vadd.f32 %v1116_v41, %v3189_v42 }
 0x1cd   : > { %v1118_v60 = vrot.slane %v1117_v26, 4  ;;  %v1271_v3 = vadd.f32 %v1270_v25, %v1199_v54 }
 0x1cf   : > { %v1119_v32 = vadd.f32 %v1118_v60, %v1117_v26  ;;  %v1272_v33 = vrot.slane %v1271_v3, 4 }
 0x1d1   : > { %v1120_v4 = vrot.slane %v1119_v32, 2  ;;  %v1273_v34 = vadd.f32 %v1272_v33, %v1271_v3 }
 0x1d3   : > { %v1121_v35 = vadd.f32 %v1120_v4, %v1119_v32  ;;  %v1274_v16 = vrot.slane %v1273_v34, 2 }
 0x1d5   : > { %v1122_v12 = vrot.slane %v1121_v35, 1  ;;  %v1275_v38 = vadd.f32 %v1274_v16, %v1273_v34 }
 0x1d7   : > { %v1123_v20 = vadd.f32 %v1122_v12, %v1121_v35  ;;  %v1276_v45 = vrot.slane %v1275_v38, 1 }
 0x1d9   : > { %v1124_v44 = vadd.f32 %v1123_v20, %v1045_v40  ;;  %v1277_v28 = vadd.f32 %v1276_v45, %v1275_v38 }
 0x1db   : > { %1125 = vst [vmem:[#allocation3] sm:$0x1] %v1124_v44  ;;  %v1278_v47 = vadd.f32 %v1277_v28, %v1126_v27 }
 0x1dd   : > { %1279 = vst [vmem:[#allocation3 + $0x1] sm:$0x1] %v1278_v47 }
 0x1de PF: > { %p2130_p5 = scmp.ne.s32.totalorder %s2786_s15, 1 }
 0x1df   : > { %v1295_v55 = vld [vmem:[%s3576_s2] sm:$0x1] (!%p2130_p5)  ;;  %v1306_v10 = vld [vmem:[#allocation2 + $0x8] sm:$0xff] (!%p2130_p5)  ;;  %v1307_v8 = vld [vmem:[#allocation2 + $0x10] sm:$0xff] (!%p2130_p5) }
 0x1e0   : > { %1283 = sbr.rel (%p2130_p5) target bundleno = 583 (0x247), region = 48  ;;  %v1300_v1 = vld [vmem:[%s3577_s3] sm:$0x1] (!%p2130_p5)  ;;  %v1308_v63 = vld [vmem:[#allocation2 + $0x18] sm:$0xff] (!%p2130_p5)  ;;  %v1310_v2 = vld [vmem:[#allocation2 + $0x28] sm:$0xff] (!%p2130_p5) }
 0x1e1   : > { %v1305_v62 = vld [vmem:[#allocation2] sm:$0xff] (!%p2130_p5)  ;;  %v1311_v15 = vld [vmem:[#allocation2 + $0x30] sm:$0xff] (!%p2130_p5)  ;;  %v1312_v30 = vld [vmem:[#allocation2 + $0x38] sm:$0xff] (!%p2130_p5) }
 0x1e2   : > { %v1288_v42 = vld [vmem:[#allocation3] sm:$0x1] (!%p2130_p5)  ;;  %v1309_v19 = vld [vmem:[#allocation2 + $0x20] sm:$0xff] (!%p2130_p5)  ;;  %v1315_v39 = vld [vmem:[#allocation2 + $0x50] sm:$0xff] (!%p2130_p5) }
 0x1e3   : > { %v1289_v37 = vmul.f32 (!%p2130_p5), 0.0017301039, %v1288_v42  ;;  %v1313_v5 = vld [vmem:[#allocation2 + $0x40] sm:$0xff] (!%p2130_p5)  ;;  %v1314_v6 = vld [vmem:[#allocation2 + $0x48] sm:$0xff] (!%p2130_p5)  ;;  %v1316_v9 = vld [vmem:[#allocation2 + $0x58] sm:$0xff] (!%p2130_p5) }
 0x1e4   : > { %v1290_v48 = vld [vmem:[#allocation3 + $0x1] sm:$0x1] (!%p2130_p5)  ;;  %v1317_v49 = vld [vmem:[#allocation2 + $0x60] sm:$0xff] (!%p2130_p5)  ;;  %v1319_v7 = vld [vmem:[#allocation2 + $0x70] sm:$0xff] (!%p2130_p5) }
 0x1e5   : > { %v1291_v51 = vmul.f32 (!%p2130_p5), 0.0017301039, %v1290_v48  ;;  %v1292_v50 = vmul.f32 (!%p2130_p5), %v1289_v37, %v1289_v37  ;;  %v1318_v14 = vld [vmem:[#allocation2 + $0x68] sm:$0xff] (!%p2130_p5)  ;;  %v1320_v36 = vld [vmem:[#allocation2 + $0x78] sm:$0xff] (!%p2130_p5) }
 0x1e7   : > { %v1293_v46 = vsub.f32 %v1291_v51, %v1292_v50 }
 0x1e9   : > { %v1294_v53 = vmax.f32 %v1293_v46, 0.0 }
 0x1eb   : > { %v1296_v58 = vadd.f32 0.001, %v1294_v53 }
 0x1ed   : > { %2770 = vrsqrt.f32 %v1296_v58 }
 0x1f7   : > { %v2771_v56 = vpop.eup %2770 }
 0x1f8   : > { %v1298_v57 = vmul.f32 %v2771_v56, %v1295_v55  ;;  %v1321_v55 = vld [vmem:[#allocation2 + $0x80] sm:$0xff] }
 0x1fa   : > { %1299 = vst [vmem:[#allocation3 + $0x2] sm:$0x1] %v1298_v57  ;;  %v1301_v0 = vmul.f32 %v1298_v57, %v1289_v37 }
 0x1fc   : > { %v1302_v59 = vsub.f32 %v1300_v1, %v1301_v0 }
 0x1fe   : > { %1303 = vst [vmem:[#allocation3 + $0x3] sm:$0x1] %v1302_v59  ;;  %v1322_v59 = vld [vmem:[#allocation2 + $0x88] sm:$0xff] }
 0x201   : > { %v3304_v22 = vld [vmem:[#allocation3 + $0x2] ss:$0 sm:$0xff] }
 0x202   : > { %v1383_v11 = vmul.f32 %v3304_v22, %v1305_v62  ;;  %v1384_v29 = vmul.f32 %v3304_v22, %v1306_v10  ;;  %v1385_v61 = vmul.f32 %v3304_v22, %v1307_v8  ;;  %v1386_v13 = vmul.f32 %v3304_v22, %v1308_v63 }
 0x203   : > { %v1387_v17 = vmul.f32 %v3304_v22, %v1309_v19  ;;  %v1388_v18 = vmul.f32 %v3304_v22, %v1310_v2  ;;  %v1389_v21 = vmul.f32 %v3304_v22, %v1311_v15  ;;  %v1390_v43 = vmul.f32 %v3304_v22, %v1312_v30  ;;  %v1323_v19 = vld [vmem:[#allocation2 + $0x90] sm:$0xff]  ;;  %v1324_v2 = vld [vmem:[#allocation2 + $0x98] sm:$0xff] }
 0x204   : > { %v1391_v31 = vmul.f32 %v3304_v22, %v1313_v5  ;;  %v1392_v23 = vmul.f32 %v3304_v22, %v1314_v6  ;;  %v1393_v24 = vmul.f32 %v3304_v22, %v1315_v39  ;;  %v1394_v41 = vmul.f32 %v3304_v22, %v1316_v9  ;;  %v1325_v39 = vld [vmem:[#allocation2 + $0xa0] sm:$0xff]  ;;  %v1326_v9 = vld [vmem:[#allocation2 + $0xa8] sm:$0xff] }
 0x205   : > { %v3318_v52 = vld [vmem:[#allocation3 + $0x3] ss:$0 sm:$0xff]  ;;  %v1395_v54 = vmul.f32 %v3304_v22, %v1317_v49  ;;  %v1396_v25 = vmul.f32 %v3304_v22, %v1318_v14  ;;  %v1397_v26 = vmul.f32 %v3304_v22, %v1319_v7  ;;  %v1398_v60 = vmul.f32 %v3304_v22, %v1320_v36 }
 0x206   : > { %v1461_v3 = vadd.f32 %v3318_v52, %v1383_v11  ;;  %v1462_v32 = vadd.f32 %v3318_v52, %v1384_v29  ;;  %v1463_v33 = vadd.f32 %v3318_v52, %v1385_v61  ;;  %v1464_v4 = vadd.f32 %v3318_v52, %v1386_v13  ;;  %v1327_v13 = vld [vmem:[#allocation2 + $0xb0] sm:$0xff] }
 0x207   : > { %v1465_v34 = vadd.f32 %v3318_v52, %v1387_v17  ;;  %v1466_v35 = vadd.f32 %v3318_v52, %v1388_v18  ;;  %v1467_v16 = vadd.f32 %v3318_v52, %v1389_v21  ;;  %v1468_v12 = vadd.f32 %v3318_v52, %v1390_v43  ;;  %v1328_v18 = vld [vmem:[#allocation2 + $0xb8] sm:$0xff] }
 0x208   : > { %v1534_v38 = vmax.f32 %v1461_v3, 0.0  ;;  %v1535_v40 = vmax.f32 %v1462_v32, 0.0  ;;  %v1536_v20 = vmax.f32 %v1463_v33, 0.0  ;;  %v1537_v45 = vmax.f32 %v1464_v4, 0.0  ;;  %v1330_v4 = vld [vmem:[#allocation2 + $0xc8] sm:$0xff] }
 0x209   : > { %v1538_v27 = vmax.f32 %v1465_v34, 0.0  ;;  %v1539_v44 = vmax.f32 %v1466_v35, 0.0  ;;  %v1540_v28 = vmax.f32 %v1467_v16, 0.0  ;;  %v1541_v47 = vmax.f32 %v1468_v12, 0.0 }
 0x20a   : > { %v2286_v42 = vpack.c.bf16 %v1535_v40, %v1534_v38  ;;  %v2291_v48 = vpack.c.bf16 %v1537_v45, %v1536_v20  ;;  %v1469_v37 = vadd.f32 %v3318_v52, %v1391_v31  ;;  %v1470_v51 = vadd.f32 %v3318_v52, %v1392_v23  ;;  %v1331_v38 = vld [vmem:[#allocation2 + $0xd0] sm:$0xff]  ;;  %v1332_v40 = vld [vmem:[#allocation2 + $0xd8] sm:$0xff] }
 0x20b   : > { %v2296_v50 = vpack.c.bf16 %v1539_v44, %v1538_v27  ;;  %v2301_v46 = vpack.c.bf16 %v1541_v47, %v1540_v28  ;;  %v1471_v53 = vadd.f32 %v3318_v52, %v1393_v24  ;;  %v1472_v58 = vadd.f32 %v3318_v52, %v1394_v41  ;;  %v1329_v24 = vld [vmem:[#allocation2 + $0xc0] sm:$0xff]  ;;  %v1334_v47 = vld [vmem:[#allocation2 + $0xe8] sm:$0xff] }
 0x20c   : > { %2287 = vst [vmem:[%s3578_s4] sm:$0xff] %v2286_v42   ;;  %2463 = vst [vmem:[%s3578_s4 + $0x8] sm:$0xff] %v2291_v48   ;;  %v1542_v56 = vmax.f32 %v1469_v37, 0.0  ;;  %v1543_v57 = vmax.f32 %v1470_v51, 0.0  ;;  %v1473_v1 = vadd.f32 %v3318_v52, %v1395_v54  ;;  %v1474_v0 = vadd.f32 %v3318_v52, %v1396_v25  ;;  %v1333_v28 = vld [vmem:[#allocation2 + $0xe0] sm:$0xff] }
 0x20d   : > { %2464 = vst [vmem:[%s3578_s4 + $0x10] sm:$0xff] %v2296_v50   ;;  %2465 = vst [vmem:[%s3578_s4 + $0x18] sm:$0xff] %v2301_v46   ;;  %v1544_v62 = vmax.f32 %v1471_v53, 0.0  ;;  %v1545_v10 = vmax.f32 %v1472_v58, 0.0  ;;  %v1475_v8 = vadd.f32 %v3318_v52, %v1397_v26  ;;  %v1476_v63 = vadd.f32 %v3318_v52, %v1398_v60  ;;  %v1335_v50 = vld [vmem:[#allocation2 + $0xf0] sm:$0xff] }
 0x20e   : > { %v2306_v15 = vpack.c.bf16 %v1543_v57, %v1542_v56  ;;  %v1546_v30 = vmax.f32 %v1473_v1, 0.0  ;;  %v1547_v5 = vmax.f32 %v1474_v0, 0.0  ;;  %v1399_v6 = vmul.f32 %v3304_v22, %v1321_v55  ;;  %v1336_v56 = vld [vmem:[#allocation2 + $0xf8] sm:$0xff] }
 0x20f   : > { %v2311_v49 = vpack.c.bf16 %v1545_v10, %v1544_v62  ;;  %v1548_v11 = vmax.f32 %v1475_v8, 0.0  ;;  %v1549_v29 = vmax.f32 %v1476_v63, 0.0  ;;  %v1400_v61 = vmul.f32 %v3304_v22, %v1322_v59  ;;  %v1337_v62 = vld [vmem:[#allocation2 + $0x100] sm:$0xff] }
 0x210   : > { %2466 = vst [vmem:[%s3578_s4 + $0x20] sm:$0xff] %v2306_v15   ;;  %v2316_v14 = vpack.c.bf16 %v1547_v5, %v1546_v30  ;;  %v1477_v7 = vadd.f32 %v3318_v52, %v1399_v6  ;;  %v1401_v36 = vmul.f32 %v3304_v22, %v1323_v19  ;;  %v1402_v17 = vmul.f32 %v3304_v22, %v1324_v2  ;;  %v1338_v6 = vld [vmem:[#allocation2 + $0x108] sm:$0xff] }
 0x211   : > { %2467 = vst [vmem:[%s3578_s4 + $0x28] sm:$0xff] %v2311_v49   ;;  %v2321_v21 = vpack.c.bf16 %v1549_v29, %v1548_v11  ;;  %v1478_v43 = vadd.f32 %v3318_v52, %v1400_v61  ;;  %v1403_v31 = vmul.f32 %v3304_v22, %v1325_v39  ;;  %v1404_v23 = vmul.f32 %v3304_v22, %v1326_v9  ;;  %v1339_v29 = vld [vmem:[#allocation2 + $0x110] sm:$0xff]  ;;  %v1340_v61 = vld [vmem:[#allocation2 + $0x118] sm:$0xff] }
 0x212   : > { %2468 = vst [vmem:[%s3578_s4 + $0x30] sm:$0xff] %v2316_v14   ;;  %v1550_v41 = vmax.f32 %v1477_v7, 0.0  ;;  %v1479_v54 = vadd.f32 %v3318_v52, %v1401_v36  ;;  %v1480_v25 = vadd.f32 %v3318_v52, %v1402_v17  ;;  %v1405_v26 = vmul.f32 %v3304_v22, %v1327_v13  ;;  %v1341_v17 = vld [vmem:[#allocation2 + $0x120] sm:$0xff] }
 0x213   : > { %2469 = vst [vmem:[%s3578_s4 + $0x38] sm:$0xff] %v2321_v21   ;;  %v1551_v60 = vmax.f32 %v1478_v43, 0.0  ;;  %v1481_v3 = vadd.f32 %v3318_v52, %v1403_v31  ;;  %v1482_v32 = vadd.f32 %v3318_v52, %v1404_v23  ;;  %v1406_v33 = vmul.f32 %v3304_v22, %v1328_v18  ;;  %v1342_v18 = vld [vmem:[#allocation2 + $0x128] sm:$0xff] }
 0x214   : > { %v1552_v34 = vmax.f32 %v1479_v54, 0.0  ;;  %v1553_v35 = vmax.f32 %v1480_v25, 0.0  ;;  %v1483_v16 = vadd.f32 %v3318_v52, %v1405_v26  ;;  %v1407_v12 = vmul.f32 %v3304_v22, %v1329_v24  ;;  %v1343_v24 = vld [vmem:[#allocation2 + $0x130] sm:$0xff] }
 0x215   : > { %v2326_v20 = vpack.c.bf16 %v1551_v60, %v1550_v41  ;;  %v1554_v45 = vmax.f32 %v1481_v3, 0.0  ;;  %v1555_v27 = vmax.f32 %v1482_v32, 0.0  ;;  %v1484_v44 = vadd.f32 %v3318_v52, %v1406_v33  ;;  %v1344_v60 = vld [vmem:[#allocation2 + $0x138] sm:$0xff] }
 0x216   : > { %v2331_v42 = vpack.c.bf16 %v1553_v35, %v1552_v34  ;;  %v1556_v48 = vmax.f32 %v1483_v16, 0.0  ;;  %v1408_v37 = vmul.f32 %v3304_v22, %v1330_v4  ;;  %v1485_v51 = vadd.f32 %v3318_v52, %v1407_v12  ;;  %v1345_v34 = vld [vmem:[#allocation2 + $0x140] sm:$0xff] }
 0x217   : > { %2470 = vst [vmem:[%s3578_s4 + $0x40] sm:$0xff] %v2326_v20   ;;  %v2336_v46 = vpack.c.bf16 %v1555_v27, %v1554_v45  ;;  %v1557_v53 = vmax.f32 %v1484_v44, 0.0  ;;  %v1409_v58 = vmul.f32 %v3304_v22, %v1331_v38  ;;  %v1410_v55 = vmul.f32 %v3304_v22, %v1332_v40  ;;  %v1346_v44 = vld [vmem:[#allocation2 + $0x148] sm:$0xff] }
 0x218   : > { %2471 = vst [vmem:[%s3578_s4 + $0x48] sm:$0xff] %v2331_v42   ;;  %v1486_v57 = vadd.f32 %v3318_v52, %v1408_v37  ;;  %v1558_v1 = vmax.f32 %v1485_v51, 0.0  ;;  %v1411_v0 = vmul.f32 %v3304_v22, %v1333_v28  ;;  %v1412_v59 = vmul.f32 %v3304_v22, %v1334_v47  ;;  %v1347_v37 = vld [vmem:[#allocation2 + $0x150] sm:$0xff]  ;;  %v1348_v51 = vld [vmem:[#allocation2 + $0x158] sm:$0xff] }
 0x219   : > { %2472 = vst [vmem:[%s3578_s4 + $0x50] sm:$0xff] %v2336_v46   ;;  %v2341_v10 = vpack.c.bf16 %v1557_v53, %v1556_v48  ;;  %v1487_v8 = vadd.f32 %v3318_v52, %v1409_v58  ;;  %v1488_v63 = vadd.f32 %v3318_v52, %v1410_v55  ;;  %v1413_v19 = vmul.f32 %v3304_v22, %v1335_v50  ;;  %v1349_v55 = vld [vmem:[#allocation2 + $0x160] sm:$0xff] }
 0x21a   : > { %v1559_v2 = vmax.f32 %v1486_v57, 0.0  ;;  %v1489_v15 = vadd.f32 %v3318_v52, %v1411_v0  ;;  %v1490_v30 = vadd.f32 %v3318_v52, %v1412_v59  ;;  %v1414_v5 = vmul.f32 %v3304_v22, %v1336_v56  ;;  %v1350_v56 = vld [vmem:[#allocation2 + $0x168] sm:$0xff] }
 0x21b   : > { %2473 = vst [vmem:[%s3578_s4 + $0x58] sm:$0xff] %v2341_v10   ;;  %v1560_v39 = vmax.f32 %v1487_v8, 0.0  ;;  %v1561_v9 = vmax.f32 %v1488_v63, 0.0  ;;  %v1491_v49 = vadd.f32 %v3318_v52, %v1413_v19  ;;  %v1415_v11 = vmul.f32 %v3304_v22, %v1337_v62  ;;  %v1351_v62 = vld [vmem:[#allocation2 + $0x170] sm:$0xff] }
 0x21c   : > { %v2346_v13 = vpack.c.bf16 %v1559_v2, %v1558_v1  ;;  %v1562_v14 = vmax.f32 %v1489_v15, 0.0  ;;  %v1563_v7 = vmax.f32 %v1490_v30, 0.0  ;;  %v1492_v36 = vadd.f32 %v3318_v52, %v1414_v5  ;;  %v1352_v2 = vld [vmem:[#allocation2 + $0x178] sm:$0xff] }
 0x21d   : > { %v2351_v21 = vpack.c.bf16 %v1561_v9, %v1560_v39  ;;  %v1564_v43 = vmax.f32 %v1491_v49, 0.0  ;;  %v1416_v31 = vmul.f32 %v3304_v22, %v1338_v6  ;;  %v1493_v23 = vadd.f32 %v3318_v52, %v1415_v11  ;;  %v1353_v39 = vld [vmem:[#allocation2 + $0x180] sm:$0xff] }
 0x21e   : > { %2474 = vst [vmem:[%s3578_s4 + $0x60] sm:$0xff] %v2346_v13   ;;  %v2356_v41 = vpack.c.bf16 %v1563_v7, %v1562_v14  ;;  %v1565_v54 = vmax.f32 %v1492_v36, 0.0  ;;  %v1417_v25 = vmul.f32 %v3304_v22, %v1339_v29  ;;  %v1418_v26 = vmul.f32 %v3304_v22, %v1340_v61  ;;  %v1354_v36 = vld [vmem:[#allocation2 + $0x188] sm:$0xff] }
 0x21f   : > { %2475 = vst [vmem:[%s3578_s4 + $0x68] sm:$0xff] %v2351_v21   ;;  %v1494_v3 = vadd.f32 %v3318_v52, %v1416_v31  ;;  %v1566_v32 = vmax.f32 %v1493_v23, 0.0  ;;  %v1419_v33 = vmul.f32 %v3304_v22, %v1341_v17  ;;  %v1420_v4 = vmul.f32 %v3304_v22, %v1342_v18  ;;  %v1355_v31 = vld [vmem:[#allocation2 + $0x190] sm:$0xff]  ;;  %v1356_v23 = vld [vmem:[#allocation2 + $0x198] sm:$0xff] }
 0x220   : > { %2476 = vst [vmem:[%s3578_s4 + $0x70] sm:$0xff] %v2356_v41   ;;  %v2361_v35 = vpack.c.bf16 %v1565_v54, %v1564_v43  ;;  %v1495_v16 = vadd.f32 %v3318_v52, %v1417_v25  ;;  %v1496_v12 = vadd.f32 %v3318_v52, %v1418_v26  ;;  %v1421_v38 = vmul.f32 %v3304_v22, %v1343_v24  ;;  %v1357_v26 = vld [vmem:[#allocation2 + $0x1a0] sm:$0xff] }
 0x221   : > { %v1567_v40 = vmax.f32 %v1494_v3, 0.0  ;;  %v1497_v20 = vadd.f32 %v3318_v52, %v1419_v33  ;;  %v1498_v45 = vadd.f32 %v3318_v52, %v1420_v4  ;;  %v1422_v27 = vmul.f32 %v3304_v22, %v1344_v60  ;;  %v1358_v60 = vld [vmem:[#allocation2 + $0x1a8] sm:$0xff] }
 0x222   : > { %2477 = vst [vmem:[%s3578_s4 + $0x78] sm:$0xff] %v2361_v35   ;;  %v1568_v28 = vmax.f32 %v1495_v16, 0.0  ;;  %v1569_v47 = vmax.f32 %v1496_v12, 0.0  ;;  %v1499_v42 = vadd.f32 %v3318_v52, %v1421_v38  ;;  %v1423_v48 = vmul.f32 %v3304_v22, %v1345_v34  ;;  %v1359_v34 = vld [vmem:[#allocation2 + $0x1b0] sm:$0xff] }
 0x223   : > { %v2366_v50 = vpack.c.bf16 %v1567_v40, %v1566_v32  ;;  %v1570_v46 = vmax.f32 %v1497_v20, 0.0  ;;  %v1571_v53 = vmax.f32 %v1498_v45, 0.0  ;;  %v1500_v58 = vadd.f32 %v3318_v52, %v1422_v27  ;;  %v1360_v40 = vld [vmem:[#allocation2 + $0x1b8] sm:$0xff] }
 0x224   : > { %v2371_v57 = vpack.c.bf16 %v1569_v47, %v1568_v28  ;;  %v1572_v1 = vmax.f32 %v1499_v42, 0.0  ;;  %v1424_v0 = vmul.f32 %v3304_v22, %v1346_v44  ;;  %v1501_v59 = vadd.f32 %v3318_v52, %v1423_v48  ;;  %v1361_v28 = vld [vmem:[#allocation2 + $0x1c0] sm:$0xff] }
 0x225   : > { %2478 = vst [vmem:[%s3578_s4 + $0x80] sm:$0xff] %v2366_v50   ;;  %v2376_v10 = vpack.c.bf16 %v1571_v53, %v1570_v46  ;;  %v1573_v8 = vmax.f32 %v1500_v58, 0.0  ;;  %v1425_v63 = vmul.f32 %v3304_v22, %v1347_v37  ;;  %v1426_v19 = vmul.f32 %v3304_v22, %v1348_v51  ;;  %v1362_v58 = vld [vmem:[#allocation2 + $0x1c8] sm:$0xff] }
 0x226   : > { %2479 = vst [vmem:[%s3578_s4 + $0x88] sm:$0xff] %v2371_v57   ;;  %v1502_v15 = vadd.f32 %v3318_v52, %v1424_v0  ;;  %v1574_v30 = vmax.f32 %v1501_v59, 0.0  ;;  %v1427_v5 = vmul.f32 %v3304_v22, %v1349_v55  ;;  %v1428_v6 = vmul.f32 %v3304_v22, %v1350_v56  ;;  %v1363_v0 = vld [vmem:[#allocation2 + $0x1d0] sm:$0xff]  ;;  %v1364_v59 = vld [vmem:[#allocation2 + $0x1d8] sm:$0xff] }
 0x227   : > { %2480 = vst [vmem:[%s3578_s4 + $0x90] sm:$0xff] %v2376_v10   ;;  %v2381_v9 = vpack.c.bf16 %v1573_v8, %v1572_v1  ;;  %v1503_v49 = vadd.f32 %v3318_v52, %v1425_v63  ;;  %v1504_v11 = vadd.f32 %v3318_v52, %v1426_v19  ;;  %v1429_v29 = vmul.f32 %v3304_v22, %v1351_v62  ;;  %v1365_v19 = vld [vmem:[#allocation2 + $0x1e0] sm:$0xff] }
 0x228   : > { %v1575_v61 = vmax.f32 %v1502_v15, 0.0  ;;  %v1505_v13 = vadd.f32 %v3318_v52, %v1427_v5  ;;  %v1506_v14 = vadd.f32 %v3318_v52, %v1428_v6  ;;  %v1430_v7 = vmul.f32 %v3304_v22, %v1352_v2  ;;  %v1366_v2 = vld [vmem:[#allocation2 + $0x1e8] sm:$0xff] }
 0x229   : > { %2481 = vst [vmem:[%s3578_s4 + $0x98] sm:$0xff] %v2381_v9   ;;  %v1576_v17 = vmax.f32 %v1503_v49, 0.0  ;;  %v1577_v18 = vmax.f32 %v1504_v11, 0.0  ;;  %v1507_v21 = vadd.f32 %v3318_v52, %v1429_v29  ;;  %v1431_v43 = vmul.f32 %v3304_v22, %v1353_v39  ;;  %v1367_v39 = vld [vmem:[#allocation2 + $0x1f0] sm:$0xff] }
 0x22a   : > { %v2386_v24 = vpack.c.bf16 %v1575_v61, %v1574_v30  ;;  %v1578_v41 = vmax.f32 %v1505_v13, 0.0  ;;  %v1579_v54 = vmax.f32 %v1506_v14, 0.0  ;;  %v1508_v25 = vadd.f32 %v3318_v52, %v1430_v7  ;;  %v1368_v61 = vld [vmem:[#allocation2 + $0x1f8] sm:$0xff] }
 0x22b   : > { %v2391_v3 = vpack.c.bf16 %v1577_v18, %v1576_v17  ;;  %v1580_v32 = vmax.f32 %v1507_v21, 0.0  ;;  %v1432_v33 = vmul.f32 %v3304_v22, %v1354_v36  ;;  %v1509_v4 = vadd.f32 %v3318_v52, %v1431_v43  ;;  %v1369_v17 = vld [vmem:[#allocation2 + $0x200] sm:$0xff] }
 0x22c   : > { %2482 = vst [vmem:[%s3578_s4 + $0xa0] sm:$0xff] %v2386_v24   ;;  %v2396_v35 = vpack.c.bf16 %v1579_v54, %v1578_v41  ;;  %v1581_v16 = vmax.f32 %v1508_v25, 0.0  ;;  %v1433_v12 = vmul.f32 %v3304_v22, %v1355_v31  ;;  %v1434_v38 = vmul.f32 %v3304_v22, %v1356_v23  ;;  %v1370_v25 = vld [vmem:[#allocation2 + $0x208] sm:$0xff] }
 0x22d   : > { %2483 = vst [vmem:[%s3578_s4 + $0xa8] sm:$0xff] %v2391_v3   ;;  %v1510_v20 = vadd.f32 %v3318_v52, %v1432_v33  ;;  %v1582_v45 = vmax.f32 %v1509_v4, 0.0  ;;  %v1435_v27 = vmul.f32 %v3304_v22, %v1357_v26  ;;  %v1436_v44 = vmul.f32 %v3304_v22, %v1358_v60  ;;  %v1371_v33 = vld [vmem:[#allocation2 + $0x210] sm:$0xff]  ;;  %v1372_v4 = vld [vmem:[#allocation2 + $0x218] sm:$0xff] }
 0x22e   : > { %2484 = vst [vmem:[%s3578_s4 + $0xb0] sm:$0xff] %v2396_v35   ;;  %v2401_v47 = vpack.c.bf16 %v1581_v16, %v1580_v32  ;;  %v1511_v42 = vadd.f32 %v3318_v52, %v1433_v12  ;;  %v1512_v48 = vadd.f32 %v3318_v52, %v1434_v38  ;;  %v1437_v37 = vmul.f32 %v3304_v22, %v1359_v34  ;;  %v1373_v38 = vld [vmem:[#allocation2 + $0x220] sm:$0xff] }
 0x22f   : > { %v1583_v51 = vmax.f32 %v1510_v20, 0.0  ;;  %v1513_v50 = vadd.f32 %v3318_v52, %v1435_v27  ;;  %v1514_v46 = vadd.f32 %v3318_v52, %v1436_v44  ;;  %v1438_v53 = vmul.f32 %v3304_v22, %v1360_v40  ;;  %v1374_v40 = vld [vmem:[#allocation2 + $0x228] sm:$0xff] }
 0x230   : > { %2485 = vst [vmem:[%s3578_s4 + $0xb8] sm:$0xff] %v2401_v47   ;;  %v1584_v55 = vmax.f32 %v1511_v42, 0.0  ;;  %v1585_v56 = vmax.f32 %v1512_v48, 0.0  ;;  %v1515_v57 = vadd.f32 %v3318_v52, %v1437_v37  ;;  %v1439_v1 = vmul.f32 %v3304_v22, %v1361_v28  ;;  %v1375_v28 = vld [vmem:[#allocation2 + $0x230] sm:$0xff] }
 0x231   : > { %v2406_v62 = vpack.c.bf16 %v1583_v51, %v1582_v45  ;;  %v1586_v10 = vmax.f32 %v1513_v50, 0.0  ;;  %v1587_v8 = vmax.f32 %v1514_v46, 0.0  ;;  %v1516_v63 = vadd.f32 %v3318_v52, %v1438_v53  ;;  %v1376_v51 = vld [vmem:[#allocation2 + $0x238] sm:$0xff] }
 0x232   : > { %v2411_v15 = vpack.c.bf16 %v1585_v56, %v1584_v55  ;;  %v1588_v30 = vmax.f32 %v1515_v57, 0.0  ;;  %v1440_v5 = vmul.f32 %v3304_v22, %v1362_v58  ;;  %v1517_v6 = vadd.f32 %v3318_v52, %v1439_v1  ;;  %v1377_v55 = vld [vmem:[#allocation2 + $0x240] sm:$0xff] }
 0x233   : > { %2486 = vst [vmem:[%s3578_s4 + $0xc0] sm:$0xff] %v2406_v62   ;;  %v2416_v9 = vpack.c.bf16 %v1587_v8, %v1586_v10  ;;  %v1589_v49 = vmax.f32 %v1516_v63, 0.0  ;;  %v1441_v11 = vmul.f32 %v3304_v22, %v1363_v0  ;;  %v1442_v29 = vmul.f32 %v3304_v22, %v1364_v59 }
 0x234   : > { %2487 = vst [vmem:[%s3578_s4 + $0xc8] sm:$0xff] %v2411_v15   ;;  %v1518_v13 = vadd.f32 %v3318_v52, %v1440_v5  ;;  %v1590_v14 = vmax.f32 %v1517_v6, 0.0  ;;  %v1443_v7 = vmul.f32 %v3304_v22, %v1365_v19  ;;  %v1444_v36 = vmul.f32 %v3304_v22, %v1366_v2 }
 0x235   : > { %2488 = vst [vmem:[%s3578_s4 + $0xd0] sm:$0xff] %v2416_v9   ;;  %v2421_v18 = vpack.c.bf16 %v1589_v49, %v1588_v30  ;;  %v1519_v21 = vadd.f32 %v3318_v52, %v1441_v11  ;;  %v1520_v43 = vadd.f32 %v3318_v52, %v1442_v29  ;;  %v1445_v31 = vmul.f32 %v3304_v22, %v1367_v39 }
 0x236   : > { %v1591_v23 = vmax.f32 %v1518_v13, 0.0  ;;  %v1521_v24 = vadd.f32 %v3318_v52, %v1443_v7  ;;  %v1522_v41 = vadd.f32 %v3318_v52, %v1444_v36  ;;  %v1446_v54 = vmul.f32 %v3304_v22, %v1368_v61 }
 0x237   : > { %2489 = vst [vmem:[%s3578_s4 + $0xd8] sm:$0xff] %v2421_v18   ;;  %v1592_v26 = vmax.f32 %v1519_v21, 0.0  ;;  %v1593_v60 = vmax.f32 %v1520_v43, 0.0  ;;  %v1523_v3 = vadd.f32 %v3318_v52, %v1445_v31  ;;  %v1447_v32 = vmul.f32 %v3304_v22, %v1369_v17 }
 0x238   : > { %v2426_v34 = vpack.c.bf16 %v1591_v23, %v1590_v14  ;;  %v1594_v35 = vmax.f32 %v1521_v24, 0.0  ;;  %v1595_v16 = vmax.f32 %v1522_v41, 0.0  ;;  %v1524_v12 = vadd.f32 %v3318_v52, %v1446_v54 }
 0x239   : > { %v2431_v20 = vpack.c.bf16 %v1593_v60, %v1592_v26  ;;  %v1596_v45 = vmax.f32 %v1523_v3, 0.0  ;;  %v1448_v27 = vmul.f32 %v3304_v22, %v1370_v25  ;;  %v1525_v44 = vadd.f32 %v3318_v52, %v1447_v32 }
 0x23a   : > { %2490 = vst [vmem:[%s3578_s4 + $0xe0] sm:$0xff] %v2426_v34   ;;  %v2436_v47 = vpack.c.bf16 %v1595_v16, %v1594_v35  ;;  %v1597_v42 = vmax.f32 %v1524_v12, 0.0  ;;  %v1449_v48 = vmul.f32 %v3304_v22, %v1371_v33  ;;  %v1450_v37 = vmul.f32 %v3304_v22, %v1372_v4 }
 0x23b   : > { %2491 = vst [vmem:[%s3578_s4 + $0xe8] sm:$0xff] %v2431_v20   ;;  %v1526_v50 = vadd.f32 %v3318_v52, %v1448_v27  ;;  %v1598_v46 = vmax.f32 %v1525_v44, 0.0  ;;  %v1451_v53 = vmul.f32 %v3304_v22, %v1373_v38  ;;  %v1452_v58 = vmul.f32 %v3304_v22, %v1374_v40 }
 0x23c   : > { %2492 = vst [vmem:[%s3578_s4 + $0xf0] sm:$0xff] %v2436_v47   ;;  %v2441_v56 = vpack.c.bf16 %v1597_v42, %v1596_v45  ;;  %v1527_v57 = vadd.f32 %v3318_v52, %v1449_v48  ;;  %v1528_v1 = vadd.f32 %v3318_v52, %v1450_v37  ;;  %v1453_v0 = vmul.f32 %v3304_v22, %v1375_v28 }
 0x23d   : > { %v1599_v59 = vmax.f32 %v1526_v50, 0.0  ;;  %v1529_v62 = vadd.f32 %v3318_v52, %v1451_v53  ;;  %v1530_v10 = vadd.f32 %v3318_v52, %v1452_v58  ;;  %v1454_v8 = vmul.f32 %v3304_v22, %v1376_v51 }
 0x23e   : > { %2493 = vst [vmem:[%s3578_s4 + $0xf8] sm:$0xff] %v2441_v56   ;;  %v1600_v63 = vmax.f32 %v1527_v57, 0.0  ;;  %v1601_v19 = vmax.f32 %v1528_v1, 0.0  ;;  %v1531_v2 = vadd.f32 %v3318_v52, %v1453_v0  ;;  %v1455_v15 = vmul.f32 %v3304_v22, %v1377_v55 }
 0x23f   : > { %v2446_v30 = vpack.c.bf16 %v1599_v59, %v1598_v46  ;;  %v1602_v5 = vmax.f32 %v1529_v62, 0.0  ;;  %v1603_v6 = vmax.f32 %v1530_v10, 0.0  ;;  %v1532_v39 = vadd.f32 %v3318_v52, %v1454_v8 }
 0x240   : > { %v2451_v9 = vpack.c.bf16 %v1601_v19, %v1600_v63  ;;  %v1604_v49 = vmax.f32 %v1531_v2, 0.0  ;;  %v1533_v11 = vadd.f32 %v3318_v52, %v1455_v15 }
 0x241   : > { %2494 = vst [vmem:[%s3578_s4 + $0x100] sm:$0xff] %v2446_v30   ;;  %v2456_v29 = vpack.c.bf16 %v1603_v6, %v1602_v5  ;;  %v1605_v61 = vmax.f32 %v1532_v39, 0.0 }
 0x242   : > { %2495 = vst [vmem:[%s3578_s4 + $0x108] sm:$0xff] %v2451_v9   ;;  %v1606_v22 = vmax.f32 %v1533_v11, 0.0 }
 0x243   : > { %2496 = vst [vmem:[%s3578_s4 + $0x110] sm:$0xff] %v2456_v29   ;;  %v2461_v13 = vpack.c.bf16 %v1605_v61, %v1604_v49 }
 0x244   : > { %v2282_v14 = vpack.c.bf16 %v1606_v22, %v1606_v22 }
 0x245   : > { %2497 = vst [vmem:[%s3578_s4 + $0x118] sm:$0xff] %v2461_v13  }
 0x246   : > { %1972 = vst [vmem:[%s3578_s4 + $0x120] sm:$0xf] %v2282_v14 }
 0x247 PF: > { %s14_s17 = sadd.s32 1, %s2794_s17   ;;  %s3579_s15 = smov %s2790_s16 }
 0x248   : > { %p11_p6 = scmp.ge.s32.totalorder %s14_s17, 4   ;;  %s3580_s16 = smov %s3582_s18 }
 0x24a   :  { %13 = sbr.rel (!%p11_p6) target bundleno = 2 (0x2), region = 84 }

// kernel: reduction_a.7
= control target key start
LH: loop header
LB: loop body
LE: loop exit
PB: predicated region body
PF: predicated region fallthrough
CT: control target
= control target key end

     0   :  { %s7775_s15 = smov 0   ;;  %s7777_s16 = smov 0   ;;  %s9605_s0 = inlined_call_operand.vmem [shape: bf16[584,1152], index: 0, kind: input, shape index: {}]   ;;  %s9606_s1 = inlined_call_operand.vmem [shape: bf16[1152,128], index: 1, kind: input, shape index: {}]   ;;  %s9607_s2 = inlined_call_operand.vmem [shape: f32[1,128], index: 2, kind: input, shape index: {}]   ;;  %s9608_s3 = inlined_call_operand.vmem [shape: f32[1,128], index: 3, kind: input, shape index: {}]   ;;  %s9609_s4 = inlined_call_operand.vmem [shape: bf16[584,128], index: 4, kind: output, shape index: {}]  }
   0x1   :  { %s7779_s17 = smov 0  }
   0x2 LB: > { %s26_s18 = sadd.s32 1, %s7741_s16  ;;  %p5594_p0 = scmp.ge.s32.totalorder %s7745_s17, 1  ;;  %s7745_s17 = sphi %s7779_s17, %s14_s17   ;;  %s7741_s16 = sphi %s7777_s16, %s9611_s16   ;;  %s7737_s15 = sphi %s7775_s15, %s9610_s15  }
   0x3   : > { %p28_p1 = scmp.ge.s32.totalorder %s26_s18, 2  ;;  %p186_p2 = scmp.lt.s32.totalorder %s7745_s17, 3 }
   0x5   : > { %s9613_s18 = smov (%p28_p1, %s26_s18), 0  ;;  %p187_p3 = pnand %p5594_p0, %p186_p2 }
   0x6   : > { %p5595_p4 = scmp.ne.s32.totalorder (!%p187_p3), %s7737_s15, 0 }
   0x7   : > { %190 = sbr.rel (%p187_p3) target bundleno = 1154 (0x482), region = 36 }
   0xe   : > { %240 = sbr.rel (%p5595_p4) target bundleno = 1049 (0x419), region = 40  ;;  %v7154_v0 = vld [vmem:[%s9606_s1] sm:$0xff] (!%p5595_p4)   ;;  %v7747_v1 = vmov (!%p5595_p4), 0   ;;  %v7156_v3 = vld [vmem:[%s9606_s1 + $0x8] sm:$0xff] (!%p5595_p4)   ;;  %v7158_v5 = vld [vmem:[%s9606_s1 + $0x10] sm:$0xff] (!%p5595_p4)   ;;  %vm7749_vm0 = vmmov (!%p5595_p4), 0  }
   0xf   : > { %2875 = vmatprep.subr.bf16.mxu1 (!%p5595_p4), %v7747_v1  ;;  %3531 = vmatprep.subr.bf16.mxu0 (!%p5595_p4), %v7747_v1  ;;  %v7155_v2 = vld [vmem:[%s9606_s1 + $0x100] sm:$0xff] (!%p5595_p4)   ;;  %v7157_v4 = vld [vmem:[%s9606_s1 + $0x108] sm:$0xff] (!%p5595_p4)   ;;  %v7159_v6 = vld [vmem:[%s9606_s1 + $0x110] sm:$0xff] (!%p5595_p4)  }
  0x10   : > { %2876 = vmatpush1.bf16.msra.mxu1 (!%p5595_p4), %v7154_v0  ;;  %3532 = vmatpush1.bf16.msra.mxu0 (!%p5595_p4), %v7155_v2  ;;  %v7160_v7 = vld [vmem:[%s9606_s1 + $0x18] sm:$0xff] (!%p5595_p4)   ;;  %v7162_v9 = vld [vmem:[%s9606_s1 + $0x20] sm:$0xff] (!%p5595_p4)   ;;  %v7164_v11 = vld [vmem:[%s9606_s1 + $0x28] sm:$0xff] (!%p5595_p4)  }
  0x11   : > { %2877 = vmatprep.subr.bf16.mxu1 (!%p5595_p4), %v7747_v1  ;;  %3533 = vmatprep.subr.bf16.mxu0 (!%p5595_p4), %v7747_v1  ;;  %v7161_v8 = vld [vmem:[%s9606_s1 + $0x118] sm:$0xff] (!%p5595_p4)   ;;  %v7163_v10 = vld [vmem:[%s9606_s1 + $0x120] sm:$0xff] (!%p5595_p4)   ;;  %v7165_v12 = vld [vmem:[%s9606_s1 + $0x128] sm:$0xff] (!%p5595_p4)  }
  0x12   : > { %v7166_v13 = vld [vmem:[%s9606_s1 + $0x30] sm:$0xff] (!%p5595_p4)   ;;  %v7168_v15 = vld [vmem:[%s9606_s1 + $0x38] sm:$0xff] (!%p5595_p4)   ;;  %v7170_v17 = vld [vmem:[%s9606_s1 + $0x40] sm:$0xff] (!%p5595_p4)  }
  0x13   : > { %v7167_v14 = vld [vmem:[%s9606_s1 + $0x130] sm:$0xff] (!%p5595_p4)   ;;  %v7169_v16 = vld [vmem:[%s9606_s1 + $0x138] sm:$0xff] (!%p5595_p4)   ;;  %v7171_v18 = vld [vmem:[%s9606_s1 + $0x140] sm:$0xff] (!%p5595_p4)  }
  0x14   : > { %2878 = vmatpush1.bf16.msra.mxu1 (!%p5595_p4), %v7156_v3  ;;  %3534 = vmatpush1.bf16.msra.mxu0 (!%p5595_p4), %v7157_v4  ;;  %v7188_v19 = vld [vmem:[%s9605_s0 + $0x4] ss:$36 sps:$4 sm:$0xff] (!%p5595_p4)   ;;  %v7191_v21 = vld [vmem:[%s9605_s0 + $0x14] ss:$36 sps:$4 sm:$0xff] (!%p5595_p4)   ;;  %v7193_v38 = vld [vmem:[%s9605_s0 + $0x4c] ss:$36 sps:$4 sm:$0xff] (!%p5595_p4)  }
  0x15   : > { %2879 = vmatprep.subr.bf16.mxu1 %v7747_v1  ;;  %3535 = vmatprep.subr.bf16.mxu0 %v7747_v1  ;;  %v7172_v20 = vld [vmem:[%s9606_s1 + $0x48] sm:$0xff]   ;;  %v7174_v23 = vld [vmem:[%s9606_s1 + $0x50] sm:$0xff]   ;;  %v7176_v25 = vld [vmem:[%s9606_s1 + $0x58] sm:$0xff]   ;;  %v7748_v3 = vmov 0.0  }
  0x16   : > { %v7173_v22 = vld [vmem:[%s9606_s1 + $0x148] sm:$0xff]   ;;  %2907 = vmatprep.mubr.bf16.mxu1 %v7188_v19  ;;  %3563 = vmatprep.mubr.bf16.mxu0 %v7191_v21  ;;  %v7175_v24 = vld [vmem:[%s9606_s1 + $0x150] sm:$0xff]   ;;  %v7177_v26 = vld [vmem:[%s9606_s1 + $0x158] sm:$0xff]   ;;  %245 = vst [vmem:[#allocation3] sm:$0xff] %v7748_v3 }
  0x17   : > { %v7178_v27 = vld [vmem:[%s9606_s1 + $0x60] sm:$0xff]   ;;  %v7180_v29 = vld [vmem:[%s9606_s1 + $0x68] sm:$0xff]   ;;  %v7182_v31 = vld [vmem:[%s9606_s1 + $0x70] sm:$0xff]  }
  0x18   : > { %2880 = vmatpush1.bf16.msra.mxu1 %v7158_v5  ;;  %3536 = vmatpush1.bf16.msra.mxu0 %v7159_v6  ;;  %v7179_v28 = vld [vmem:[%s9606_s1 + $0x160] sm:$0xff]   ;;  %v7181_v30 = vld [vmem:[%s9606_s1 + $0x168] sm:$0xff]   ;;  %v7183_v32 = vld [vmem:[%s9606_s1 + $0x170] sm:$0xff]  }
  0x19   : > { %2881 = vmatprep.subr.bf16.mxu1 %v7747_v1  ;;  %3537 = vmatprep.subr.bf16.mxu0 %v7747_v1  ;;  %v7184_v33 = vld [vmem:[%s9606_s1 + $0x78] sm:$0xff]   ;;  %v7186_v35 = vld [vmem:[%s9605_s0] ss:$36 sps:$4 sm:$0xff]   ;;  %v7189_v36 = vld [vmem:[%s9605_s0 + $0x10] ss:$36 sps:$4 sm:$0xff]  }
  0x1a   : > { %v7185_v34 = vld [vmem:[%s9606_s1 + $0x178] sm:$0xff]   ;;  %v7192_v37 = vld [vmem:[%s9606_s1 + $0x180] sm:$0xff]   ;;  %v7197_v41 = vld [vmem:[%s9605_s0 + $0x48] ss:$36 sps:$4 sm:$0xff]  }
  0x1b   : > { %v7195_v39 = vld [vmem:[%s9605_s0 + $0x5c] ss:$36 sps:$4 sm:$0xff]   ;;  %v7200_v42 = vld [vmem:[%s9606_s1 + $0x188] sm:$0xff]   ;;  %v7201_v45 = vld [vmem:[%s9605_s0 + $0x94] ss:$36 sps:$4 sm:$0xff]  }
  0x1c   : > { %2882 = vmatpush1.bf16.msra.mxu1 %v7160_v7  ;;  %3538 = vmatpush1.bf16.msra.mxu0 %v7161_v8  ;;  %v7199_v40 = vld [vmem:[%s9606_s1 + $0x80] sm:$0xff]   ;;  %v7214_v43 = vld [vmem:[%s9606_s1 + $0x88] sm:$0xff]   ;;  %v7198_v44 = vld [vmem:[%s9605_s0 + $0x58] ss:$36 sps:$4 sm:$0xff]  }
  0x1d   : > { %2883 = vmatprep.subr.bf16.mxu1 %v7747_v1  ;;  %3539 = vmatprep.subr.bf16.mxu0 %v7747_v1  ;;  %v7203_v46 = vld [vmem:[%s9605_s0 + $0xa4] ss:$36 sps:$4 sm:$0xff]   ;;  %v7207_v47 = vld [vmem:[%s9606_s1 + $0x190] sm:$0xff]   ;;  %v7215_v49 = vld [vmem:[%s9606_s1 + $0x198] sm:$0xff]  }
  0x1e   : > { %v7229_v48 = vld [vmem:[%s9606_s1 + $0x90] sm:$0xff]   ;;  %v7250_v50 = vld [vmem:[%s9606_s1 + $0x98] sm:$0xff]   ;;  %v7206_v52 = vld [vmem:[%s9605_s0 + $0xa0] ss:$36 sps:$4 sm:$0xff]  }
  0x1f   : > { %v7205_v51 = vld [vmem:[%s9605_s0 + $0x90] ss:$36 sps:$4 sm:$0xff]   ;;  %v7208_v53 = vld [vmem:[%s9605_s0 + $0xdc] ss:$36 sps:$4 sm:$0xff]   ;;  %v7236_v58 = vld [vmem:[%s9606_s1 + $0x1a8] sm:$0xff]  }
  0x20   : > { %2884 = vmatpush1.bf16.msra.mxu1 %v7162_v9  ;;  %3540 = vmatpush1.bf16.msra.mxu0 %v7163_v10  ;;  %v7210_v54 = vld [vmem:[%s9605_s0 + $0xec] ss:$36 sps:$4 sm:$0xff]   ;;  %v7226_v55 = vld [vmem:[%s9606_s1 + $0x1a0] sm:$0xff]   ;;  %v7212_v57 = vld [vmem:[%s9605_s0 + $0xd8] ss:$36 sps:$4 sm:$0xff]  }
  0x21   : > { %2885 = vmatprep.subr.bf16.mxu1 %v7747_v1  ;;  %3541 = vmatprep.subr.bf16.mxu0 %v7747_v1  ;;  %v7265_v56 = vld [vmem:[%s9606_s1 + $0xa0] sm:$0xff]   ;;  %v7280_v59 = vld [vmem:[%s9606_s1 + $0xa8] sm:$0xff]   ;;  %v7218_v62 = vld [vmem:[%s9605_s0 + $0x134] ss:$36 sps:$4 sm:$0xff]  }
  0x22   : > { %v7213_v60 = vld [vmem:[%s9605_s0 + $0xe8] ss:$36 sps:$4 sm:$0xff]   ;;  %v7243_v63 = vld [vmem:[%s9606_s1 + $0x1b0] sm:$0xff]   ;;  %v7220_v0 = vld [vmem:[%s9605_s0 + $0x120] ss:$36 sps:$4 sm:$0xff]  }
  0x23   : > { %v7216_v61 = vld [vmem:[%s9605_s0 + $0x124] ss:$36 sps:$4 sm:$0xff]   ;;  %v7251_v2 = vld [vmem:[%s9606_s1 + $0x1b8] sm:$0xff]   ;;  %v7221_v4 = vld [vmem:[%s9605_s0 + $0x130] ss:$36 sps:$4 sm:$0xff]  }
  0x24   : > { %2886 = vmatpush1.bf16.msra.mxu1 %v7164_v11  ;;  %3542 = vmatpush1.bf16.msra.mxu0 %v7165_v12  ;;  %v7222_v5 = vld [vmem:[%s9605_s0 + $0x16c] ss:$36 sps:$4 sm:$0xff]   ;;  %v7224_v6 = vld [vmem:[%s9605_s0 + $0x17c] ss:$36 sps:$4 sm:$0xff]   ;;  %v7230_v12 = vld [vmem:[%s9605_s0 + $0x1b4] ss:$36 sps:$4 sm:$0xff]  }
  0x25   : > { %2887 = vmatprep.subr.bf16.mxu1 %v7747_v1  ;;  %3543 = vmatprep.subr.bf16.mxu0 %v7747_v1  ;;  %v7300_v7 = vld [vmem:[%s9606_s1 + $0xb0] sm:$0xff]   ;;  %v7258_v8 = vld [vmem:[%s9606_s1 + $0x1c0] sm:$0xff]   ;;  %v7270_v9 = vld [vmem:[%s9606_s1 + $0x1c8] sm:$0xff]  }
  0x26   : > { %v7227_v10 = vld [vmem:[%s9605_s0 + $0x168] ss:$36 sps:$4 sm:$0xff]   ;;  %v7228_v11 = vld [vmem:[%s9605_s0 + $0x178] ss:$36 sps:$4 sm:$0xff]   ;;  %v7294_v21 = vld [vmem:[%s9606_s1 + $0x1e0] sm:$0xff]  }
  0x27   : > { %v7237_v19 = vld [vmem:[%s9605_s0 + $0x1fc] ss:$36 sps:$4 sm:$0xff]  }
  0x28   : > { %2888 = vmatpush1.bf16.msra.mxu1 %v7166_v13  ;;  %3544 = vmatpush1.bf16.msra.mxu0 %v7167_v14  ;;  %v7232_v13 = vld [vmem:[%s9605_s0 + $0x1c4] ss:$36 sps:$4 sm:$0xff]   ;;  %v7316_v14 = vld [vmem:[%s9606_s1 + $0xb8] sm:$0xff]  }
  0x29   : > { %2889 = vmatprep.subr.bf16.mxu1 %v7747_v1  ;;  %3545 = vmatprep.subr.bf16.mxu0 %v7747_v1 }
  0x2c   : > { %2890 = vmatpush1.bf16.msra.mxu1 %v7168_v15  ;;  %3546 = vmatpush1.bf16.msra.mxu0 %v7169_v16  ;;  %v7279_v15 = vld [vmem:[%s9606_s1 + $0x1d0] sm:$0xff]   ;;  %v7287_v16 = vld [vmem:[%s9606_s1 + $0x1d8] sm:$0xff]  }
  0x2d   : > { %2891 = vmatprep.subr.bf16.mxu1 %v7747_v1  ;;  %3547 = vmatprep.subr.bf16.mxu0 %v7747_v1 }
  0x30   : > { %2892 = vmatpush1.bf16.msra.mxu1 %v7170_v17  ;;  %3548 = vmatpush1.bf16.msra.mxu0 %v7171_v18  ;;  %v7234_v17 = vld [vmem:[%s9605_s0 + $0x1b0] ss:$36 sps:$4 sm:$0xff]   ;;  %v7235_v18 = vld [vmem:[%s9605_s0 + $0x1c0] ss:$36 sps:$4 sm:$0xff]  }
  0x31   : > { %2893 = vmatprep.subr.bf16.mxu1 %v7747_v1  ;;  %3549 = vmatprep.subr.bf16.mxu0 %v7747_v1 }
  0x34   : > { %2894 = vmatpush1.bf16.msra.mxu1 %v7172_v20  ;;  %3550 = vmatpush1.bf16.msra.mxu0 %v7173_v22  ;;  %v7239_v20 = vld [vmem:[%s9605_s0 + $0x20c] ss:$36 sps:$4 sm:$0xff]   ;;  %v7331_v22 = vld [vmem:[%s9606_s1 + $0xc0] sm:$0xff]  }
  0x35   : > { %2895 = vmatprep.subr.bf16.mxu1 %v7747_v1  ;;  %3551 = vmatprep.subr.bf16.mxu0 %v7747_v1 }
  0x38   : > { %2896 = vmatpush1.bf16.msra.mxu1 %v7174_v23  ;;  %3552 = vmatpush1.bf16.msra.mxu0 %v7175_v24  ;;  %v7302_v23 = vld [vmem:[%s9606_s1 + $0x1e8] sm:$0xff]   ;;  %v7241_v24 = vld [vmem:[%s9605_s0 + $0x1f8] ss:$36 sps:$4 sm:$0xff]  }
  0x39   : > { %2897 = vmatprep.subr.bf16.mxu1 %v7747_v1  ;;  %3553 = vmatprep.subr.bf16.mxu0 %v7747_v1 }
  0x3c   : > { %2898 = vmatpush1.bf16.msra.mxu1 %v7176_v25  ;;  %3554 = vmatpush1.bf16.msra.mxu0 %v7177_v26  ;;  %v7242_v25 = vld [vmem:[%s9605_s0 + $0x208] ss:$36 sps:$4 sm:$0xff]  }
  0x3d   : > { %2899 = vmatprep.subr.bf16.mxu1 %v7747_v1  ;;  %3555 = vmatprep.subr.bf16.mxu0 %v7747_v1  ;;  %v7244_v26 = vld [vmem:[%s9605_s0 + $0x244] ss:$36 sps:$4 sm:$0xff]  }
  0x40   : > { %2900 = vmatpush1.bf16.msra.mxu1 %v7178_v27  ;;  %3556 = vmatpush1.bf16.msra.mxu0 %v7179_v28  ;;  %v7246_v27 = vld [vmem:[%s9605_s0 + $0x254] ss:$36 sps:$4 sm:$0xff]  }
  0x41   : > { %2901 = vmatprep.subr.bf16.mxu1 %v7747_v1  ;;  %3557 = vmatprep.subr.bf16.mxu0 %v7747_v1  ;;  %v7309_v28 = vld [vmem:[%s9606_s1 + $0x1f0] sm:$0xff]  }
  0x44   : > { %2902 = vmatpush1.bf16.msra.mxu1 %v7180_v29  ;;  %3558 = vmatpush1.bf16.msra.mxu0 %v7181_v30  ;;  %v7349_v29 = vld [vmem:[%s9606_s1 + $0xc8] sm:$0xff]   ;;  %v7248_v30 = vld [vmem:[%s9605_s0 + $0x240] ss:$36 sps:$4 sm:$0xff]  }
  0x45   : > { %2903 = vmatprep.subr.bf16.mxu1 %v7747_v1  ;;  %3559 = vmatprep.subr.bf16.mxu0 %v7747_v1 }
  0x48   : > { %2904 = vmatpush1.bf16.msra.mxu1 %v7182_v31  ;;  %3560 = vmatpush1.bf16.msra.mxu0 %v7183_v32  ;;  %v7323_v31 = vld [vmem:[%s9606_s1 + $0x1f8] sm:$0xff]   ;;  %v7249_v32 = vld [vmem:[%s9605_s0 + $0x250] ss:$36 sps:$4 sm:$0xff]  }
  0x49   : > { %2905 = vmatprep.subr.bf16.mxu1 %v7747_v1  ;;  %3561 = vmatprep.subr.bf16.mxu0 %v7747_v1 }
  0x4c   : > { %2906 = vmatpush1.bf16.msra.mxu1 %v7184_v33  ;;  %3562 = vmatpush1.bf16.msra.mxu0 %v7185_v34  ;;  %v7252_v33 = vld [vmem:[%s9605_s0 + $0x28c] ss:$36 sps:$4 sm:$0xff]   ;;  %v7254_v34 = vld [vmem:[%s9605_s0 + $0x29c] ss:$36 sps:$4 sm:$0xff]  }
  0x4d   : > { %3203 = vmatprep.subr.bf16.mxu1 %v7747_v1  ;;  %3859 = vmatprep.subr.bf16.mxu0 %v7747_v1 }
  0x4f   : > { %2908 = vmatmul.mubr.bf16.vlgmr.msra.gmra.mrb[0].mxu1 %v7186_v35  ;;  %3564 = vmatmul.mubr.bf16.vlgmr.msra.gmra.mrb[0].mxu0 %v7189_v36  ;;  %v7364_v35 = vld [vmem:[%s9606_s1 + $0xd0] sm:$0xff]   ;;  %v7256_v36 = vld [vmem:[%s9605_s0 + $0x288] ss:$36 sps:$4 sm:$0xff]  }
  0x50   : > { %2915 = vmatprep.mubr.bf16.mxu1 %v7193_v38  ;;  %3860 = vmatpush1.bf16.msra.mxu0 %v7192_v37  ;;  %v7257_v37 = vld [vmem:[%s9605_s0 + $0x298] ss:$36 sps:$4 sm:$0xff]  }
  0x51   : > { %3571 = vmatprep.mubr.bf16.mxu0 %v7195_v39  ;;  %3204 = vmatpush1.bf16.msra.mxu1 %v7199_v40  ;;  %v7259_v38 = vld [vmem:[%s9605_s0 + $0x2d4] ss:$36 sps:$4 sm:$0xff]   ;;  %v7261_v39 = vld [vmem:[%s9605_s0 + $0x2e4] ss:$36 sps:$4 sm:$0xff]  }
  0x52   : > { %3861 = vmatprep.subr.bf16.mxu0 %v7747_v1  ;;  %3205 = vmatprep.subr.bf16.mxu1 %v7747_v1  ;;  %v7263_v40 = vld [vmem:[%s9605_s0 + $0x2d0] ss:$36 sps:$4 sm:$0xff]  }
  0x54   : > { %3862 = vmatpush1.bf16.msra.mxu0 %v7200_v42  ;;  %v7266_v42 = vld [vmem:[%s9605_s0 + $0x31c] ss:$36 sps:$4 sm:$0xff]  }
  0x55   : > { %3863 = vmatprep.subr.bf16.mxu0 %v7747_v1  ;;  %3206 = vmatpush1.bf16.msra.mxu1 %v7214_v43  ;;  %v7268_v43 = vld [vmem:[%s9605_s0 + $0x32c] ss:$36 sps:$4 sm:$0xff]  }
  0x56   : > { %3207 = vmatprep.subr.bf16.mxu1 %v7747_v1 }
  0x57   : > { %2916 = vmatmul.mubr.bf16.gmra.mrb[4].mxu1 %v7197_v41  ;;  %3572 = vmatmul.mubr.bf16.gmra.mrb[4].mxu0 %v7198_v44  ;;  %v7264_v41 = vld [vmem:[%s9605_s0 + $0x2e0] ss:$36 sps:$4 sm:$0xff]   ;;  %v7377_v44 = vld [vmem:[%s9606_s1 + $0xd8] sm:$0xff]  }
  0x58   : > { %2923 = vmatprep.mubr.bf16.mxu1 %v7201_v45  ;;  %3579 = vmatprep.mubr.bf16.mxu0 %v7203_v46  ;;  %v7271_v45 = vld [vmem:[%s9605_s0 + $0x318] ss:$36 sps:$4 sm:$0xff]   ;;  %v7272_v46 = vld [vmem:[%s9605_s0 + $0x328] ss:$36 sps:$4 sm:$0xff]  }
  0x59   : > { %3864 = vmatpush1.bf16.msra.mxu0 %v7207_v47  ;;  %3208 = vmatpush1.bf16.msra.mxu1 %v7229_v48  ;;  %v7273_v47 = vld [vmem:[%s9605_s0 + $0x364] ss:$36 sps:$4 sm:$0xff]   ;;  %v7275_v48 = vld [vmem:[%s9605_s0 + $0x374] ss:$36 sps:$4 sm:$0xff]  }
  0x5a   : > { %3865 = vmatprep.subr.bf16.mxu0 %v7747_v1  ;;  %3209 = vmatprep.subr.bf16.mxu1 %v7747_v1 }
  0x5d   : > { %3866 = vmatpush1.bf16.msra.mxu0 %v7215_v49  ;;  %3210 = vmatpush1.bf16.msra.mxu1 %v7250_v50  ;;  %v7277_v49 = vld [vmem:[%s9605_s0 + $0x360] ss:$36 sps:$4 sm:$0xff]   ;;  %v7278_v50 = vld [vmem:[%s9605_s0 + $0x370] ss:$36 sps:$4 sm:$0xff]  }
  0x5e   : > { %3867 = vmatprep.subr.bf16.mxu0 %v7747_v1  ;;  %3211 = vmatprep.subr.bf16.mxu1 %v7747_v1 }
  0x5f   : > { %2924 = vmatmul.mubr.bf16.gmra.mrb[8].mxu1 %v7205_v51  ;;  %3580 = vmatmul.mubr.bf16.gmra.mrb[8].mxu0 %v7206_v52  ;;  %v7281_v51 = vld [vmem:[%s9605_s0 + $0x3ac] ss:$36 sps:$4 sm:$0xff]   ;;  %v7283_v52 = vld [vmem:[%s9605_s0 + $0x3bc] ss:$36 sps:$4 sm:$0xff]  }
  0x60   : > { %2931 = vmatprep.mubr.bf16.mxu1 %v7208_v53  ;;  %3587 = vmatprep.mubr.bf16.mxu0 %v7210_v54  ;;  %v7393_v53 = vld [vmem:[%s9606_s1 + $0xe0] sm:$0xff]   ;;  %v7285_v54 = vld [vmem:[%s9605_s0 + $0x3a8] ss:$36 sps:$4 sm:$0xff]  }
  0x61   : > { %3868 = vmatpush1.bf16.msra.mxu0 %v7226_v55  ;;  %3212 = vmatpush1.bf16.msra.mxu1 %v7265_v56  ;;  %v7286_v55 = vld [vmem:[%s9605_s0 + $0x3b8] ss:$36 sps:$4 sm:$0xff]  }
  0x62   : > { %3869 = vmatprep.subr.bf16.mxu0 %v7747_v1  ;;  %3213 = vmatprep.subr.bf16.mxu1 %v7747_v1  ;;  %v7288_v56 = vld [vmem:[%s9605_s0 + $0x3f4] ss:$36 sps:$4 sm:$0xff]  }
  0x65   : > { %3870 = vmatpush1.bf16.msra.mxu0 %v7236_v58  ;;  %3214 = vmatpush1.bf16.msra.mxu1 %v7280_v59  ;;  %v7292_v58 = vld [vmem:[%s9605_s0 + $0x3f0] ss:$36 sps:$4 sm:$0xff]   ;;  %v7293_v59 = vld [vmem:[%s9605_s0 + $0x400] ss:$36 sps:$4 sm:$0xff]  }
  0x66   : > { %3871 = vmatprep.subr.bf16.mxu0 %v7747_v1  ;;  %3215 = vmatprep.subr.bf16.mxu1 %v7747_v1 }
  0x67   : > { %2932 = vmatmul.mubr.bf16.gmra.mrb[12].mxu1 %v7212_v57  ;;  %3588 = vmatmul.mubr.bf16.gmra.mrb[12].mxu0 %v7213_v60  ;;  %v7290_v57 = vld [vmem:[%s9605_s0 + $0x404] ss:$36 sps:$4 sm:$0xff]   ;;  %v7295_v60 = vld [vmem:[%s9605_s0 + $0x43c] ss:$36 sps:$4 sm:$0xff]  }
  0x68   : > { %2939 = vmatprep.mubr.bf16.mxu1 %v7216_v61  ;;  %3595 = vmatprep.mubr.bf16.mxu0 %v7218_v62  ;;  %v7297_v61 = vld [vmem:[%s9605_s0 + $0x44c] ss:$36 sps:$4 sm:$0xff]   ;;  %v7299_v62 = vld [vmem:[%s9605_s0 + $0x438] ss:$36 sps:$4 sm:$0xff]  }
  0x69   : > { %3872 = vmatpush1.bf16.msra.mxu0 %v7243_v63  ;;  %3216 = vmatpush1.bf16.msra.mxu1 %v7300_v7  ;;  %v7301_v63 = vld [vmem:[%s9605_s0 + $0x448] ss:$36 sps:$4 sm:$0xff]  }
  0x6a   : > { %3873 = vmatprep.subr.bf16.mxu0 %v7747_v1  ;;  %3217 = vmatprep.subr.bf16.mxu1 %v7747_v1  ;;  %v7310_v7 = vld [vmem:[%s9605_s0 + $0x4cc] ss:$36 sps:$4 sm:$0xff]  }
  0x6d   : > { %3874 = vmatpush1.bf16.msra.mxu0 %v7251_v2  ;;  %3218 = vmatpush1.bf16.msra.mxu1 %v7316_v14  ;;  %v7305_v2 = vld [vmem:[%s9605_s0 + $0x494] ss:$36 sps:$4 sm:$0xff]  }
  0x6e   : > { %3875 = vmatprep.subr.bf16.mxu0 %v7747_v1  ;;  %3219 = vmatprep.subr.bf16.mxu1 %v7747_v1  ;;  %v7321_v14 = vld [vmem:[%s9605_s0 + $0x510] ss:$36 sps:$4 sm:$0xff]  }
  0x6f   : > { %2940 = vmatmul.mubr.bf16.gmra.mrb[16].mxu1 %v7220_v0  ;;  %3596 = vmatmul.mubr.bf16.gmra.mrb[16].mxu0 %v7221_v4  ;;  %v7303_v0 = vld [vmem:[%s9605_s0 + $0x484] ss:$36 sps:$4 sm:$0xff]  }
  0x70   : > { %2947 = vmatprep.mubr.bf16.mxu1 %v7222_v5  ;;  %3603 = vmatprep.mubr.bf16.mxu0 %v7224_v6  ;;  %v7410_v4 = vld [vmem:[%s9606_s1 + $0xe8] sm:$0xff]   ;;  %v7307_v5 = vld [vmem:[%s9605_s0 + $0x480] ss:$36 sps:$4 sm:$0xff]   ;;  %v7308_v6 = vld [vmem:[%s9605_s0 + $0x490] ss:$36 sps:$4 sm:$0xff]  }
  0x71   : > { %3876 = vmatpush1.bf16.msra.mxu0 %v7258_v8  ;;  %3220 = vmatpush1.bf16.msra.mxu1 %v7331_v22  ;;  %v7312_v8 = vld [vmem:[%s9605_s0 + $0x4dc] ss:$36 sps:$4 sm:$0xff]   ;;  %v7334_v22 = vld [vmem:[%s9605_s0 + $0x64] ss:$36 sps:$4 sm:$0xff]  }
  0x72   : > { %3877 = vmatprep.subr.bf16.mxu0 %v7747_v1  ;;  %3221 = vmatprep.subr.bf16.mxu1 %v7747_v1 }
  0x75   : > { %3878 = vmatpush1.bf16.msra.mxu0 %v7270_v9  ;;  %3222 = vmatpush1.bf16.msra.mxu1 %v7349_v29  ;;  %v7314_v9 = vld [vmem:[%s9605_s0 + $0x4c8] ss:$36 sps:$4 sm:$0xff]   ;;  %v7390_v29 = vld [vmem:[%s9606_s1 + $0x210] sm:$0xff]  }
  0x76   : > { %3879 = vmatprep.subr.bf16.mxu0 %v7747_v1  ;;  %3223 = vmatprep.subr.bf16.mxu1 %v7747_v1 }
  0x77   : > { %2948 = vmatmul.mubr.bf16.gmra.mrb[20].mxu1 %v7227_v10  ;;  %3604 = vmatmul.mubr.bf16.gmra.mrb[20].mxu0 %v7228_v11  ;;  %v7315_v10 = vld [vmem:[%s9605_s0 + $0x4d8] ss:$36 sps:$4 sm:$0xff]  }
  0x78   : > { %2955 = vmatprep.mubr.bf16.mxu1 %v7230_v12  ;;  %3611 = vmatprep.mubr.bf16.mxu0 %v7232_v13  ;;  %v7317_v11 = vld [vmem:[%s9605_s0 + $0x514] ss:$36 sps:$4 sm:$0xff]   ;;  %v7319_v12 = vld [vmem:[%s9605_s0 + $0x524] ss:$36 sps:$4 sm:$0xff]  }
  0x79   : > { %3880 = vmatpush1.bf16.msra.mxu0 %v7279_v15  ;;  %3224 = vmatpush1.bf16.msra.mxu1 %v7364_v35  ;;  %v7424_v13 = vld [vmem:[%s9606_s1 + $0xf0] sm:$0xff]   ;;  %v7322_v15 = vld [vmem:[%s9605_s0 + $0x520] ss:$36 sps:$4 sm:$0xff]   ;;  %v8340_v35 = vld [vmem:[#allocation3] sm:$0xff] }
  0x7a   : > { %3881 = vmatprep.subr.bf16.mxu0 %v7747_v1  ;;  %3225 = vmatprep.subr.bf16.mxu1 %v7747_v1 }
  0x7d   : > { %3882 = vmatpush1.bf16.msra.mxu0 %v7287_v16  ;;  %3226 = vmatpush1.bf16.msra.mxu1 %v7377_v44  ;;  %v7324_v16 = vld [vmem:[%s9605_s0 + $0x55c] ss:$36 sps:$4 sm:$0xff]  }
  0x7e   : > { %3883 = vmatprep.subr.bf16.mxu0 %v7747_v1  ;;  %3227 = vmatprep.subr.bf16.mxu1 %v7747_v1  ;;  %v7362_v44 = vld [vmem:[%s9605_s0 + $0x6c0] ss:$36 sps:$4 sm:$0xff]  }
  0x7f   : > { %2956 = vmatmul.mubr.bf16.gmra.mrb[24].mxu1 %v7234_v17  ;;  %3612 = vmatmul.mubr.bf16.gmra.mrb[24].mxu0 %v7235_v18  ;;  %v7328_v17 = vld [vmem:[%s9605_s0 + $0x1c] ss:$36 sps:$4 sm:$0xff]  }
  0x80   : > { %2963 = vmatprep.mubr.bf16.mxu1 %v7237_v19  ;;  %3619 = vmatprep.mubr.bf16.mxu0 %v7239_v20  ;;  %v7329_v18 = vld [vmem:[%s9605_s0 + $0x558] ss:$36 sps:$4 sm:$0xff]   ;;  %v7332_v20 = vld [vmem:[%s9605_s0 + $0x5a4] ss:$36 sps:$4 sm:$0xff]  }
  0x81   : > { %3884 = vmatpush1.bf16.msra.mxu0 %v7294_v21  ;;  %3228 = vmatpush1.bf16.msra.mxu1 %v7393_v53  ;;  %v7326_v19 = vld [vmem:[%s9605_s0 + $0x18] ss:$36 sps:$4 sm:$0xff]   ;;  %v7330_v21 = vld [vmem:[%s9606_s1 + $0x200] sm:$0xff]   ;;  %v7376_v53 = vld [vmem:[%s9605_s0 + $0x210] ss:$36 sps:$4 sm:$0xff]  }
  0x82   : > { %3885 = vmatprep.subr.bf16.mxu0 %v7747_v1  ;;  %3229 = vmatprep.subr.bf16.mxu1 %v7747_v1 }
  0x85   : > { %3886 = vmatpush1.bf16.msra.mxu0 %v7302_v23  ;;  %3230 = vmatpush1.bf16.msra.mxu1 %v7410_v4  ;;  %v7357_v23 = vld [vmem:[%s9606_s1 + $0x208] sm:$0xff]  }
  0x86   : > { %3887 = vmatprep.subr.bf16.mxu0 %v7747_v1  ;;  %3231 = vmatprep.subr.bf16.mxu1 %v7747_v1  ;;  %v7397_v4 = vld [vmem:[%s9605_s0 + $0x2e8] ss:$36 sps:$4 sm:$0xff]  }
  0x87   : > { %2964 = vmatmul.mubr.bf16.gmra.mrb[28].mxu1 %v7241_v24  ;;  %3620 = vmatmul.mubr.bf16.gmra.mrb[28].mxu0 %v7242_v25  ;;  %v7438_v24 = vld [vmem:[%s9606_s1 + $0xf8] sm:$0xff]   ;;  %v7336_v25 = vld [vmem:[%s9605_s0 + $0x5a0] ss:$36 sps:$4 sm:$0xff]  }
  0x88   : > { %2971 = vmatprep.mubr.bf16.mxu1 %v7244_v26  ;;  %3627 = vmatprep.mubr.bf16.mxu0 %v7246_v27  ;;  %v7337_v26 = vld [vmem:[%s9605_s0 + $0x60] ss:$36 sps:$4 sm:$0xff]   ;;  %v7338_v27 = vld [vmem:[%s9605_s0 + $0x5ec] ss:$36 sps:$4 sm:$0xff]  }
  0x89   : > { %3888 = vmatpush1.bf16.msra.mxu0 %v7309_v28  ;;  %3232 = vmatpush1.bf16.msra.mxu1 %v7424_v13  ;;  %v7340_v28 = vld [vmem:[%s9605_s0 + $0xac] ss:$36 sps:$4 sm:$0xff]   ;;  %v7409_v13 = vld [vmem:[%s9605_s0 + $0x378] ss:$36 sps:$4 sm:$0xff]  }
  0x8a   : > { %3889 = vmatprep.subr.bf16.mxu0 %v7747_v1  ;;  %3233 = vmatprep.subr.bf16.mxu1 %v7747_v1 }
  0x8d   : > { %3890 = vmatpush1.bf16.msra.mxu0 %v7323_v31  ;;  %3234 = vmatpush1.bf16.msra.mxu1 %v7438_v24  ;;  %v7342_v31 = vld [vmem:[%s9605_s0 + $0x5e8] ss:$36 sps:$4 sm:$0xff]   ;;  %v7429_v24 = vld [vmem:[%s9605_s0 + $0x990] ss:$36 sps:$4 sm:$0xff]  }
  0x8e   : > { %6414 = vmatprep.subr.bf16.mxu0 %v7748_v3  ;;  %6578 = vmatprep.subr.bf16.mxu1 %v7747_v1 }
  0x8f   : > { %2972 = vmatmul.mubr.bf16.gmra.mrb[32].mxu1 %v7248_v30  ;;  %3628 = vmatmul.mubr.bf16.gmra.mrb[32].mxu0 %v7249_v32  ;;  %v7423_v30 = vld [vmem:[%s9606_s1 + $0x218] sm:$0xff]   ;;  %v7343_v32 = vld [vmem:[%s9605_s0 + $0xa8] ss:$36 sps:$4 sm:$0xff]  }
  0x90   : > { %2979 = vmatprep.mubr.bf16.mxu1 %v7252_v33  ;;  %3635 = vmatprep.mubr.bf16.mxu0 %v7254_v34  ;;  %v7344_v33 = vld [vmem:[%s9605_s0 + $0x634] ss:$36 sps:$4 sm:$0xff]  }
  0x91   : > { %v7346_v34 = vld [vmem:[%s9605_s0 + $0xf4] ss:$36 sps:$4 sm:$0xff]  }
  0x97   : > { %2980 = vmatmul.mubr.bf16.gmra.mrb[36].mxu1 %v7256_v36  ;;  %3636 = vmatmul.mubr.bf16.gmra.mrb[36].mxu0 %v7257_v37  ;;  %v7449_v36 = vld [vmem:[%s9606_s1 + $0x220] sm:$0xff]   ;;  %v7350_v37 = vld [vmem:[%s9605_s0 + $0xf0] ss:$36 sps:$4 sm:$0xff]  }
  0x98   : > { %2987 = vmatprep.mubr.bf16.mxu1 %v7259_v38  ;;  %3643 = vmatprep.mubr.bf16.mxu0 %v7261_v39  ;;  %v7351_v38 = vld [vmem:[%s9605_s0 + $0x67c] ss:$36 sps:$4 sm:$0xff]  }
  0x99   : > { %v7353_v39 = vld [vmem:[%s9605_s0 + $0x13c] ss:$36 sps:$4 sm:$0xff]  }
  0x9f   : > { %2988 = vmatmul.mubr.bf16.gmra.mrb[40].mxu1 %v7263_v40  ;;  %3644 = vmatmul.mubr.bf16.gmra.mrb[40].mxu0 %v7264_v41  ;;  %v7355_v40 = vld [vmem:[%s9605_s0 + $0x678] ss:$36 sps:$4 sm:$0xff]  }
  0xa0   : > { %2995 = vmatprep.mubr.bf16.mxu1 %v7266_v42  ;;  %3651 = vmatprep.mubr.bf16.mxu0 %v7268_v43  ;;  %v7356_v41 = vld [vmem:[%s9605_s0 + $0x138] ss:$36 sps:$4 sm:$0xff]   ;;  %v7358_v42 = vld [vmem:[%s9605_s0 + $0x6c4] ss:$36 sps:$4 sm:$0xff]  }
  0xa1   : > { %v7360_v43 = vld [vmem:[%s9605_s0 + $0x184] ss:$36 sps:$4 sm:$0xff]  }
  0xa7   : > { %2996 = vmatmul.mubr.bf16.gmra.mrb[44].mxu1 %v7271_v45  ;;  %3652 = vmatmul.mubr.bf16.gmra.mrb[44].mxu0 %v7272_v46  ;;  %v7363_v45 = vld [vmem:[%s9605_s0 + $0x180] ss:$36 sps:$4 sm:$0xff]   ;;  %v7365_v46 = vld [vmem:[%s9605_s0 + $0x70c] ss:$36 sps:$4 sm:$0xff]  }
  0xa8   : > { %3003 = vmatprep.mubr.bf16.mxu1 %v7273_v47  ;;  %3659 = vmatprep.mubr.bf16.mxu0 %v7275_v48  ;;  %v7367_v47 = vld [vmem:[%s9605_s0 + $0x1cc] ss:$36 sps:$4 sm:$0xff]  }
  0xa9   : > { %v7369_v48 = vld [vmem:[%s9605_s0 + $0x708] ss:$36 sps:$4 sm:$0xff]  }
  0xaf   : > { %3004 = vmatmul.mubr.bf16.gmra.mrb[48].mxu1 %v7277_v49  ;;  %3660 = vmatmul.mubr.bf16.gmra.mrb[48].mxu0 %v7278_v50  ;;  %v7370_v49 = vld [vmem:[%s9605_s0 + $0x1c8] ss:$36 sps:$4 sm:$0xff]   ;;  %v7371_v50 = vld [vmem:[%s9605_s0 + $0x754] ss:$36 sps:$4 sm:$0xff]  }
  0xb0   : > { %3011 = vmatprep.mubr.bf16.mxu1 %v7281_v51  ;;  %3667 = vmatprep.mubr.bf16.mxu0 %v7283_v52  ;;  %v7373_v51 = vld [vmem:[%s9605_s0 + $0x214] ss:$36 sps:$4 sm:$0xff]  }
  0xb1   : > { %v7375_v52 = vld [vmem:[%s9605_s0 + $0x750] ss:$36 sps:$4 sm:$0xff]  }
  0xb7   : > { %3012 = vmatmul.mubr.bf16.gmra.mrb[52].mxu1 %v7285_v54  ;;  %3668 = vmatmul.mubr.bf16.gmra.mrb[52].mxu0 %v7286_v55  ;;  %v7378_v54 = vld [vmem:[%s9605_s0 + $0x79c] ss:$36 sps:$4 sm:$0xff]  }
  0xb8   : > { %3019 = vmatprep.mubr.bf16.mxu1 %v7288_v56  ;;  %3675 = vmatprep.mubr.bf16.mxu0 %v7290_v57  ;;  %v7380_v55 = vld [vmem:[%s9605_s0 + $0x25c] ss:$36 sps:$4 sm:$0xff]   ;;  %v7480_v56 = vld [vmem:[%s9606_s1 + $0x228] sm:$0xff]  }
  0xb9   : > { %v7382_v57 = vld [vmem:[%s9605_s0 + $0x798] ss:$36 sps:$4 sm:$0xff]  }
  0xbf   : > { %3020 = vmatmul.mubr.bf16.gmra.mrb[56].mxu1 %v7292_v58  ;;  %3676 = vmatmul.mubr.bf16.gmra.mrb[56].mxu0 %v7293_v59  ;;  %v7383_v58 = vld [vmem:[%s9605_s0 + $0x258] ss:$36 sps:$4 sm:$0xff]   ;;  %v7384_v59 = vld [vmem:[%s9605_s0 + $0x7e4] ss:$36 sps:$4 sm:$0xff]  }
  0xc0   : > { %3027 = vmatprep.mubr.bf16.mxu1 %v7295_v60  ;;  %3683 = vmatprep.mubr.bf16.mxu0 %v7297_v61  ;;  %v7386_v60 = vld [vmem:[%s9605_s0 + $0x2a4] ss:$36 sps:$4 sm:$0xff]  }
  0xc1   : > { %v7388_v61 = vld [vmem:[%s9605_s0 + $0x7e0] ss:$36 sps:$4 sm:$0xff]  }
  0xc7   : > { %3028 = vmatmul.mubr.bf16.gmra.mrb[60].mxu1 %v7299_v62  ;;  %3684 = vmatmul.mubr.bf16.gmra.mrb[60].mxu0 %v7301_v63  ;;  %v7389_v62 = vld [vmem:[%s9605_s0 + $0x2a0] ss:$36 sps:$4 sm:$0xff]   ;;  %v7391_v63 = vld [vmem:[%s9605_s0 + $0x82c] ss:$36 sps:$4 sm:$0xff]  }
  0xc8   : > { %3035 = vmatprep.mubr.bf16.mxu1 %v7303_v0  ;;  %3691 = vmatprep.mubr.bf16.mxu0 %v7305_v2  ;;  %v7394_v0 = vld [vmem:[%s9605_s0 + $0x2ec] ss:$36 sps:$4 sm:$0xff]  }
  0xc9   : > { %v7396_v2 = vld [vmem:[%s9605_s0 + $0x828] ss:$36 sps:$4 sm:$0xff]  }
  0xcf   : > { %3036 = vmatmul.mubr.bf16.gmra.mrb[64].mxu1 %v7307_v5  ;;  %3692 = vmatmul.mubr.bf16.gmra.mrb[64].mxu0 %v7308_v6  ;;  %v7398_v5 = vld [vmem:[%s9605_s0 + $0x874] ss:$36 sps:$4 sm:$0xff]  }
  0xd0   : > { %3043 = vmatprep.mubr.bf16.mxu1 %v7310_v7  ;;  %3699 = vmatprep.mubr.bf16.mxu0 %v7312_v8  ;;  %v7400_v6 = vld [vmem:[%s9605_s0 + $0x334] ss:$36 sps:$4 sm:$0xff]  }
  0xd1   : > { %v7402_v7 = vld [vmem:[%s9605_s0 + $0x870] ss:$36 sps:$4 sm:$0xff]  }
  0xd2   : > { %v7403_v8 = vld [vmem:[%s9605_s0 + $0x330] ss:$36 sps:$4 sm:$0xff]  }
  0xd7   : > { %3044 = vmatmul.mubr.bf16.gmra.mrb[68].mxu1 %v7314_v9  ;;  %3700 = vmatmul.mubr.bf16.gmra.mrb[68].mxu0 %v7315_v10  ;;  %v7404_v9 = vld [vmem:[%s9605_s0 + $0x8bc] ss:$36 sps:$4 sm:$0xff]  }
  0xd8   : > { %3051 = vmatprep.mubr.bf16.mxu1 %v7317_v11  ;;  %3707 = vmatprep.mubr.bf16.mxu0 %v7319_v12  ;;  %v7406_v10 = vld [vmem:[%s9605_s0 + $0x37c] ss:$36 sps:$4 sm:$0xff]   ;;  %v7509_v11 = vld [vmem:[%s9606_s1 + $0x230] sm:$0xff]  }
  0xd9   : > { %v7408_v12 = vld [vmem:[%s9605_s0 + $0x8b8] ss:$36 sps:$4 sm:$0xff]  }
  0xdf   : > { %3052 = vmatmul.mubr.bf16.gmra.mrb[72].mxu1 %v7321_v14  ;;  %3708 = vmatmul.mubr.bf16.gmra.mrb[72].mxu0 %v7322_v15  ;;  %v7411_v14 = vld [vmem:[%s9605_s0 + $0x904] ss:$36 sps:$4 sm:$0xff]  }
  0xe0   : > { %3059 = vmatprep.mubr.bf16.mxu1 %v7324_v16  ;;  %3891 = vmatprep.mubr.bf16.mxu0 %v7328_v17  ;;  %v7413_v15 = vld [vmem:[%s9605_s0 + $0x3c4] ss:$36 sps:$4 sm:$0xff]  }
  0xe1   : > { %v7415_v16 = vld [vmem:[%s9605_s0 + $0x900] ss:$36 sps:$4 sm:$0xff]  }
  0xe2   : > { %v7416_v17 = vld [vmem:[%s9605_s0 + $0x3c0] ss:$36 sps:$4 sm:$0xff]  }
  0xe7   : > { %3060 = vmatmul.mubr.bf16.gmra.mrb[76].mxu1 %v7329_v18  ;;  %3892 = vmatmul.mubr.bf16.vlgmr.msra.gmra.mrb[0].mxu0 %v7326_v19  ;;  %v7417_v18 = vld [vmem:[%s9605_s0 + $0x94c] ss:$36 sps:$4 sm:$0xff]  }
  0xe8   : > { %3067 = vmatprep.mubr.bf16.mxu1 %v7332_v20  ;;  %6415 = vmatpush3.bf16.msra.mxu0 %v7330_v21  ;;  %v7419_v19 = vld [vmem:[%s9605_s0 + $0x40c] ss:$36 sps:$4 sm:$0xff]  }
  0xe9   : > { %3899 = vmatprep.mubr.bf16.mxu0 %v7334_v22  ;;  %6416 = vmatprep.subr.bf16.mxu0 %v7748_v3  ;;  %v7421_v20 = vld [vmem:[%s9605_s0 + $0x948] ss:$36 sps:$4 sm:$0xff]   ;;  %v7425_v22 = vld [vmem:[%s9605_s0 + $0x994] ss:$36 sps:$4 sm:$0xff]  }
  0xea   : > { %v7422_v21 = vld [vmem:[%s9605_s0 + $0x408] ss:$36 sps:$4 sm:$0xff]  }
  0xec   : > { %6417 = vmatpush3.bf16.msra.mxu0 %v7357_v23  ;;  %v7427_v23 = vld [vmem:[%s9605_s0 + $0x454] ss:$36 sps:$4 sm:$0xff]  }
  0xed   : > { %6418 = vmatprep.subr.bf16.mxu0 %v7748_v3 }
  0xef   : > { %3068 = vmatmul.mubr.bf16.gmra.mrb[80].mxu1 %v7336_v25  ;;  %3900 = vmatmul.mubr.bf16.gmra.mrb[4].mxu0 %v7337_v26  ;;  %v7430_v25 = vld [vmem:[%s9605_s0 + $0x450] ss:$36 sps:$4 sm:$0xff]   ;;  %v7431_v26 = vld [vmem:[%s9605_s0 + $0x9dc] ss:$36 sps:$4 sm:$0xff]  }
  0xf0   : > { %3075 = vmatprep.mubr.bf16.mxu1 %v7338_v27  ;;  %3907 = vmatprep.mubr.bf16.mxu0 %v7340_v28  ;;  %v7433_v27 = vld [vmem:[%s9605_s0 + $0x49c] ss:$36 sps:$4 sm:$0xff]  }
  0xf1   : > { %6419 = vmatpush3.bf16.msra.mxu0 %v7390_v29  ;;  %v606_v28 = vld [vmem:[%s9605_s0 + $0xa20] sm:$0xff]  ;;  %v7435_v29 = vld [vmem:[%s9605_s0 + $0x9d8] ss:$36 sps:$4 sm:$0xff]  }
  0xf2   : > { %6420 = vmatprep.subr.bf16.mxu0 %v7748_v3  ;;  %v7348_v3 = vld [vmem:[%s9605_s0 + $0x630] ss:$36 sps:$4 sm:$0xff]  }
  0xf5   : > { %6421 = vmatpush3.bf16.msra.mxu0 %v7423_v30  ;;  %v7436_v30 = vld [vmem:[%s9605_s0 + $0x498] ss:$36 sps:$4 sm:$0xff]  }
  0xf6   : > { %6422 = vmatprep.subr.bf16.mxu0 %v8340_v35 }
  0xf7   : > { %3076 = vmatmul.mubr.bf16.gmra.mrb[84].mxu1 %v7342_v31  ;;  %3908 = vmatmul.mubr.bf16.gmra.mrb[8].mxu0 %v7343_v32  ;;  %v5921_v31 = vcombine.high %v606_v28, %v606_v28  ;;  %v7439_v32 = vld [vmem:[%s9605_s0 + $0x4e4] ss:$36 sps:$4 sm:$0xff]  }
  0xf8   : > { %3083 = vmatprep.mubr.bf16.mxu1 %v7344_v33  ;;  %3915 = vmatprep.mubr.bf16.mxu0 %v7346_v34  ;;  %v7536_v33 = vld [vmem:[%s9606_s1 + $0x238] sm:$0xff]   ;;  %v5920_v34 = vcombine.low %v606_v28, %v606_v28  ;;  %v7504_v28 = vld [vmem:[%s9605_s0 + $0x7b0] ss:$36 sps:$4 sm:$0xff]  }
  0xf9   : > { %6423 = vmatpush3.bf16.msra.mxu0 %v7449_v36  ;;  %v7442_v36 = vld [vmem:[%s9605_s0 + $0x4e0] ss:$36 sps:$4 sm:$0xff]  }
  0xfa   : > { %6424 = vmatprep.subr.bf16.mxu0 %v8340_v35 }
  0xfd   : > { %6425 = vmatpush3.bf16.msra.mxu0 %v7480_v56  ;;  %v7467_v56 = vld [vmem:[%s9605_s0 + $0x600] ss:$36 sps:$4 sm:$0xff]  }
  0xfe   : > { %6426 = vmatprep.subr.bf16.mxu0 %v8340_v35 }
  0xff   : > { %3084 = vmatmul.mubr.bf16.gmra.mrb[88].mxu1 %v7348_v3  ;;  %3916 = vmatmul.mubr.bf16.gmra.mrb[12].mxu0 %v7350_v37  ;;  %v7445_v3 = vld [vmem:[%s9605_s0 + $0xc] ss:$36 sps:$4 sm:$0xff]  }
 0x100   : > { %3091 = vmatprep.mubr.bf16.mxu1 %v7351_v38  ;;  %3923 = vmatprep.mubr.bf16.mxu0 %v7353_v39  ;;  %v7446_v37 = vld [vmem:[%s9605_s0 + $0x52c] ss:$36 sps:$4 sm:$0xff]  }
 0x101   : > { %6427 = vmatpush3.bf16.msra.mxu0 %v7509_v11  ;;  %v7443_v38 = vld [vmem:[%s9605_s0 + $0x8] ss:$36 sps:$4 sm:$0xff]   ;;  %v7485_v11 = vld [vmem:[%s9605_s0 + $0x1b8] ss:$36 sps:$4 sm:$0xff]  }
 0x102   : > { %6428 = vmatprep.subr.bf16.mxu0 %v8340_v35  ;;  %v7448_v39 = vld [vmem:[%s9605_s0 + $0x528] ss:$36 sps:$4 sm:$0xff]  }
 0x105   : > { %6429 = vmatpush3.bf16.msra.mxu0 %v7536_v33  ;;  %v7512_v33 = vld [vmem:[%s9605_s0 + $0x324] ss:$36 sps:$4 sm:$0xff]  }
 0x107   : > { %3092 = vmatmul.mubr.bf16.gmra.mrb[92].mxu1 %v7355_v40  ;;  %3924 = vmatmul.mubr.bf16.gmra.mrb[16].mxu0 %v7356_v41  ;;  %v7450_v40 = vld [vmem:[%s9605_s0 + $0x54] ss:$36 sps:$4 sm:$0xff]  }
 0x108   : > { %3099 = vmatprep.mubr.bf16.mxu1 %v7358_v42  ;;  %3931 = vmatprep.mubr.bf16.mxu0 %v7360_v43  ;;  %v7452_v41 = vld [vmem:[%s9605_s0 + $0x574] ss:$36 sps:$4 sm:$0xff]   ;;  %v7704_v42 = vld [vmem:[%s9606_s1 + $0x100] sm:$0xff]  }
 0x109   : > { %v7454_v43 = vld [vmem:[%s9605_s0 + $0x50] ss:$36 sps:$4 sm:$0xff]  }
 0x10f   : > { %3100 = vmatmul.mubr.bf16.gmra.mrb[96].mxu1 %v7362_v44  ;;  %3932 = vmatmul.mubr.bf16.gmra.mrb[20].mxu0 %v7363_v45  ;;  %v7455_v44 = vld [vmem:[%s9605_s0 + $0x570] ss:$36 sps:$4 sm:$0xff]   ;;  %v7456_v45 = vld [vmem:[%s9605_s0 + $0x9c] ss:$36 sps:$4 sm:$0xff]  }
 0x110   : > { %3107 = vmatprep.mubr.bf16.mxu1 %v7365_v46  ;;  %3939 = vmatprep.mubr.bf16.mxu0 %v7367_v47  ;;  %v7458_v46 = vld [vmem:[%s9605_s0 + $0x5bc] ss:$36 sps:$4 sm:$0xff]   ;;  %v7705_v47 = vld [vmem:[%s9606_s1 + $0x108] sm:$0xff]  }
 0x117   : > { %3108 = vmatmul.mubr.bf16.gmra.mrb[100].mxu1 %v7369_v48  ;;  %3940 = vmatmul.mubr.bf16.gmra.mrb[24].mxu0 %v7370_v49  ;;  %v7706_v48 = vld [vmem:[%s9606_s1 + $0x110] sm:$0xff]   ;;  %v7460_v49 = vld [vmem:[%s9605_s0 + $0x98] ss:$36 sps:$4 sm:$0xff]  }
 0x118   : > { %3115 = vmatprep.mubr.bf16.mxu1 %v7371_v50  ;;  %3947 = vmatprep.mubr.bf16.mxu0 %v7373_v51  ;;  %v7461_v50 = vld [vmem:[%s9605_s0 + $0x5b8] ss:$36 sps:$4 sm:$0xff]   ;;  %v7462_v51 = vld [vmem:[%s9605_s0 + $0xe4] ss:$36 sps:$4 sm:$0xff]  }
 0x11f   : > { %3116 = vmatmul.mubr.bf16.gmra.mrb[104].mxu1 %v7375_v52  ;;  %3948 = vmatmul.mubr.bf16.gmra.mrb[28].mxu0 %v7376_v53  ;;  %v7464_v52 = vld [vmem:[%s9605_s0 + $0x604] ss:$36 sps:$4 sm:$0xff]   ;;  %v7707_v53 = vld [vmem:[%s9606_s1 + $0x118] sm:$0xff]  }
 0x120   : > { %3123 = vmatprep.mubr.bf16.mxu1 %v7378_v54  ;;  %3955 = vmatprep.mubr.bf16.mxu0 %v7380_v55  ;;  %v7708_v54 = vld [vmem:[%s9606_s1 + $0x120] sm:$0xff]  }
 0x121   : > { %v7466_v55 = vld [vmem:[%s9605_s0 + $0xe0] ss:$36 sps:$4 sm:$0xff]  }
 0x127   : > { %3124 = vmatmul.mubr.bf16.gmra.mrb[108].mxu1 %v7382_v57  ;;  %3956 = vmatmul.mubr.bf16.gmra.mrb[32].mxu0 %v7383_v58  ;;  %v7468_v57 = vld [vmem:[%s9605_s0 + $0x12c] ss:$36 sps:$4 sm:$0xff]  }
 0x128   : > { %3131 = vmatprep.mubr.bf16.mxu1 %v7384_v59  ;;  %3963 = vmatprep.mubr.bf16.mxu0 %v7386_v60  ;;  %v7470_v58 = vld [vmem:[%s9605_s0 + $0x64c] ss:$36 sps:$4 sm:$0xff]  }
 0x129   : > { %v7709_v59 = vld [vmem:[%s9606_s1 + $0x128] sm:$0xff]   ;;  %v7710_v60 = vld [vmem:[%s9606_s1 + $0x130] sm:$0xff]  }
 0x12f   : > { %3132 = vmatmul.mubr.bf16.gmra.mrb[112].mxu1 %v7388_v61  ;;  %3964 = vmatmul.mubr.bf16.gmra.mrb[36].mxu0 %v7389_v62  ;;  %v7472_v61 = vld [vmem:[%s9605_s0 + $0x128] ss:$36 sps:$4 sm:$0xff]  }
 0x130   : > { %3139 = vmatprep.mubr.bf16.mxu1 %v7391_v63  ;;  %3971 = vmatprep.mubr.bf16.mxu0 %v7394_v0  ;;  %v7473_v62 = vld [vmem:[%s9605_s0 + $0x648] ss:$36 sps:$4 sm:$0xff]   ;;  %v7474_v63 = vld [vmem:[%s9605_s0 + $0x174] ss:$36 sps:$4 sm:$0xff]  }
 0x131   : > { %v7476_v0 = vld [vmem:[%s9605_s0 + $0x694] ss:$36 sps:$4 sm:$0xff]  }
 0x137   : > { %3140 = vmatmul.mubr.bf16.gmra.mrb[116].mxu1 %v7396_v2  ;;  %3972 = vmatmul.mubr.bf16.gmra.mrb[40].mxu0 %v7397_v4  ;;  %v7711_v2 = vld [vmem:[%s9606_s1 + $0x138] sm:$0xff]   ;;  %v7712_v4 = vld [vmem:[%s9606_s1 + $0x140] sm:$0xff]  }
 0x138   : > { %3147 = vmatprep.mubr.bf16.mxu1 %v7398_v5  ;;  %3979 = vmatprep.mubr.bf16.mxu0 %v7400_v6  ;;  %v7478_v5 = vld [vmem:[%s9605_s0 + $0x170] ss:$36 sps:$4 sm:$0xff]  }
 0x139   : > { %v7479_v6 = vld [vmem:[%s9605_s0 + $0x690] ss:$36 sps:$4 sm:$0xff]  }
 0x13f   : > { %3148 = vmatmul.mubr.bf16.gmra.mrb[120].mxu1 %v7402_v7  ;;  %3980 = vmatmul.mubr.bf16.gmra.mrb[44].mxu0 %v7403_v8  ;;  %v7481_v7 = vld [vmem:[%s9605_s0 + $0x1bc] ss:$36 sps:$4 sm:$0xff]  }
 0x140   : > { %3155 = vmatprep.mubr.bf16.mxu1 %v7404_v9  ;;  %3987 = vmatprep.mubr.bf16.mxu0 %v7406_v10  ;;  %v7483_v8 = vld [vmem:[%s9605_s0 + $0x6dc] ss:$36 sps:$4 sm:$0xff]   ;;  %v7713_v9 = vld [vmem:[%s9606_s1 + $0x148] sm:$0xff]   ;;  %v7714_v10 = vld [vmem:[%s9606_s1 + $0x150] sm:$0xff]  }
 0x147   : > { %3156 = vmatmul.mubr.bf16.gmra.mrb[124].mxu1 %v7408_v12  ;;  %3988 = vmatmul.mubr.bf16.gmra.mrb[48].mxu0 %v7409_v13  ;;  %v7486_v12 = vld [vmem:[%s9605_s0 + $0x6d8] ss:$36 sps:$4 sm:$0xff]   ;;  %v7487_v13 = vld [vmem:[%s9605_s0 + $0x204] ss:$36 sps:$4 sm:$0xff]  }
 0x148   : > { %3163 = vmatprep.mubr.bf16.mxu1 %v7411_v14  ;;  %3995 = vmatprep.mubr.bf16.mxu0 %v7413_v15  ;;  %v7489_v14 = vld [vmem:[%s9605_s0 + $0x724] ss:$36 sps:$4 sm:$0xff]   ;;  %v7715_v15 = vld [vmem:[%s9606_s1 + $0x158] sm:$0xff]  }
 0x14f   : > { %3164 = vmatmul.mubr.bf16.gmra.mrb[128].mxu1 %v7415_v16  ;;  %3996 = vmatmul.mubr.bf16.gmra.mrb[52].mxu0 %v7416_v17  ;;  %v7716_v16 = vld [vmem:[%s9606_s1 + $0x160] sm:$0xff]  }
 0x150   : > { %3171 = vmatprep.mubr.bf16.mxu1 %v7417_v18  ;;  %4003 = vmatprep.mubr.bf16.mxu0 %v7419_v19  ;;  %v7491_v17 = vld [vmem:[%s9605_s0 + $0x200] ss:$36 sps:$4 sm:$0xff]   ;;  %v7493_v19 = vld [vmem:[%s9605_s0 + $0x24c] ss:$36 sps:$4 sm:$0xff]  }
 0x151   : > { %v7492_v18 = vld [vmem:[%s9605_s0 + $0x720] ss:$36 sps:$4 sm:$0xff]  }
 0x157   : > { %3172 = vmatmul.mubr.bf16.gmra.mrb[132].mxu1 %v7421_v20  ;;  %4004 = vmatmul.mubr.bf16.gmra.mrb[56].mxu0 %v7422_v21  ;;  %v7495_v20 = vld [vmem:[%s9605_s0 + $0x76c] ss:$36 sps:$4 sm:$0xff]  }
 0x158   : > { %3179 = vmatprep.mubr.bf16.mxu1 %v7425_v22  ;;  %4011 = vmatprep.mubr.bf16.mxu0 %v7427_v23  ;;  %v7717_v21 = vld [vmem:[%s9606_s1 + $0x168] sm:$0xff]   ;;  %v7718_v22 = vld [vmem:[%s9606_s1 + $0x170] sm:$0xff]  }
 0x159   : > { %v7497_v23 = vld [vmem:[%s9605_s0 + $0x248] ss:$36 sps:$4 sm:$0xff]  }
 0x15f   : > { %3180 = vmatmul.mubr.bf16.gmra.mrb[136].mxu1 %v7429_v24  ;;  %4012 = vmatmul.mubr.bf16.gmra.mrb[60].mxu0 %v7430_v25  ;;  %v7498_v24 = vld [vmem:[%s9605_s0 + $0x768] ss:$36 sps:$4 sm:$0xff]   ;;  %v7499_v25 = vld [vmem:[%s9605_s0 + $0x294] ss:$36 sps:$4 sm:$0xff]  }
 0x160   : > { %3187 = vmatprep.mubr.bf16.mxu1 %v7431_v26  ;;  %4019 = vmatprep.mubr.bf16.mxu0 %v7433_v27  ;;  %v7501_v26 = vld [vmem:[%s9605_s0 + $0x7b4] ss:$36 sps:$4 sm:$0xff]  }
 0x161   : > { %v7503_v27 = vld [vmem:[%s9605_s0 + $0x290] ss:$36 sps:$4 sm:$0xff]  }
 0x167   : > { %3188 = vmatmul.mubr.bf16.gmra.mrb[140].mxu1 %v7435_v29  ;;  %4020 = vmatmul.mubr.bf16.gmra.mrb[64].mxu0 %v7436_v30  ;;  %v7505_v29 = vld [vmem:[%s9605_s0 + $0x2dc] ss:$36 sps:$4 sm:$0xff]  }
 0x168   : > { %3195 = vmatprep.mubr.bf16.mxu1 %v5921_v31  ;;  %4027 = vmatprep.mubr.bf16.mxu0 %v7439_v32  ;;  %v7507_v30 = vld [vmem:[%s9605_s0 + $0x7fc] ss:$36 sps:$4 sm:$0xff]  }
 0x169   : > { %v7510_v31 = vld [vmem:[%s9605_s0 + $0x2d8] ss:$36 sps:$4 sm:$0xff]  }
 0x16a   : > { %v7511_v32 = vld [vmem:[%s9605_s0 + $0x7f8] ss:$36 sps:$4 sm:$0xff]  }
 0x16f   : > { %3196 = vmatmul.mubr.bf16.gmra.mrb[144].mxu1 %v5920_v34  ;;  %4028 = vmatmul.mubr.bf16.gmra.mrb[68].mxu0 %v7442_v36  ;;  %v7514_v34 = vld [vmem:[%s9605_s0 + $0x844] ss:$36 sps:$4 sm:$0xff]  }
 0x170   : > { %3235 = vmatprep.mubr.bf16.mxu1 %v7445_v3  ;;  %4035 = vmatprep.mubr.bf16.mxu0 %v7446_v37  ;;  %v7516_v36 = vld [vmem:[%s9605_s0 + $0x320] ss:$36 sps:$4 sm:$0xff]   ;;  %v7518_v37 = vld [vmem:[%s9605_s0 + $0x36c] ss:$36 sps:$4 sm:$0xff]  }
 0x171   : > { %v7517_v3 = vld [vmem:[%s9605_s0 + $0x840] ss:$36 sps:$4 sm:$0xff]  }
 0x177   : > { %3236 = vmatmul.mubr.bf16.vlgmr.msra.gmra.mrb[0].mxu1 %v7443_v38  ;;  %4036 = vmatmul.mubr.bf16.gmra.mrb[72].mxu0 %v7448_v39  ;;  %v7520_v38 = vld [vmem:[%s9605_s0 + $0x88c] ss:$36 sps:$4 sm:$0xff]  }
 0x178   : > { %3243 = vmatprep.mubr.bf16.mxu1 %v7450_v40  ;;  %4043 = vmatprep.mubr.bf16.mxu0 %v7452_v41  ;;  %v7522_v39 = vld [vmem:[%s9605_s0 + $0x368] ss:$36 sps:$4 sm:$0xff]   ;;  %v7524_v41 = vld [vmem:[%s9605_s0 + $0x3b4] ss:$36 sps:$4 sm:$0xff]  }
 0x179   : > { %6594 = vmatpush1.bf16.msra.mxu1 %v7704_v42  ;;  %v7523_v40 = vld [vmem:[%s9605_s0 + $0x888] ss:$36 sps:$4 sm:$0xff]   ;;  %v7526_v42 = vld [vmem:[%s9605_s0 + $0x8d4] ss:$36 sps:$4 sm:$0xff]  }
 0x17a   : > { %6579 = vmatprep.subr.bf16.mxu1 %v7747_v1 }
 0x17d   : > { %6595 = vmatpush1.bf16.msra.mxu1 %v7705_v47  ;;  %v7534_v47 = vld [vmem:[%s9605_s0 + $0x3f8] ss:$36 sps:$4 sm:$0xff]  }
 0x17e   : > { %6580 = vmatprep.subr.bf16.mxu1 %v7747_v1 }
 0x17f   : > { %3244 = vmatmul.mubr.bf16.gmra.mrb[4].mxu1 %v7454_v43  ;;  %4044 = vmatmul.mubr.bf16.gmra.mrb[76].mxu0 %v7455_v44  ;;  %v7528_v43 = vld [vmem:[%s9605_s0 + $0x3b0] ss:$36 sps:$4 sm:$0xff]  }
 0x180   : > { %3251 = vmatprep.mubr.bf16.mxu1 %v7456_v45  ;;  %4051 = vmatprep.mubr.bf16.mxu0 %v7458_v46  ;;  %v7529_v44 = vld [vmem:[%s9605_s0 + $0x8d0] ss:$36 sps:$4 sm:$0xff]   ;;  %v7530_v45 = vld [vmem:[%s9605_s0 + $0x3fc] ss:$36 sps:$4 sm:$0xff]  }
 0x181   : > { %6596 = vmatpush1.bf16.msra.mxu1 %v7706_v48  ;;  %v7532_v46 = vld [vmem:[%s9605_s0 + $0x91c] ss:$36 sps:$4 sm:$0xff]  }
 0x182   : > { %6581 = vmatprep.subr.bf16.mxu1 %v7747_v1  ;;  %v7535_v48 = vld [vmem:[%s9605_s0 + $0x918] ss:$36 sps:$4 sm:$0xff]  }
 0x185   : > { %6597 = vmatpush1.bf16.msra.mxu1 %v7707_v53  ;;  %v7543_v53 = vld [vmem:[%s9605_s0 + $0x48c] ss:$36 sps:$4 sm:$0xff]  }
 0x186   : > { %6582 = vmatprep.subr.bf16.mxu1 %v7747_v1 }
 0x187   : > { %3252 = vmatmul.mubr.bf16.gmra.mrb[8].mxu1 %v7460_v49  ;;  %4052 = vmatmul.mubr.bf16.gmra.mrb[80].mxu0 %v7461_v50  ;;  %v7537_v49 = vld [vmem:[%s9605_s0 + $0x444] ss:$36 sps:$4 sm:$0xff]  }
 0x188   : > { %3259 = vmatprep.mubr.bf16.mxu1 %v7462_v51  ;;  %4059 = vmatprep.mubr.bf16.mxu0 %v7464_v52  ;;  %v7539_v50 = vld [vmem:[%s9605_s0 + $0x964] ss:$36 sps:$4 sm:$0xff]  }
 0x189   : > { %6598 = vmatpush1.bf16.msra.mxu1 %v7708_v54  ;;  %v7541_v51 = vld [vmem:[%s9605_s0 + $0x440] ss:$36 sps:$4 sm:$0xff]   ;;  %v7545_v54 = vld [vmem:[%s9605_s0 + $0x9ac] ss:$36 sps:$4 sm:$0xff]  }
 0x18a   : > { %6583 = vmatprep.subr.bf16.mxu1 %v7747_v1  ;;  %v7542_v52 = vld [vmem:[%s9605_s0 + $0x960] ss:$36 sps:$4 sm:$0xff]  }
 0x18d   : > { %6599 = vmatpush1.bf16.msra.mxu1 %v7709_v59  ;;  %v609_v59 = vld [vmem:[%s9605_s0 + $0xa38] sm:$0xff] }
 0x18e   : > { %6584 = vmatprep.subr.bf16.mxu1 %v7747_v1 }
 0x18f   : > { %3260 = vmatmul.mubr.bf16.gmra.mrb[12].mxu1 %v7466_v55  ;;  %4060 = vmatmul.mubr.bf16.gmra.mrb[84].mxu0 %v7467_v56  ;;  %v7547_v55 = vld [vmem:[%s9605_s0 + $0x488] ss:$36 sps:$4 sm:$0xff]  }
 0x190   : > { %3267 = vmatprep.mubr.bf16.mxu1 %v7468_v57  ;;  %4067 = vmatprep.mubr.bf16.mxu0 %v7470_v58  ;;  %v7548_v56 = vld [vmem:[%s9605_s0 + $0x9a8] ss:$36 sps:$4 sm:$0xff]   ;;  %v7549_v57 = vld [vmem:[%s9605_s0 + $0x4d4] ss:$36 sps:$4 sm:$0xff]  }
 0x191   : > { %6600 = vmatpush1.bf16.msra.mxu1 %v7710_v60  ;;  %v7551_v58 = vld [vmem:[%s9605_s0 + $0x9f4] ss:$36 sps:$4 sm:$0xff]  }
 0x192   : > { %6585 = vmatprep.subr.bf16.mxu1 %v7747_v1  ;;  %v7553_v60 = vld [vmem:[%s9605_s0 + $0x4d0] ss:$36 sps:$4 sm:$0xff]  }
 0x195   : > { %6601 = vmatpush1.bf16.msra.mxu1 %v7711_v2  ;;  %v5926_v2 = vcombine.low %v609_v59, %v609_v59 }
 0x196   : > { %6586 = vmatprep.subr.bf16.mxu1 %v7747_v1 }
 0x197   : > { %3268 = vmatmul.mubr.bf16.gmra.mrb[16].mxu1 %v7472_v61  ;;  %4068 = vmatmul.mubr.bf16.gmra.mrb[88].mxu0 %v7473_v62  ;;  %v7554_v61 = vld [vmem:[%s9605_s0 + $0x9f0] ss:$36 sps:$4 sm:$0xff]   ;;  %v7555_v62 = vld [vmem:[%s9605_s0 + $0x51c] ss:$36 sps:$4 sm:$0xff]  }
 0x198   : > { %3275 = vmatprep.mubr.bf16.mxu1 %v7474_v63  ;;  %4075 = vmatprep.mubr.bf16.mxu0 %v7476_v0  ;;  %v5927_v63 = vcombine.high %v609_v59, %v609_v59  ;;  %v7558_v0 = vld [vmem:[%s9605_s0 + $0x518] ss:$36 sps:$4 sm:$0xff]  }
 0x199   : > { %6602 = vmatpush1.bf16.msra.mxu1 %v7712_v4  ;;  %v7560_v4 = vld [vmem:[%s9605_s0 + $0x564] ss:$36 sps:$4 sm:$0xff]  }
 0x19a   : > { %6587 = vmatprep.subr.bf16.mxu1 %v7747_v1 }
 0x19d   : > { %6603 = vmatpush1.bf16.msra.mxu1 %v7713_v9  ;;  %v7567_v9 = vld [vmem:[%s9605_s0 + $0x68] ss:$36 sps:$4 sm:$0xff]  }
 0x19e   : > { %6588 = vmatprep.subr.bf16.mxu1 %v7747_v1 }
 0x19f   : > { %3276 = vmatmul.mubr.bf16.gmra.mrb[20].mxu1 %v7478_v5  ;;  %4076 = vmatmul.mubr.bf16.gmra.mrb[92].mxu0 %v7479_v6  ;;  %v7562_v5 = vld [vmem:[%s9605_s0 + $0x560] ss:$36 sps:$4 sm:$0xff]  }
 0x1a0   : > { %3283 = vmatprep.mubr.bf16.mxu1 %v7481_v7  ;;  %4083 = vmatprep.mubr.bf16.mxu0 %v7483_v8  ;;  %v7563_v6 = vld [vmem:[%s9605_s0 + $0x20] ss:$36 sps:$4 sm:$0xff]   ;;  %v7564_v7 = vld [vmem:[%s9605_s0 + $0x5ac] ss:$36 sps:$4 sm:$0xff]  }
 0x1a1   : > { %6604 = vmatpush1.bf16.msra.mxu1 %v7714_v10  ;;  %v7566_v8 = vld [vmem:[%s9605_s0 + $0x5a8] ss:$36 sps:$4 sm:$0xff]   ;;  %v7568_v10 = vld [vmem:[%s9605_s0 + $0x5f4] ss:$36 sps:$4 sm:$0xff]  }
 0x1a2   : > { %6589 = vmatprep.subr.bf16.mxu1 %v7747_v1 }
 0x1a5   : > { %6605 = vmatpush1.bf16.msra.mxu1 %v7715_v15  ;;  %v7575_v15 = vld [vmem:[%s9605_s0 + $0xf8] ss:$36 sps:$4 sm:$0xff]  }
 0x1a6   : > { %6590 = vmatprep.subr.bf16.mxu1 %v7747_v1 }
 0x1a7   : > { %3284 = vmatmul.mubr.bf16.gmra.mrb[24].mxu1 %v7485_v11  ;;  %4084 = vmatmul.mubr.bf16.gmra.mrb[96].mxu0 %v7486_v12  ;;  %v7570_v11 = vld [vmem:[%s9605_s0 + $0x5f0] ss:$36 sps:$4 sm:$0xff]  }
 0x1a8   : > { %3291 = vmatprep.mubr.bf16.mxu1 %v7487_v13  ;;  %4091 = vmatprep.mubr.bf16.mxu0 %v7489_v14  ;;  %v7571_v12 = vld [vmem:[%s9605_s0 + $0xb0] ss:$36 sps:$4 sm:$0xff]   ;;  %v7572_v13 = vld [vmem:[%s9605_s0 + $0x63c] ss:$36 sps:$4 sm:$0xff]  }
 0x1a9   : > { %6606 = vmatpush1.bf16.msra.mxu1 %v7716_v16  ;;  %v7574_v14 = vld [vmem:[%s9605_s0 + $0x638] ss:$36 sps:$4 sm:$0xff]   ;;  %v7576_v16 = vld [vmem:[%s9605_s0 + $0x684] ss:$36 sps:$4 sm:$0xff]  }
 0x1aa   : > { %6591 = vmatprep.subr.bf16.mxu1 %v7747_v1 }
 0x1ad   : > { %6607 = vmatpush1.bf16.msra.mxu1 %v7717_v21  ;;  %v7583_v21 = vld [vmem:[%s9605_s0 + $0x188] ss:$36 sps:$4 sm:$0xff]  }
 0x1ae   : > { %6592 = vmatprep.subr.bf16.mxu1 %v7747_v1 }
 0x1af   : > { %3292 = vmatmul.mubr.bf16.gmra.mrb[28].mxu1 %v7491_v17  ;;  %4092 = vmatmul.mubr.bf16.gmra.mrb[100].mxu0 %v7492_v18  ;;  %v7578_v17 = vld [vmem:[%s9605_s0 + $0x680] ss:$36 sps:$4 sm:$0xff]  }
 0x1b0   : > { %3299 = vmatprep.mubr.bf16.mxu1 %v7493_v19  ;;  %4099 = vmatprep.mubr.bf16.mxu0 %v7495_v20  ;;  %v7579_v18 = vld [vmem:[%s9605_s0 + $0x140] ss:$36 sps:$4 sm:$0xff]   ;;  %v7580_v19 = vld [vmem:[%s9605_s0 + $0x6cc] ss:$36 sps:$4 sm:$0xff]  }
 0x1b1   : > { %6608 = vmatpush1.bf16.msra.mxu1 %v7718_v22  ;;  %v7582_v20 = vld [vmem:[%s9605_s0 + $0x6c8] ss:$36 sps:$4 sm:$0xff]   ;;  %v7584_v22 = vld [vmem:[%s9605_s0 + $0x714] ss:$36 sps:$4 sm:$0xff]  }
 0x1b2   : > { %6593 = vmatprep.subr.bf16.mxu1 %v7747_v1  ;;  %v7719_v1 = vld [vmem:[%s9606_s1 + $0x178] sm:$0xff]  }
 0x1b5   : > { %6609 = vmatpush1.bf16.msra.mxu1 %v7719_v1  ;;  %v7591_v1 = vld [vmem:[%s9605_s0 + $0x218] ss:$36 sps:$4 sm:$0xff]  }
 0x1b7   : > { %3300 = vmatmul.mubr.bf16.gmra.mrb[32].mxu1 %v7497_v23  ;;  %4100 = vmatmul.mubr.bf16.gmra.mrb[104].mxu0 %v7498_v24  ;;  %v7586_v23 = vld [vmem:[%s9605_s0 + $0x710] ss:$36 sps:$4 sm:$0xff]  }
 0x1b8   : > { %3307 = vmatprep.mubr.bf16.mxu1 %v7499_v25  ;;  %4107 = vmatprep.mubr.bf16.mxu0 %v7501_v26  ;;  %v7587_v24 = vld [vmem:[%s9605_s0 + $0x1d0] ss:$36 sps:$4 sm:$0xff]   ;;  %v7588_v25 = vld [vmem:[%s9605_s0 + $0x75c] ss:$36 sps:$4 sm:$0xff]  }
 0x1b9   : > { %v7590_v26 = vld [vmem:[%s9605_s0 + $0x758] ss:$36 sps:$4 sm:$0xff]  }
 0x1bf   : > { %3308 = vmatmul.mubr.bf16.gmra.mrb[36].mxu1 %v7503_v27  ;;  %4108 = vmatmul.mubr.bf16.gmra.mrb[108].mxu0 %v7504_v28  ;;  %v7592_v27 = vld [vmem:[%s9605_s0 + $0x7a4] ss:$36 sps:$4 sm:$0xff]  }
 0x1c0   : > { %3315 = vmatprep.mubr.bf16.mxu1 %v7505_v29  ;;  %4115 = vmatprep.mubr.bf16.mxu0 %v7507_v30  ;;  %v7594_v30 = vld [vmem:[%s9605_s0 + $0x7a0] ss:$36 sps:$4 sm:$0xff]  }
 0x1c7   : > { %3316 = vmatmul.mubr.bf16.gmra.mrb[40].mxu1 %v7510_v31  ;;  %4116 = vmatmul.mubr.bf16.gmra.mrb[112].mxu0 %v7511_v32  ;;  %v7595_v32 = vld [vmem:[%s9605_s0 + $0x260] ss:$36 sps:$4 sm:$0xff]  }
 0x1c8   : > { %3323 = vmatprep.mubr.bf16.mxu1 %v7512_v33  ;;  %4123 = vmatprep.mubr.bf16.mxu0 %v7514_v34  ;;  %v7596_v33 = vld [vmem:[%s9605_s0 + $0x7ec] ss:$36 sps:$4 sm:$0xff]  }
 0x1cf   : > { %3324 = vmatmul.mubr.bf16.gmra.mrb[44].mxu1 %v7516_v36  ;;  %4124 = vmatmul.mubr.bf16.gmra.mrb[116].mxu0 %v7517_v3 }
 0x1d0   : > { %3331 = vmatprep.mubr.bf16.mxu1 %v7518_v37  ;;  %4131 = vmatprep.mubr.bf16.mxu0 %v7520_v38  ;;  %v7598_v37 = vld [vmem:[%s9605_s0 + $0x7e8] ss:$36 sps:$4 sm:$0xff]  }
 0x1d7   : > { %3332 = vmatmul.mubr.bf16.gmra.mrb[48].mxu1 %v7522_v39  ;;  %4132 = vmatmul.mubr.bf16.gmra.mrb[120].mxu0 %v7523_v40  ;;  %v7599_v39 = vld [vmem:[%s9605_s0 + $0x2a8] ss:$36 sps:$4 sm:$0xff]   ;;  %v7600_v40 = vld [vmem:[%s9605_s0 + $0x834] ss:$36 sps:$4 sm:$0xff]  }
 0x1d8   : > { %3339 = vmatprep.mubr.bf16.mxu1 %v7524_v41  ;;  %4139 = vmatprep.mubr.bf16.mxu0 %v7526_v42 }
 0x1df   : > { %3340 = vmatmul.mubr.bf16.gmra.mrb[52].mxu1 %v7528_v43  ;;  %4140 = vmatmul.mubr.bf16.gmra.mrb[124].mxu0 %v7529_v44  ;;  %v7602_v44 = vld [vmem:[%s9605_s0 + $0x830] ss:$36 sps:$4 sm:$0xff]  }
 0x1e0   : > { %3347 = vmatprep.mubr.bf16.mxu1 %v7530_v45  ;;  %4147 = vmatprep.mubr.bf16.mxu0 %v7532_v46  ;;  %v7603_v46 = vld [vmem:[%s9605_s0 + $0x2f0] ss:$36 sps:$4 sm:$0xff]  }
 0x1e7   : > { %3348 = vmatmul.mubr.bf16.gmra.mrb[56].mxu1 %v7534_v47  ;;  %4148 = vmatmul.mubr.bf16.gmra.mrb[128].mxu0 %v7535_v48  ;;  %v7604_v47 = vld [vmem:[%s9605_s0 + $0x87c] ss:$36 sps:$4 sm:$0xff]  }
 0x1e8   : > { %3355 = vmatprep.mubr.bf16.mxu1 %v7537_v49  ;;  %4155 = vmatprep.mubr.bf16.mxu0 %v7539_v50 }
 0x1ef   : > { %3356 = vmatmul.mubr.bf16.gmra.mrb[60].mxu1 %v7541_v51  ;;  %4156 = vmatmul.mubr.bf16.gmra.mrb[132].mxu0 %v7542_v52  ;;  %v7606_v51 = vld [vmem:[%s9605_s0 + $0x878] ss:$36 sps:$4 sm:$0xff]  }
 0x1f0   : > { %3363 = vmatprep.mubr.bf16.mxu1 %v7543_v53  ;;  %4163 = vmatprep.mubr.bf16.mxu0 %v7545_v54  ;;  %v7607_v53 = vld [vmem:[%s9605_s0 + $0x338] ss:$36 sps:$4 sm:$0xff]   ;;  %v7608_v54 = vld [vmem:[%s9605_s0 + $0x8c4] ss:$36 sps:$4 sm:$0xff]  }
 0x1f7   : > { %3364 = vmatmul.mubr.bf16.gmra.mrb[64].mxu1 %v7547_v55  ;;  %4164 = vmatmul.mubr.bf16.gmra.mrb[136].mxu0 %v7548_v56 }
 0x1f8   : > { %3371 = vmatprep.mubr.bf16.mxu1 %v7549_v57  ;;  %4171 = vmatprep.mubr.bf16.mxu0 %v7551_v58  ;;  %v7610_v58 = vld [vmem:[%s9605_s0 + $0x8c0] ss:$36 sps:$4 sm:$0xff]  }
 0x1ff   : > { %3372 = vmatmul.mubr.bf16.gmra.mrb[68].mxu1 %v7553_v60  ;;  %4172 = vmatmul.mubr.bf16.gmra.mrb[140].mxu0 %v7554_v61  ;;  %v7611_v60 = vld [vmem:[%s9605_s0 + $0x380] ss:$36 sps:$4 sm:$0xff]   ;;  %v7612_v61 = vld [vmem:[%s9605_s0 + $0x90c] ss:$36 sps:$4 sm:$0xff]  }
 0x200   : > { %3379 = vmatprep.mubr.bf16.mxu1 %v7555_v62  ;;  %4179 = vmatprep.mubr.bf16.mxu0 %v5927_v63 }
 0x207   : > { %3380 = vmatmul.mubr.bf16.gmra.mrb[72].mxu1 %v7558_v0  ;;  %4180 = vmatmul.mubr.bf16.gmra.mrb[144].mxu0 %v5926_v2  ;;  %v7614_v2 = vld [vmem:[%s9605_s0 + $0x908] ss:$36 sps:$4 sm:$0xff]  }
 0x208   : > { %3387 = vmatprep.mubr.bf16.mxu1 %v7560_v4  ;;  %6430 = vmatprep.mubr.msk.bf16.mxu0 %vm7749_vm0, %v8340_v35 }
 0x20f   : > { %3388 = vmatmul.mubr.bf16.gmra.mrb[76].mxu1 %v7562_v5  ;;  %6431 = vmatmul.mubr.bf16.vlgmr.msra.gmra.mrb[0].mxu0 %v7563_v6  ;;  %v7615_v5 = vld [vmem:[%s9605_s0 + $0x3c8] ss:$36 sps:$4 sm:$0xff]   ;;  %v7616_v6 = vld [vmem:[%s9605_s0 + $0x954] ss:$36 sps:$4 sm:$0xff]  }
 0x210   : > { %3395 = vmatprep.mubr.bf16.mxu1 %v7564_v7  ;;  %6434 = vmatprep.mubr.msk.bf16.mxu0 %vm7749_vm0, %v8340_v35 }
 0x217   : > { %3396 = vmatmul.mubr.bf16.gmra.mrb[80].mxu1 %v7566_v8  ;;  %6435 = vmatmul.mubr.bf16.gmra.mrb[4].mxu0 %v7567_v9 }
 0x218   : > { %3403 = vmatprep.mubr.bf16.mxu1 %v7568_v10  ;;  %6438 = vmatprep.mubr.msk.bf16.mxu0 %vm7749_vm0, %v8340_v35  ;;  %v7618_v10 = vld [vmem:[%s9605_s0 + $0x950] ss:$36 sps:$4 sm:$0xff]  }
 0x21f   : > { %3404 = vmatmul.mubr.bf16.gmra.mrb[84].mxu1 %v7570_v11  ;;  %6439 = vmatmul.mubr.bf16.gmra.mrb[8].mxu0 %v7571_v12  ;;  %v7619_v12 = vld [vmem:[%s9605_s0 + $0x410] ss:$36 sps:$4 sm:$0xff]  }
 0x220   : > { %3411 = vmatprep.mubr.bf16.mxu1 %v7572_v13  ;;  %6442 = vmatprep.mubr.msk.bf16.mxu0 %vm7749_vm0, %v8340_v35  ;;  %v7620_v13 = vld [vmem:[%s9605_s0 + $0x99c] ss:$36 sps:$4 sm:$0xff]  }
 0x227   : > { %3412 = vmatmul.mubr.bf16.gmra.mrb[88].mxu1 %v7574_v14  ;;  %6443 = vmatmul.mubr.bf16.gmra.mrb[12].mxu0 %v7575_v15 }
 0x228   : > { %3419 = vmatprep.mubr.bf16.mxu1 %v7576_v16  ;;  %6446 = vmatprep.mubr.msk.bf16.mxu0 %vm7749_vm0, %v8340_v35 }
 0x22f   : > { %3420 = vmatmul.mubr.bf16.gmra.mrb[92].mxu1 %v7578_v17  ;;  %6447 = vmatmul.mubr.bf16.gmra.mrb[16].mxu0 %v7579_v18  ;;  %v7622_v17 = vld [vmem:[%s9605_s0 + $0x998] ss:$36 sps:$4 sm:$0xff]  }
 0x230   : > { %3427 = vmatprep.mubr.bf16.mxu1 %v7580_v19  ;;  %6450 = vmatprep.mubr.msk.bf16.mxu0 %vm7749_vm0, %v8340_v35  ;;  %v7623_v19 = vld [vmem:[%s9605_s0 + $0x458] ss:$36 sps:$4 sm:$0xff]  }
 0x237   : > { %3428 = vmatmul.mubr.bf16.gmra.mrb[96].mxu1 %v7582_v20  ;;  %6451 = vmatmul.mubr.bf16.gmra.mrb[20].mxu0 %v7583_v21  ;;  %v7624_v20 = vld [vmem:[%s9605_s0 + $0x9e4] ss:$36 sps:$4 sm:$0xff]  }
 0x238   : > { %3435 = vmatprep.mubr.bf16.mxu1 %v7584_v22  ;;  %6454 = vmatprep.mubr.msk.bf16.mxu0 %vm7749_vm0, %v8340_v35  ;;  %v607_v22 = vld [vmem:[%s9605_s0 + $0xa28] sm:$0xff] }
 0x23f   : > { %3436 = vmatmul.mubr.bf16.gmra.mrb[100].mxu1 %v7586_v23  ;;  %6455 = vmatmul.mubr.bf16.gmra.mrb[24].mxu0 %v7587_v24 }
 0x240   : > { %3443 = vmatprep.mubr.bf16.mxu1 %v7588_v25  ;;  %6458 = vmatprep.mubr.msk.bf16.mxu0 %vm7749_vm0, %v8340_v35  ;;  %v7626_v25 = vld [vmem:[%s9605_s0 + $0x9e0] ss:$36 sps:$4 sm:$0xff]  }
 0x247   : > { %3444 = vmatmul.mubr.bf16.gmra.mrb[104].mxu1 %v7590_v26  ;;  %6459 = vmatmul.mubr.bf16.gmra.mrb[28].mxu0 %v7591_v1  ;;  %v7627_v1 = vld [vmem:[%s9605_s0 + $0x4a0] ss:$36 sps:$4 sm:$0xff]  }
 0x248   : > { %3451 = vmatprep.mubr.bf16.mxu1 %v7592_v27  ;;  %6462 = vmatprep.mubr.msk.bf16.mxu0 %vm7749_vm0, %v8340_v35  ;;  %v5923_v27 = vcombine.high %v607_v22, %v607_v22 }
 0x24a   : > { %v8910_v28 = vpop.f32.mrb[0].mxu1 }
 0x24b   : > { %v3239_v29 = vpop.f32.mrb[1].mxu1 }
 0x24c   : > { %v8915_v31 = vpop.f32.mrb[2].mxu1 }
 0x24d   : > { %v3242_v34 = vpop.f32.mrb[3].mxu1 }
 0x24f   : > { %3452 = vmatmul.mubr.bf16.gmra.mrb[108].mxu1 %v7594_v30  ;;  %6463 = vmatmul.mubr.bf16.gmra.mrb[32].mxu0 %v7595_v32 }
 0x250   : > { %3459 = vmatprep.mubr.bf16.mxu1 %v7596_v33  ;;  %6466 = vmatprep.mubr.msk.bf16.mxu0 %vm7749_vm0, %v8340_v35  ;;  %v5922_v33 = vcombine.low %v607_v22, %v607_v22  ;;  %v7650_v22 = vld [vmem:[%s9605_s0 + $0x650] ss:$36 sps:$4 sm:$0xff]  }
 0x252   : > { %v8925_v36 = vpop.f32.mrb[4].mxu1 }
 0x253   : > { %v3247_v3 = vpop.f32.mrb[5].mxu1 }
 0x254   : > { %v8930_v38 = vpop.f32.mrb[6].mxu1  ;;  %v7630_v3 = vld [vmem:[%s9605_s0 + $0x4e8] ss:$36 sps:$4 sm:$0xff]  }
 0x255   : > { %v3250_v41 = vpop.f32.mrb[7].mxu1 }
 0x257   : > { %3460 = vmatmul.mubr.bf16.gmra.mrb[112].mxu1 %v7598_v37  ;;  %6467 = vmatmul.mubr.bf16.gmra.mrb[36].mxu0 %v7599_v39  ;;  %v7633_v37 = vld [vmem:[%s9605_s0 + $0x56c] ss:$36 sps:$4 sm:$0xff]  }
 0x258   : > { %3467 = vmatprep.mubr.bf16.mxu1 %v7600_v40  ;;  %6470 = vmatprep.mubr.msk.bf16.mxu0 %vm7749_vm0, %v8340_v35  ;;  %v9055_v40 = vld [vmem:[#allocation3] sm:$0xff] }
 0x25a   : > { %v8940_v42 = vpop.f32.mrb[8].mxu1 }
 0x25b   : > { %v3255_v43 = vpop.f32.mrb[9].mxu1 }
 0x25c   : > { %v8945_v45 = vpop.f32.mrb[10].mxu1  ;;  %v7631_v43 = vld [vmem:[%s9605_s0 + $0x568] ss:$36 sps:$4 sm:$0xff]  }
 0x25d   : > { %v3258_v48 = vpop.f32.mrb[11].mxu1 }
 0x25f   : > { %3468 = vmatmul.mubr.bf16.gmra.mrb[116].mxu1 %v7602_v44  ;;  %6471 = vmatmul.mubr.bf16.gmra.mrb[40].mxu0 %v7603_v46  ;;  %v7634_v46 = vld [vmem:[%s9605_s0 + $0x530] ss:$36 sps:$4 sm:$0xff]  }
 0x260   : > { %3475 = vmatprep.mubr.bf16.mxu1 %v7604_v47  ;;  %6474 = vmatprep.mubr.msk.bf16.mxu0 %vm7749_vm0, %v8340_v35  ;;  %v7635_v47 = vld [vmem:[%s9605_s0 + $0x5b4] ss:$36 sps:$4 sm:$0xff]  }
 0x262   : > { %v8955_v49 = vpop.f32.mrb[12].mxu1 }
 0x263   : > { %v3263_v50 = vpop.f32.mrb[13].mxu1 }
 0x264   : > { %v8960_v52 = vpop.f32.mrb[14].mxu1 }
 0x265   : > { %v3266_v55 = vpop.f32.mrb[15].mxu1 }
 0x266   : > { %v7638_v55 = vld [vmem:[%s9605_s0 + $0x578] ss:$36 sps:$4 sm:$0xff]  }
 0x267   : > { %3476 = vmatmul.mubr.bf16.gmra.mrb[120].mxu1 %v7606_v51  ;;  %6475 = vmatmul.mubr.bf16.gmra.mrb[44].mxu0 %v7607_v53  ;;  %v7637_v53 = vld [vmem:[%s9605_s0 + $0x5b0] ss:$36 sps:$4 sm:$0xff]  }
 0x268   : > { %3483 = vmatprep.mubr.bf16.mxu1 %v7608_v54  ;;  %6478 = vmatprep.mubr.msk.bf16.mxu0 %vm7749_vm0, %v8340_v35 }
 0x26a   : > { %v8970_v56 = vpop.f32.mrb[16].mxu1 }
 0x26b   : > { %v3271_v57 = vpop.f32.mrb[17].mxu1 }
 0x26c   : > { %v8975_v59 = vpop.f32.mrb[18].mxu1  ;;  %v7639_v57 = vld [vmem:[%s9605_s0 + $0x5fc] ss:$36 sps:$4 sm:$0xff]  }
 0x26d   : > { %v3274_v62 = vpop.f32.mrb[19].mxu1 }
 0x26e   : > { %v7641_v62 = vld [vmem:[%s9605_s0 + $0x5f8] ss:$36 sps:$4 sm:$0xff]  }
 0x26f   : > { %3484 = vmatmul.mubr.bf16.gmra.mrb[124].mxu1 %v7610_v58  ;;  %6479 = vmatmul.mubr.bf16.gmra.mrb[48].mxu0 %v7611_v60 }
 0x270   : > { %3491 = vmatprep.mubr.bf16.mxu1 %v7612_v61  ;;  %6482 = vmatprep.mubr.msk.bf16.mxu0 %vm7749_vm0, %v8340_v35 }
 0x272   : > { %v8985_v63 = vpop.f32.mrb[20].mxu1 }
 0x273   : > { %v3279_v0 = vpop.f32.mrb[21].mxu1 }
 0x274   : > { %v8990_v4 = vpop.f32.mrb[22].mxu1 }
 0x275   : > { %v3282_v7 = vpop.f32.mrb[23].mxu1 }
 0x277   : > { %3492 = vmatmul.mubr.bf16.gmra.mrb[128].mxu1 %v7614_v2  ;;  %6483 = vmatmul.mubr.bf16.gmra.mrb[52].mxu0 %v7615_v5  ;;  %v7642_v2 = vld [vmem:[%s9605_s0 + $0x5c0] ss:$36 sps:$4 sm:$0xff]  }
 0x278   : > { %3499 = vmatprep.mubr.bf16.mxu1 %v7616_v6  ;;  %6486 = vmatprep.mubr.msk.bf16.mxu0 %vm7749_vm0, %v8340_v35  ;;  %v7643_v5 = vld [vmem:[%s9605_s0 + $0x644] ss:$36 sps:$4 sm:$0xff]  }
 0x27a   : > { %v9000_v8 = vpop.f32.mrb[24].mxu1 }
 0x27b   : > { %v3287_v9 = vpop.f32.mrb[25].mxu1 }
 0x27c   : > { %v9005_v11 = vpop.f32.mrb[26].mxu1 }
 0x27d   : > { %v3290_v14 = vpop.f32.mrb[27].mxu1 }
 0x27e   : > { %v7647_v14 = vld [vmem:[%s9605_s0 + $0x68c] ss:$36 sps:$4 sm:$0xff]  }
 0x27f   : > { %3500 = vmatmul.mubr.bf16.gmra.mrb[132].mxu1 %v7618_v10  ;;  %6487 = vmatmul.mubr.bf16.gmra.mrb[56].mxu0 %v7619_v12  ;;  %v7645_v10 = vld [vmem:[%s9605_s0 + $0x640] ss:$36 sps:$4 sm:$0xff]  }
 0x280   : > { %3507 = vmatprep.mubr.bf16.mxu1 %v7620_v13  ;;  %6490 = vmatprep.mubr.msk.bf16.mxu0 %vm7749_vm0, %v8340_v35  ;;  %v7646_v13 = vld [vmem:[%s9605_s0 + $0x608] ss:$36 sps:$4 sm:$0xff]  }
 0x282   : > { %v9015_v15 = vpop.f32.mrb[28].mxu1 }
 0x283   : > { %v3295_v16 = vpop.f32.mrb[29].mxu1 }
 0x284   : > { %v9020_v18 = vpop.f32.mrb[30].mxu1 }
 0x285   : > { %v3298_v21 = vpop.f32.mrb[31].mxu1 }
 0x287   : > { %3508 = vmatmul.mubr.bf16.gmra.mrb[136].mxu1 %v7622_v17  ;;  %6491 = vmatmul.mubr.bf16.gmra.mrb[60].mxu0 %v7623_v19 }
 0x288   : > { %3515 = vmatprep.mubr.bf16.mxu1 %v7624_v20  ;;  %6494 = vmatprep.mubr.msk.bf16.mxu0 %vm7749_vm0, %v8340_v35  ;;  %v7649_v20 = vld [vmem:[%s9605_s0 + $0x688] ss:$36 sps:$4 sm:$0xff]  }
 0x28a   : > { %v9033_v23 = vpop.f32.mrb[32].mxu1 }
 0x28b   : > { %v3303_v24 = vpop.f32.mrb[33].mxu1 }
 0x28c   : > { %v9038_v26 = vpop.f32.mrb[34].mxu1  ;;  %v7651_v24 = vld [vmem:[%s9605_s0 + $0x6d4] ss:$36 sps:$4 sm:$0xff]  }
 0x28d   : > { %v3306_v29 = vpop.f32.mrb[35].mxu1 }
 0x28e   : > { %v7653_v29 = vld [vmem:[%s9605_s0 + $0x6d0] ss:$36 sps:$4 sm:$0xff]  }
 0x28f   : > { %3516 = vmatmul.mubr.bf16.gmra.mrb[140].mxu1 %v7626_v25  ;;  %6495 = vmatmul.mubr.bf16.gmra.mrb[64].mxu0 %v7627_v1 }
 0x290   : > { %3523 = vmatprep.mubr.bf16.mxu1 %v5923_v27  ;;  %6498 = vmatprep.mubr.msk.bf16.mxu0 %vm7749_vm0, %v8340_v35 }
 0x292   : > { %v9045_v30 = vpop.f32.mrb[36].mxu1 }
 0x293   : > { %v3311_v32 = vpop.f32.mrb[37].mxu1 }
 0x294   : > { %v9047_v34 = vpop.f32.mrb[38].mxu1 }
 0x295   : > { %v3314_v39 = vpop.f32.mrb[39].mxu1 }
 0x297   : > { %3524 = vmatmul.mubr.bf16.gmra.mrb[144].mxu1 %v5922_v33  ;;  %6499 = vmatmul.mubr.bf16.gmra.mrb[68].mxu0 %v7630_v3  ;;  %v7654_v33 = vld [vmem:[%s9605_s0 + $0x698] ss:$36 sps:$4 sm:$0xff]  }
 0x298   : > { %3715 = vmatprep.mubr.bf16.mxu1 %v7633_v37  ;;  %6502 = vmatprep.mubr.msk.bf16.mxu0 %vm7749_vm0, %v9055_v40  ;;  %v7655_v3 = vld [vmem:[%s9605_s0 + $0x71c] ss:$36 sps:$4 sm:$0xff]  }
 0x29a   : > { %v9059_v35 = vpop.f32.mrb[40].mxu1 }
 0x29b   : > { %v3319_v41 = vpop.f32.mrb[41].mxu1 }
 0x29c   : > { %v9064_v44 = vpop.f32.mrb[42].mxu1 }
 0x29d   : > { %v3322_v48 = vpop.f32.mrb[43].mxu1 }
 0x29e   : > { %v7659_v48 = vld [vmem:[%s9605_s0 + $0x764] ss:$36 sps:$4 sm:$0xff]  }
 0x29f   : > { %3716 = vmatmul.mubr.bf16.vlgmr.msra.gmra.mrb[76].mxu1 %v7631_v43  ;;  %6503 = vmatmul.mubr.bf16.gmra.mrb[72].mxu0 %v7634_v46  ;;  %v7657_v43 = vld [vmem:[%s9605_s0 + $0x718] ss:$36 sps:$4 sm:$0xff]  }
 0x2a0   : > { %3723 = vmatprep.mubr.bf16.mxu1 %v7635_v47  ;;  %6506 = vmatprep.mubr.msk.bf16.mxu0 %vm7749_vm0, %v9055_v40  ;;  %v7658_v47 = vld [vmem:[%s9605_s0 + $0x6e0] ss:$36 sps:$4 sm:$0xff]  }
 0x2a2   : > { %v9074_v50 = vpop.f32.mrb[44].mxu1 }
 0x2a3   : > { %v3327_v51 = vpop.f32.mrb[45].mxu1 }
 0x2a4   : > { %v9079_v54 = vpop.f32.mrb[46].mxu1 }
 0x2a5   : > { %v3330_v58 = vpop.f32.mrb[47].mxu1 }
 0x2a7   : > { %3724 = vmatmul.mubr.bf16.gmra.mrb[80].mxu1 %v7637_v53  ;;  %6507 = vmatmul.mubr.bf16.gmra.mrb[76].mxu0 %v7638_v55 }
 0x2a8   : > { %3731 = vmatprep.mubr.bf16.mxu1 %v7639_v57  ;;  %6510 = vmatprep.mubr.msk.bf16.mxu0 %vm7749_vm0, %v9055_v40  ;;  %v7661_v57 = vld [vmem:[%s9605_s0 + $0x760] ss:$36 sps:$4 sm:$0xff]  }
 0x2aa   : > { %v9089_v60 = vpop.f32.mrb[48].mxu1 }
 0x2ab   : > { %v3335_v61 = vpop.f32.mrb[49].mxu1 }
 0x2ac   : > { %v9094_v0 = vpop.f32.mrb[50].mxu1  ;;  %v7662_v61 = vld [vmem:[%s9605_s0 + $0x728] ss:$36 sps:$4 sm:$0xff]  }
 0x2ad   : > { %v3338_v6 = vpop.f32.mrb[51].mxu1 }
 0x2af   : > { %3732 = vmatmul.mubr.bf16.gmra.mrb[84].mxu1 %v7641_v62  ;;  %6511 = vmatmul.mubr.bf16.gmra.mrb[80].mxu0 %v7642_v2  ;;  %v7663_v62 = vld [vmem:[%s9605_s0 + $0x7ac] ss:$36 sps:$4 sm:$0xff]  }
 0x2b0   : > { %3739 = vmatprep.mubr.bf16.mxu1 %v7643_v5  ;;  %6514 = vmatprep.mubr.msk.bf16.mxu0 %vm7749_vm0, %v9055_v40 }
 0x2b2   : > { %v9104_v7 = vpop.f32.mrb[52].mxu1 }
 0x2b3   : > { %v3343_v9 = vpop.f32.mrb[53].mxu1 }
 0x2b4   : > { %v9109_v12 = vpop.f32.mrb[54].mxu1  ;;  %v7665_v9 = vld [vmem:[%s9605_s0 + $0x7a8] ss:$36 sps:$4 sm:$0xff]  }
 0x2b5   : > { %v3346_v16 = vpop.f32.mrb[55].mxu1 }
 0x2b7   : > { %3740 = vmatmul.mubr.bf16.gmra.mrb[88].mxu1 %v7645_v10  ;;  %6515 = vmatmul.mubr.bf16.gmra.mrb[84].mxu0 %v7646_v13  ;;  %v7666_v13 = vld [vmem:[%s9605_s0 + $0x770] ss:$36 sps:$4 sm:$0xff]  }
 0x2b8   : > { %3747 = vmatprep.mubr.bf16.mxu1 %v7647_v14  ;;  %6518 = vmatprep.mubr.msk.bf16.mxu0 %vm7749_vm0, %v9055_v40  ;;  %v7667_v14 = vld [vmem:[%s9605_s0 + $0x7f4] ss:$36 sps:$4 sm:$0xff]  }
 0x2ba   : > { %v9119_v17 = vpop.f32.mrb[56].mxu1 }
 0x2bb   : > { %v3351_v19 = vpop.f32.mrb[57].mxu1 }
 0x2bc   : > { %v9124_v21 = vpop.f32.mrb[58].mxu1 }
 0x2bd   : > { %v3354_v25 = vpop.f32.mrb[59].mxu1 }
 0x2be   : > { %v7670_v25 = vld [vmem:[%s9605_s0 + $0x7b8] ss:$36 sps:$4 sm:$0xff]  }
 0x2bf   : > { %3748 = vmatmul.mubr.bf16.gmra.mrb[92].mxu1 %v7649_v20  ;;  %6519 = vmatmul.mubr.bf16.gmra.mrb[88].mxu0 %v7650_v22  ;;  %v7669_v20 = vld [vmem:[%s9605_s0 + $0x7f0] ss:$36 sps:$4 sm:$0xff]  }
 0x2c0   : > { %3755 = vmatprep.mubr.bf16.mxu1 %v7651_v24  ;;  %6522 = vmatprep.mubr.msk.bf16.mxu0 %vm7749_vm0, %v9055_v40 }
 0x2c2   : > { %v9134_v1 = vpop.f32.mrb[60].mxu1 }
 0x2c3   : > { %v3359_v27 = vpop.f32.mrb[61].mxu1 }
 0x2c4   : > { %v9139_v32 = vpop.f32.mrb[62].mxu1  ;;  %v7671_v27 = vld [vmem:[%s9605_s0 + $0x83c] ss:$36 sps:$4 sm:$0xff]  }
 0x2c5   : > { %v3362_v37 = vpop.f32.mrb[63].mxu1 }
 0x2c7   : > { %3756 = vmatmul.mubr.bf16.gmra.mrb[96].mxu1 %v7653_v29  ;;  %6523 = vmatmul.mubr.bf16.gmra.mrb[92].mxu0 %v7654_v33 }
 0x2c8   : > { %3763 = vmatprep.mubr.bf16.mxu1 %v7655_v3  ;;  %6526 = vmatprep.mubr.msk.bf16.mxu0 %vm7749_vm0, %v9055_v40 }
 0x2ca   : > { %v9149_v39 = vpop.f32.mrb[64].mxu1 }
 0x2cb   : > { %v3367_v41 = vpop.f32.mrb[65].mxu1 }
 0x2cc   : > { %v9154_v46 = vpop.f32.mrb[66].mxu1 }
 0x2cd   : > { %v3370_v51 = vpop.f32.mrb[67].mxu1 }
 0x2cf   : > { %3764 = vmatmul.mubr.bf16.gmra.mrb[100].mxu1 %v7657_v43  ;;  %6527 = vmatmul.mubr.bf16.gmra.mrb[96].mxu0 %v7658_v47 }
 0x2d0   : > { %3771 = vmatprep.mubr.bf16.mxu1 %v7659_v48  ;;  %6530 = vmatprep.mubr.msk.bf16.mxu0 %vm7749_vm0, %v9055_v40  ;;  %v7673_v48 = vld [vmem:[%s9605_s0 + $0x838] ss:$36 sps:$4 sm:$0xff]  }
 0x2d2   : > { %v9164_v53 = vpop.f32.mrb[68].mxu1 }
 0x2d3   : > { %v3375_v55 = vpop.f32.mrb[69].mxu1 }
 0x2d4   : > { %v9169_v58 = vpop.f32.mrb[70].mxu1  ;;  %v7674_v55 = vld [vmem:[%s9605_s0 + $0x800] ss:$36 sps:$4 sm:$0xff]  }
 0x2d5   : > { %v3378_v2 = vpop.f32.mrb[71].mxu1 }
 0x2d7   : > { %3772 = vmatmul.mubr.bf16.gmra.mrb[104].mxu1 %v7661_v57  ;;  %6531 = vmatmul.mubr.bf16.gmra.mrb[100].mxu0 %v7662_v61  ;;  %v7675_v57 = vld [vmem:[%s9605_s0 + $0x884] ss:$36 sps:$4 sm:$0xff]  }
 0x2d8   : > { %3779 = vmatprep.mubr.bf16.mxu1 %v7663_v62  ;;  %6534 = vmatprep.mubr.msk.bf16.mxu0 %vm7749_vm0, %v9055_v40 }
 0x2da   : > { %v9179_v5 = vpop.f32.mrb[72].mxu1 }
 0x2db   : > { %v3383_v6 = vpop.f32.mrb[73].mxu1 }
 0x2dc   : > { %v9184_v10 = vpop.f32.mrb[74].mxu1 }
 0x2dd   : > { %v3386_v16 = vpop.f32.mrb[75].mxu1 }
 0x2df   : > { %3780 = vmatmul.mubr.bf16.gmra.mrb[108].mxu1 %v7665_v9  ;;  %6535 = vmatmul.mubr.bf16.gmra.mrb[104].mxu0 %v7666_v13 }
 0x2e0   : > { %3787 = vmatprep.mubr.bf16.mxu1 %v7667_v14  ;;  %6538 = vmatprep.mubr.msk.bf16.mxu0 %vm7749_vm0, %v9055_v40 }
 0x2e2   : > { %v4221_v19 = vpop.f32.mrb[0].mxu0 }
 0x2e3   : > { %v6610_v22 = vadd.f32 %v4221_v19, %v8910_v28  ;;  %v6432_v24 = vpop.f32.mrb[1].mxu0 }
 0x2e4   : > { %v4224_v29 = vpop.f32.mrb[2].mxu0  ;;  %v7678_v24 = vld [vmem:[%s9605_s0 + $0x848] ss:$36 sps:$4 sm:$0xff]  }
 0x2e5   : > { %4516 = vst [vmem:[#allocation2] sm:$0xff] %v6610_v22  ;;  %v6611_v33 = vadd.f32 %v4224_v29, %v8915_v31  ;;  %v6433_v3 = vpop.f32.mrb[3].mxu0  ;;  %v4671_v37 = vmul.f32 %v6610_v22, %v6610_v22 }
 0x2e7   : > { %3788 = vmatmul.mubr.bf16.gmra.mrb[112].mxu1 %v7669_v20  ;;  %4517 = vst [vmem:[#allocation2 + $0x8] sm:$0xff] %v6611_v33  ;;  %v4590_v41 = vadd.f32 %v6611_v33, %v6610_v22  ;;  %v4672_v43 = vmul.f32 %v6611_v33, %v6611_v33  ;;  %6539 = vmatmul.mubr.bf16.gmra.mrb[108].mxu0 %v7670_v25  ;;  %v7677_v20 = vld [vmem:[%s9605_s0 + $0x880] ss:$36 sps:$4 sm:$0xff]   ;;  %v7679_v25 = vld [vmem:[%s9605_s0 + $0x8cc] ss:$36 sps:$4 sm:$0xff]  }
 0x2e8   : > { %3795 = vmatprep.mubr.bf16.mxu1 %v7671_v27  ;;  %6542 = vmatprep.mubr.msk.bf16.mxu0 %vm7749_vm0, %v9055_v40 }
 0x2e9   : > { %v4744_v28 = vadd.f32 %v4672_v43, %v4671_v37 }
 0x2ea   : > { %v4229_v47 = vpop.f32.mrb[4].mxu0 }
 0x2eb   : > { %v6612_v51 = vadd.f32 %v4229_v47, %v8925_v36  ;;  %v6436_v31 = vpop.f32.mrb[5].mxu0 }
 0x2ec   : > { %v4232_v61 = vpop.f32.mrb[6].mxu0  ;;  %v7682_v31 = vld [vmem:[%s9605_s0 + $0x890] ss:$36 sps:$4 sm:$0xff]  }
 0x2ed   : > { %4518 = vst [vmem:[#allocation2 + $0x10] sm:$0xff] %v6612_v51  ;;  %v4591_v62 = vadd.f32 %v6612_v51, %v4590_v41  ;;  %v4673_v2 = vmul.f32 %v6612_v51, %v6612_v51  ;;  %v6613_v6 = vadd.f32 %v4232_v61, %v8930_v38  ;;  %v6437_v9 = vpop.f32.mrb[7].mxu0 }
 0x2ef   : > { %3796 = vmatmul.mubr.bf16.gmra.mrb[116].mxu1 %v7673_v48  ;;  %v4745_v13 = vadd.f32 %v4744_v28, %v4673_v2  ;;  %4519 = vst [vmem:[#allocation2 + $0x18] sm:$0xff] %v6613_v6  ;;  %v4592_v36 = vadd.f32 %v6613_v6, %v4591_v62  ;;  %v4674_v14 = vmul.f32 %v6613_v6, %v6613_v6  ;;  %v7681_v48 = vld [vmem:[%s9605_s0 + $0x8c8] ss:$36 sps:$4 sm:$0xff]  }
 0x2f0   : > { %6543 = vmatmul.mubr.bf16.gmra.mrb[112].mxu0 %v7674_v55  ;;  %3803 = vmatprep.mubr.bf16.mxu1 %v7675_v57  ;;  %v7683_v55 = vld [vmem:[%s9605_s0 + $0x914] ss:$36 sps:$4 sm:$0xff]  }
 0x2f1   : > { %6546 = vmatprep.mubr.msk.bf16.mxu0 %vm7749_vm0, %v9055_v40  ;;  %v4746_v16 = vadd.f32 %v4745_v13, %v4674_v14 }
 0x2f2   : > { %v4237_v19 = vpop.f32.mrb[8].mxu0 }
 0x2f3   : > { %v6614_v22 = vadd.f32 %v4237_v19, %v8940_v42  ;;  %v6440_v38 = vpop.f32.mrb[9].mxu0 }
 0x2f4   : > { %v4240_v27 = vpop.f32.mrb[10].mxu0 }
 0x2f5   : > { %4520 = vst [vmem:[#allocation2 + $0x20] sm:$0xff] %v6614_v22  ;;  %v4593_v29 = vadd.f32 %v6614_v22, %v4592_v36  ;;  %v4675_v33 = vmul.f32 %v6614_v22, %v6614_v22  ;;  %v6615_v3 = vadd.f32 %v4240_v27, %v8945_v45  ;;  %v6441_v37 = vpop.f32.mrb[11].mxu0  ;;  %v7687_v22 = vld [vmem:[%s9605_s0 + $0x95c] ss:$36 sps:$4 sm:$0xff]  }
 0x2f7   : > { %3804 = vmatmul.mubr.bf16.gmra.mrb[120].mxu1 %v7677_v20  ;;  %v4747_v41 = vadd.f32 %v4746_v16, %v4675_v33  ;;  %4521 = vst [vmem:[#allocation2 + $0x28] sm:$0xff] %v6615_v3  ;;  %v4594_v42 = vadd.f32 %v6615_v3, %v4593_v29  ;;  %v4676_v43 = vmul.f32 %v6615_v3, %v6615_v3  ;;  %v7685_v16 = vld [vmem:[%s9605_s0 + $0x910] ss:$36 sps:$4 sm:$0xff]   ;;  %v7686_v20 = vld [vmem:[%s9605_s0 + $0x8d8] ss:$36 sps:$4 sm:$0xff]  }
 0x2f8   : > { %6547 = vmatmul.mubr.bf16.gmra.mrb[116].mxu0 %v7678_v24  ;;  %3811 = vmatprep.mubr.bf16.mxu1 %v7679_v25 }
 0x2f9   : > { %6550 = vmatprep.mubr.msk.bf16.mxu0 %vm7749_vm0, %v9055_v40  ;;  %v4748_v28 = vadd.f32 %v4747_v41, %v4676_v43 }
 0x2fa   : > { %v4245_v47 = vpop.f32.mrb[12].mxu0 }
 0x2fb   : > { %v6616_v51 = vadd.f32 %v4245_v47, %v8955_v49  ;;  %v6444_v45 = vpop.f32.mrb[13].mxu0  ;;  %v7691_v47 = vld [vmem:[%s9605_s0 + $0x9a4] ss:$36 sps:$4 sm:$0xff]  }
 0x2fc   : > { %v4248_v57 = vpop.f32.mrb[14].mxu0 }
 0x2fd   : > { %4522 = vst [vmem:[#allocation2 + $0x30] sm:$0xff] %v6616_v51  ;;  %v4595_v61 = vadd.f32 %v6616_v51, %v4594_v42  ;;  %v4677_v62 = vmul.f32 %v6616_v51, %v6616_v51  ;;  %v6617_v2 = vadd.f32 %v4248_v57, %v8960_v52  ;;  %v6445_v6 = vpop.f32.mrb[15].mxu0  ;;  %v7689_v42 = vld [vmem:[%s9605_s0 + $0x958] ss:$36 sps:$4 sm:$0xff]  }
 0x2fe   : > { %v7693_v6 = vld [vmem:[%s9605_s0 + $0x9a0] ss:$36 sps:$4 sm:$0xff]  }
 0x2ff   : > { %3812 = vmatmul.mubr.bf16.gmra.mrb[124].mxu1 %v7681_v48  ;;  %v4749_v9 = vadd.f32 %v4748_v28, %v4677_v62  ;;  %4523 = vst [vmem:[#allocation2 + $0x38] sm:$0xff] %v6617_v2  ;;  %v4596_v49 = vadd.f32 %v6617_v2, %v4595_v61  ;;  %v4678_v13 = vmul.f32 %v6617_v2, %v6617_v2  ;;  %v7690_v28 = vld [vmem:[%s9605_s0 + $0x920] ss:$36 sps:$4 sm:$0xff]  }
 0x300   : > { %6551 = vmatmul.mubr.bf16.gmra.mrb[120].mxu0 %v7682_v31  ;;  %3819 = vmatprep.mubr.bf16.mxu1 %v7683_v55 }
 0x301   : > { %6554 = vmatprep.mubr.msk.bf16.mxu0 %vm7749_vm0, %v9055_v40  ;;  %v4750_v36 = vadd.f32 %v4749_v9, %v4678_v13  ;;  %v7695_v13 = vld [vmem:[%s9605_s0 + $0x9ec] ss:$36 sps:$4 sm:$0xff]  }
 0x302   : > { %v4253_v14 = vpop.f32.mrb[16].mxu0 }
 0x303   : > { %v6618_v19 = vadd.f32 %v4253_v14, %v8970_v56  ;;  %v6448_v52 = vpop.f32.mrb[17].mxu0 }
 0x304   : > { %v4256_v38 = vpop.f32.mrb[18].mxu0 }
 0x305   : > { %4524 = vst [vmem:[#allocation2 + $0x40] sm:$0xff] %v6618_v19  ;;  %v4597_v24 = vadd.f32 %v6618_v19, %v4596_v49  ;;  %v4679_v25 = vmul.f32 %v6618_v19, %v6618_v19  ;;  %v6619_v27 = vadd.f32 %v4256_v38, %v8975_v59  ;;  %v6449_v29 = vpop.f32.mrb[19].mxu0  ;;  %v7694_v49 = vld [vmem:[%s9605_s0 + $0x968] ss:$36 sps:$4 sm:$0xff]   ;;  %v608_v38 = vld [vmem:[%s9605_s0 + $0xa30] sm:$0xff] }
 0x307   : > { %3820 = vmatmul.mubr.bf16.gmra.mrb[128].mxu1 %v7685_v16  ;;  %v4751_v33 = vadd.f32 %v4750_v36, %v4679_v25  ;;  %4525 = vst [vmem:[#allocation2 + $0x48] sm:$0xff] %v6619_v27  ;;  %v4598_v56 = vadd.f32 %v6619_v27, %v4597_v24  ;;  %v4680_v3 = vmul.f32 %v6619_v27, %v6619_v27 }
 0x308   : > { %6555 = vmatmul.mubr.bf16.gmra.mrb[124].mxu0 %v7686_v20  ;;  %3827 = vmatprep.mubr.bf16.mxu1 %v7687_v22 }
 0x309   : > { %6558 = vmatprep.mubr.msk.bf16.mxu0 %vm7749_vm0, %v9055_v40  ;;  %v4752_v37 = vadd.f32 %v4751_v33, %v4680_v3  ;;  %v7698_v33 = vld [vmem:[%s9605_s0 + $0x9b0] ss:$36 sps:$4 sm:$0xff]  }
 0x30a   : > { %v4261_v41 = vpop.f32.mrb[20].mxu0 }
 0x30b   : > { %v6620_v43 = vadd.f32 %v4261_v41, %v8985_v63  ;;  %v6452_v59 = vpop.f32.mrb[21].mxu0 }
 0x30c   : > { %v4264_v48 = vpop.f32.mrb[22].mxu0 }
 0x30d   : > { %4526 = vst [vmem:[#allocation2 + $0x50] sm:$0xff] %v6620_v43  ;;  %v4599_v51 = vadd.f32 %v6620_v43, %v4598_v56  ;;  %v4681_v45 = vmul.f32 %v6620_v43, %v6620_v43  ;;  %v6621_v31 = vadd.f32 %v4264_v48, %v8990_v4  ;;  %v6453_v55 = vpop.f32.mrb[23].mxu0  ;;  %v5925_v56 = vcombine.high %v608_v38, %v608_v38 }
 0x30f   : > { %3828 = vmatmul.mubr.bf16.gmra.mrb[132].mxu1 %v7689_v42  ;;  %v4753_v57 = vadd.f32 %v4752_v37, %v4681_v45  ;;  %4527 = vst [vmem:[#allocation2 + $0x58] sm:$0xff] %v6621_v31  ;;  %v4600_v63 = vadd.f32 %v6621_v31, %v4599_v51  ;;  %v4682_v61 = vmul.f32 %v6621_v31, %v6621_v31 }
 0x310   : > { %6559 = vmatmul.mubr.bf16.gmra.mrb[128].mxu0 %v7690_v28  ;;  %3835 = vmatprep.mubr.bf16.mxu1 %v7691_v47  ;;  %v5924_v51 = vcombine.low %v608_v38, %v608_v38 }
 0x311   : > { %6562 = vmatprep.mubr.msk.bf16.mxu0 %vm7749_vm0, %v9055_v40  ;;  %v4754_v62 = vadd.f32 %v4753_v57, %v4682_v61 }
 0x312   : > { %v4269_v2 = vpop.f32.mrb[24].mxu0 }
 0x313   : > { %v6622_v9 = vadd.f32 %v4269_v2, %v9000_v8  ;;  %v6456_v4 = vpop.f32.mrb[25].mxu0 }
 0x314   : > { %v4272_v36 = vpop.f32.mrb[26].mxu0 }
 0x315   : > { %4528 = vst [vmem:[#allocation2 + $0x60] sm:$0xff] %v6622_v9  ;;  %v4601_v14 = vadd.f32 %v6622_v9, %v4600_v63  ;;  %v4683_v16 = vmul.f32 %v6622_v9, %v6622_v9  ;;  %v6623_v19 = vadd.f32 %v4272_v36, %v9005_v11  ;;  %v6457_v52 = vpop.f32.mrb[27].mxu0  ;;  %v7697_v11 = vld [vmem:[%s9605_s0 + $0x9e8] ss:$36 sps:$4 sm:$0xff]   ;;  %v7702_v36 = vld [vmem:[%s9605_s0 + $0xa40] ss:$0 sps:$4 sm:$0xff]  }
 0x317   : > { %3836 = vmatmul.mubr.bf16.gmra.mrb[136].mxu1 %v7693_v6  ;;  %v4755_v20 = vadd.f32 %v4754_v62, %v4683_v16  ;;  %4529 = vst [vmem:[#allocation2 + $0x68] sm:$0xff] %v6623_v19  ;;  %v4602_v8 = vadd.f32 %v6623_v19, %v4601_v14  ;;  %v4684_v22 = vmul.f32 %v6623_v19, %v6623_v19 }
 0x318   : > { %6563 = vmatmul.mubr.bf16.gmra.mrb[132].mxu0 %v7694_v49  ;;  %3843 = vmatprep.mubr.bf16.mxu1 %v7695_v13 }
 0x319   : > { %6566 = vmatprep.mubr.msk.bf16.mxu0 %vm7749_vm0, %v9055_v40  ;;  %v4756_v24 = vadd.f32 %v4755_v20, %v4684_v22 }
 0x31a   : > { %v4277_v25 = vpop.f32.mrb[28].mxu0 }
 0x31b   : > { %v6624_v27 = vadd.f32 %v4277_v25, %v9015_v15  ;;  %v6460_v29 = vpop.f32.mrb[29].mxu0 }
 0x31c   : > { %v4280_v3 = vpop.f32.mrb[30].mxu0 }
 0x31d   : > { %4530 = vst [vmem:[#allocation2 + $0x70] sm:$0xff] %v6624_v27  ;;  %v4603_v37 = vadd.f32 %v6624_v27, %v4602_v8  ;;  %v4685_v41 = vmul.f32 %v6624_v27, %v6624_v27  ;;  %v6625_v42 = vadd.f32 %v4280_v3, %v9020_v18  ;;  %v6461_v43 = vpop.f32.mrb[31].mxu0  ;;  %v7701_v18 = vld [vmem:[%s9605_s0 + $0x9f8] ss:$36 sps:$4 sm:$0xff]  }
 0x31f   : > { %3844 = vmatmul.mubr.bf16.gmra.mrb[140].mxu1 %v7697_v11  ;;  %v4757_v59 = vadd.f32 %v4756_v24, %v4685_v41  ;;  %4531 = vst [vmem:[#allocation2 + $0x78] sm:$0xff] %v6625_v42  ;;  %v4604_v28 = vadd.f32 %v6625_v42, %v4603_v37  ;;  %v4686_v47 = vmul.f32 %v6625_v42, %v6625_v42 }
 0x320   : > { %6567 = vmatmul.mubr.bf16.gmra.mrb[136].mxu0 %v7698_v33  ;;  %3851 = vmatprep.mubr.bf16.mxu1 %v5925_v56 }
 0x321   : > { %6570 = vmatprep.mubr.msk.bf16.mxu0 %vm7749_vm0, %v9055_v40  ;;  %v4758_v15 = vadd.f32 %v4757_v59, %v4686_v47 }
 0x322   : > { %v4285_v48 = vpop.f32.mrb[32].mxu0 }
 0x323   : > { %v6626_v45 = vadd.f32 %v4285_v48, %v9033_v23  ;;  %v6464_v31 = vpop.f32.mrb[33].mxu0 }
 0x324   : > { %v4288_v55 = vpop.f32.mrb[34].mxu0 }
 0x325   : > { %4532 = vst [vmem:[#allocation2 + $0x80] sm:$0xff] %v6626_v45  ;;  %v4605_v57 = vadd.f32 %v6626_v45, %v4604_v28  ;;  %v4687_v63 = vmul.f32 %v6626_v45, %v6626_v45  ;;  %v6627_v61 = vadd.f32 %v4288_v55, %v9038_v26  ;;  %v6465_v62 = vpop.f32.mrb[35].mxu0 }
 0x327   : > { %3852 = vmatmul.mubr.bf16.gmra.mrb[144].mxu1 %v5924_v51  ;;  %v4759_v2 = vadd.f32 %v4758_v15, %v4687_v63  ;;  %4533 = vst [vmem:[#allocation2 + $0x88] sm:$0xff] %v6627_v61  ;;  %v4606_v6 = vadd.f32 %v6627_v61, %v4605_v57  ;;  %v4688_v9 = vmul.f32 %v6627_v61, %v6627_v61 }
 0x328   : > { %6571 = vmatmul.mubr.bf16.gmra.mrb[140].mxu0 %v7701_v18 }
 0x329   : > { %6574 = vmatprep.mubr.msk.bf16.mxu0 %vm7749_vm0, %v9055_v40  ;;  %v4760_v23 = vadd.f32 %v4759_v2, %v4688_v9 }
 0x32a   : > { %v4293_v4 = vpop.f32.mrb[36].mxu0 }
 0x32b   : > { %v6628_v49 = vadd.f32 %v4293_v4, %v9045_v30  ;;  %v6468_v13 = vpop.f32.mrb[37].mxu0 }
 0x32c   : > { %v4296_v26 = vpop.f32.mrb[38].mxu0 }
 0x32d   : > { %4534 = vst [vmem:[#allocation2 + $0x90] sm:$0xff] %v6628_v49  ;;  %v4607_v14 = vadd.f32 %v6628_v49, %v4606_v6  ;;  %v4689_v16 = vmul.f32 %v6628_v49, %v6628_v49  ;;  %v6629_v19 = vadd.f32 %v4296_v26, %v9047_v34  ;;  %v6469_v52 = vpop.f32.mrb[39].mxu0 }
 0x32f   : > { %v4761_v20 = vadd.f32 %v4760_v23, %v4689_v16  ;;  %4535 = vst [vmem:[#allocation2 + $0x98] sm:$0xff] %v6629_v19  ;;  %v4608_v8 = vadd.f32 %v6629_v19, %v4607_v14  ;;  %v4690_v40 = vmul.f32 %v6629_v19, %v6629_v19 }
 0x330   : > { %6575 = vmatmul.mubr.bf16.gmra.mrb[144].mxu0 %v7702_v36 }
 0x331   : > { %v4762_v22 = vadd.f32 %v4761_v20, %v4690_v40 }
 0x332   : > { %v4301_v38 = vpop.f32.mrb[40].mxu0 }
 0x333   : > { %v6630_v30 = vadd.f32 %v4301_v38, %v9059_v35  ;;  %v6472_v24 = vpop.f32.mrb[41].mxu0 }
 0x334   : > { %v4304_v25 = vpop.f32.mrb[42].mxu0 }
 0x335   : > { %4536 = vst [vmem:[#allocation2 + $0xa0] sm:$0xff] %v6630_v30  ;;  %v4609_v11 = vadd.f32 %v6630_v30, %v4608_v8  ;;  %v4691_v27 = vmul.f32 %v6630_v30, %v6630_v30  ;;  %v6631_v29 = vadd.f32 %v4304_v25, %v9064_v44  ;;  %v6473_v33 = vpop.f32.mrb[43].mxu0 }
 0x337   : > { %v4763_v56 = vadd.f32 %v4762_v22, %v4691_v27  ;;  %4537 = vst [vmem:[#allocation2 + $0xa8] sm:$0xff] %v6631_v29  ;;  %v4610_v34 = vadd.f32 %v6631_v29, %v4609_v11  ;;  %v4692_v3 = vmul.f32 %v6631_v29, %v6631_v29 }
 0x339   : > { %v4764_v37 = vadd.f32 %v4763_v56, %v4692_v3 }
 0x33a   : > { %v4309_v41 = vpop.f32.mrb[44].mxu0 }
 0x33b   : > { %v6632_v42 = vadd.f32 %v4309_v41, %v9074_v50  ;;  %v6476_v43 = vpop.f32.mrb[45].mxu0 }
 0x33c   : > { %v4312_v59 = vpop.f32.mrb[46].mxu0 }
 0x33d   : > { %4538 = vst [vmem:[#allocation2 + $0xb0] sm:$0xff] %v6632_v42  ;;  %v4611_v35 = vadd.f32 %v6632_v42, %v4610_v34  ;;  %v4693_v28 = vmul.f32 %v6632_v42, %v6632_v42  ;;  %v6633_v47 = vadd.f32 %v4312_v59, %v9079_v54  ;;  %v6477_v15 = vpop.f32.mrb[47].mxu0 }
 0x33f   : > { %v4765_v48 = vadd.f32 %v4764_v37, %v4693_v28  ;;  %4539 = vst [vmem:[#allocation2 + $0xb8] sm:$0xff] %v6633_v47  ;;  %v4612_v44 = vadd.f32 %v6633_v47, %v4611_v35  ;;  %v4694_v51 = vmul.f32 %v6633_v47, %v6633_v47 }
 0x341   : > { %v4766_v45 = vadd.f32 %v4765_v48, %v4694_v51 }
 0x342   : > { %v4317_v31 = vpop.f32.mrb[48].mxu0 }
 0x343   : > { %v6634_v18 = vadd.f32 %v4317_v31, %v9089_v60  ;;  %v6480_v55 = vpop.f32.mrb[49].mxu0 }
 0x344   : > { %v4320_v57 = vpop.f32.mrb[50].mxu0 }
 0x345   : > { %4540 = vst [vmem:[#allocation2 + $0xc0] sm:$0xff] %v6634_v18  ;;  %v4613_v50 = vadd.f32 %v6634_v18, %v4612_v44  ;;  %v4695_v63 = vmul.f32 %v6634_v18, %v6634_v18  ;;  %v6635_v61 = vadd.f32 %v4320_v57, %v9094_v0  ;;  %v6481_v62 = vpop.f32.mrb[51].mxu0 }
 0x347   : > { %v4767_v2 = vadd.f32 %v4766_v45, %v4695_v63  ;;  %4541 = vst [vmem:[#allocation2 + $0xc8] sm:$0xff] %v6635_v61  ;;  %v4614_v54 = vadd.f32 %v6635_v61, %v4613_v50  ;;  %v4696_v6 = vmul.f32 %v6635_v61, %v6635_v61 }
 0x349   : > { %v4768_v9 = vadd.f32 %v4767_v2, %v4696_v6 }
 0x34a   : > { %v4325_v23 = vpop.f32.mrb[52].mxu0 }
 0x34b   : > { %v6636_v4 = vadd.f32 %v4325_v23, %v9104_v7  ;;  %v6484_v49 = vpop.f32.mrb[53].mxu0 }
 0x34c   : > { %v4328_v13 = vpop.f32.mrb[54].mxu0 }
 0x34d   : > { %4542 = vst [vmem:[#allocation2 + $0xd0] sm:$0xff] %v6636_v4  ;;  %v4615_v60 = vadd.f32 %v6636_v4, %v4614_v54  ;;  %v4697_v36 = vmul.f32 %v6636_v4, %v6636_v4  ;;  %v6637_v26 = vadd.f32 %v4328_v13, %v9109_v12  ;;  %v6485_v14 = vpop.f32.mrb[55].mxu0 }
 0x34f   : > { %v4769_v16 = vadd.f32 %v4768_v9, %v4697_v36  ;;  %4543 = vst [vmem:[#allocation2 + $0xd8] sm:$0xff] %v6637_v26  ;;  %v4616_v0 = vadd.f32 %v6637_v26, %v4615_v60  ;;  %v4698_v19 = vmul.f32 %v6637_v26, %v6637_v26 }
 0x351   : > { %v4770_v52 = vadd.f32 %v4769_v16, %v4698_v19 }
 0x352   : > { %v4333_v20 = vpop.f32.mrb[56].mxu0 }
 0x353   : > { %v6638_v8 = vadd.f32 %v4333_v20, %v9119_v17  ;;  %v6488_v40 = vpop.f32.mrb[57].mxu0 }
 0x354   : > { %v4336_v22 = vpop.f32.mrb[58].mxu0 }
 0x355   : > { %4544 = vst [vmem:[#allocation2 + $0xe0] sm:$0xff] %v6638_v8  ;;  %v4617_v7 = vadd.f32 %v6638_v8, %v4616_v0  ;;  %v4699_v38 = vmul.f32 %v6638_v8, %v6638_v8  ;;  %v6639_v30 = vadd.f32 %v4336_v22, %v9124_v21  ;;  %v6489_v24 = vpop.f32.mrb[59].mxu0 }
 0x357   : > { %v4771_v25 = vadd.f32 %v4770_v52, %v4699_v38  ;;  %4545 = vst [vmem:[#allocation2 + $0xe8] sm:$0xff] %v6639_v30  ;;  %v4618_v12 = vadd.f32 %v6639_v30, %v4617_v7  ;;  %v4700_v11 = vmul.f32 %v6639_v30, %v6639_v30 }
 0x359   : > { %v4772_v27 = vadd.f32 %v4771_v25, %v4700_v11 }
 0x35a   : > { %v4341_v29 = vpop.f32.mrb[60].mxu0 }
 0x35b   : > { %v6640_v33 = vadd.f32 %v4341_v29, %v9134_v1  ;;  %v6492_v56 = vpop.f32.mrb[61].mxu0 }
 0x35c   : > { %v4344_v34 = vpop.f32.mrb[62].mxu0 }
 0x35d   : > { %4546 = vst [vmem:[#allocation2 + $0xf0] sm:$0xff] %v6640_v33  ;;  %v4619_v17 = vadd.f32 %v6640_v33, %v4618_v12  ;;  %v4701_v3 = vmul.f32 %v6640_v33, %v6640_v33  ;;  %v6641_v37 = vadd.f32 %v4344_v34, %v9139_v32  ;;  %v6493_v41 = vpop.f32.mrb[63].mxu0 }
 0x35f   : > { %v4773_v42 = vadd.f32 %v4772_v27, %v4701_v3  ;;  %4547 = vst [vmem:[#allocation2 + $0xf8] sm:$0xff] %v6641_v37  ;;  %v4620_v21 = vadd.f32 %v6641_v37, %v4619_v17  ;;  %v4702_v43 = vmul.f32 %v6641_v37, %v6641_v37 }
 0x361   : > { %v4774_v59 = vadd.f32 %v4773_v42, %v4702_v43 }
 0x362   : > { %v4349_v35 = vpop.f32.mrb[64].mxu0 }
 0x363   : > { %v6642_v28 = vadd.f32 %v4349_v35, %v9149_v39  ;;  %v6496_v47 = vpop.f32.mrb[65].mxu0 }
 0x364   : > { %v4352_v15 = vpop.f32.mrb[66].mxu0 }
 0x365   : > { %4548 = vst [vmem:[#allocation2 + $0x100] sm:$0xff] %v6642_v28  ;;  %v4621_v1 = vadd.f32 %v6642_v28, %v4620_v21  ;;  %v4703_v48 = vmul.f32 %v6642_v28, %v6642_v28  ;;  %v6643_v44 = vadd.f32 %v4352_v15, %v9154_v46  ;;  %v6497_v51 = vpop.f32.mrb[67].mxu0 }
 0x367   : > { %v4775_v45 = vadd.f32 %v4774_v59, %v4703_v48  ;;  %4549 = vst [vmem:[#allocation2 + $0x108] sm:$0xff] %v6643_v44  ;;  %v4622_v32 = vadd.f32 %v6643_v44, %v4621_v1  ;;  %v4704_v31 = vmul.f32 %v6643_v44, %v6643_v44 }
 0x369   : > { %v4776_v18 = vadd.f32 %v4775_v45, %v4704_v31 }
 0x36a   : > { %v4357_v55 = vpop.f32.mrb[68].mxu0 }
 0x36b   : > { %v6644_v57 = vadd.f32 %v4357_v55, %v9164_v53  ;;  %v6500_v50 = vpop.f32.mrb[69].mxu0 }
 0x36c   : > { %v4360_v63 = vpop.f32.mrb[70].mxu0 }
 0x36d   : > { %4550 = vst [vmem:[#allocation2 + $0x110] sm:$0xff] %v6644_v57  ;;  %v4623_v39 = vadd.f32 %v6644_v57, %v4622_v32  ;;  %v4705_v61 = vmul.f32 %v6644_v57, %v6644_v57  ;;  %v6645_v62 = vadd.f32 %v4360_v63, %v9169_v58  ;;  %v6501_v2 = vpop.f32.mrb[71].mxu0 }
 0x36f   : > { %v4777_v54 = vadd.f32 %v4776_v18, %v4705_v61  ;;  %4551 = vst [vmem:[#allocation2 + $0x118] sm:$0xff] %v6645_v62  ;;  %v4624_v46 = vadd.f32 %v6645_v62, %v4623_v39  ;;  %v4706_v6 = vmul.f32 %v6645_v62, %v6645_v62 }
 0x371   : > { %v4778_v9 = vadd.f32 %v4777_v54, %v4706_v6 }
 0x372   : > { %v3717_v23 = vpop.f32.mrb[76].mxu1  ;;  %v4365_v4 = vpop.f32.mrb[72].mxu0 }
 0x373   : > { %v3719_v49 = vpop.f32.mrb[77].mxu1  ;;  %v6646_v13 = vadd.f32 %v4365_v4, %v9179_v5  ;;  %v6504_v60 = vpop.f32.mrb[73].mxu0 }
 0x374   : > { %v3720_v53 = vpop.f32.mrb[78].mxu1  ;;  %v4368_v36 = vpop.f32.mrb[74].mxu0 }
 0x375   : > { %v3722_v26 = vpop.f32.mrb[79].mxu1  ;;  %4552 = vst [vmem:[#allocation2 + $0x120] sm:$0xff] %v6646_v13  ;;  %v4625_v14 = vadd.f32 %v6646_v13, %v4624_v46  ;;  %v4707_v16 = vmul.f32 %v6646_v13, %v6646_v13  ;;  %v6647_v58 = vadd.f32 %v4368_v36, %v9184_v10  ;;  %v6505_v0 = vpop.f32.mrb[75].mxu0 }
 0x377   : > { %v4779_v19 = vadd.f32 %v4778_v9, %v4707_v16  ;;  %4553 = vst [vmem:[#allocation2 + $0x128] sm:$0xff] %v6647_v58  ;;  %v4626_v52 = vadd.f32 %v6647_v58, %v4625_v14  ;;  %v4708_v20 = vmul.f32 %v6647_v58, %v6647_v58 }
 0x379   : > { %v4780_v8 = vadd.f32 %v4779_v19, %v4708_v20 }
 0x37a   : > { %v3725_v40 = vpop.f32.mrb[80].mxu1  ;;  %v4373_v22 = vpop.f32.mrb[76].mxu0 }
 0x37b   : > { %v3727_v7 = vpop.f32.mrb[81].mxu1  ;;  %v6648_v38 = vadd.f32 %v4373_v22, %v3717_v23  ;;  %v6508_v5 = vpop.f32.mrb[77].mxu0 }
 0x37c   : > { %v3728_v30 = vpop.f32.mrb[82].mxu1  ;;  %v4376_v24 = vpop.f32.mrb[78].mxu0 }
 0x37d   : > { %v3730_v25 = vpop.f32.mrb[83].mxu1  ;;  %4554 = vst [vmem:[#allocation2 + $0x130] sm:$0xff] %v6648_v38  ;;  %v4627_v12 = vadd.f32 %v6648_v38, %v4626_v52  ;;  %v4709_v11 = vmul.f32 %v6648_v38, %v6648_v38  ;;  %v6649_v27 = vadd.f32 %v4376_v24, %v3720_v53  ;;  %v6509_v29 = vpop.f32.mrb[79].mxu0 }
 0x37f   : > { %v4781_v10 = vadd.f32 %v4780_v8, %v4709_v11  ;;  %4555 = vst [vmem:[#allocation2 + $0x138] sm:$0xff] %v6649_v27  ;;  %v4628_v33 = vadd.f32 %v6649_v27, %v4627_v12  ;;  %v4710_v56 = vmul.f32 %v6649_v27, %v6649_v27 }
 0x381   : > { %v4782_v34 = vadd.f32 %v4781_v10, %v4710_v56 }
 0x382   : > { %v3733_v17 = vpop.f32.mrb[84].mxu1  ;;  %v4381_v3 = vpop.f32.mrb[80].mxu0 }
 0x383   : > { %v3735_v37 = vpop.f32.mrb[85].mxu1  ;;  %v6650_v41 = vadd.f32 %v4381_v3, %v3725_v40  ;;  %v6512_v42 = vpop.f32.mrb[81].mxu0 }
 0x384   : > { %v3736_v21 = vpop.f32.mrb[86].mxu1  ;;  %v4384_v43 = vpop.f32.mrb[82].mxu0 }
 0x385   : > { %v3738_v59 = vpop.f32.mrb[87].mxu1  ;;  %4556 = vst [vmem:[#allocation2 + $0x140] sm:$0xff] %v6650_v41  ;;  %v4629_v35 = vadd.f32 %v6650_v41, %v4628_v33  ;;  %v4711_v28 = vmul.f32 %v6650_v41, %v6650_v41  ;;  %v6651_v47 = vadd.f32 %v4384_v43, %v3728_v30  ;;  %v6513_v15 = vpop.f32.mrb[83].mxu0 }
 0x387   : > { %v4783_v1 = vadd.f32 %v4782_v34, %v4711_v28  ;;  %4557 = vst [vmem:[#allocation2 + $0x148] sm:$0xff] %v6651_v47  ;;  %v4630_v48 = vadd.f32 %v6651_v47, %v4629_v35  ;;  %v4712_v44 = vmul.f32 %v6651_v47, %v6651_v47 }
 0x389   : > { %v4784_v51 = vadd.f32 %v4783_v1, %v4712_v44 }
 0x38a   : > { %v3741_v45 = vpop.f32.mrb[88].mxu1  ;;  %v4389_v32 = vpop.f32.mrb[84].mxu0 }
 0x38b   : > { %v3743_v31 = vpop.f32.mrb[89].mxu1  ;;  %v6652_v18 = vadd.f32 %v4389_v32, %v3733_v17  ;;  %v6516_v55 = vpop.f32.mrb[85].mxu0 }
 0x38c   : > { %v3744_v57 = vpop.f32.mrb[90].mxu1  ;;  %v4392_v50 = vpop.f32.mrb[86].mxu0 }
 0x38d   : > { %v3746_v63 = vpop.f32.mrb[91].mxu1  ;;  %4558 = vst [vmem:[#allocation2 + $0x150] sm:$0xff] %v6652_v18  ;;  %v4631_v39 = vadd.f32 %v6652_v18, %v4630_v48  ;;  %v4713_v61 = vmul.f32 %v6652_v18, %v6652_v18  ;;  %v6653_v62 = vadd.f32 %v4392_v50, %v3736_v21  ;;  %v6517_v2 = vpop.f32.mrb[87].mxu0 }
 0x38f   : > { %v4785_v54 = vadd.f32 %v4784_v51, %v4713_v61  ;;  %4559 = vst [vmem:[#allocation2 + $0x158] sm:$0xff] %v6653_v62  ;;  %v4632_v46 = vadd.f32 %v6653_v62, %v4631_v39  ;;  %v4714_v6 = vmul.f32 %v6653_v62, %v6653_v62 }
 0x391   : > { %v4786_v9 = vadd.f32 %v4785_v54, %v4714_v6 }
 0x392   : > { %v3749_v23 = vpop.f32.mrb[92].mxu1  ;;  %v4397_v4 = vpop.f32.mrb[88].mxu0 }
 0x393   : > { %v3751_v49 = vpop.f32.mrb[93].mxu1  ;;  %v6654_v13 = vadd.f32 %v4397_v4, %v3741_v45  ;;  %v6520_v60 = vpop.f32.mrb[89].mxu0 }
 0x394   : > { %v3752_v53 = vpop.f32.mrb[94].mxu1  ;;  %v4400_v36 = vpop.f32.mrb[90].mxu0 }
 0x395   : > { %v3754_v26 = vpop.f32.mrb[95].mxu1  ;;  %4560 = vst [vmem:[#allocation2 + $0x160] sm:$0xff] %v6654_v13  ;;  %v4633_v14 = vadd.f32 %v6654_v13, %v4632_v46  ;;  %v4715_v16 = vmul.f32 %v6654_v13, %v6654_v13  ;;  %v6655_v58 = vadd.f32 %v4400_v36, %v3744_v57  ;;  %v6521_v0 = vpop.f32.mrb[91].mxu0 }
 0x397   : > { %v4787_v19 = vadd.f32 %v4786_v9, %v4715_v16  ;;  %4561 = vst [vmem:[#allocation2 + $0x168] sm:$0xff] %v6655_v58  ;;  %v4634_v52 = vadd.f32 %v6655_v58, %v4633_v14  ;;  %v4716_v20 = vmul.f32 %v6655_v58, %v6655_v58 }
 0x399   : > { %v4788_v8 = vadd.f32 %v4787_v19, %v4716_v20 }
 0x39a   : > { %v3757_v40 = vpop.f32.mrb[96].mxu1  ;;  %v4405_v22 = vpop.f32.mrb[92].mxu0 }
 0x39b   : > { %v3759_v7 = vpop.f32.mrb[97].mxu1  ;;  %v6656_v38 = vadd.f32 %v4405_v22, %v3749_v23  ;;  %v6524_v5 = vpop.f32.mrb[93].mxu0 }
 0x39c   : > { %v3760_v30 = vpop.f32.mrb[98].mxu1  ;;  %v4408_v24 = vpop.f32.mrb[94].mxu0 }
 0x39d   : > { %v3762_v25 = vpop.f32.mrb[99].mxu1  ;;  %4562 = vst [vmem:[#allocation2 + $0x170] sm:$0xff] %v6656_v38  ;;  %v4635_v12 = vadd.f32 %v6656_v38, %v4634_v52  ;;  %v4717_v11 = vmul.f32 %v6656_v38, %v6656_v38  ;;  %v6657_v27 = vadd.f32 %v4408_v24, %v3752_v53  ;;  %v6525_v29 = vpop.f32.mrb[95].mxu0 }
 0x39f   : > { %v4789_v10 = vadd.f32 %v4788_v8, %v4717_v11  ;;  %4563 = vst [vmem:[#allocation2 + $0x178] sm:$0xff] %v6657_v27  ;;  %v4636_v33 = vadd.f32 %v6657_v27, %v4635_v12  ;;  %v4718_v56 = vmul.f32 %v6657_v27, %v6657_v27 }
 0x3a1   : > { %v4790_v34 = vadd.f32 %v4789_v10, %v4718_v56 }
 0x3a2   : > { %v3765_v17 = vpop.f32.mrb[100].mxu1  ;;  %v4413_v3 = vpop.f32.mrb[96].mxu0 }
 0x3a3   : > { %v3767_v37 = vpop.f32.mrb[101].mxu1  ;;  %v6658_v41 = vadd.f32 %v4413_v3, %v3757_v40  ;;  %v6528_v42 = vpop.f32.mrb[97].mxu0 }
 0x3a4   : > { %v3768_v21 = vpop.f32.mrb[102].mxu1  ;;  %v4416_v43 = vpop.f32.mrb[98].mxu0 }
 0x3a5   : > { %v3770_v59 = vpop.f32.mrb[103].mxu1  ;;  %4564 = vst [vmem:[#allocation2 + $0x180] sm:$0xff] %v6658_v41  ;;  %v4637_v35 = vadd.f32 %v6658_v41, %v4636_v33  ;;  %v4719_v28 = vmul.f32 %v6658_v41, %v6658_v41  ;;  %v6659_v47 = vadd.f32 %v4416_v43, %v3760_v30  ;;  %v6529_v15 = vpop.f32.mrb[99].mxu0 }
 0x3a7   : > { %v4791_v1 = vadd.f32 %v4790_v34, %v4719_v28  ;;  %4565 = vst [vmem:[#allocation2 + $0x188] sm:$0xff] %v6659_v47  ;;  %v4638_v48 = vadd.f32 %v6659_v47, %v4637_v35  ;;  %v4720_v44 = vmul.f32 %v6659_v47, %v6659_v47 }
 0x3a9   : > { %v4792_v51 = vadd.f32 %v4791_v1, %v4720_v44 }
 0x3aa   : > { %v3773_v45 = vpop.f32.mrb[104].mxu1  ;;  %v4421_v32 = vpop.f32.mrb[100].mxu0 }
 0x3ab   : > { %v3775_v31 = vpop.f32.mrb[105].mxu1  ;;  %v6660_v18 = vadd.f32 %v4421_v32, %v3765_v17  ;;  %v6532_v55 = vpop.f32.mrb[101].mxu0 }
 0x3ac   : > { %v3776_v57 = vpop.f32.mrb[106].mxu1  ;;  %v4424_v50 = vpop.f32.mrb[102].mxu0 }
 0x3ad   : > { %v3778_v63 = vpop.f32.mrb[107].mxu1  ;;  %4566 = vst [vmem:[#allocation2 + $0x190] sm:$0xff] %v6660_v18  ;;  %v4639_v39 = vadd.f32 %v6660_v18, %v4638_v48  ;;  %v4721_v61 = vmul.f32 %v6660_v18, %v6660_v18  ;;  %v6661_v62 = vadd.f32 %v4424_v50, %v3768_v21  ;;  %v6533_v2 = vpop.f32.mrb[103].mxu0 }
 0x3af   : > { %v4793_v54 = vadd.f32 %v4792_v51, %v4721_v61  ;;  %4567 = vst [vmem:[#allocation2 + $0x198] sm:$0xff] %v6661_v62  ;;  %v4640_v46 = vadd.f32 %v6661_v62, %v4639_v39  ;;  %v4722_v6 = vmul.f32 %v6661_v62, %v6661_v62 }
 0x3b1   : > { %v4794_v9 = vadd.f32 %v4793_v54, %v4722_v6 }
 0x3b2   : > { %v3781_v23 = vpop.f32.mrb[108].mxu1  ;;  %v4429_v4 = vpop.f32.mrb[104].mxu0 }
 0x3b3   : > { %v3783_v49 = vpop.f32.mrb[109].mxu1  ;;  %v6662_v13 = vadd.f32 %v4429_v4, %v3773_v45  ;;  %v6536_v60 = vpop.f32.mrb[105].mxu0 }
 0x3b4   : > { %v3784_v53 = vpop.f32.mrb[110].mxu1  ;;  %v4432_v36 = vpop.f32.mrb[106].mxu0 }
 0x3b5   : > { %v3786_v26 = vpop.f32.mrb[111].mxu1  ;;  %4568 = vst [vmem:[#allocation2 + $0x1a0] sm:$0xff] %v6662_v13  ;;  %v4641_v14 = vadd.f32 %v6662_v13, %v4640_v46  ;;  %v4723_v16 = vmul.f32 %v6662_v13, %v6662_v13  ;;  %v6663_v58 = vadd.f32 %v4432_v36, %v3776_v57  ;;  %v6537_v0 = vpop.f32.mrb[107].mxu0 }
 0x3b7   : > { %v4795_v19 = vadd.f32 %v4794_v9, %v4723_v16  ;;  %4569 = vst [vmem:[#allocation2 + $0x1a8] sm:$0xff] %v6663_v58  ;;  %v4642_v52 = vadd.f32 %v6663_v58, %v4641_v14  ;;  %v4724_v20 = vmul.f32 %v6663_v58, %v6663_v58 }
 0x3b9   : > { %v4796_v8 = vadd.f32 %v4795_v19, %v4724_v20 }
 0x3ba   : > { %v3789_v40 = vpop.f32.mrb[112].mxu1  ;;  %v4437_v22 = vpop.f32.mrb[108].mxu0 }
 0x3bb   : > { %v3791_v7 = vpop.f32.mrb[113].mxu1  ;;  %v6664_v38 = vadd.f32 %v4437_v22, %v3781_v23  ;;  %v6540_v5 = vpop.f32.mrb[109].mxu0 }
 0x3bc   : > { %v3792_v30 = vpop.f32.mrb[114].mxu1  ;;  %v4440_v24 = vpop.f32.mrb[110].mxu0 }
 0x3bd   : > { %v3794_v25 = vpop.f32.mrb[115].mxu1  ;;  %4570 = vst [vmem:[#allocation2 + $0x1b0] sm:$0xff] %v6664_v38  ;;  %v4643_v12 = vadd.f32 %v6664_v38, %v4642_v52  ;;  %v4725_v11 = vmul.f32 %v6664_v38, %v6664_v38  ;;  %v6665_v27 = vadd.f32 %v4440_v24, %v3784_v53  ;;  %v6541_v29 = vpop.f32.mrb[111].mxu0 }
 0x3bf   : > { %v4797_v10 = vadd.f32 %v4796_v8, %v4725_v11  ;;  %4571 = vst [vmem:[#allocation2 + $0x1b8] sm:$0xff] %v6665_v27  ;;  %v4644_v33 = vadd.f32 %v6665_v27, %v4643_v12  ;;  %v4726_v56 = vmul.f32 %v6665_v27, %v6665_v27 }
 0x3c1   : > { %v4798_v34 = vadd.f32 %v4797_v10, %v4726_v56 }
 0x3c2   : > { %v3797_v17 = vpop.f32.mrb[116].mxu1 }
 0x3c3   : > { %v4445_v3 = vpop.f32.mrb[112].mxu0  ;;  %v3799_v37 = vpop.f32.mrb[117].mxu1 }
 0x3c4   : > { %v6666_v41 = vadd.f32 %v4445_v3, %v3789_v40  ;;  %v6544_v42 = vpop.f32.mrb[113].mxu0  ;;  %v3800_v21 = vpop.f32.mrb[118].mxu1 }
 0x3c5   : > { %v4448_v43 = vpop.f32.mrb[114].mxu0  ;;  %v3802_v59 = vpop.f32.mrb[119].mxu1 }
 0x3c6   : > { %4572 = vst [vmem:[#allocation2 + $0x1c0] sm:$0xff] %v6666_v41  ;;  %v4645_v35 = vadd.f32 %v6666_v41, %v4644_v33  ;;  %v4727_v28 = vmul.f32 %v6666_v41, %v6666_v41  ;;  %v6667_v47 = vadd.f32 %v4448_v43, %v3792_v30  ;;  %v6545_v15 = vpop.f32.mrb[115].mxu0 }
 0x3c8   : > { %v4799_v1 = vadd.f32 %v4798_v34, %v4727_v28  ;;  %4573 = vst [vmem:[#allocation2 + $0x1c8] sm:$0xff] %v6667_v47  ;;  %v4646_v48 = vadd.f32 %v6667_v47, %v4645_v35  ;;  %v4728_v44 = vmul.f32 %v6667_v47, %v6667_v47 }
 0x3ca   : > { %v4800_v51 = vadd.f32 %v4799_v1, %v4728_v44  ;;  %v3805_v45 = vpop.f32.mrb[120].mxu1 }
 0x3cb   : > { %v4453_v32 = vpop.f32.mrb[116].mxu0  ;;  %v3807_v31 = vpop.f32.mrb[121].mxu1 }
 0x3cc   : > { %v6668_v18 = vadd.f32 %v4453_v32, %v3797_v17  ;;  %v6548_v55 = vpop.f32.mrb[117].mxu0  ;;  %v3808_v57 = vpop.f32.mrb[122].mxu1 }
 0x3cd   : > { %v4456_v50 = vpop.f32.mrb[118].mxu0  ;;  %v3810_v63 = vpop.f32.mrb[123].mxu1 }
 0x3ce   : > { %4574 = vst [vmem:[#allocation2 + $0x1d0] sm:$0xff] %v6668_v18  ;;  %v4647_v39 = vadd.f32 %v6668_v18, %v4646_v48  ;;  %v4729_v61 = vmul.f32 %v6668_v18, %v6668_v18  ;;  %v6669_v62 = vadd.f32 %v4456_v50, %v3800_v21  ;;  %v6549_v2 = vpop.f32.mrb[119].mxu0 }
 0x3d0   : > { %v4801_v54 = vadd.f32 %v4800_v51, %v4729_v61  ;;  %4575 = vst [vmem:[#allocation2 + $0x1d8] sm:$0xff] %v6669_v62  ;;  %v4648_v46 = vadd.f32 %v6669_v62, %v4647_v39  ;;  %v4730_v6 = vmul.f32 %v6669_v62, %v6669_v62 }
 0x3d2   : > { %v4802_v9 = vadd.f32 %v4801_v54, %v4730_v6  ;;  %v3813_v23 = vpop.f32.mrb[124].mxu1 }
 0x3d3   : > { %v4461_v4 = vpop.f32.mrb[120].mxu0  ;;  %v3815_v49 = vpop.f32.mrb[125].mxu1 }
 0x3d4   : > { %v6670_v13 = vadd.f32 %v4461_v4, %v3805_v45  ;;  %v6552_v60 = vpop.f32.mrb[121].mxu0  ;;  %v3816_v53 = vpop.f32.mrb[126].mxu1 }
 0x3d5   : > { %v4464_v36 = vpop.f32.mrb[122].mxu0  ;;  %v3818_v26 = vpop.f32.mrb[127].mxu1 }
 0x3d6   : > { %4576 = vst [vmem:[#allocation2 + $0x1e0] sm:$0xff] %v6670_v13  ;;  %v4649_v14 = vadd.f32 %v6670_v13, %v4648_v46  ;;  %v4731_v16 = vmul.f32 %v6670_v13, %v6670_v13  ;;  %v6671_v58 = vadd.f32 %v4464_v36, %v3808_v57  ;;  %v6553_v0 = vpop.f32.mrb[123].mxu0 }
 0x3d8   : > { %v4803_v19 = vadd.f32 %v4802_v9, %v4731_v16  ;;  %4577 = vst [vmem:[#allocation2 + $0x1e8] sm:$0xff] %v6671_v58  ;;  %v4650_v52 = vadd.f32 %v6671_v58, %v4649_v14  ;;  %v4732_v20 = vmul.f32 %v6671_v58, %v6671_v58 }
 0x3da   : > { %v4804_v8 = vadd.f32 %v4803_v19, %v4732_v20  ;;  %v3821_v40 = vpop.f32.mrb[128].mxu1 }
 0x3db   : > { %v4469_v22 = vpop.f32.mrb[124].mxu0  ;;  %v3823_v7 = vpop.f32.mrb[129].mxu1 }
 0x3dc   : > { %v6672_v38 = vadd.f32 %v4469_v22, %v3813_v23  ;;  %v6556_v5 = vpop.f32.mrb[125].mxu0  ;;  %v3824_v30 = vpop.f32.mrb[130].mxu1 }
 0x3dd   : > { %v4472_v24 = vpop.f32.mrb[126].mxu0  ;;  %v3826_v25 = vpop.f32.mrb[131].mxu1 }
 0x3de   : > { %4578 = vst [vmem:[#allocation2 + $0x1f0] sm:$0xff] %v6672_v38  ;;  %v4651_v12 = vadd.f32 %v6672_v38, %v4650_v52  ;;  %v4733_v11 = vmul.f32 %v6672_v38, %v6672_v38  ;;  %v6673_v27 = vadd.f32 %v4472_v24, %v3816_v53  ;;  %v6557_v29 = vpop.f32.mrb[127].mxu0 }
 0x3e0   : > { %v4805_v10 = vadd.f32 %v4804_v8, %v4733_v11  ;;  %4579 = vst [vmem:[#allocation2 + $0x1f8] sm:$0xff] %v6673_v27  ;;  %v4652_v33 = vadd.f32 %v6673_v27, %v4651_v12  ;;  %v4734_v56 = vmul.f32 %v6673_v27, %v6673_v27 }
 0x3e2   : > { %v4806_v34 = vadd.f32 %v4805_v10, %v4734_v56  ;;  %v3829_v17 = vpop.f32.mrb[132].mxu1 }
 0x3e3   : > { %v4477_v3 = vpop.f32.mrb[128].mxu0  ;;  %v3831_v37 = vpop.f32.mrb[133].mxu1 }
 0x3e4   : > { %v6674_v41 = vadd.f32 %v4477_v3, %v3821_v40  ;;  %v6560_v42 = vpop.f32.mrb[129].mxu0  ;;  %v3832_v21 = vpop.f32.mrb[134].mxu1 }
 0x3e5   : > { %v4480_v43 = vpop.f32.mrb[130].mxu0  ;;  %v3834_v59 = vpop.f32.mrb[135].mxu1 }
 0x3e6   : > { %4580 = vst [vmem:[#allocation2 + $0x200] sm:$0xff] %v6674_v41  ;;  %v4653_v35 = vadd.f32 %v6674_v41, %v4652_v33  ;;  %v4735_v28 = vmul.f32 %v6674_v41, %v6674_v41  ;;  %v6675_v47 = vadd.f32 %v4480_v43, %v3824_v30  ;;  %v6561_v15 = vpop.f32.mrb[131].mxu0 }
 0x3e8   : > { %v4807_v1 = vadd.f32 %v4806_v34, %v4735_v28  ;;  %4581 = vst [vmem:[#allocation2 + $0x208] sm:$0xff] %v6675_v47  ;;  %v4654_v48 = vadd.f32 %v6675_v47, %v4653_v35  ;;  %v4736_v44 = vmul.f32 %v6675_v47, %v6675_v47 }
 0x3ea   : > { %v4808_v51 = vadd.f32 %v4807_v1, %v4736_v44  ;;  %v3837_v45 = vpop.f32.mrb[136].mxu1 }
 0x3eb   : > { %v4485_v32 = vpop.f32.mrb[132].mxu0  ;;  %v3839_v31 = vpop.f32.mrb[137].mxu1 }
 0x3ec   : > { %v6676_v18 = vadd.f32 %v4485_v32, %v3829_v17  ;;  %v6564_v55 = vpop.f32.mrb[133].mxu0  ;;  %v3840_v57 = vpop.f32.mrb[138].mxu1  ;;  %v4589_v32 = vld [vmem:[#allocation3] sm:$0x1] }
 0x3ed   : > { %v4488_v50 = vpop.f32.mrb[134].mxu0  ;;  %v3842_v63 = vpop.f32.mrb[139].mxu1  ;;  %v4670_v55 = vld [vmem:[#allocation3 + $0x1] sm:$0x1] }
 0x3ee   : > { %4582 = vst [vmem:[#allocation2 + $0x210] sm:$0xff] %v6676_v18  ;;  %v4655_v39 = vadd.f32 %v6676_v18, %v4654_v48  ;;  %v4737_v61 = vmul.f32 %v6676_v18, %v6676_v18  ;;  %v6677_v62 = vadd.f32 %v4488_v50, %v3832_v21  ;;  %v6565_v2 = vpop.f32.mrb[135].mxu0 }
 0x3f0   : > { %v4809_v54 = vadd.f32 %v4808_v51, %v4737_v61  ;;  %4583 = vst [vmem:[#allocation2 + $0x218] sm:$0xff] %v6677_v62  ;;  %v4656_v46 = vadd.f32 %v6677_v62, %v4655_v39  ;;  %v4738_v6 = vmul.f32 %v6677_v62, %v6677_v62 }
 0x3f2   : > { %v4810_v9 = vadd.f32 %v4809_v54, %v4738_v6  ;;  %v3845_v23 = vpop.f32.mrb[140].mxu1 }
 0x3f3   : > { %v4493_v4 = vpop.f32.mrb[136].mxu0  ;;  %v3847_v49 = vpop.f32.mrb[141].mxu1 }
 0x3f4   : > { %v6678_v13 = vadd.f32 %v4493_v4, %v3837_v45  ;;  %v6568_v60 = vpop.f32.mrb[137].mxu0  ;;  %v3848_v53 = vpop.f32.mrb[142].mxu1 }
 0x3f5   : > { %v4496_v36 = vpop.f32.mrb[138].mxu0  ;;  %v3850_v26 = vpop.f32.mrb[143].mxu1 }
 0x3f6   : > { %4584 = vst [vmem:[#allocation2 + $0x220] sm:$0xff] %v6678_v13  ;;  %v4657_v14 = vadd.f32 %v6678_v13, %v4656_v46  ;;  %v4739_v16 = vmul.f32 %v6678_v13, %v6678_v13  ;;  %v6679_v58 = vadd.f32 %v4496_v36, %v3840_v57  ;;  %v6569_v0 = vpop.f32.mrb[139].mxu0 }
 0x3f8   : > { %v4811_v19 = vadd.f32 %v4810_v9, %v4739_v16  ;;  %4585 = vst [vmem:[#allocation2 + $0x228] sm:$0xff] %v6679_v58  ;;  %v4658_v52 = vadd.f32 %v6679_v58, %v4657_v14  ;;  %v4740_v20 = vmul.f32 %v6679_v58, %v6679_v58 }
 0x3fa   : > { %v4812_v8 = vadd.f32 %v4811_v19, %v4740_v20  ;;  %v3853_v40 = vpop.f32.mrb[144].mxu1 }
 0x3fb   : > { %v4501_v22 = vpop.f32.mrb[140].mxu0  ;;  %v3855_v7 = vpop.f32.mrb[145].mxu1 }
 0x3fc   : > { %v6680_v38 = vadd.f32 %v4501_v22, %v3845_v23  ;;  %v6572_v5 = vpop.f32.mrb[141].mxu0  ;;  %v3856_v30 = vpop.f32.mrb[146].mxu1 }
 0x3fd   : > { %v4504_v24 = vpop.f32.mrb[142].mxu0  ;;  %v3857_v25 = vpop.f32.mrb[147].mxu1 }
 0x3fe   : > { %4586 = vst [vmem:[#allocation2 + $0x230] sm:$0xff] %v6680_v38  ;;  %v4659_v12 = vadd.f32 %v6680_v38, %v4658_v52  ;;  %v4741_v11 = vmul.f32 %v6680_v38, %v6680_v38  ;;  %v6681_v27 = vadd.f32 %v4504_v24, %v3848_v53  ;;  %v6573_v29 = vpop.f32.mrb[143].mxu0 }
 0x400   : > { %v4813_v10 = vadd.f32 %v4812_v8, %v4741_v11  ;;  %4587 = vst [vmem:[#allocation2 + $0x238] sm:$0xff] %v6681_v27  ;;  %v4660_v33 = vadd.f32 %v6681_v27, %v4659_v12  ;;  %v4742_v56 = vmul.f32 %v6681_v27, %v6681_v27 }
 0x402   : > { %v4814_v34 = vadd.f32 %v4813_v10, %v4742_v56 }
 0x403   : > { %v4509_v17 = vpop.f32.mrb[144].mxu0 }
 0x404   : > { %v6682_v3 = vadd.f32 %v4509_v17, %v3853_v40  ;;  %v6576_v37 = vpop.f32.mrb[145].mxu0 }
 0x405   : > { %v4512_v41 = vpop.f32.mrb[146].mxu0 }
 0x406   : > { %4588 = vst [vmem:[#allocation2 + $0x240] sm:$0xff] %v6682_v3  ;;  %v4661_v42 = vadd.f32 %v6682_v3, %v4660_v33  ;;  %v4743_v21 = vmul.f32 %v6682_v3, %v6682_v3  ;;  %v6577_v43 = vpop.f32.mrb[147].mxu0 }
 0x408   : > { %v4662_v59 = vrot.slane %v4661_v42, 4  ;;  %v4815_v35 = vadd.f32 %v4814_v34, %v4743_v21 }
 0x40a   : > { %v4663_v28 = vadd.f32 %v4662_v59, %v4661_v42  ;;  %v4816_v47 = vrot.slane %v4815_v35, 4 }
 0x40c   : > { %v4664_v15 = vrot.slane %v4663_v28, 2  ;;  %v4817_v1 = vadd.f32 %v4816_v47, %v4815_v35 }
 0x40e   : > { %v4665_v48 = vadd.f32 %v4664_v15, %v4663_v28  ;;  %v4818_v44 = vrot.slane %v4817_v1, 2 }
 0x410   : > { %v4666_v51 = vrot.slane %v4665_v48, 1  ;;  %v4819_v45 = vadd.f32 %v4818_v44, %v4817_v1 }
 0x412   : > { %v4667_v31 = vadd.f32 %v4666_v51, %v4665_v48  ;;  %v4820_v18 = vrot.slane %v4819_v45, 1 }
 0x414   : > { %v4668_v57 = vadd.f32 %v4667_v31, %v4589_v32  ;;  %v4821_v50 = vadd.f32 %v4820_v18, %v4819_v45 }
 0x416   : > { %4669 = vst [vmem:[#allocation3] sm:$0x1] %v4668_v57  ;;  %v4822_v63 = vadd.f32 %v4821_v50, %v4670_v55 }
 0x418   : > { %4823 = vst [vmem:[#allocation3 + $0x1] sm:$0x1] %v4822_v63 }
 0x419 PF: > { %p6001_p5 = scmp.ne.s32.totalorder %s7737_s15, 1 }
 0x41a   : > { %v4839_v23 = vld [vmem:[%s9607_s2] sm:$0x1] (!%p6001_p5)  ;;  %v4850_v26 = vld [vmem:[#allocation2 + $0x8] sm:$0xff] (!%p6001_p5)  ;;  %v4851_v14 = vld [vmem:[#allocation2 + $0x10] sm:$0xff] (!%p6001_p5) }
 0x41b   : > { %4827 = sbr.rel (%p6001_p5) target bundleno = 1154 (0x482), region = 48  ;;  %v4844_v13 = vld [vmem:[%s9608_s3] sm:$0x1] (!%p6001_p5)  ;;  %v4852_v16 = vld [vmem:[#allocation2 + $0x18] sm:$0xff] (!%p6001_p5)  ;;  %v4854_v0 = vld [vmem:[#allocation2 + $0x28] sm:$0xff] (!%p6001_p5) }
 0x41c   : > { %v4849_v36 = vld [vmem:[#allocation2] sm:$0xff] (!%p6001_p5)  ;;  %v4855_v19 = vld [vmem:[#allocation2 + $0x30] sm:$0xff] (!%p6001_p5)  ;;  %v4856_v52 = vld [vmem:[#allocation2 + $0x38] sm:$0xff] (!%p6001_p5) }
 0x41d   : > { %v4832_v39 = vld [vmem:[#allocation3] sm:$0x1] (!%p6001_p5)  ;;  %v4853_v58 = vld [vmem:[#allocation2 + $0x20] sm:$0xff] (!%p6001_p5)  ;;  %v4859_v40 = vld [vmem:[#allocation2 + $0x50] sm:$0xff] (!%p6001_p5) }
 0x41e   : > { %v4833_v62 = vmul.f32 (!%p6001_p5), 0.0017301039, %v4832_v39  ;;  %v4857_v20 = vld [vmem:[#allocation2 + $0x40] sm:$0xff] (!%p6001_p5)  ;;  %v4858_v8 = vld [vmem:[#allocation2 + $0x48] sm:$0xff] (!%p6001_p5)  ;;  %v4860_v7 = vld [vmem:[#allocation2 + $0x58] sm:$0xff] (!%p6001_p5) }
 0x41f   : > { %v4834_v61 = vld [vmem:[#allocation3 + $0x1] sm:$0x1] (!%p6001_p5)  ;;  %v4861_v38 = vld [vmem:[#allocation2 + $0x60] sm:$0xff] (!%p6001_p5)  ;;  %v4863_v11 = vld [vmem:[#allocation2 + $0x70] sm:$0xff] (!%p6001_p5) }
 0x420   : > { %v4835_v2 = vmul.f32 (!%p6001_p5), 0.0017301039, %v4834_v61  ;;  %v4836_v54 = vmul.f32 (!%p6001_p5), %v4833_v62, %v4833_v62  ;;  %v4862_v12 = vld [vmem:[#allocation2 + $0x68] sm:$0xff] (!%p6001_p5)  ;;  %v4864_v27 = vld [vmem:[#allocation2 + $0x78] sm:$0xff] (!%p6001_p5) }
 0x422   : > { %v4837_v46 = vsub.f32 %v4835_v2, %v4836_v54 }
 0x424   : > { %v4838_v6 = vmax.f32 %v4837_v46, 0.0 }
 0x426   : > { %v4840_v9 = vadd.f32 0.001, %v4838_v6 }
 0x428   : > { %7721 = vrsqrt.f32 %v4840_v9 }
 0x432   : > { %v7722_v4 = vpop.eup %7721 }
 0x433   : > { %v4842_v49 = vmul.f32 %v7722_v4, %v4839_v23  ;;  %v4865_v23 = vld [vmem:[#allocation2 + $0x80] sm:$0xff] }
 0x435   : > { %4843 = vst [vmem:[#allocation3 + $0x2] sm:$0x1] %v4842_v49  ;;  %v4845_v60 = vmul.f32 %v4842_v49, %v4833_v62 }
 0x437   : > { %v4846_v53 = vsub.f32 %v4844_v13, %v4845_v60 }
 0x439   : > { %4847 = vst [vmem:[#allocation3 + $0x3] sm:$0x1] %v4846_v53  ;;  %v4866_v53 = vld [vmem:[#allocation2 + $0x88] sm:$0xff] }
 0x43c   : > { %v9335_v22 = vld [vmem:[#allocation3 + $0x2] ss:$0 sm:$0xff] }
 0x43d   : > { %v4927_v5 = vmul.f32 %v9335_v22, %v4849_v36  ;;  %v4928_v30 = vmul.f32 %v9335_v22, %v4850_v26  ;;  %v4929_v24 = vmul.f32 %v9335_v22, %v4851_v14  ;;  %v4930_v25 = vmul.f32 %v9335_v22, %v4852_v16 }
 0x43e   : > { %v4931_v29 = vmul.f32 %v9335_v22, %v4853_v58  ;;  %v4932_v10 = vmul.f32 %v9335_v22, %v4854_v0  ;;  %v4933_v33 = vmul.f32 %v9335_v22, %v4855_v19  ;;  %v4934_v56 = vmul.f32 %v9335_v22, %v4856_v52  ;;  %v4867_v58 = vld [vmem:[#allocation2 + $0x90] sm:$0xff]  ;;  %v4868_v0 = vld [vmem:[#allocation2 + $0x98] sm:$0xff] }
 0x43f   : > { %v4935_v34 = vmul.f32 %v9335_v22, %v4857_v20  ;;  %v4936_v17 = vmul.f32 %v9335_v22, %v4858_v8  ;;  %v4937_v3 = vmul.f32 %v9335_v22, %v4859_v40  ;;  %v4938_v37 = vmul.f32 %v9335_v22, %v4860_v7  ;;  %v4869_v40 = vld [vmem:[#allocation2 + $0xa0] sm:$0xff]  ;;  %v4870_v7 = vld [vmem:[#allocation2 + $0xa8] sm:$0xff] }
 0x440   : > { %v9349_v41 = vld [vmem:[#allocation3 + $0x3] ss:$0 sm:$0xff]  ;;  %v4939_v42 = vmul.f32 %v9335_v22, %v4861_v38  ;;  %v4940_v21 = vmul.f32 %v9335_v22, %v4862_v12  ;;  %v4941_v43 = vmul.f32 %v9335_v22, %v4863_v11  ;;  %v4942_v59 = vmul.f32 %v9335_v22, %v4864_v27 }
 0x441   : > { %v5005_v35 = vadd.f32 %v9349_v41, %v4927_v5  ;;  %v5006_v28 = vadd.f32 %v9349_v41, %v4928_v30  ;;  %v5007_v47 = vadd.f32 %v9349_v41, %v4929_v24  ;;  %v5008_v15 = vadd.f32 %v9349_v41, %v4930_v25  ;;  %v4871_v25 = vld [vmem:[#allocation2 + $0xb0] sm:$0xff] }
 0x442   : > { %v5009_v1 = vadd.f32 %v9349_v41, %v4931_v29  ;;  %v5010_v48 = vadd.f32 %v9349_v41, %v4932_v10  ;;  %v5011_v44 = vadd.f32 %v9349_v41, %v4933_v33  ;;  %v5012_v51 = vadd.f32 %v9349_v41, %v4934_v56  ;;  %v4872_v10 = vld [vmem:[#allocation2 + $0xb8] sm:$0xff] }
 0x443   : > { %v5078_v45 = vmax.f32 %v5005_v35, 0.0  ;;  %v5079_v32 = vmax.f32 %v5006_v28, 0.0  ;;  %v5080_v31 = vmax.f32 %v5007_v47, 0.0  ;;  %v5081_v18 = vmax.f32 %v5008_v15, 0.0  ;;  %v4874_v15 = vld [vmem:[#allocation2 + $0xc8] sm:$0xff] }
 0x444   : > { %v5082_v55 = vmax.f32 %v5009_v1, 0.0  ;;  %v5083_v57 = vmax.f32 %v5010_v48, 0.0  ;;  %v5084_v50 = vmax.f32 %v5011_v44, 0.0  ;;  %v5085_v63 = vmax.f32 %v5012_v51, 0.0 }
 0x445   : > { %v6157_v39 = vpack.c.bf16 %v5079_v32, %v5078_v45  ;;  %v6162_v61 = vpack.c.bf16 %v5081_v18, %v5080_v31  ;;  %v5013_v62 = vadd.f32 %v9349_v41, %v4935_v34  ;;  %v5014_v2 = vadd.f32 %v9349_v41, %v4936_v17  ;;  %v4875_v45 = vld [vmem:[#allocation2 + $0xd0] sm:$0xff]  ;;  %v4876_v32 = vld [vmem:[#allocation2 + $0xd8] sm:$0xff] }
 0x446   : > { %v6167_v54 = vpack.c.bf16 %v5083_v57, %v5082_v55  ;;  %v6172_v46 = vpack.c.bf16 %v5085_v63, %v5084_v50  ;;  %v5015_v6 = vadd.f32 %v9349_v41, %v4937_v3  ;;  %v5016_v9 = vadd.f32 %v9349_v41, %v4938_v37  ;;  %v4873_v3 = vld [vmem:[#allocation2 + $0xc0] sm:$0xff]  ;;  %v4878_v63 = vld [vmem:[#allocation2 + $0xe8] sm:$0xff] }
 0x447   : > { %6158 = vst [vmem:[%s9609_s4] sm:$0xff] %v6157_v39   ;;  %6334 = vst [vmem:[%s9609_s4 + $0x8] sm:$0xff] %v6162_v61   ;;  %v5086_v4 = vmax.f32 %v5013_v62, 0.0  ;;  %v5087_v49 = vmax.f32 %v5014_v2, 0.0  ;;  %v5017_v13 = vadd.f32 %v9349_v41, %v4939_v42  ;;  %v5018_v60 = vadd.f32 %v9349_v41, %v4940_v21  ;;  %v4877_v50 = vld [vmem:[#allocation2 + $0xe0] sm:$0xff] }
 0x448   : > { %6335 = vst [vmem:[%s9609_s4 + $0x10] sm:$0xff] %v6167_v54   ;;  %6336 = vst [vmem:[%s9609_s4 + $0x18] sm:$0xff] %v6172_v46   ;;  %v5088_v36 = vmax.f32 %v5015_v6, 0.0  ;;  %v5089_v26 = vmax.f32 %v5016_v9, 0.0  ;;  %v5019_v14 = vadd.f32 %v9349_v41, %v4941_v43  ;;  %v5020_v16 = vadd.f32 %v9349_v41, %v4942_v59  ;;  %v4879_v54 = vld [vmem:[#allocation2 + $0xf0] sm:$0xff] }
 0x449   : > { %v6177_v19 = vpack.c.bf16 %v5087_v49, %v5086_v4  ;;  %v5090_v52 = vmax.f32 %v5017_v13, 0.0  ;;  %v5091_v20 = vmax.f32 %v5018_v60, 0.0  ;;  %v4943_v8 = vmul.f32 %v9335_v22, %v4865_v23  ;;  %v4880_v4 = vld [vmem:[#allocation2 + $0xf8] sm:$0xff] }
 0x44a   : > { %v6182_v38 = vpack.c.bf16 %v5089_v26, %v5088_v36  ;;  %v5092_v5 = vmax.f32 %v5019_v14, 0.0  ;;  %v5093_v30 = vmax.f32 %v5020_v16, 0.0  ;;  %v4944_v24 = vmul.f32 %v9335_v22, %v4866_v53  ;;  %v4881_v36 = vld [vmem:[#allocation2 + $0x100] sm:$0xff] }
 0x44b   : > { %6337 = vst [vmem:[%s9609_s4 + $0x20] sm:$0xff] %v6177_v19   ;;  %v6187_v12 = vpack.c.bf16 %v5091_v20, %v5090_v52  ;;  %v5021_v11 = vadd.f32 %v9349_v41, %v4943_v8  ;;  %v4945_v27 = vmul.f32 %v9335_v22, %v4867_v58  ;;  %v4946_v29 = vmul.f32 %v9335_v22, %v4868_v0  ;;  %v4882_v8 = vld [vmem:[#allocation2 + $0x108] sm:$0xff] }
 0x44c   : > { %6338 = vst [vmem:[%s9609_s4 + $0x28] sm:$0xff] %v6182_v38   ;;  %v6192_v33 = vpack.c.bf16 %v5093_v30, %v5092_v5  ;;  %v5022_v56 = vadd.f32 %v9349_v41, %v4944_v24  ;;  %v4947_v34 = vmul.f32 %v9335_v22, %v4869_v40  ;;  %v4948_v17 = vmul.f32 %v9335_v22, %v4870_v7  ;;  %v4883_v30 = vld [vmem:[#allocation2 + $0x110] sm:$0xff]  ;;  %v4884_v24 = vld [vmem:[#allocation2 + $0x118] sm:$0xff] }
 0x44d   : > { %6339 = vst [vmem:[%s9609_s4 + $0x30] sm:$0xff] %v6187_v12   ;;  %v5094_v37 = vmax.f32 %v5021_v11, 0.0  ;;  %v5023_v42 = vadd.f32 %v9349_v41, %v4945_v27  ;;  %v5024_v21 = vadd.f32 %v9349_v41, %v4946_v29  ;;  %v4949_v43 = vmul.f32 %v9335_v22, %v4871_v25  ;;  %v4885_v29 = vld [vmem:[#allocation2 + $0x120] sm:$0xff] }
 0x44e   : > { %6340 = vst [vmem:[%s9609_s4 + $0x38] sm:$0xff] %v6192_v33   ;;  %v5095_v59 = vmax.f32 %v5022_v56, 0.0  ;;  %v5025_v35 = vadd.f32 %v9349_v41, %v4947_v34  ;;  %v5026_v28 = vadd.f32 %v9349_v41, %v4948_v17  ;;  %v4950_v47 = vmul.f32 %v9335_v22, %v4872_v10  ;;  %v4886_v10 = vld [vmem:[#allocation2 + $0x128] sm:$0xff] }
 0x44f   : > { %v5096_v1 = vmax.f32 %v5023_v42, 0.0  ;;  %v5097_v48 = vmax.f32 %v5024_v21, 0.0  ;;  %v5027_v44 = vadd.f32 %v9349_v41, %v4949_v43  ;;  %v4951_v51 = vmul.f32 %v9335_v22, %v4873_v3  ;;  %v4887_v3 = vld [vmem:[#allocation2 + $0x130] sm:$0xff] }
 0x450   : > { %v6197_v31 = vpack.c.bf16 %v5095_v59, %v5094_v37  ;;  %v5098_v18 = vmax.f32 %v5025_v35, 0.0  ;;  %v5099_v55 = vmax.f32 %v5026_v28, 0.0  ;;  %v5028_v57 = vadd.f32 %v9349_v41, %v4950_v47  ;;  %v4888_v59 = vld [vmem:[#allocation2 + $0x138] sm:$0xff] }
 0x451   : > { %v6202_v39 = vpack.c.bf16 %v5097_v48, %v5096_v1  ;;  %v5100_v61 = vmax.f32 %v5027_v44, 0.0  ;;  %v4952_v62 = vmul.f32 %v9335_v22, %v4874_v15  ;;  %v5029_v2 = vadd.f32 %v9349_v41, %v4951_v51  ;;  %v4889_v1 = vld [vmem:[#allocation2 + $0x140] sm:$0xff] }
 0x452   : > { %6341 = vst [vmem:[%s9609_s4 + $0x40] sm:$0xff] %v6197_v31   ;;  %v6207_v46 = vpack.c.bf16 %v5099_v55, %v5098_v18  ;;  %v5101_v6 = vmax.f32 %v5028_v57, 0.0  ;;  %v4953_v9 = vmul.f32 %v9335_v22, %v4875_v45  ;;  %v4954_v23 = vmul.f32 %v9335_v22, %v4876_v32  ;;  %v4890_v57 = vld [vmem:[#allocation2 + $0x148] sm:$0xff] }
 0x453   : > { %6342 = vst [vmem:[%s9609_s4 + $0x48] sm:$0xff] %v6202_v39   ;;  %v5030_v49 = vadd.f32 %v9349_v41, %v4952_v62  ;;  %v5102_v13 = vmax.f32 %v5029_v2, 0.0  ;;  %v4955_v60 = vmul.f32 %v9335_v22, %v4877_v50  ;;  %v4956_v53 = vmul.f32 %v9335_v22, %v4878_v63  ;;  %v4891_v62 = vld [vmem:[#allocation2 + $0x150] sm:$0xff]  ;;  %v4892_v2 = vld [vmem:[#allocation2 + $0x158] sm:$0xff] }
 0x454   : > { %6343 = vst [vmem:[%s9609_s4 + $0x50] sm:$0xff] %v6207_v46   ;;  %v6212_v26 = vpack.c.bf16 %v5101_v6, %v5100_v61  ;;  %v5031_v14 = vadd.f32 %v9349_v41, %v4953_v9  ;;  %v5032_v16 = vadd.f32 %v9349_v41, %v4954_v23  ;;  %v4957_v58 = vmul.f32 %v9335_v22, %v4879_v54  ;;  %v4893_v23 = vld [vmem:[#allocation2 + $0x160] sm:$0xff] }
 0x455   : > { %v5103_v0 = vmax.f32 %v5030_v49, 0.0  ;;  %v5033_v19 = vadd.f32 %v9349_v41, %v4955_v60  ;;  %v5034_v52 = vadd.f32 %v9349_v41, %v4956_v53  ;;  %v4958_v20 = vmul.f32 %v9335_v22, %v4880_v4  ;;  %v4894_v4 = vld [vmem:[#allocation2 + $0x168] sm:$0xff] }
 0x456   : > { %6344 = vst [vmem:[%s9609_s4 + $0x58] sm:$0xff] %v6212_v26   ;;  %v5104_v40 = vmax.f32 %v5031_v14, 0.0  ;;  %v5105_v7 = vmax.f32 %v5032_v16, 0.0  ;;  %v5035_v38 = vadd.f32 %v9349_v41, %v4957_v58  ;;  %v4959_v5 = vmul.f32 %v9335_v22, %v4881_v36  ;;  %v4895_v36 = vld [vmem:[#allocation2 + $0x170] sm:$0xff] }
 0x457   : > { %v6217_v25 = vpack.c.bf16 %v5103_v0, %v5102_v13  ;;  %v5106_v12 = vmax.f32 %v5033_v19, 0.0  ;;  %v5107_v11 = vmax.f32 %v5034_v52, 0.0  ;;  %v5036_v27 = vadd.f32 %v9349_v41, %v4958_v20  ;;  %v4896_v0 = vld [vmem:[#allocation2 + $0x178] sm:$0xff] }
 0x458   : > { %v6222_v33 = vpack.c.bf16 %v5105_v7, %v5104_v40  ;;  %v5108_v56 = vmax.f32 %v5035_v38, 0.0  ;;  %v4960_v34 = vmul.f32 %v9335_v22, %v4882_v8  ;;  %v5037_v17 = vadd.f32 %v9349_v41, %v4959_v5  ;;  %v4897_v40 = vld [vmem:[#allocation2 + $0x180] sm:$0xff] }
 0x459   : > { %6345 = vst [vmem:[%s9609_s4 + $0x60] sm:$0xff] %v6217_v25   ;;  %v6227_v37 = vpack.c.bf16 %v5107_v11, %v5106_v12  ;;  %v5109_v42 = vmax.f32 %v5036_v27, 0.0  ;;  %v4961_v21 = vmul.f32 %v9335_v22, %v4883_v30  ;;  %v4962_v43 = vmul.f32 %v9335_v22, %v4884_v24  ;;  %v4898_v27 = vld [vmem:[#allocation2 + $0x188] sm:$0xff] }
 0x45a   : > { %6346 = vst [vmem:[%s9609_s4 + $0x68] sm:$0xff] %v6222_v33   ;;  %v5038_v35 = vadd.f32 %v9349_v41, %v4960_v34  ;;  %v5110_v28 = vmax.f32 %v5037_v17, 0.0  ;;  %v4963_v47 = vmul.f32 %v9335_v22, %v4885_v29  ;;  %v4964_v15 = vmul.f32 %v9335_v22, %v4886_v10  ;;  %v4899_v34 = vld [vmem:[#allocation2 + $0x190] sm:$0xff]  ;;  %v4900_v17 = vld [vmem:[#allocation2 + $0x198] sm:$0xff] }
 0x45b   : > { %6347 = vst [vmem:[%s9609_s4 + $0x70] sm:$0xff] %v6227_v37   ;;  %v6232_v48 = vpack.c.bf16 %v5109_v42, %v5108_v56  ;;  %v5039_v44 = vadd.f32 %v9349_v41, %v4961_v21  ;;  %v5040_v51 = vadd.f32 %v9349_v41, %v4962_v43  ;;  %v4965_v45 = vmul.f32 %v9335_v22, %v4887_v3  ;;  %v4901_v43 = vld [vmem:[#allocation2 + $0x1a0] sm:$0xff] }
 0x45c   : > { %v5111_v32 = vmax.f32 %v5038_v35, 0.0  ;;  %v5041_v31 = vadd.f32 %v9349_v41, %v4963_v47  ;;  %v5042_v18 = vadd.f32 %v9349_v41, %v4964_v15  ;;  %v4966_v55 = vmul.f32 %v9335_v22, %v4888_v59  ;;  %v4902_v59 = vld [vmem:[#allocation2 + $0x1a8] sm:$0xff] }
 0x45d   : > { %6348 = vst [vmem:[%s9609_s4 + $0x78] sm:$0xff] %v6232_v48   ;;  %v5112_v50 = vmax.f32 %v5039_v44, 0.0  ;;  %v5113_v63 = vmax.f32 %v5040_v51, 0.0  ;;  %v5043_v39 = vadd.f32 %v9349_v41, %v4965_v45  ;;  %v4967_v61 = vmul.f32 %v9335_v22, %v4889_v1  ;;  %v4903_v1 = vld [vmem:[#allocation2 + $0x1b0] sm:$0xff] }
 0x45e   : > { %v6237_v54 = vpack.c.bf16 %v5111_v32, %v5110_v28  ;;  %v5114_v46 = vmax.f32 %v5041_v31, 0.0  ;;  %v5115_v6 = vmax.f32 %v5042_v18, 0.0  ;;  %v5044_v9 = vadd.f32 %v9349_v41, %v4966_v55  ;;  %v4904_v32 = vld [vmem:[#allocation2 + $0x1b8] sm:$0xff] }
 0x45f   : > { %v6242_v49 = vpack.c.bf16 %v5113_v63, %v5112_v50  ;;  %v5116_v13 = vmax.f32 %v5043_v39, 0.0  ;;  %v4968_v60 = vmul.f32 %v9335_v22, %v4890_v57  ;;  %v5045_v53 = vadd.f32 %v9349_v41, %v4967_v61  ;;  %v4905_v50 = vld [vmem:[#allocation2 + $0x1c0] sm:$0xff] }
 0x460   : > { %6349 = vst [vmem:[%s9609_s4 + $0x80] sm:$0xff] %v6237_v54   ;;  %v6247_v26 = vpack.c.bf16 %v5115_v6, %v5114_v46  ;;  %v5117_v14 = vmax.f32 %v5044_v9, 0.0  ;;  %v4969_v16 = vmul.f32 %v9335_v22, %v4891_v62  ;;  %v4970_v58 = vmul.f32 %v9335_v22, %v4892_v2  ;;  %v4906_v9 = vld [vmem:[#allocation2 + $0x1c8] sm:$0xff] }
 0x461   : > { %6350 = vst [vmem:[%s9609_s4 + $0x88] sm:$0xff] %v6242_v49   ;;  %v5046_v19 = vadd.f32 %v9349_v41, %v4968_v60  ;;  %v5118_v52 = vmax.f32 %v5045_v53, 0.0  ;;  %v4971_v20 = vmul.f32 %v9335_v22, %v4893_v23  ;;  %v4972_v8 = vmul.f32 %v9335_v22, %v4894_v4  ;;  %v4907_v60 = vld [vmem:[#allocation2 + $0x1d0] sm:$0xff]  ;;  %v4908_v53 = vld [vmem:[#allocation2 + $0x1d8] sm:$0xff] }
 0x462   : > { %6351 = vst [vmem:[%s9609_s4 + $0x90] sm:$0xff] %v6247_v26   ;;  %v6252_v7 = vpack.c.bf16 %v5117_v14, %v5116_v13  ;;  %v5047_v38 = vadd.f32 %v9349_v41, %v4969_v16  ;;  %v5048_v5 = vadd.f32 %v9349_v41, %v4970_v58  ;;  %v4973_v30 = vmul.f32 %v9335_v22, %v4895_v36  ;;  %v4909_v58 = vld [vmem:[#allocation2 + $0x1e0] sm:$0xff] }
 0x463   : > { %v5119_v24 = vmax.f32 %v5046_v19, 0.0  ;;  %v5049_v25 = vadd.f32 %v9349_v41, %v4971_v20  ;;  %v5050_v12 = vadd.f32 %v9349_v41, %v4972_v8  ;;  %v4974_v11 = vmul.f32 %v9335_v22, %v4896_v0  ;;  %v4910_v0 = vld [vmem:[#allocation2 + $0x1e8] sm:$0xff] }
 0x464   : > { %6352 = vst [vmem:[%s9609_s4 + $0x98] sm:$0xff] %v6252_v7   ;;  %v5120_v29 = vmax.f32 %v5047_v38, 0.0  ;;  %v5121_v10 = vmax.f32 %v5048_v5, 0.0  ;;  %v5051_v33 = vadd.f32 %v9349_v41, %v4973_v30  ;;  %v4975_v56 = vmul.f32 %v9335_v22, %v4897_v40  ;;  %v4911_v40 = vld [vmem:[#allocation2 + $0x1f0] sm:$0xff] }
 0x465   : > { %v6257_v3 = vpack.c.bf16 %v5119_v24, %v5118_v52  ;;  %v5122_v37 = vmax.f32 %v5049_v25, 0.0  ;;  %v5123_v42 = vmax.f32 %v5050_v12, 0.0  ;;  %v5052_v21 = vadd.f32 %v9349_v41, %v4974_v11  ;;  %v4912_v24 = vld [vmem:[#allocation2 + $0x1f8] sm:$0xff] }
 0x466   : > { %v6262_v35 = vpack.c.bf16 %v5121_v10, %v5120_v29  ;;  %v5124_v28 = vmax.f32 %v5051_v33, 0.0  ;;  %v4976_v47 = vmul.f32 %v9335_v22, %v4898_v27  ;;  %v5053_v15 = vadd.f32 %v9349_v41, %v4975_v56  ;;  %v4913_v29 = vld [vmem:[#allocation2 + $0x200] sm:$0xff] }
 0x467   : > { %6353 = vst [vmem:[%s9609_s4 + $0xa0] sm:$0xff] %v6257_v3   ;;  %v6267_v48 = vpack.c.bf16 %v5123_v42, %v5122_v37  ;;  %v5125_v44 = vmax.f32 %v5052_v21, 0.0  ;;  %v4977_v51 = vmul.f32 %v9335_v22, %v4899_v34  ;;  %v4978_v45 = vmul.f32 %v9335_v22, %v4900_v17  ;;  %v4914_v21 = vld [vmem:[#allocation2 + $0x208] sm:$0xff] }
 0x468   : > { %6354 = vst [vmem:[%s9609_s4 + $0xa8] sm:$0xff] %v6262_v35   ;;  %v5054_v31 = vadd.f32 %v9349_v41, %v4976_v47  ;;  %v5126_v18 = vmax.f32 %v5053_v15, 0.0  ;;  %v4979_v55 = vmul.f32 %v9335_v22, %v4901_v43  ;;  %v4980_v57 = vmul.f32 %v9335_v22, %v4902_v59  ;;  %v4915_v47 = vld [vmem:[#allocation2 + $0x210] sm:$0xff]  ;;  %v4916_v15 = vld [vmem:[#allocation2 + $0x218] sm:$0xff] }
 0x469   : > { %6355 = vst [vmem:[%s9609_s4 + $0xb0] sm:$0xff] %v6267_v48   ;;  %v6272_v63 = vpack.c.bf16 %v5125_v44, %v5124_v28  ;;  %v5055_v39 = vadd.f32 %v9349_v41, %v4977_v51  ;;  %v5056_v61 = vadd.f32 %v9349_v41, %v4978_v45  ;;  %v4981_v62 = vmul.f32 %v9335_v22, %v4903_v1  ;;  %v4917_v45 = vld [vmem:[#allocation2 + $0x220] sm:$0xff] }
 0x46a   : > { %v5127_v2 = vmax.f32 %v5054_v31, 0.0  ;;  %v5057_v54 = vadd.f32 %v9349_v41, %v4979_v55  ;;  %v5058_v46 = vadd.f32 %v9349_v41, %v4980_v57  ;;  %v4982_v6 = vmul.f32 %v9335_v22, %v4904_v32  ;;  %v4918_v32 = vld [vmem:[#allocation2 + $0x228] sm:$0xff] }
 0x46b   : > { %6356 = vst [vmem:[%s9609_s4 + $0xb8] sm:$0xff] %v6272_v63   ;;  %v5128_v23 = vmax.f32 %v5055_v39, 0.0  ;;  %v5129_v4 = vmax.f32 %v5056_v61, 0.0  ;;  %v5059_v49 = vadd.f32 %v9349_v41, %v4981_v62  ;;  %v4983_v13 = vmul.f32 %v9335_v22, %v4905_v50  ;;  %v4919_v50 = vld [vmem:[#allocation2 + $0x230] sm:$0xff] }
 0x46c   : > { %v6277_v36 = vpack.c.bf16 %v5127_v2, %v5126_v18  ;;  %v5130_v26 = vmax.f32 %v5057_v54, 0.0  ;;  %v5131_v14 = vmax.f32 %v5058_v46, 0.0  ;;  %v5060_v16 = vadd.f32 %v9349_v41, %v4982_v6  ;;  %v4920_v2 = vld [vmem:[#allocation2 + $0x238] sm:$0xff] }
 0x46d   : > { %v6282_v19 = vpack.c.bf16 %v5129_v4, %v5128_v23  ;;  %v5132_v52 = vmax.f32 %v5059_v49, 0.0  ;;  %v4984_v20 = vmul.f32 %v9335_v22, %v4906_v9  ;;  %v5061_v8 = vadd.f32 %v9349_v41, %v4983_v13  ;;  %v4921_v23 = vld [vmem:[#allocation2 + $0x240] sm:$0xff] }
 0x46e   : > { %6357 = vst [vmem:[%s9609_s4 + $0xc0] sm:$0xff] %v6277_v36   ;;  %v6287_v7 = vpack.c.bf16 %v5131_v14, %v5130_v26  ;;  %v5133_v38 = vmax.f32 %v5060_v16, 0.0  ;;  %v4985_v5 = vmul.f32 %v9335_v22, %v4907_v60  ;;  %v4986_v30 = vmul.f32 %v9335_v22, %v4908_v53 }
 0x46f   : > { %6358 = vst [vmem:[%s9609_s4 + $0xc8] sm:$0xff] %v6282_v19   ;;  %v5062_v25 = vadd.f32 %v9349_v41, %v4984_v20  ;;  %v5134_v12 = vmax.f32 %v5061_v8, 0.0  ;;  %v4987_v11 = vmul.f32 %v9335_v22, %v4909_v58  ;;  %v4988_v27 = vmul.f32 %v9335_v22, %v4910_v0 }
 0x470   : > { %6359 = vst [vmem:[%s9609_s4 + $0xd0] sm:$0xff] %v6287_v7   ;;  %v6292_v10 = vpack.c.bf16 %v5133_v38, %v5132_v52  ;;  %v5063_v33 = vadd.f32 %v9349_v41, %v4985_v5  ;;  %v5064_v56 = vadd.f32 %v9349_v41, %v4986_v30  ;;  %v4989_v34 = vmul.f32 %v9335_v22, %v4911_v40 }
 0x471   : > { %v5135_v17 = vmax.f32 %v5062_v25, 0.0  ;;  %v5065_v3 = vadd.f32 %v9349_v41, %v4987_v11  ;;  %v5066_v37 = vadd.f32 %v9349_v41, %v4988_v27  ;;  %v4990_v42 = vmul.f32 %v9335_v22, %v4912_v24 }
 0x472   : > { %6360 = vst [vmem:[%s9609_s4 + $0xd8] sm:$0xff] %v6292_v10   ;;  %v5136_v43 = vmax.f32 %v5063_v33, 0.0  ;;  %v5137_v59 = vmax.f32 %v5064_v56, 0.0  ;;  %v5067_v35 = vadd.f32 %v9349_v41, %v4989_v34  ;;  %v4991_v28 = vmul.f32 %v9335_v22, %v4913_v29 }
 0x473   : > { %v6297_v1 = vpack.c.bf16 %v5135_v17, %v5134_v12  ;;  %v5138_v48 = vmax.f32 %v5065_v3, 0.0  ;;  %v5139_v44 = vmax.f32 %v5066_v37, 0.0  ;;  %v5068_v51 = vadd.f32 %v9349_v41, %v4990_v42 }
 0x474   : > { %v6302_v31 = vpack.c.bf16 %v5137_v59, %v5136_v43  ;;  %v5140_v18 = vmax.f32 %v5067_v35, 0.0  ;;  %v4992_v55 = vmul.f32 %v9335_v22, %v4914_v21  ;;  %v5069_v57 = vadd.f32 %v9349_v41, %v4991_v28 }
 0x475   : > { %6361 = vst [vmem:[%s9609_s4 + $0xe0] sm:$0xff] %v6297_v1   ;;  %v6307_v63 = vpack.c.bf16 %v5139_v44, %v5138_v48  ;;  %v5141_v39 = vmax.f32 %v5068_v51, 0.0  ;;  %v4993_v61 = vmul.f32 %v9335_v22, %v4915_v47  ;;  %v4994_v62 = vmul.f32 %v9335_v22, %v4916_v15 }
 0x476   : > { %6362 = vst [vmem:[%s9609_s4 + $0xe8] sm:$0xff] %v6302_v31   ;;  %v5070_v54 = vadd.f32 %v9349_v41, %v4992_v55  ;;  %v5142_v46 = vmax.f32 %v5069_v57, 0.0  ;;  %v4995_v6 = vmul.f32 %v9335_v22, %v4917_v45  ;;  %v4996_v9 = vmul.f32 %v9335_v22, %v4918_v32 }
 0x477   : > { %6363 = vst [vmem:[%s9609_s4 + $0xf0] sm:$0xff] %v6307_v63   ;;  %v6312_v4 = vpack.c.bf16 %v5141_v39, %v5140_v18  ;;  %v5071_v49 = vadd.f32 %v9349_v41, %v4993_v61  ;;  %v5072_v13 = vadd.f32 %v9349_v41, %v4994_v62  ;;  %v4997_v60 = vmul.f32 %v9335_v22, %v4919_v50 }
 0x478   : > { %v5143_v53 = vmax.f32 %v5070_v54, 0.0  ;;  %v5073_v36 = vadd.f32 %v9349_v41, %v4995_v6  ;;  %v5074_v26 = vadd.f32 %v9349_v41, %v4996_v9  ;;  %v4998_v14 = vmul.f32 %v9335_v22, %v4920_v2 }
 0x479   : > { %6364 = vst [vmem:[%s9609_s4 + $0xf8] sm:$0xff] %v6312_v4   ;;  %v5144_v16 = vmax.f32 %v5071_v49, 0.0  ;;  %v5145_v58 = vmax.f32 %v5072_v13, 0.0  ;;  %v5075_v0 = vadd.f32 %v9349_v41, %v4997_v60  ;;  %v4999_v19 = vmul.f32 %v9335_v22, %v4921_v23 }
 0x47a   : > { %v6317_v52 = vpack.c.bf16 %v5143_v53, %v5142_v46  ;;  %v5146_v20 = vmax.f32 %v5073_v36, 0.0  ;;  %v5147_v8 = vmax.f32 %v5074_v26, 0.0  ;;  %v5076_v40 = vadd.f32 %v9349_v41, %v4998_v14 }
 0x47b   : > { %v6322_v7 = vpack.c.bf16 %v5145_v58, %v5144_v16  ;;  %v5148_v38 = vmax.f32 %v5075_v0, 0.0  ;;  %v5077_v5 = vadd.f32 %v9349_v41, %v4999_v19 }
 0x47c   : > { %6365 = vst [vmem:[%s9609_s4 + $0x100] sm:$0xff] %v6317_v52   ;;  %v6327_v30 = vpack.c.bf16 %v5147_v8, %v5146_v20  ;;  %v5149_v24 = vmax.f32 %v5076_v40, 0.0 }
 0x47d   : > { %6366 = vst [vmem:[%s9609_s4 + $0x108] sm:$0xff] %v6322_v7   ;;  %v5150_v22 = vmax.f32 %v5077_v5, 0.0 }
 0x47e   : > { %6367 = vst [vmem:[%s9609_s4 + $0x110] sm:$0xff] %v6327_v30   ;;  %v6332_v25 = vpack.c.bf16 %v5149_v24, %v5148_v38 }
 0x47f   : > { %v6153_v12 = vpack.c.bf16 %v5150_v22, %v5150_v22 }
 0x480   : > { %6368 = vst [vmem:[%s9609_s4 + $0x118] sm:$0xff] %v6332_v25  }
 0x481   : > { %5516 = vst [vmem:[%s9609_s4 + $0x120] sm:$0xf] %v6153_v12 }
 0x482 PF: > { %s14_s17 = sadd.s32 1, %s7745_s17   ;;  %s9610_s15 = smov %s7741_s16 }
 0x483   : > { %p11_p6 = scmp.ge.s32.totalorder %s14_s17, 4   ;;  %s9611_s16 = smov %s9613_s18 }
 0x485   :  { %13 = sbr.rel (!%p11_p6) target bundleno = 2 (0x2), region = 84 }

// kernel: reduction_a.8
= control target key start
LH: loop header
LB: loop body
LE: loop exit
PB: predicated region body
PF: predicated region fallthrough
CT: control target
= control target key end

     0   :  { %s2754_s15 = smov 0   ;;  %s2756_s16 = smov 0   ;;  %s3361_s0 = inlined_call_operand.vmem [shape: bf16[128,1152], index: 0, kind: input, shape index: {}]   ;;  %s3362_s1 = inlined_call_operand.vmem [shape: bf16[1152,128], index: 1, kind: input, shape index: {}]   ;;  %s3363_s2 = inlined_call_operand.vmem [shape: f32[1,128], index: 2, kind: input, shape index: {}]   ;;  %s3364_s3 = inlined_call_operand.vmem [shape: f32[1,128], index: 3, kind: input, shape index: {}]   ;;  %s3365_s4 = inlined_call_operand.vmem [shape: f32[128,128], index: 4, kind: output, shape index: {}]  }
   0x1   :  { %s2758_s17 = smov 0  }
   0x2 LB: > { %s26_s18 = sadd.s32 1, %s2722_s16  ;;  %p2028_p0 = scmp.ge.s32.totalorder %s2726_s17, 1  ;;  %s2726_s17 = sphi %s2758_s17, %s14_s17   ;;  %s2722_s16 = sphi %s2756_s16, %s3367_s16   ;;  %s2718_s15 = sphi %s2754_s15, %s3366_s15  }
   0x3   : > { %p28_p1 = scmp.ge.s32.totalorder %s26_s18, 2  ;;  %p186_p2 = scmp.lt.s32.totalorder %s2726_s17, 3 }
   0x5   : > { %s3369_s18 = smov (%p28_p1, %s26_s18), 0  ;;  %p187_p3 = pnand %p2028_p0, %p186_p2 }
   0x6   : > { %p2029_p4 = scmp.ne.s32.totalorder (!%p187_p3), %s2718_s15, 0 }
   0x7   : > { %190 = sbr.rel (%p187_p3) target bundleno = 493 (0x1ed), region = 36 }
   0xe   : > { %240 = sbr.rel (%p2029_p4) target bundleno = 441 (0x1b9), region = 40  ;;  %v2526_v0 = vld [vmem:[%s3362_s1 + $0x40] sm:$0xff] (!%p2029_p4)   ;;  %v2530_v4 = vld [vmem:[%s3362_s1 + $0x48] sm:$0xff] (!%p2029_p4)   ;;  %v2534_v8 = vld [vmem:[%s3362_s1 + $0x50] sm:$0xff] (!%p2029_p4)  }
   0xf   : > { %v2527_v1 = vld [vmem:[%s3362_s1 + $0xc0] sm:$0xff] (!%p2029_p4)   ;;  %2181 = vmatprep.subr.bf16.mxu0 (!%p2029_p4), %v2526_v0  ;;  %v2531_v5 = vld [vmem:[%s3362_s1 + $0xc8] sm:$0xff] (!%p2029_p4)   ;;  %v2535_v9 = vld [vmem:[%s3362_s1 + $0xd0] sm:$0xff] (!%p2029_p4)  }
  0x10   : > { %v2528_v2 = vld [vmem:[%s3362_s1] sm:$0xff] (!%p2029_p4)   ;;  %2245 = vmatprep.subr.bf16.mxu1 (!%p2029_p4), %v2527_v1  ;;  %v2532_v6 = vld [vmem:[%s3362_s1 + $0x8] sm:$0xff] (!%p2029_p4)   ;;  %v2536_v10 = vld [vmem:[%s3362_s1 + $0x10] sm:$0xff] (!%p2029_p4)  }
  0x11   : > { %v2529_v3 = vld [vmem:[%s3362_s1 + $0x80] sm:$0xff] (!%p2029_p4)   ;;  %2182 = vmatpush3.bf16.msra.mxu0 (!%p2029_p4), %v2528_v2  ;;  %v2533_v7 = vld [vmem:[%s3362_s1 + $0x88] sm:$0xff] (!%p2029_p4)   ;;  %v2537_v11 = vld [vmem:[%s3362_s1 + $0x90] sm:$0xff] (!%p2029_p4)  }
  0x12   : > { %2246 = vmatpush3.bf16.msra.mxu1 (!%p2029_p4), %v2529_v3  ;;  %2183 = vmatprep.subr.bf16.mxu0 (!%p2029_p4), %v2530_v4  ;;  %v2538_v12 = vld [vmem:[%s3362_s1 + $0x58] sm:$0xff] (!%p2029_p4)   ;;  %v2542_v16 = vld [vmem:[%s3362_s1 + $0x60] sm:$0xff] (!%p2029_p4)   ;;  %v2546_v20 = vld [vmem:[%s3362_s1 + $0x68] sm:$0xff] (!%p2029_p4)  }
  0x13   : > { %2247 = vmatprep.subr.bf16.mxu1 (!%p2029_p4), %v2531_v5  ;;  %v2539_v13 = vld [vmem:[%s3362_s1 + $0xd8] sm:$0xff] (!%p2029_p4)   ;;  %v2543_v17 = vld [vmem:[%s3362_s1 + $0xe0] sm:$0xff] (!%p2029_p4)   ;;  %v2547_v21 = vld [vmem:[%s3362_s1 + $0xe8] sm:$0xff] (!%p2029_p4)  }
  0x14   : > { %v2540_v14 = vld [vmem:[%s3362_s1 + $0x18] sm:$0xff] (!%p2029_p4)   ;;  %v2544_v18 = vld [vmem:[%s3362_s1 + $0x20] sm:$0xff] (!%p2029_p4)   ;;  %v2548_v22 = vld [vmem:[%s3362_s1 + $0x28] sm:$0xff] (!%p2029_p4)  }
  0x15   : > { %2184 = vmatpush3.bf16.msra.mxu0 %v2532_v6  ;;  %v2541_v15 = vld [vmem:[%s3362_s1 + $0x98] sm:$0xff]   ;;  %v2545_v19 = vld [vmem:[%s3362_s1 + $0xa0] sm:$0xff]   ;;  %v2549_v23 = vld [vmem:[%s3362_s1 + $0xa8] sm:$0xff]  }
  0x16   : > { %2248 = vmatpush3.bf16.msra.mxu1 %v2533_v7  ;;  %2185 = vmatprep.subr.bf16.mxu0 %v2534_v8  ;;  %v2550_v24 = vld [vmem:[%s3362_s1 + $0x70] sm:$0xff]   ;;  %v2554_v28 = vld [vmem:[%s3362_s1 + $0x78] sm:$0xff]   ;;  %v2558_v32 = vld [vmem:[%s3361_s0] ss:$36 sps:$4 sm:$0xff]  }
  0x17   : > { %2249 = vmatprep.subr.bf16.mxu1 %v2535_v9  ;;  %v2551_v25 = vld [vmem:[%s3362_s1 + $0xf0] sm:$0xff]   ;;  %v2555_v29 = vld [vmem:[%s3362_s1 + $0xf8] sm:$0xff]   ;;  %v2560_v33 = vld [vmem:[%s3361_s0 + $0x4] ss:$36 sps:$4 sm:$0xff]  }
  0x18   : > { %v2552_v26 = vld [vmem:[%s3362_s1 + $0x30] sm:$0xff]   ;;  %v2556_v30 = vld [vmem:[%s3362_s1 + $0x38] sm:$0xff]   ;;  %v2561_v34 = vld [vmem:[%s3361_s0 + $0x8] ss:$36 sps:$4 sm:$0xff]   ;;  %1302 = vmatprep.mubr.bf16.mxu0 %v2560_v33 }
  0x19   : > { %2186 = vmatpush3.bf16.msra.mxu0 %v2536_v10  ;;  %v2553_v27 = vld [vmem:[%s3362_s1 + $0xb0] sm:$0xff]   ;;  %v2557_v31 = vld [vmem:[%s3362_s1 + $0xb8] sm:$0xff]   ;;  %v2564_v36 = vld [vmem:[%s3362_s1 + $0x140] sm:$0xff]  }
  0x1a   : > { %2250 = vmatpush3.bf16.msra.mxu1 %v2537_v11  ;;  %2187 = vmatprep.subr.bf16.mxu0 %v2538_v12  ;;  %v2563_v35 = vld [vmem:[%s3361_s0 + $0xc] ss:$36 sps:$4 sm:$0xff]   ;;  %v2565_v37 = vld [vmem:[%s3362_s1 + $0x100] sm:$0xff]   ;;  %v2568_v39 = vld [vmem:[%s3361_s0 + $0x54] ss:$36 sps:$4 sm:$0xff]  }
  0x1b   : > { %2251 = vmatprep.subr.bf16.mxu1 %v2539_v13  ;;  %1399 = vmatprep.mubr.bf16.mxu1 %v2563_v35  ;;  %v2566_v38 = vld [vmem:[%s3361_s0 + $0x4c] ss:$36 sps:$4 sm:$0xff]   ;;  %v2574_v44 = vld [vmem:[%s3361_s0 + $0x94] ss:$36 sps:$4 sm:$0xff]   ;;  %v2576_v45 = vld [vmem:[%s3361_s0 + $0x9c] ss:$36 sps:$4 sm:$0xff]  }
  0x1c   : > { %v2570_v40 = vld [vmem:[%s3361_s0 + $0x48] ss:$36 sps:$4 sm:$0xff]   ;;  %v2571_v41 = vld [vmem:[%s3361_s0 + $0x50] ss:$36 sps:$4 sm:$0xff]   ;;  %v2581_v47 = vld [vmem:[%s3362_s1 + $0x1c0] sm:$0xff]  }
  0x1d   : > { %2188 = vmatpush3.bf16.msra.mxu0 %v2540_v14  ;;  %v2572_v42 = vld [vmem:[%s3362_s1 + $0x148] sm:$0xff]   ;;  %v2580_v46 = vld [vmem:[%s3362_s1 + $0x150] sm:$0xff]   ;;  %v2583_v50 = vld [vmem:[%s3362_s1 + $0x180] sm:$0xff]  }
  0x1e   : > { %2252 = vmatpush3.bf16.msra.mxu1 %v2541_v15  ;;  %2189 = vmatprep.subr.bf16.mxu0 %v2542_v16  ;;  %v2573_v43 = vld [vmem:[%s3362_s1 + $0x108] sm:$0xff]   ;;  %v2578_v48 = vld [vmem:[%s3361_s0 + $0x90] ss:$36 sps:$4 sm:$0xff]   ;;  %v2579_v51 = vld [vmem:[%s3361_s0 + $0x98] ss:$36 sps:$4 sm:$0xff]  }
  0x1f   : > { %2253 = vmatprep.subr.bf16.mxu1 %v2543_v17  ;;  %v2582_v49 = vld [vmem:[%s3362_s1 + $0x110] sm:$0xff]   ;;  %v2584_v52 = vld [vmem:[%s3361_s0 + $0xdc] ss:$36 sps:$4 sm:$0xff]   ;;  %v2586_v53 = vld [vmem:[%s3361_s0 + $0xe4] ss:$36 sps:$4 sm:$0xff]  }
  0x20   : > { %v2590_v54 = vld [vmem:[%s3362_s1 + $0x158] sm:$0xff]   ;;  %v2591_v55 = vld [vmem:[%s3362_s1 + $0x1c8] sm:$0xff]   ;;  %v2589_v59 = vld [vmem:[%s3361_s0 + $0xe0] ss:$36 sps:$4 sm:$0xff]  }
  0x21   : > { %2190 = vmatpush3.bf16.msra.mxu0 %v2544_v18  ;;  %v2592_v56 = vld [vmem:[%s3362_s1 + $0x118] sm:$0xff]   ;;  %v2593_v57 = vld [vmem:[%s3362_s1 + $0x188] sm:$0xff]   ;;  %v2600_v62 = vld [vmem:[%s3362_s1 + $0x160] sm:$0xff]  }
  0x22   : > { %2254 = vmatpush3.bf16.msra.mxu1 %v2545_v19  ;;  %2191 = vmatprep.subr.bf16.mxu0 %v2546_v20  ;;  %v2588_v58 = vld [vmem:[%s3361_s0 + $0xd8] ss:$36 sps:$4 sm:$0xff]   ;;  %v2594_v60 = vld [vmem:[%s3361_s0 + $0x124] ss:$36 sps:$4 sm:$0xff]   ;;  %v2596_v61 = vld [vmem:[%s3361_s0 + $0x12c] ss:$36 sps:$4 sm:$0xff]  }
  0x23   : > { %2255 = vmatprep.subr.bf16.mxu1 %v2547_v21  ;;  %v2601_v63 = vld [vmem:[%s3362_s1 + $0x1d0] sm:$0xff]   ;;  %v2602_v0 = vld [vmem:[%s3362_s1 + $0x120] sm:$0xff]   ;;  %v2599_v3 = vld [vmem:[%s3361_s0 + $0x128] ss:$36 sps:$4 sm:$0xff]  }
  0x24   : > { %v2603_v1 = vld [vmem:[%s3362_s1 + $0x190] sm:$0xff]   ;;  %v2598_v2 = vld [vmem:[%s3361_s0 + $0x120] ss:$36 sps:$4 sm:$0xff]   ;;  %v2610_v6 = vld [vmem:[%s3362_s1 + $0x168] sm:$0xff]  }
  0x25   : > { %2192 = vmatpush3.bf16.msra.mxu0 %v2548_v22  ;;  %v2604_v4 = vld [vmem:[%s3361_s0 + $0x16c] ss:$36 sps:$4 sm:$0xff]   ;;  %v2606_v5 = vld [vmem:[%s3361_s0 + $0x174] ss:$36 sps:$4 sm:$0xff]   ;;  %v2616_v14 = vld [vmem:[%s3361_s0 + $0x1bc] ss:$36 sps:$4 sm:$0xff]  }
  0x26   : > { %2256 = vmatpush3.bf16.msra.mxu1 %v2549_v23  ;;  %2193 = vmatprep.subr.bf16.mxu0 %v2550_v24  ;;  %v2611_v7 = vld [vmem:[%s3362_s1 + $0x1d8] sm:$0xff]   ;;  %v2612_v8 = vld [vmem:[%s3362_s1 + $0x128] sm:$0xff]   ;;  %v2609_v11 = vld [vmem:[%s3361_s0 + $0x170] ss:$36 sps:$4 sm:$0xff]  }
  0x27   : > { %2257 = vmatprep.subr.bf16.mxu1 %v2551_v25  ;;  %v2613_v9 = vld [vmem:[%s3362_s1 + $0x198] sm:$0xff]   ;;  %v2608_v10 = vld [vmem:[%s3361_s0 + $0x168] ss:$36 sps:$4 sm:$0xff]   ;;  %v2620_v13 = vld [vmem:[%s3362_s1 + $0x170] sm:$0xff]  }
  0x28   : > { %v2614_v12 = vld [vmem:[%s3361_s0 + $0x1b4] ss:$36 sps:$4 sm:$0xff]   ;;  %v2621_v15 = vld [vmem:[%s3362_s1 + $0x1e0] sm:$0xff]   ;;  %v2624_v18 = vld [vmem:[%s3362_s1 + $0x1e8] sm:$0xff]  }
  0x29   : > { %2194 = vmatpush3.bf16.msra.mxu0 %v2552_v26  ;;  %v2622_v16 = vld [vmem:[%s3362_s1 + $0x130] sm:$0xff]   ;;  %v2623_v17 = vld [vmem:[%s3362_s1 + $0x1a0] sm:$0xff]   ;;  %v2625_v19 = vld [vmem:[%s3362_s1 + $0x1a8] sm:$0xff]  }
  0x2a   : > { %2258 = vmatpush3.bf16.msra.mxu1 %v2553_v27  ;;  %2195 = vmatprep.subr.bf16.mxu0 %v2554_v28  ;;  %v2618_v20 = vld [vmem:[%s3361_s0 + $0x1b0] ss:$36 sps:$4 sm:$0xff]   ;;  %v2619_v21 = vld [vmem:[%s3361_s0 + $0x1b8] ss:$36 sps:$4 sm:$0xff]   ;;  %v2628_v23 = vld [vmem:[%s3361_s0 + $0x204] ss:$36 sps:$4 sm:$0xff]  }
  0x2b   : > { %2259 = vmatprep.subr.bf16.mxu1 %v2555_v29  ;;  %v2626_v22 = vld [vmem:[%s3361_s0 + $0x1fc] ss:$36 sps:$4 sm:$0xff]   ;;  %v2633_v25 = vld [vmem:[%s3362_s1 + $0x1f0] sm:$0xff]  }
  0x2c   : > { %v2632_v24 = vld [vmem:[%s3362_s1 + $0x178] sm:$0xff]   ;;  %v2635_v27 = vld [vmem:[%s3362_s1 + $0x1b0] sm:$0xff]  }
  0x2d   : > { %2196 = vmatpush3.bf16.msra.mxu0 %v2556_v30  ;;  %v2634_v26 = vld [vmem:[%s3362_s1 + $0x138] sm:$0xff]   ;;  %v2631_v30 = vld [vmem:[%s3361_s0 + $0x200] ss:$36 sps:$4 sm:$0xff]   ;;  %v2638_v35 = vld [vmem:[%s3361_s0 + $0x10] ss:$36 sps:$4 sm:$0xff]  }
  0x2e   : > { %2260 = vmatpush3.bf16.msra.mxu1 %v2557_v31  ;;  %2309 = vmatprep.subr.bf16.mxu0 %v2564_v36  ;;  %v2636_v28 = vld [vmem:[%s3362_s1 + $0x1f8] sm:$0xff]  }
  0x2f   : > { %2373 = vmatprep.subr.bf16.mxu1 %v2581_v47  ;;  %v2630_v29 = vld [vmem:[%s3361_s0 + $0x1f8] ss:$36 sps:$4 sm:$0xff]   ;;  %v2656_v47 = vld [vmem:[%s3361_s0 + $0xa0] ss:$36 sps:$4 sm:$0xff]  }
  0x30   : > { %1303 = vmatmul.mubr.bf16.vlgmr.msra.gmra.mrb[0].mxu0 %v2558_v32  ;;  %v2637_v31 = vld [vmem:[%s3362_s1 + $0x1b8] sm:$0xff]   ;;  %v2644_v32 = vld [vmem:[%s3362_s1 + $0x200] sm:$0xff]  }
  0x31   : > { %1400 = vmatmul.mubr.bf16.vlgmr.msra.gmra.mrb[0].mxu1 %v2561_v34  ;;  %2310 = vmatpush3.bf16.msra.mxu0 %v2565_v37  ;;  %v2640_v33 = vld [vmem:[%s3361_s0 + $0x14] ss:$36 sps:$4 sm:$0xff]   ;;  %v2643_v34 = vld [vmem:[%s3361_s0 + $0x1c] ss:$36 sps:$4 sm:$0xff]  }
  0x32   : > { %1310 = vmatprep.mubr.bf16.mxu0 %v2566_v38  ;;  %1407 = vmatprep.mubr.bf16.mxu1 %v2568_v39  ;;  %v2641_v36 = vld [vmem:[%s3361_s0 + $0x18] ss:$36 sps:$4 sm:$0xff]   ;;  %v2647_v38 = vld [vmem:[%s3361_s0 + $0x64] ss:$36 sps:$4 sm:$0xff]  }
  0x33   : > { %2311 = vmatprep.subr.bf16.mxu0 %v2572_v42  ;;  %2374 = vmatpush3.bf16.msra.mxu1 %v2583_v50  ;;  %v2645_v37 = vld [vmem:[%s3361_s0 + $0x5c] ss:$36 sps:$4 sm:$0xff]   ;;  %v2651_v39 = vld [vmem:[%s3362_s1 + $0x208] sm:$0xff]   ;;  %v2661_v50 = vld [vmem:[%s3361_s0 + $0xf4] ss:$36 sps:$4 sm:$0xff]  }
  0x34   : > { %2375 = vmatprep.subr.bf16.mxu1 %v2591_v55  ;;  %v2650_v42 = vld [vmem:[%s3361_s0 + $0x60] ss:$36 sps:$4 sm:$0xff]   ;;  %v2666_v55 = vld [vmem:[%s3361_s0 + $0x134] ss:$36 sps:$4 sm:$0xff]  }
  0x35   : > { %2312 = vmatpush3.bf16.msra.mxu0 %v2573_v43  ;;  %v2652_v43 = vld [vmem:[%s3361_s0 + $0xa4] ss:$36 sps:$4 sm:$0xff]  }
  0x36   : > { %2313 = vmatprep.subr.bf16.mxu0 %v2580_v46  ;;  %v2672_v46 = vld [vmem:[%s3362_s1 + $0x220] sm:$0xff]  }
  0x37   : > { %2376 = vmatpush3.bf16.msra.mxu1 %v2593_v57  ;;  %v2693_v57 = vld [vmem:[%s3362_s1 + $0x238] sm:$0xff]  }
  0x38   : > { %1311 = vmatmul.mubr.bf16.gmra.mrb[4].mxu0 %v2570_v40  ;;  %2377 = vmatprep.subr.bf16.mxu1 %v2601_v63  ;;  %v2658_v40 = vld [vmem:[%s3362_s1 + $0x210] sm:$0xff]   ;;  %v2678_v63 = vld [vmem:[%s3361_s0 + $0x180] ss:$36 sps:$4 sm:$0xff]  }
  0x39   : > { %1408 = vmatmul.mubr.bf16.gmra.mrb[4].mxu1 %v2571_v41  ;;  %1318 = vmatprep.mubr.bf16.mxu0 %v2574_v44  ;;  %v2649_v41 = vld [vmem:[%s3361_s0 + $0x58] ss:$36 sps:$4 sm:$0xff]   ;;  %v2654_v44 = vld [vmem:[%s3361_s0 + $0xac] ss:$36 sps:$4 sm:$0xff]  }
  0x3a   : > { %1415 = vmatprep.mubr.bf16.mxu1 %v2576_v45  ;;  %2314 = vmatpush3.bf16.msra.mxu0 %v2582_v49  ;;  %v2665_v45 = vld [vmem:[%s3362_s1 + $0x218] sm:$0xff]   ;;  %v2659_v49 = vld [vmem:[%s3361_s0 + $0xec] ss:$36 sps:$4 sm:$0xff]  }
  0x3b   : > { %2315 = vmatprep.subr.bf16.mxu0 %v2590_v54  ;;  %2378 = vmatpush3.bf16.msra.mxu1 %v2603_v1  ;;  %v2664_v54 = vld [vmem:[%s3361_s0 + $0xf0] ss:$36 sps:$4 sm:$0xff]  }
  0x3c   : > { %2379 = vmatprep.subr.bf16.mxu1 %v2611_v7  ;;  %v2682_v1 = vld [vmem:[%s3361_s0 + $0x1cc] ss:$36 sps:$4 sm:$0xff]  }
  0x3d   : > { %v2692_v7 = vld [vmem:[%s3361_s0 + $0x210] ss:$36 sps:$4 sm:$0xff]  }
  0x3e   : > { %2316 = vmatpush3.bf16.msra.mxu0 %v2592_v56  ;;  %v2668_v56 = vld [vmem:[%s3361_s0 + $0x13c] ss:$36 sps:$4 sm:$0xff]  }
  0x3f   : > { %2317 = vmatprep.subr.bf16.mxu0 %v2600_v62  ;;  %2380 = vmatpush3.bf16.msra.mxu1 %v2613_v9  ;;  %v2677_v62 = vld [vmem:[%s3361_s0 + $0x178] ss:$36 sps:$4 sm:$0xff]   ;;  %v2695_v9 = vld [vmem:[%s3361_s0 + $0x140] ss:$36 sps:$4 sm:$0xff]  }
  0x40   : > { %1319 = vmatmul.mubr.bf16.gmra.mrb[8].mxu0 %v2578_v48  ;;  %2381 = vmatprep.subr.bf16.mxu1 %v2621_v15  ;;  %v2657_v48 = vld [vmem:[%s3361_s0 + $0xa8] ss:$36 sps:$4 sm:$0xff]   ;;  %v2701_v15 = vld [vmem:[%s3361_s0 + $0x218] ss:$36 sps:$4 sm:$0xff]  }
  0x41   : > { %1416 = vmatmul.mubr.bf16.gmra.mrb[8].mxu1 %v2579_v51  ;;  %1326 = vmatprep.mubr.bf16.mxu0 %v2584_v52  ;;  %v2679_v51 = vld [vmem:[%s3362_s1 + $0x228] sm:$0xff]  }
  0x42   : > { %1423 = vmatprep.mubr.bf16.mxu1 %v2586_v53  ;;  %2318 = vmatpush3.bf16.msra.mxu0 %v2602_v0  ;;  %v2663_v52 = vld [vmem:[%s3361_s0 + $0xe8] ss:$36 sps:$4 sm:$0xff]   ;;  %v2686_v53 = vld [vmem:[%s3362_s1 + $0x230] sm:$0xff]  }
  0x43   : > { %2319 = vmatprep.subr.bf16.mxu0 %v2610_v6  ;;  %2382 = vmatpush3.bf16.msra.mxu1 %v2623_v17  ;;  %v2680_v0 = vld [vmem:[%s3361_s0 + $0x1c4] ss:$36 sps:$4 sm:$0xff]  }
  0x44   : > { %2383 = vmatprep.subr.bf16.mxu1 %v2624_v18  ;;  %v2691_v6 = vld [vmem:[%s3361_s0 + $0x208] ss:$36 sps:$4 sm:$0xff]  }
  0x46   : > { %2320 = vmatpush3.bf16.msra.mxu0 %v2612_v8  ;;  %v2694_v8 = vld [vmem:[%s3361_s0 + $0x20] ss:$36 sps:$4 sm:$0xff]  }
  0x47   : > { %2321 = vmatprep.subr.bf16.mxu0 %v2620_v13  ;;  %2384 = vmatpush3.bf16.msra.mxu1 %v2625_v19  ;;  %v2699_v13 = vld [vmem:[%s3361_s0 + $0x1d0] ss:$36 sps:$4 sm:$0xff]  }
  0x48   : > { %1327 = vmatmul.mubr.bf16.gmra.mrb[12].mxu0 %v2588_v58  ;;  %2385 = vmatprep.subr.bf16.mxu1 %v2633_v25  ;;  %v2670_v58 = vld [vmem:[%s3361_s0 + $0x130] ss:$36 sps:$4 sm:$0xff]  }
  0x49   : > { %1424 = vmatmul.mubr.bf16.gmra.mrb[12].mxu1 %v2589_v59  ;;  %1334 = vmatprep.mubr.bf16.mxu0 %v2594_v60  ;;  %v2671_v59 = vld [vmem:[%s3361_s0 + $0x138] ss:$36 sps:$4 sm:$0xff]  }
  0x4a   : > { %1431 = vmatprep.mubr.bf16.mxu1 %v2596_v61  ;;  %2322 = vmatpush3.bf16.msra.mxu0 %v2622_v16  ;;  %v2673_v60 = vld [vmem:[%s3361_s0 + $0x17c] ss:$36 sps:$4 sm:$0xff]   ;;  %v2675_v61 = vld [vmem:[%s3361_s0 + $0x184] ss:$36 sps:$4 sm:$0xff]  }
  0x4b   : > { %2323 = vmatprep.subr.bf16.mxu0 %v2632_v24  ;;  %2386 = vmatpush3.bf16.msra.mxu1 %v2635_v27 }
  0x4c   : > { %2387 = vmatprep.subr.bf16.mxu1 %v2636_v28 }
  0x4e   : > { %2324 = vmatpush3.bf16.msra.mxu0 %v2634_v26 }
  0x4f   : > { %2453 = vmatprep.subr.bf16.mxu0 %v2644_v32  ;;  %2388 = vmatpush3.bf16.msra.mxu1 %v2637_v31 }
  0x50   : > { %1335 = vmatmul.mubr.bf16.gmra.mrb[16].mxu0 %v2598_v2  ;;  %2485 = vmatprep.subr.bf16.mxu1 %v2644_v32  ;;  %v2684_v2 = vld [vmem:[%s3361_s0 + $0x1c0] ss:$36 sps:$4 sm:$0xff]  }
  0x51   : > { %1432 = vmatmul.mubr.bf16.gmra.mrb[16].mxu1 %v2599_v3  ;;  %1342 = vmatprep.mubr.bf16.mxu0 %v2604_v4  ;;  %v2685_v3 = vld [vmem:[%s3361_s0 + $0x1c8] ss:$36 sps:$4 sm:$0xff]  }
  0x52   : > { %1439 = vmatprep.mubr.bf16.mxu1 %v2606_v5  ;;  %v2687_v4 = vld [vmem:[%s3361_s0 + $0x20c] ss:$36 sps:$4 sm:$0xff]   ;;  %v2689_v5 = vld [vmem:[%s3361_s0 + $0x214] ss:$36 sps:$4 sm:$0xff]  }
  0x58   : > { %1343 = vmatmul.mubr.bf16.gmra.mrb[20].mxu0 %v2608_v10  ;;  %v2696_v10 = vld [vmem:[%s3361_s0 + $0x68] ss:$36 sps:$4 sm:$0xff]  }
  0x59   : > { %1440 = vmatmul.mubr.bf16.gmra.mrb[20].mxu1 %v2609_v11  ;;  %1350 = vmatprep.mubr.bf16.mxu0 %v2614_v12  ;;  %v2697_v11 = vld [vmem:[%s3361_s0 + $0x188] ss:$36 sps:$4 sm:$0xff]   ;;  %v2698_v12 = vld [vmem:[%s3361_s0 + $0xb0] ss:$36 sps:$4 sm:$0xff]  }
  0x5a   : > { %1447 = vmatprep.mubr.bf16.mxu1 %v2616_v14  ;;  %v2700_v14 = vld [vmem:[%s3361_s0 + $0xf8] ss:$36 sps:$4 sm:$0xff]  }
  0x60   : > { %1351 = vmatmul.mubr.bf16.gmra.mrb[24].mxu0 %v2618_v20 }
  0x61   : > { %1448 = vmatmul.mubr.bf16.gmra.mrb[24].mxu1 %v2619_v21  ;;  %1358 = vmatprep.mubr.bf16.mxu0 %v2626_v22 }
  0x62   : > { %1455 = vmatprep.mubr.bf16.mxu1 %v2628_v23 }
  0x68   : > { %1359 = vmatmul.mubr.bf16.gmra.mrb[28].mxu0 %v2630_v29 }
  0x69   : > { %1456 = vmatmul.mubr.bf16.gmra.mrb[28].mxu1 %v2631_v30  ;;  %1496 = vmatprep.mubr.bf16.mxu0 %v2640_v33 }
  0x6a   : > { %1593 = vmatprep.mubr.bf16.mxu1 %v2643_v34 }
  0x70   : > { %1497 = vmatmul.mubr.bf16.vlgmr.msra.gmra.mrb[32].mxu0 %v2638_v35 }
  0x71   : > { %1594 = vmatmul.mubr.bf16.vlgmr.msra.gmra.mrb[32].mxu1 %v2641_v36  ;;  %2454 = vmatpush3.bf16.msra.mxu0 %v2644_v32 }
  0x72   : > { %1504 = vmatprep.mubr.bf16.mxu0 %v2645_v37  ;;  %1601 = vmatprep.mubr.bf16.mxu1 %v2647_v38 }
  0x73   : > { %2455 = vmatprep.subr.bf16.mxu0 %v2651_v39  ;;  %2493 = vmatpush3.bf16.msra.mxu1 %v2644_v32 }
  0x74   : > { %2486 = vmatprep.subr.bf16.mxu1 %v2651_v39 }
  0x75   : > { %2456 = vmatpush3.bf16.msra.mxu0 %v2651_v39 }
  0x76   : > { %2457 = vmatprep.subr.bf16.mxu0 %v2658_v40 }
  0x77   : > { %2494 = vmatpush3.bf16.msra.mxu1 %v2651_v39 }
  0x78   : > { %1505 = vmatmul.mubr.bf16.gmra.mrb[36].mxu0 %v2649_v41  ;;  %2487 = vmatprep.subr.bf16.mxu1 %v2658_v40 }
  0x79   : > { %1602 = vmatmul.mubr.bf16.gmra.mrb[36].mxu1 %v2650_v42  ;;  %1512 = vmatprep.mubr.bf16.mxu0 %v2652_v43 }
  0x7a   : > { %1609 = vmatprep.mubr.bf16.mxu1 %v2654_v44  ;;  %2458 = vmatpush3.bf16.msra.mxu0 %v2658_v40 }
  0x7b   : > { %2459 = vmatprep.subr.bf16.mxu0 %v2665_v45  ;;  %2495 = vmatpush3.bf16.msra.mxu1 %v2658_v40 }
  0x7c   : > { %2488 = vmatprep.subr.bf16.mxu1 %v2665_v45 }
  0x7e   : > { %2460 = vmatpush3.bf16.msra.mxu0 %v2665_v45 }
  0x7f   : > { %2461 = vmatprep.subr.bf16.mxu0 %v2672_v46  ;;  %2496 = vmatpush3.bf16.msra.mxu1 %v2665_v45 }
  0x80   : > { %1513 = vmatmul.mubr.bf16.gmra.mrb[40].mxu0 %v2656_v47  ;;  %2489 = vmatprep.subr.bf16.mxu1 %v2672_v46 }
  0x81   : > { %1610 = vmatmul.mubr.bf16.gmra.mrb[40].mxu1 %v2657_v48  ;;  %1520 = vmatprep.mubr.bf16.mxu0 %v2659_v49 }
  0x82   : > { %1617 = vmatprep.mubr.bf16.mxu1 %v2661_v50  ;;  %2462 = vmatpush3.bf16.msra.mxu0 %v2672_v46 }
  0x83   : > { %2463 = vmatprep.subr.bf16.mxu0 %v2679_v51  ;;  %2497 = vmatpush3.bf16.msra.mxu1 %v2672_v46 }
  0x84   : > { %2490 = vmatprep.subr.bf16.mxu1 %v2679_v51 }
  0x86   : > { %2464 = vmatpush3.bf16.msra.mxu0 %v2679_v51 }
  0x87   : > { %2465 = vmatprep.subr.bf16.mxu0 %v2686_v53  ;;  %2498 = vmatpush3.bf16.msra.mxu1 %v2679_v51 }
  0x88   : > { %1521 = vmatmul.mubr.bf16.gmra.mrb[44].mxu0 %v2663_v52  ;;  %2491 = vmatprep.subr.bf16.mxu1 %v2686_v53 }
  0x89   : > { %1618 = vmatmul.mubr.bf16.gmra.mrb[44].mxu1 %v2664_v54  ;;  %1528 = vmatprep.mubr.bf16.mxu0 %v2666_v55 }
  0x8a   : > { %1625 = vmatprep.mubr.bf16.mxu1 %v2668_v56  ;;  %2466 = vmatpush3.bf16.msra.mxu0 %v2686_v53 }
  0x8b   : > { %2467 = vmatprep.subr.bf16.mxu0 %v2693_v57  ;;  %2499 = vmatpush3.bf16.msra.mxu1 %v2686_v53 }
  0x8c   : > { %2492 = vmatprep.subr.bf16.mxu1 %v2693_v57 }
  0x8e   : > { %2468 = vmatpush3.bf16.msra.mxu0 %v2693_v57 }
  0x8f   : > { %2500 = vmatpush3.bf16.msra.mxu1 %v2693_v57 }
  0x90   : > { %1529 = vmatmul.mubr.bf16.gmra.mrb[48].mxu0 %v2670_v58 }
  0x91   : > { %1626 = vmatmul.mubr.bf16.gmra.mrb[48].mxu1 %v2671_v59  ;;  %1536 = vmatprep.mubr.bf16.mxu0 %v2673_v60  ;;  %v2728_v59 = vmov 0.0  }
  0x92   : > { %1633 = vmatprep.mubr.bf16.mxu1 %v2675_v61  ;;  %245 = vst [vmem:[#allocation3] sm:$0xff] %v2728_v59 }
  0x98   : > { %1537 = vmatmul.mubr.bf16.gmra.mrb[52].mxu0 %v2677_v62 }
  0x99   : > { %1634 = vmatmul.mubr.bf16.gmra.mrb[52].mxu1 %v2678_v63  ;;  %1544 = vmatprep.mubr.bf16.mxu0 %v2680_v0 }
  0x9a   : > { %1641 = vmatprep.mubr.bf16.mxu1 %v2682_v1 }
  0xa0   : > { %1545 = vmatmul.mubr.bf16.gmra.mrb[56].mxu0 %v2684_v2 }
  0xa1   : > { %1642 = vmatmul.mubr.bf16.gmra.mrb[56].mxu1 %v2685_v3  ;;  %1552 = vmatprep.mubr.bf16.mxu0 %v2687_v4 }
  0xa2   : > { %1649 = vmatprep.mubr.bf16.mxu1 %v2689_v5 }
  0xa8   : > { %1553 = vmatmul.mubr.bf16.gmra.mrb[60].mxu0 %v2691_v6 }
  0xa9   : > { %1650 = vmatmul.mubr.bf16.gmra.mrb[60].mxu1 %v2692_v7  ;;  %2469 = vmatprep.mubr.bf16.mxu0 %v2694_v8 }
  0xaa   : > { %2477 = vmatprep.mubr.bf16.mxu1 %v2695_v9 }
  0xb0   : > { %2470 = vmatmul.mubr.bf16.vlgmr.msra.gmra.mrb[64].mxu0 %v2696_v10 }
  0xb1   : > { %2478 = vmatmul.mubr.bf16.vlgmr.msra.gmra.mrb[64].mxu1 %v2697_v11  ;;  %2473 = vmatprep.mubr.bf16.mxu0 %v2698_v12 }
  0xb2   : > { %2481 = vmatprep.mubr.bf16.mxu1 %v2699_v13 }
  0xb8   : > { %2474 = vmatmul.mubr.bf16.gmra.mrb[68].mxu0 %v2700_v14 }
  0xb9   : > { %2482 = vmatmul.mubr.bf16.gmra.mrb[68].mxu1 %v2701_v15 }
 0x103   : > { %v2197_v16 = vpop.f32.mrb[0].mxu0 }
 0x104   : > { %v2261_v17 = vpop.f32.mrb[0].mxu1  ;;  %v2198_v18 = vpop.f32.mrb[1].mxu0 }
 0x105   : > { %v2199_v19 = vadd.f32 %v2198_v18, %v2197_v16  ;;  %v2262_v20 = vpop.f32.mrb[1].mxu1  ;;  %v2200_v21 = vpop.f32.mrb[2].mxu0 }
 0x106   : > { %v2263_v22 = vadd.f32 %v2262_v20, %v2261_v17  ;;  %v2264_v23 = vpop.f32.mrb[2].mxu1  ;;  %v2201_v24 = vpop.f32.mrb[3].mxu0 }
 0x107   : > { %v2202_v25 = vadd.f32 %v2201_v24, %v2200_v21  ;;  %v2265_v26 = vpop.f32.mrb[3].mxu1 }
 0x108   : > { %v3207_v27 = vadd.f32 %v2263_v22, %v2199_v19  ;;  %v2266_v28 = vadd.f32 %v2265_v26, %v2264_v23 }
 0x10a   : > { %v3209_v29 = vadd.f32 %v2266_v28, %v2202_v25 }
 0x10b   : > { %v2203_v30 = vpop.f32.mrb[4].mxu0 }
 0x10c   : > { %v2267_v31 = vpop.f32.mrb[4].mxu1  ;;  %v2204_v32 = vpop.f32.mrb[5].mxu0 }
 0x10d   : > { %v2205_v33 = vadd.f32 %v2204_v32, %v2203_v30  ;;  %v2268_v34 = vpop.f32.mrb[5].mxu1  ;;  %v2206_v35 = vpop.f32.mrb[6].mxu0 }
 0x10e   : > { %v2269_v36 = vadd.f32 %v2268_v34, %v2267_v31  ;;  %v2270_v37 = vpop.f32.mrb[6].mxu1  ;;  %v2207_v38 = vpop.f32.mrb[7].mxu0 }
 0x10f   : > { %v2208_v39 = vadd.f32 %v2207_v38, %v2206_v35  ;;  %v2271_v40 = vpop.f32.mrb[7].mxu1 }
 0x110   : > { %v3211_v41 = vadd.f32 %v2269_v36, %v2205_v33  ;;  %v2272_v42 = vadd.f32 %v2271_v40, %v2270_v37 }
 0x112   : > { %v3213_v43 = vadd.f32 %v2272_v42, %v2208_v39 }
 0x113   : > { %v2209_v44 = vpop.f32.mrb[8].mxu0 }
 0x114   : > { %v2273_v45 = vpop.f32.mrb[8].mxu1  ;;  %v2210_v46 = vpop.f32.mrb[9].mxu0 }
 0x115   : > { %v2211_v47 = vadd.f32 %v2210_v46, %v2209_v44  ;;  %v2274_v48 = vpop.f32.mrb[9].mxu1  ;;  %v2212_v49 = vpop.f32.mrb[10].mxu0 }
 0x116   : > { %v2275_v50 = vadd.f32 %v2274_v48, %v2273_v45  ;;  %v2276_v51 = vpop.f32.mrb[10].mxu1  ;;  %v2213_v52 = vpop.f32.mrb[11].mxu0 }
 0x117   : > { %v2214_v53 = vadd.f32 %v2213_v52, %v2212_v49  ;;  %v2277_v54 = vpop.f32.mrb[11].mxu1 }
 0x118   : > { %v3215_v55 = vadd.f32 %v2275_v50, %v2211_v47  ;;  %v2278_v56 = vadd.f32 %v2277_v54, %v2276_v51 }
 0x11a   : > { %v3217_v57 = vadd.f32 %v2278_v56, %v2214_v53 }
 0x11b   : > { %v2215_v58 = vpop.f32.mrb[12].mxu0 }
 0x11c   : > { %v2279_v60 = vpop.f32.mrb[12].mxu1  ;;  %v2216_v61 = vpop.f32.mrb[13].mxu0 }
 0x11d   : > { %v2217_v62 = vadd.f32 %v2216_v61, %v2215_v58  ;;  %v2280_v63 = vpop.f32.mrb[13].mxu1  ;;  %v2218_v0 = vpop.f32.mrb[14].mxu0 }
 0x11e   : > { %v2281_v1 = vadd.f32 %v2280_v63, %v2279_v60  ;;  %v2282_v2 = vpop.f32.mrb[14].mxu1  ;;  %v2219_v3 = vpop.f32.mrb[15].mxu0 }
 0x11f   : > { %v2220_v4 = vadd.f32 %v2219_v3, %v2218_v0  ;;  %v2283_v5 = vpop.f32.mrb[15].mxu1 }
 0x120   : > { %v3219_v6 = vadd.f32 %v2281_v1, %v2217_v62  ;;  %v2284_v7 = vadd.f32 %v2283_v5, %v2282_v2 }
 0x122   : > { %v3221_v8 = vadd.f32 %v2284_v7, %v2220_v4 }
 0x123   : > { %v2221_v9 = vpop.f32.mrb[16].mxu0 }
 0x124   : > { %v2285_v10 = vpop.f32.mrb[16].mxu1  ;;  %v2222_v11 = vpop.f32.mrb[17].mxu0 }
 0x125   : > { %v2223_v12 = vadd.f32 %v2222_v11, %v2221_v9  ;;  %v2286_v13 = vpop.f32.mrb[17].mxu1  ;;  %v2224_v14 = vpop.f32.mrb[18].mxu0 }
 0x126   : > { %v2287_v15 = vadd.f32 %v2286_v13, %v2285_v10  ;;  %v2288_v16 = vpop.f32.mrb[18].mxu1  ;;  %v2225_v17 = vpop.f32.mrb[19].mxu0 }
 0x127   : > { %v2226_v18 = vadd.f32 %v2225_v17, %v2224_v14  ;;  %v2289_v19 = vpop.f32.mrb[19].mxu1 }
 0x128   : > { %v3223_v20 = vadd.f32 %v2287_v15, %v2223_v12  ;;  %v2290_v21 = vadd.f32 %v2289_v19, %v2288_v16 }
 0x12a   : > { %v3225_v22 = vadd.f32 %v2290_v21, %v2226_v18 }
 0x12b   : > { %v2227_v23 = vpop.f32.mrb[20].mxu0 }
 0x12c   : > { %v2291_v24 = vpop.f32.mrb[20].mxu1  ;;  %v2228_v25 = vpop.f32.mrb[21].mxu0 }
 0x12d   : > { %v2229_v26 = vadd.f32 %v2228_v25, %v2227_v23  ;;  %v2292_v28 = vpop.f32.mrb[21].mxu1  ;;  %v2230_v30 = vpop.f32.mrb[22].mxu0 }
 0x12e   : > { %v2293_v31 = vadd.f32 %v2292_v28, %v2291_v24  ;;  %v2294_v32 = vpop.f32.mrb[22].mxu1  ;;  %v2231_v33 = vpop.f32.mrb[23].mxu0 }
 0x12f   : > { %v2232_v34 = vadd.f32 %v2231_v33, %v2230_v30  ;;  %v2295_v35 = vpop.f32.mrb[23].mxu1 }
 0x130   : > { %v3227_v36 = vadd.f32 %v2293_v31, %v2229_v26  ;;  %v2296_v37 = vadd.f32 %v2295_v35, %v2294_v32 }
 0x132   : > { %v3229_v38 = vadd.f32 %v2296_v37, %v2232_v34 }
 0x133   : > { %v2233_v39 = vpop.f32.mrb[24].mxu0 }
 0x134   : > { %v2297_v40 = vpop.f32.mrb[24].mxu1  ;;  %v2234_v42 = vpop.f32.mrb[25].mxu0 }
 0x135   : > { %v2235_v44 = vadd.f32 %v2234_v42, %v2233_v39  ;;  %v2298_v45 = vpop.f32.mrb[25].mxu1  ;;  %v2236_v46 = vpop.f32.mrb[26].mxu0 }
 0x136   : > { %v2299_v47 = vadd.f32 %v2298_v45, %v2297_v40  ;;  %v2300_v48 = vpop.f32.mrb[26].mxu1  ;;  %v2237_v49 = vpop.f32.mrb[27].mxu0 }
 0x137   : > { %v2238_v50 = vadd.f32 %v2237_v49, %v2236_v46  ;;  %v2301_v51 = vpop.f32.mrb[27].mxu1 }
 0x138   : > { %v3231_v52 = vadd.f32 %v2299_v47, %v2235_v44  ;;  %v2302_v53 = vadd.f32 %v2301_v51, %v2300_v48 }
 0x13a   : > { %v3233_v54 = vadd.f32 %v2302_v53, %v2238_v50 }
 0x13b   : > { %v2239_v56 = vpop.f32.mrb[28].mxu0 }
 0x13c   : > { %v2303_v58 = vpop.f32.mrb[28].mxu1  ;;  %v2240_v59 = vpop.f32.mrb[29].mxu0 }
 0x13d   : > { %v2241_v60 = vadd.f32 %v2240_v59, %v2239_v56  ;;  %v2304_v61 = vpop.f32.mrb[29].mxu1  ;;  %v2242_v62 = vpop.f32.mrb[30].mxu0 }
 0x13e   : > { %v2305_v63 = vadd.f32 %v2304_v61, %v2303_v58  ;;  %v2306_v0 = vpop.f32.mrb[30].mxu1  ;;  %v2243_v1 = vpop.f32.mrb[31].mxu0 }
 0x13f   : > { %v2244_v2 = vadd.f32 %v2243_v1, %v2242_v62  ;;  %v2307_v3 = vpop.f32.mrb[31].mxu1 }
 0x140   : > { %v3235_v4 = vadd.f32 %v2305_v63, %v2241_v60  ;;  %v2308_v5 = vadd.f32 %v2307_v3, %v2306_v0 }
 0x142   : > { %v3237_v7 = vadd.f32 %v2308_v5, %v2244_v2 }
 0x143   : > { %v2325_v9 = vpop.f32.mrb[32].mxu0 }
 0x144   : > { %v2326_v10 = vpop.f32.mrb[33].mxu0  ;;  %v2389_v11 = vpop.f32.mrb[32].mxu1 }
 0x145   : > { %v2327_v12 = vadd.f32 %v2326_v10, %v2325_v9  ;;  %v2328_v13 = vpop.f32.mrb[34].mxu0  ;;  %v2390_v14 = vpop.f32.mrb[33].mxu1 }
 0x146   : > { %v2329_v15 = vpop.f32.mrb[35].mxu0  ;;  %v2391_v16 = vadd.f32 %v2390_v14, %v2389_v11  ;;  %v2392_v17 = vpop.f32.mrb[34].mxu1 }
 0x147   : > { %v1499_v18 = vadd.f32 %v2327_v12, %v3207_v27  ;;  %v2330_v19 = vadd.f32 %v2329_v15, %v2328_v13  ;;  %v2393_v21 = vpop.f32.mrb[35].mxu1 }
 0x148   : > { %v2394_v23 = vadd.f32 %v2393_v21, %v2392_v17 }
 0x149   : > { %v1502_v24 = vadd.f32 %v2330_v19, %v3209_v29  ;;  %v3241_v25 = vadd.f32 %v2391_v16, %v1499_v18 }
 0x14b   : > { %v2331_v26 = vpop.f32.mrb[36].mxu0  ;;  %v3243_v28 = vadd.f32 %v2394_v23, %v1502_v24 }
 0x14c   : > { %v2332_v30 = vpop.f32.mrb[37].mxu0  ;;  %v2395_v31 = vpop.f32.mrb[36].mxu1 }
 0x14d   : > { %v2333_v32 = vadd.f32 %v2332_v30, %v2331_v26  ;;  %v2334_v33 = vpop.f32.mrb[38].mxu0  ;;  %v2396_v34 = vpop.f32.mrb[37].mxu1 }
 0x14e   : > { %v2335_v35 = vpop.f32.mrb[39].mxu0  ;;  %v2397_v37 = vadd.f32 %v2396_v34, %v2395_v31  ;;  %v2398_v39 = vpop.f32.mrb[38].mxu1 }
 0x14f   : > { %v1507_v27 = vadd.f32 %v2333_v32, %v3211_v41  ;;  %v2336_v40 = vadd.f32 %v2335_v35, %v2334_v33  ;;  %v2399_v42 = vpop.f32.mrb[39].mxu1 }
 0x150   : > { %v2400_v44 = vadd.f32 %v2399_v42, %v2398_v39 }
 0x151   : > { %v1510_v29 = vadd.f32 %v2336_v40, %v3213_v43  ;;  %v3247_v45 = vadd.f32 %v2397_v37, %v1507_v27 }
 0x153   : > { %v2337_v46 = vpop.f32.mrb[40].mxu0  ;;  %v3249_v47 = vadd.f32 %v2400_v44, %v1510_v29 }
 0x154   : > { %v2338_v48 = vpop.f32.mrb[41].mxu0  ;;  %v2401_v49 = vpop.f32.mrb[40].mxu1 }
 0x155   : > { %v2339_v50 = vadd.f32 %v2338_v48, %v2337_v46  ;;  %v2340_v51 = vpop.f32.mrb[42].mxu0  ;;  %v2402_v53 = vpop.f32.mrb[41].mxu1 }
 0x156   : > { %v2341_v56 = vpop.f32.mrb[43].mxu0  ;;  %v2403_v58 = vadd.f32 %v2402_v53, %v2401_v49  ;;  %v2404_v59 = vpop.f32.mrb[42].mxu1 }
 0x157   : > { %v1515_v41 = vadd.f32 %v2339_v50, %v3215_v55  ;;  %v2342_v60 = vadd.f32 %v2341_v56, %v2340_v51  ;;  %v2405_v61 = vpop.f32.mrb[43].mxu1 }
 0x158   : > { %v2406_v62 = vadd.f32 %v2405_v61, %v2404_v59 }
 0x159   : > { %v1518_v43 = vadd.f32 %v2342_v60, %v3217_v57  ;;  %v3253_v63 = vadd.f32 %v2403_v58, %v1515_v41 }
 0x15b   : > { %v2343_v0 = vpop.f32.mrb[44].mxu0  ;;  %v3255_v1 = vadd.f32 %v2406_v62, %v1518_v43 }
 0x15c   : > { %v2344_v2 = vpop.f32.mrb[45].mxu0  ;;  %v2407_v3 = vpop.f32.mrb[44].mxu1 }
 0x15d   : > { %v2345_v5 = vadd.f32 %v2344_v2, %v2343_v0  ;;  %v2346_v9 = vpop.f32.mrb[46].mxu0  ;;  %v2408_v10 = vpop.f32.mrb[45].mxu1 }
 0x15e   : > { %v2347_v11 = vpop.f32.mrb[47].mxu0  ;;  %v2409_v12 = vadd.f32 %v2408_v10, %v2407_v3  ;;  %v2410_v13 = vpop.f32.mrb[46].mxu1 }
 0x15f   : > { %v1523_v55 = vadd.f32 %v2345_v5, %v3219_v6  ;;  %v2348_v14 = vadd.f32 %v2347_v11, %v2346_v9  ;;  %v2411_v15 = vpop.f32.mrb[47].mxu1 }
 0x160   : > { %v2412_v16 = vadd.f32 %v2411_v15, %v2410_v13 }
 0x161   : > { %v1526_v57 = vadd.f32 %v2348_v14, %v3221_v8  ;;  %v3259_v17 = vadd.f32 %v2409_v12, %v1523_v55 }
 0x163   : > { %v2349_v18 = vpop.f32.mrb[48].mxu0  ;;  %v3261_v19 = vadd.f32 %v2412_v16, %v1526_v57 }
 0x164   : > { %v2350_v21 = vpop.f32.mrb[49].mxu0  ;;  %v2413_v23 = vpop.f32.mrb[48].mxu1 }
 0x165   : > { %v2351_v24 = vadd.f32 %v2350_v21, %v2349_v18  ;;  %v2352_v26 = vpop.f32.mrb[50].mxu0  ;;  %v2414_v30 = vpop.f32.mrb[49].mxu1 }
 0x166   : > { %v2353_v31 = vpop.f32.mrb[51].mxu0  ;;  %v2415_v32 = vadd.f32 %v2414_v30, %v2413_v23  ;;  %v2416_v33 = vpop.f32.mrb[50].mxu1 }
 0x167   : > { %v1531_v6 = vadd.f32 %v2351_v24, %v3223_v20  ;;  %v2354_v34 = vadd.f32 %v2353_v31, %v2352_v26  ;;  %v2417_v35 = vpop.f32.mrb[51].mxu1 }
 0x168   : > { %v2418_v37 = vadd.f32 %v2417_v35, %v2416_v33 }
 0x169   : > { %v1534_v8 = vadd.f32 %v2354_v34, %v3225_v22  ;;  %v1628_v39 = vadd.f32 %v2415_v32, %v1531_v6 }
 0x16b   : > { %v2355_v27 = vpop.f32.mrb[52].mxu0  ;;  %v3265_v40 = vadd.f32 %v2418_v37, %v1534_v8 }
 0x16c   : > { %v2356_v42 = vpop.f32.mrb[53].mxu0  ;;  %v2419_v44 = vpop.f32.mrb[52].mxu1 }
 0x16d   : > { %v2357_v29 = vadd.f32 %v2356_v42, %v2355_v27  ;;  %v2358_v46 = vpop.f32.mrb[54].mxu0  ;;  %v2420_v48 = vpop.f32.mrb[53].mxu1 }
 0x16e   : > { %v2359_v49 = vpop.f32.mrb[55].mxu0  ;;  %v2421_v50 = vadd.f32 %v2420_v48, %v2419_v44  ;;  %v2422_v51 = vpop.f32.mrb[54].mxu1 }
 0x16f   : > { %v1539_v53 = vadd.f32 %v2357_v29, %v3227_v36  ;;  %v2360_v20 = vadd.f32 %v2359_v49, %v2358_v46  ;;  %v2423_v56 = vpop.f32.mrb[55].mxu1 }
 0x170   : > { %v2424_v58 = vadd.f32 %v2423_v56, %v2422_v51 }
 0x171   : > { %v1542_v59 = vadd.f32 %v2360_v20, %v3229_v38  ;;  %v1636_v22 = vadd.f32 %v2421_v50, %v1539_v53 }
 0x173   : > { %v2361_v41 = vpop.f32.mrb[56].mxu0  ;;  %v1639_v60 = vadd.f32 %v2424_v58, %v1542_v59 }
 0x174   : > { %v2362_v61 = vpop.f32.mrb[57].mxu0  ;;  %v2425_v62 = vpop.f32.mrb[56].mxu1 }
 0x175   : > { %v2363_v43 = vadd.f32 %v2362_v61, %v2361_v41  ;;  %v2364_v0 = vpop.f32.mrb[58].mxu0  ;;  %v2426_v2 = vpop.f32.mrb[57].mxu1 }
 0x176   : > { %v2365_v3 = vpop.f32.mrb[59].mxu0  ;;  %v2427_v5 = vadd.f32 %v2426_v2, %v2425_v62  ;;  %v2428_v9 = vpop.f32.mrb[58].mxu1 }
 0x177   : > { %v1547_v10 = vadd.f32 %v2363_v43, %v3231_v52  ;;  %v2366_v11 = vadd.f32 %v2365_v3, %v2364_v0  ;;  %v2429_v36 = vpop.f32.mrb[59].mxu1 }
 0x178   : > { %v2430_v12 = vadd.f32 %v2429_v36, %v2428_v9 }
 0x179   : > { %v1550_v13 = vadd.f32 %v2366_v11, %v3233_v54  ;;  %v1644_v55 = vadd.f32 %v2427_v5, %v1547_v10 }
 0x17b   : > { %v2367_v38 = vpop.f32.mrb[60].mxu0  ;;  %v3271_v14 = vadd.f32 %v2430_v12, %v1550_v13 }
 0x17c   : > { %v2368_v15 = vpop.f32.mrb[61].mxu0  ;;  %v2431_v16 = vpop.f32.mrb[60].mxu1 }
 0x17d   : > { %v2369_v57 = vadd.f32 %v2368_v15, %v2367_v38  ;;  %v2370_v18 = vpop.f32.mrb[62].mxu0  ;;  %v2432_v21 = vpop.f32.mrb[61].mxu1 }
 0x17e   : > { %v2371_v23 = vpop.f32.mrb[63].mxu0  ;;  %v2433_v24 = vadd.f32 %v2432_v21, %v2431_v16  ;;  %v2434_v26 = vpop.f32.mrb[62].mxu1 }
 0x17f   : > { %v1555_v30 = vadd.f32 %v2369_v57, %v3235_v4  ;;  %v2372_v52 = vadd.f32 %v2371_v23, %v2370_v18  ;;  %v2435_v31 = vpop.f32.mrb[63].mxu1 }
 0x180   : > { %v2436_v32 = vadd.f32 %v2435_v31, %v2434_v26 }
 0x181   : > { %v1558_v33 = vadd.f32 %v2372_v52, %v3237_v7  ;;  %v1652_v54 = vadd.f32 %v2433_v24, %v1555_v30 }
 0x183   : > { %v2471_v6 = vpop.f32.mrb[64].mxu0  ;;  %v1655_v34 = vadd.f32 %v2436_v32, %v1558_v33 }
 0x184   : > { %v1701_v35 = vadd.f32 %v2471_v6, %v3247_v45  ;;  %v2479_v37 = vpop.f32.mrb[64].mxu1  ;;  %v1692_v8 = vpop.f32.mrb[65].mxu0 }
 0x185   : > { %v3276_v27 = vadd.f32 %v2479_v37, %v1636_v22  ;;  %v1693_v42 = vadd.f32 %v1692_v8, %v3241_v25  ;;  %v1724_v44 = vpop.f32.mrb[65].mxu1  ;;  %v2472_v29 = vpop.f32.mrb[66].mxu0 }
 0x186   : > { %1758 = vst [vmem:[#allocation2 + $0x10] sm:$0xff] %v1701_v35  ;;  %v1725_v4 = vadd.f32 %v1724_v44, %v1628_v39  ;;  %v1704_v46 = vadd.f32 %v2472_v29, %v3249_v47  ;;  %v2480_v48 = vpop.f32.mrb[66].mxu1  ;;  %v1695_v49 = vpop.f32.mrb[67].mxu0  ;;  %v1799_v53 = vmul.f32 %v1701_v35, %v1701_v35 }
 0x187   : > { %1766 = vst [vmem:[#allocation2 + $0x50] sm:$0xff] %v3276_v27  ;;  %1756 = vst [vmem:[#allocation2] sm:$0xff] %v1693_v42  ;;  %v3281_v7 = vadd.f32 %v2480_v48, %v1639_v60  ;;  %v1696_v45 = vadd.f32 %v1695_v49, %v3243_v28  ;;  %v1727_v50 = vpop.f32.mrb[67].mxu1  ;;  %v1797_v51 = vmul.f32 %v1693_v42, %v1693_v42 }
 0x188   : > { %1764 = vst [vmem:[#allocation2 + $0x40] sm:$0xff] %v1725_v4  ;;  %1759 = vst [vmem:[#allocation2 + $0x18] sm:$0xff] %v1704_v46  ;;  %v1728_v25 = vadd.f32 %v1727_v50, %v3265_v40  ;;  %v1800_v59 = vmul.f32 %v1704_v46, %v1704_v46  ;;  %v1805_v24 = vmul.f32 %v1725_v4, %v1725_v4 }
 0x189   : > { %1767 = vst [vmem:[#allocation2 + $0x58] sm:$0xff] %v3281_v7  ;;  %1757 = vst [vmem:[#allocation2 + $0x8] sm:$0xff] %v1696_v45  ;;  %v1773_v39 = vadd.f32 %v1696_v45, %v1693_v42  ;;  %v1798_v47 = vmul.f32 %v1696_v45, %v1696_v45 }
 0x18a   : > { %1765 = vst [vmem:[#allocation2 + $0x48] sm:$0xff] %v1728_v25  ;;  %v1806_v52 = vmul.f32 %v1728_v25, %v1728_v25 }
 0x18b   : > { %v1774_v20 = vadd.f32 %v1773_v39, %v1701_v35  ;;  %v1813_v56 = vadd.f32 %v1798_v47, %v1797_v51  ;;  %v2475_v58 = vpop.f32.mrb[68].mxu0 }
 0x18c   : > { %v1717_v22 = vadd.f32 %v2475_v58, %v3259_v17  ;;  %v2483_v28 = vpop.f32.mrb[68].mxu1  ;;  %v1708_v41 = vpop.f32.mrb[69].mxu0 }
 0x18d   : > { %v1814_v60 = vadd.f32 %v1813_v56, %v1799_v53  ;;  %v1749_v61 = vadd.f32 %v2483_v28, %v1652_v54  ;;  %v1709_v40 = vadd.f32 %v1708_v41, %v3253_v63  ;;  %v1775_v62 = vadd.f32 %v1774_v20, %v1704_v46  ;;  %v1740_v43 = vpop.f32.mrb[69].mxu1  ;;  %v2476_v0 = vpop.f32.mrb[70].mxu0  ;;  %v1796_v41 = vld [vmem:[#allocation3 + $0x1] sm:$0x1] }
 0x18e   : > { %1762 = vst [vmem:[#allocation2 + $0x30] sm:$0xff] %v1717_v22  ;;  %v1741_v2 = vadd.f32 %v1740_v43, %v1644_v55  ;;  %v1720_v3 = vadd.f32 %v2476_v0, %v3261_v19  ;;  %v2484_v5 = vpop.f32.mrb[70].mxu1  ;;  %v1711_v9 = vpop.f32.mrb[71].mxu0  ;;  %v1803_v15 = vmul.f32 %v1717_v22, %v1717_v22  ;;  %v1808_v54 = vmul.f32 %v3281_v7, %v3281_v7 }
 0x18f   : > { %1770 = vst [vmem:[#allocation2 + $0x70] sm:$0xff] %v1749_v61  ;;  %1760 = vst [vmem:[#allocation2 + $0x20] sm:$0xff] %v1709_v40  ;;  %v1776_v10 = vadd.f32 %v1775_v62, %v1709_v40  ;;  %v1801_v11 = vmul.f32 %v1709_v40, %v1709_v40  ;;  %v1815_v17 = vadd.f32 %v1814_v60, %v1800_v59  ;;  %v1743_v36 = vpop.f32.mrb[71].mxu1  ;;  %v1772_v59 = vld [vmem:[#allocation3] sm:$0x1] }
 0x190   : > { %1768 = vst [vmem:[#allocation2 + $0x60] sm:$0xff] %v1741_v2  ;;  %1763 = vst [vmem:[#allocation2 + $0x38] sm:$0xff] %v1720_v3  ;;  %v1752_v12 = vadd.f32 %v2484_v5, %v1655_v34  ;;  %v1712_v63 = vadd.f32 %v1711_v9, %v3255_v1  ;;  %v1744_v38 = vadd.f32 %v1743_v36, %v3271_v14 }
 0x191   : > { %v1816_v13 = vadd.f32 %v1815_v17, %v1801_v11  ;;  %v1804_v18 = vmul.f32 %v1720_v3, %v1720_v3  ;;  %v1807_v14 = vmul.f32 %v3276_v27, %v3276_v27  ;;  %v1809_v35 = vmul.f32 %v1741_v2, %v1741_v2 }
 0x192   : > { %1771 = vst [vmem:[#allocation2 + $0x78] sm:$0xff] %v1752_v12  ;;  %1761 = vst [vmem:[#allocation2 + $0x28] sm:$0xff] %v1712_v63  ;;  %v1777_v55 = vadd.f32 %v1776_v10, %v1712_v63  ;;  %v1802_v19 = vmul.f32 %v1712_v63, %v1712_v63  ;;  %v1810_v44 = vmul.f32 %v1744_v38, %v1744_v38 }
 0x193   : > { %1769 = vst [vmem:[#allocation2 + $0x68] sm:$0xff] %v1744_v38  ;;  %v1812_v49 = vmul.f32 %v1752_v12, %v1752_v12 }
 0x194   : > { %v1778_v16 = vadd.f32 %v1777_v55, %v1717_v22  ;;  %v1817_v57 = vadd.f32 %v1816_v13, %v1802_v19 }
 0x196   : > { %v1779_v21 = vadd.f32 %v1778_v16, %v1720_v3  ;;  %v1818_v23 = vadd.f32 %v1817_v57, %v1803_v15 }
 0x198   : > { %v1780_v26 = vadd.f32 %v1779_v21, %v1725_v4  ;;  %v1819_v30 = vadd.f32 %v1818_v23, %v1804_v18  ;;  %v1811_v4 = vmul.f32 %v1749_v61, %v1749_v61 }
 0x19a   : > { %v1820_v31 = vadd.f32 %v1819_v30, %v1805_v24  ;;  %v1781_v1 = vadd.f32 %v1780_v26, %v1728_v25 }
 0x19c   : > { %v1782_v32 = vadd.f32 %v1781_v1, %v3276_v27  ;;  %v1821_v33 = vadd.f32 %v1820_v31, %v1806_v52 }
 0x19e   : > { %v1783_v6 = vadd.f32 %v1782_v32, %v3281_v7  ;;  %v1822_v34 = vadd.f32 %v1821_v33, %v1807_v14 }
 0x1a0   : > { %v1784_v37 = vadd.f32 %v1783_v6, %v1741_v2  ;;  %v1823_v8 = vadd.f32 %v1822_v34, %v1808_v54 }
 0x1a2   : > { %v1785_v42 = vadd.f32 %v1784_v37, %v1744_v38  ;;  %v1824_v29 = vadd.f32 %v1823_v8, %v1809_v35 }
 0x1a4   : > { %v1786_v46 = vadd.f32 %v1785_v42, %v1749_v61  ;;  %v1825_v48 = vadd.f32 %v1824_v29, %v1810_v44 }
 0x1a6   : > { %v1787_v45 = vadd.f32 %v1786_v46, %v1752_v12  ;;  %v1826_v50 = vadd.f32 %v1825_v48, %v1811_v4 }
 0x1a8   : > { %v1788_v27 = vrot.slane %v1787_v45, 4  ;;  %v1827_v25 = vadd.f32 %v1826_v50, %v1812_v49 }
 0x1aa   : > { %v1789_v51 = vadd.f32 %v1788_v27, %v1787_v45  ;;  %v1828_v39 = vrot.slane %v1827_v25, 4 }
 0x1ac   : > { %v1790_v47 = vrot.slane %v1789_v51, 2  ;;  %v1829_v53 = vadd.f32 %v1828_v39, %v1827_v25 }
 0x1ae   : > { %v1791_v7 = vadd.f32 %v1790_v47, %v1789_v51  ;;  %v1830_v20 = vrot.slane %v1829_v53, 2 }
 0x1b0   : > { %v1792_v56 = vrot.slane %v1791_v7, 1  ;;  %v1831_v58 = vadd.f32 %v1830_v20, %v1829_v53 }
 0x1b2   : > { %v1793_v22 = vadd.f32 %v1792_v56, %v1791_v7  ;;  %v1832_v28 = vrot.slane %v1831_v58, 1 }
 0x1b4   : > { %v1794_v60 = vadd.f32 %v1793_v22, %v1772_v59  ;;  %v1833_v61 = vadd.f32 %v1832_v28, %v1831_v58 }
 0x1b6   : > { %1795 = vst [vmem:[#allocation3] sm:$0x1] %v1794_v60  ;;  %v1834_v40 = vadd.f32 %v1833_v61, %v1796_v41 }
 0x1b8   : > { %1835 = vst [vmem:[#allocation3 + $0x1] sm:$0x1] %v1834_v40 }
 0x1b9 PF: > { %p2174_p5 = scmp.ne.s32.totalorder %s2718_s15, 1 }
 0x1ba   : > { %v1851_v11 = vld [vmem:[%s3363_s2] sm:$0x1] (!%p2174_p5)  ;;  %v1862_v55 = vld [vmem:[#allocation2 + $0x8] sm:$0xff] (!%p2174_p5)  ;;  %v1863_v19 = vld [vmem:[#allocation2 + $0x10] sm:$0xff] (!%p2174_p5) }
 0x1bb   : > { %1839 = sbr.rel (%p2174_p5) target bundleno = 493 (0x1ed), region = 48  ;;  %v1856_v12 = vld [vmem:[%s3364_s3] sm:$0x1] (!%p2174_p5)  ;;  %v1864_v15 = vld [vmem:[#allocation2 + $0x18] sm:$0xff] (!%p2174_p5)  ;;  %v1866_v57 = vld [vmem:[#allocation2 + $0x28] sm:$0xff] (!%p2174_p5) }
 0x1bc   : > { %v1861_v38 = vld [vmem:[#allocation2] sm:$0xff] (!%p2174_p5)  ;;  %v1867_v18 = vld [vmem:[#allocation2 + $0x30] sm:$0xff] (!%p2174_p5)  ;;  %v1868_v21 = vld [vmem:[#allocation2 + $0x38] sm:$0xff] (!%p2174_p5) }
 0x1bd   : > { %v1844_v62 = vld [vmem:[#allocation3] sm:$0x1] (!%p2174_p5)  ;;  %v1870_v24 = vld [vmem:[#allocation2 + $0x48] sm:$0xff] (!%p2174_p5)  ;;  %v1871_v26 = vld [vmem:[#allocation2 + $0x50] sm:$0xff] (!%p2174_p5) }
 0x1be   : > { %v1845_v0 = vmul.f32 (!%p2174_p5), 0.0078125, %v1844_v62  ;;  %v1865_v16 = vld [vmem:[#allocation2 + $0x20] sm:$0xff] (!%p2174_p5)  ;;  %v1872_v52 = vld [vmem:[#allocation2 + $0x58] sm:$0xff] (!%p2174_p5)  ;;  %v1874_v54 = vld [vmem:[#allocation2 + $0x68] sm:$0xff] (!%p2174_p5) }
 0x1bf   : > { %v1846_v43 = vld [vmem:[#allocation3 + $0x1] sm:$0x1] (!%p2174_p5)  ;;  %v1875_v6 = vld [vmem:[#allocation2 + $0x70] sm:$0xff] (!%p2174_p5)  ;;  %v1876_v34 = vld [vmem:[#allocation2 + $0x78] sm:$0xff] (!%p2174_p5) }
 0x1c0   : > { %v1847_v2 = vmul.f32 (!%p2174_p5), 0.0078125, %v1846_v43  ;;  %v1848_v3 = vmul.f32 (!%p2174_p5), %v1845_v0, %v1845_v0  ;;  %v1869_v23 = vld [vmem:[#allocation2 + $0x40] sm:$0xff] (!%p2174_p5) }
 0x1c1   : > { %v1873_v31 = vld [vmem:[#allocation2 + $0x60] sm:$0xff] (!%p2174_p5) }
 0x1c2   : > { %v1849_v5 = vsub.f32 %v1847_v2, %v1848_v3 }
 0x1c4   : > { %v1850_v9 = vmax.f32 %v1849_v5, 0.0 }
 0x1c6   : > { %v1852_v10 = vadd.f32 0.001, %v1850_v9 }
 0x1c8   : > { %2702 = vrsqrt.f32 %v1852_v10 }
 0x1d2   : > { %v2703_v17 = vpop.eup %2702 }
 0x1d3   : > { %v1854_v36 = vmul.f32 %v2703_v17, %v1851_v11 }
 0x1d5   : > { %1855 = vst [vmem:[#allocation3 + $0x2] sm:$0x1] %v1854_v36  ;;  %v1857_v63 = vmul.f32 %v1854_v36, %v1845_v0 }
 0x1d7   : > { %v1858_v13 = vsub.f32 %v1856_v12, %v1857_v63 }
 0x1d9   : > { %1859 = vst [vmem:[#allocation3 + $0x3] sm:$0x1] %v1858_v13 }
 0x1dc   : > { %v2175_v30 = vld [vmem:[#allocation3 + $0x2] ss:$0 sm:$0xff] }
 0x1dd   : > { %v1882_v1 = vmul.f32 %v2175_v30, %v1861_v38  ;;  %v1883_v14 = vmul.f32 %v2175_v30, %v1862_v55  ;;  %v1884_v32 = vmul.f32 %v2175_v30, %v1863_v19  ;;  %v1885_v33 = vmul.f32 %v2175_v30, %v1864_v15 }
 0x1de   : > { %v1886_v35 = vmul.f32 %v2175_v30, %v1865_v16  ;;  %v1887_v37 = vmul.f32 %v2175_v30, %v1866_v57  ;;  %v1888_v8 = vmul.f32 %v2175_v30, %v1867_v18  ;;  %v1889_v42 = vmul.f32 %v2175_v30, %v1868_v21 }
 0x1df   : > { %v1890_v44 = vmul.f32 %v2175_v30, %v1869_v23  ;;  %v1891_v29 = vmul.f32 %v2175_v30, %v1870_v24  ;;  %v1892_v4 = vmul.f32 %v2175_v30, %v1871_v26  ;;  %v1893_v46 = vmul.f32 %v2175_v30, %v1872_v52 }
 0x1e0   : > { %v2176_v48 = vld [vmem:[#allocation3 + $0x3] ss:$0 sm:$0xff]  ;;  %v1894_v49 = vmul.f32 %v2175_v30, %v1873_v31  ;;  %v1895_v45 = vmul.f32 %v2175_v30, %v1874_v54  ;;  %v1896_v50 = vmul.f32 %v2175_v30, %v1875_v6  ;;  %v1897_v27 = vmul.f32 %v2175_v30, %v1876_v34 }
 0x1e1   : > { %v1903_v25 = vadd.f32 %v2176_v48, %v1882_v1  ;;  %v1904_v51 = vadd.f32 %v2176_v48, %v1883_v14  ;;  %v1905_v39 = vadd.f32 %v2176_v48, %v1884_v32  ;;  %v1906_v47 = vadd.f32 %v2176_v48, %v1885_v33 }
 0x1e2   : > { %v1907_v53 = vadd.f32 %v2176_v48, %v1886_v35  ;;  %v1908_v7 = vadd.f32 %v2176_v48, %v1887_v37  ;;  %v1909_v20 = vadd.f32 %v2176_v48, %v1888_v8  ;;  %v1910_v56 = vadd.f32 %v2176_v48, %v1889_v42 }
 0x1e3   : > { %v1919_v58 = vmax.f32 %v1903_v25, 0.0  ;;  %v1920_v59 = vmax.f32 %v1904_v51, 0.0  ;;  %v1921_v22 = vmax.f32 %v1905_v39, 0.0  ;;  %v1922_v28 = vmax.f32 %v1906_v47, 0.0 }
 0x1e4   : > { %v1923_v41 = vmax.f32 %v1907_v53, 0.0  ;;  %v1924_v60 = vmax.f32 %v1908_v7, 0.0  ;;  %v1925_v61 = vmax.f32 %v1909_v20, 0.0  ;;  %v1926_v40 = vmax.f32 %v1910_v56, 0.0 }
 0x1e5   : > { %1935 = vst [vmem:[%s3365_s4] sm:$0xff] %v1919_v58  ;;  %1936 = vst [vmem:[%s3365_s4 + $0x8] sm:$0xff] %v1920_v59  ;;  %v1911_v62 = vadd.f32 %v2176_v48, %v1890_v44  ;;  %v1912_v43 = vadd.f32 %v2176_v48, %v1891_v29  ;;  %v1913_v0 = vadd.f32 %v2176_v48, %v1892_v4 }
 0x1e6   : > { %1937 = vst [vmem:[%s3365_s4 + $0x10] sm:$0xff] %v1921_v22  ;;  %1938 = vst [vmem:[%s3365_s4 + $0x18] sm:$0xff] %v1922_v28  ;;  %v1914_v2 = vadd.f32 %v2176_v48, %v1893_v46  ;;  %v1915_v3 = vadd.f32 %v2176_v48, %v1894_v49  ;;  %v1916_v5 = vadd.f32 %v2176_v48, %v1895_v45 }
 0x1e7   : > { %1939 = vst [vmem:[%s3365_s4 + $0x20] sm:$0xff] %v1923_v41  ;;  %1940 = vst [vmem:[%s3365_s4 + $0x28] sm:$0xff] %v1924_v60  ;;  %v1917_v9 = vadd.f32 %v2176_v48, %v1896_v50  ;;  %v1918_v10 = vadd.f32 %v2176_v48, %v1897_v27  ;;  %v1927_v11 = vmax.f32 %v1911_v62, 0.0  ;;  %v1928_v17 = vmax.f32 %v1912_v43, 0.0 }
 0x1e8   : > { %1941 = vst [vmem:[%s3365_s4 + $0x30] sm:$0xff] %v1925_v61  ;;  %1942 = vst [vmem:[%s3365_s4 + $0x38] sm:$0xff] %v1926_v40  ;;  %v1929_v36 = vmax.f32 %v1913_v0, 0.0  ;;  %v1930_v12 = vmax.f32 %v1914_v2, 0.0  ;;  %v1931_v63 = vmax.f32 %v1915_v3, 0.0  ;;  %v1932_v13 = vmax.f32 %v1916_v5, 0.0 }
 0x1e9   : > { %v1933_v38 = vmax.f32 %v1917_v9, 0.0  ;;  %v1934_v55 = vmax.f32 %v1918_v10, 0.0  ;;  %1943 = vst [vmem:[%s3365_s4 + $0x40] sm:$0xff] %v1927_v11  ;;  %1944 = vst [vmem:[%s3365_s4 + $0x48] sm:$0xff] %v1928_v17 }
 0x1ea   : > { %1945 = vst [vmem:[%s3365_s4 + $0x50] sm:$0xff] %v1929_v36  ;;  %1946 = vst [vmem:[%s3365_s4 + $0x58] sm:$0xff] %v1930_v12 }
 0x1eb   : > { %1947 = vst [vmem:[%s3365_s4 + $0x60] sm:$0xff] %v1931_v63  ;;  %1948 = vst [vmem:[%s3365_s4 + $0x68] sm:$0xff] %v1932_v13 }
 0x1ec   : > { %1949 = vst [vmem:[%s3365_s4 + $0x70] sm:$0xff] %v1933_v38  ;;  %1950 = vst [vmem:[%s3365_s4 + $0x78] sm:$0xff] %v1934_v55 }
 0x1ed PF: > { %s14_s17 = sadd.s32 1, %s2726_s17   ;;  %s3366_s15 = smov %s2722_s16 }
 0x1ee   : > { %p11_p6 = scmp.ge.s32.totalorder %s14_s17, 4   ;;  %s3367_s16 = smov %s3369_s18 }
 0x1f0   :  { %13 = sbr.rel (!%p11_p6) target bundleno = 2 (0x2), region = 84 }

// kernel: reduction_a.9
= control target key start
LH: loop header
LB: loop body
LE: loop exit
PB: predicated region body
PF: predicated region fallthrough
CT: control target
= control target key end

     0   :  { %s420_s6 = smov 0   ;;  %s514_s0 = inlined_call_operand.vmem [shape: f32[2,17,17,64], index: 0, kind: input, shape index: {}]   ;;  %s515_s1 = inlined_call_operand.vmem [shape: f32[2,8,8,64], index: 1, kind: output, shape index: {}]  }
   0x1 LB: > { %s332_s7 = sadd.s32 4294967295, %s408_s6   ;;  %p336_p0 = scmp.ge.s32.totalorder %s408_s6, 1  ;;  %s408_s6 = sphi %s420_s6, %s11_s6  }
   0x2   : > { %p87_p1 = scmp.lt.s32.totalorder %s408_s6, 3 }
   0x4   : > { %p88_p2 = pnand %p336_p0, %p87_p1 }
   0x5   : > { %p107_p3 = scmp.lt.s32.totalorder (!%p88_p2), %s332_s7, 1  ;;  %vm268_vm0 = vcmask (!%p88_p2), 523264  }
   0x6   : > { %91 = sbr.rel (%p88_p2) target bundleno = 43 (0x2b), region = 24 }
   0xd   : > { %s517_s7 = smov (!%p107_p3, %s332_s7), 1 }
   0xe   : > { %s393_s8 = smul.u32 408, %s517_s7  ;;  %s392_s12 = sshll.u32 %s517_s7, 6 }
   0xf   : > { %s463_s15 = scalar_lea.vmem %s515_s1, %s392_s12 }
  0x10   : > { %s434_s11 = scalar_lea.vmem %s514_s0, %s393_s8 }
  0x11   : > { %v117_v0 = vld [vmem:[%s434_s11] ss:$2 sm:$0xff]  ;;  %v341_v2 = vld [vmem:[%s434_s11 + $0x30] ss:$2 sm:$0xff]  ;;  %v356_v3 = vld [vmem:[%s434_s11 + $0x1] ss:$2 sm:$0xff] }
  0x12   : > { %v340_v1 = vld [vmem:[%s434_s11 + $0x18] ss:$2 sm:$0xff]  ;;  %v357_v4 = vld [vmem:[%s434_s11 + $0x19] ss:$2 sm:$0xff]  ;;  %v218_v9 = vmax.f32 %v117_v0, %v356_v3  ;;  %v342_v12 = vld [vmem:[%s434_s11 + $0x48] ss:$2 sm:$0xff] }
  0x13   : > { %v358_v5 = vld [vmem:[%s434_s11 + $0x31] ss:$2 sm:$0xff]  ;;  %v373_v6 = vld [vmem:[%s434_s11 + $0x2] ss:$2 sm:$0xff]  ;;  %v375_v8 = vld [vmem:[%s434_s11 + $0x32] ss:$2 sm:$0xff]  ;;  %v219_v10 = vmax.f32 %v340_v1, %v357_v4 }
  0x14   : > { %v374_v7 = vld [vmem:[%s434_s11 + $0x1a] ss:$2 sm:$0xff]  ;;  %v220_v11 = vmax.f32 %v341_v2, %v358_v5  ;;  %v359_v14 = vld [vmem:[%s434_s11 + $0x49] ss:$2 sm:$0xff]  ;;  %v235_v15 = vmax.f32 %v218_v9, %v373_v6  ;;  %v376_v19 = vld [vmem:[%s434_s11 + $0x4a] ss:$2 sm:$0xff] }
  0x15   : > { %v343_v13 = vld [vmem:[%s434_s11 + $0x60] ss:$2 sm:$0xff]  ;;  %v236_v16 = vmax.f32 %v219_v10, %v374_v7  ;;  %v360_v18 = vld [vmem:[%s434_s11 + $0x61] ss:$2 sm:$0xff]  ;;  %v221_v21 = vmax.f32 %v342_v12, %v359_v14  ;;  %v345_v24 = vld [vmem:[%s434_s11 + $0x90] ss:$2 sm:$0xff] }
  0x16   : > { %v237_v17 = vmax.f32 %v220_v11, %v375_v8  ;;  %v377_v20 = vld [vmem:[%s434_s11 + $0x62] ss:$2 sm:$0xff]  ;;  %v222_v22 = vmax.f32 %v343_v13, %v360_v18  ;;  %v361_v25 = vld [vmem:[%s434_s11 + $0x79] ss:$2 sm:$0xff]  ;;  %v379_v30 = vld [vmem:[%s434_s11 + $0x92] ss:$2 sm:$0xff] }
  0x17   : > { %v344_v23 = vld [vmem:[%s434_s11 + $0x78] ss:$2 sm:$0xff]  ;;  %v252_v26 = vmax.f32 %v235_v15, %v236_v16  ;;  %v238_v27 = vmax.f32 %v221_v21, %v376_v19  ;;  %v362_v28 = vld [vmem:[%s434_s11 + $0x91] ss:$2 sm:$0xff]  ;;  %v346_v34 = vld [vmem:[%s434_s11 + $0xa8] ss:$2 sm:$0xff] }
  0x18   : > { %v378_v29 = vld [vmem:[%s434_s11 + $0x7a] ss:$2 sm:$0xff]  ;;  %v223_v31 = vmax.f32 %v344_v23, %v361_v25  ;;  %v239_v32 = vmax.f32 %v222_v22, %v377_v20  ;;  %v224_v33 = vmax.f32 %v345_v24, %v362_v28  ;;  %v363_v36 = vld [vmem:[%s434_s11 + $0xa9] ss:$2 sm:$0xff]  ;;  %v380_v41 = vld [vmem:[%s434_s11 + $0xaa] ss:$2 sm:$0xff] }
  0x19   : > { %v347_v35 = vld [vmem:[%s434_s11 + $0xc0] ss:$2 sm:$0xff]  ;;  %v260_v37 = vmax.f32 %v252_v26, %v237_v17  ;;  %v253_v38 = vmax.f32 %v237_v17, %v238_v27  ;;  %v364_v40 = vld [vmem:[%s434_s11 + $0xc1] ss:$2 sm:$0xff]  ;;  %v225_v43 = vmax.f32 %v346_v34, %v363_v36  ;;  %v349_v47 = vld [vmem:[%s434_s11 + $0xf0] ss:$2 sm:$0xff] }
  0x1a   : > { %v240_v39 = vmax.f32 %v223_v31, %v378_v29  ;;  %v381_v42 = vld [vmem:[%s434_s11 + $0xc2] ss:$2 sm:$0xff]  ;;  %v241_v44 = vmax.f32 %v224_v33, %v379_v30  ;;  %v226_v45 = vmax.f32 %v347_v35, %v364_v40  ;;  %v365_v48 = vld [vmem:[%s434_s11 + $0xd9] ss:$2 sm:$0xff]  ;;  %v383_v54 = vld [vmem:[%s434_s11 + $0xf2] ss:$2 sm:$0xff] }
  0x1b   : > { %v348_v46 = vld [vmem:[%s434_s11 + $0xd8] ss:$2 sm:$0xff]  ;;  %269 = vst.msk [vmem:[%s463_s15] sm:$0xff] %vm268_vm0, %v260_v37  ;;  %v261_v49 = vmax.f32 %v253_v38, %v239_v32  ;;  %v242_v51 = vmax.f32 %v225_v43, %v380_v41  ;;  %v366_v52 = vld [vmem:[%s434_s11 + $0xf1] ss:$2 sm:$0xff] }
  0x1c   : > { %v254_v50 = vmax.f32 %v239_v32, %v240_v39  ;;  %v382_v53 = vld [vmem:[%s434_s11 + $0xda] ss:$2 sm:$0xff]  ;;  %v227_v55 = vmax.f32 %v348_v46, %v365_v48  ;;  %v243_v56 = vmax.f32 %v226_v45, %v381_v42  ;;  %v228_v57 = vmax.f32 %v349_v47, %v366_v52  ;;  %v367_v60 = vld [vmem:[%s434_s11 + $0x109] ss:$2 sm:$0xff]  ;;  %v384_v1 = vld [vmem:[%s434_s11 + $0x10a] ss:$2 sm:$0xff] }
  0x1d   : > { %v350_v58 = vld [vmem:[%s434_s11 + $0x108] ss:$2 sm:$0xff]  ;;  %270 = vst.msk [vmem:[%s463_s15 + $0x8] sm:$0xff] %vm268_vm0, %v261_v49  ;;  %v255_v62 = vmax.f32 %v241_v44, %v242_v51  ;;  %v368_v0 = vld [vmem:[%s434_s11 + $0x121] ss:$2 sm:$0xff] }
  0x1e   : > { %v351_v59 = vld [vmem:[%s434_s11 + $0x120] ss:$2 sm:$0xff]  ;;  %v262_v61 = vmax.f32 %v254_v50, %v241_v44  ;;  %v244_v63 = vmax.f32 %v227_v55, %v382_v53  ;;  %v229_v3 = vmax.f32 %v350_v58, %v367_v60  ;;  %v245_v4 = vmax.f32 %v228_v57, %v383_v54  ;;  %v353_v7 = vld [vmem:[%s434_s11 + $0x150] ss:$2 sm:$0xff]  ;;  %v369_v8 = vld [vmem:[%s434_s11 + $0x139] ss:$2 sm:$0xff] }
  0x1f   : > { %v385_v2 = vld [vmem:[%s434_s11 + $0x122] ss:$2 sm:$0xff]  ;;  %v230_v5 = vmax.f32 %v351_v59, %v368_v0  ;;  %v263_v9 = vmax.f32 %v255_v62, %v243_v56  ;;  %v370_v12 = vld [vmem:[%s434_s11 + $0x151] ss:$2 sm:$0xff]  ;;  %v387_v14 = vld [vmem:[%s434_s11 + $0x152] ss:$2 sm:$0xff] }
  0x20   : > { %v352_v6 = vld [vmem:[%s434_s11 + $0x138] ss:$2 sm:$0xff]  ;;  %271 = vst.msk [vmem:[%s463_s15 + $0x10] sm:$0xff] %vm268_vm0, %v262_v61  ;;  %v256_v10 = vmax.f32 %v243_v56, %v244_v63  ;;  %v246_v11 = vmax.f32 %v229_v3, %v384_v1  ;;  %v232_v17 = vmax.f32 %v353_v7, %v370_v12  ;;  %v354_v18 = vld [vmem:[%s434_s11 + $0x168] ss:$2 sm:$0xff] }
  0x21   : > { %v386_v13 = vld [vmem:[%s434_s11 + $0x13a] ss:$2 sm:$0xff]  ;;  %v231_v15 = vmax.f32 %v352_v6, %v369_v8  ;;  %v247_v16 = vmax.f32 %v230_v5, %v385_v2  ;;  %v371_v20 = vld [vmem:[%s434_s11 + $0x169] ss:$2 sm:$0xff]  ;;  %272 = vst.msk [vmem:[%s463_s15 + $0x18] sm:$0xff] %vm268_vm0, %v263_v9 }
  0x22   : > { %v355_v19 = vld [vmem:[%s434_s11 + $0x180] ss:$2 sm:$0xff]  ;;  %v264_v21 = vmax.f32 %v256_v10, %v245_v4  ;;  %v257_v22 = vmax.f32 %v245_v4, %v246_v11  ;;  %v372_v24 = vld [vmem:[%s434_s11 + $0x181] ss:$2 sm:$0xff]  ;;  %v233_v27 = vmax.f32 %v354_v18, %v371_v20  ;;  %v249_v28 = vmax.f32 %v232_v17, %v387_v14 }
  0x23   : > { %v248_v23 = vmax.f32 %v231_v15, %v386_v13  ;;  %v388_v25 = vld [vmem:[%s434_s11 + $0x16a] ss:$2 sm:$0xff]  ;;  %v234_v29 = vmax.f32 %v355_v19, %v372_v24 }
  0x24   : > { %v389_v26 = vld [vmem:[%s434_s11 + $0x182] ss:$2 sm:$0xff]  ;;  %273 = vst.msk [vmem:[%s463_s15 + $0x20] sm:$0xff] %vm268_vm0, %v264_v21  ;;  %v265_v30 = vmax.f32 %v257_v22, %v247_v16  ;;  %v250_v32 = vmax.f32 %v233_v27, %v388_v25 }
  0x25   : > { %v258_v31 = vmax.f32 %v247_v16, %v248_v23  ;;  %v251_v33 = vmax.f32 %v234_v29, %v389_v26 }
  0x26   : > { %274 = vst.msk [vmem:[%s463_s15 + $0x28] sm:$0xff] %vm268_vm0, %v265_v30  ;;  %v259_v35 = vmax.f32 %v249_v28, %v250_v32 }
  0x27   : > { %v266_v34 = vmax.f32 %v258_v31, %v249_v28 }
  0x28   : > { %v267_v36 = vmax.f32 %v259_v35, %v251_v33 }
  0x29   : > { %275 = vst.msk [vmem:[%s463_s15 + $0x30] sm:$0xff] %vm268_vm0, %v266_v34 }
  0x2a   : > { %276 = vst.msk [vmem:[%s463_s15 + $0x38] sm:$0xff] %vm268_vm0, %v267_v36 }
  0x2b PF: > { %s11_s6 = sadd.s32 1, %s408_s6  }
  0x2c   : > { %p8_p4 = scmp.ge.s32.totalorder %s11_s6, 4  }
  0x2e   :  { %10 = sbr.rel (!%p8_p4) target bundleno = 1 (0x1), region = 104 }

// kernel: reduction_a.5
= control target key start
LH: loop header
LB: loop body
LE: loop exit
PB: predicated region body
PF: predicated region fallthrough
CT: control target
= control target key end

     0   :  { %s1805_s15 = smov 0   ;;  %s1807_s16 = smov 0   ;;  %s2168_s0 = inlined_call_operand.vmem [shape: bf16[128,576], index: 0, kind: input, shape index: {}]   ;;  %s2169_s1 = inlined_call_operand.vmem [shape: bf16[576,128], index: 1, kind: input, shape index: {}]   ;;  %s2170_s2 = inlined_call_operand.vmem [shape: f32[1,128], index: 2, kind: input, shape index: {}]   ;;  %s2171_s3 = inlined_call_operand.vmem [shape: f32[1,128], index: 3, kind: input, shape index: {}]   ;;  %s2172_s4 = inlined_call_operand.vmem [shape: f32[128,128], index: 4, kind: output, shape index: {}]  }
   0x1   :  { %s1809_s17 = smov 0  }
   0x2 LB: > { %s26_s18 = sadd.s32 1, %s1773_s16  ;;  %p1371_p0 = scmp.ge.s32.totalorder %s1777_s17, 1  ;;  %s1777_s17 = sphi %s1809_s17, %s14_s17   ;;  %s1773_s16 = sphi %s1807_s16, %s2174_s16   ;;  %s1769_s15 = sphi %s1805_s15, %s2173_s15  }
   0x3   : > { %p28_p1 = scmp.ge.s32.totalorder %s26_s18, 2  ;;  %p186_p2 = scmp.lt.s32.totalorder %s1777_s17, 3 }
   0x5   : > { %s2176_s18 = smov (%p28_p1, %s26_s18), 0  ;;  %p187_p3 = pnand %p1371_p0, %p186_p2 }
   0x6   : > { %p1372_p4 = scmp.ne.s32.totalorder (!%p187_p3), %s1769_s15, 0 }
   0x7   : > { %190 = sbr.rel (%p187_p3) target bundleno = 429 (0x1ad), region = 36 }
   0xe   : > { %240 = sbr.rel (%p1372_p4) target bundleno = 377 (0x179), region = 40  ;;  %v1661_v0 = vld [vmem:[%s2169_s1 + $0x40] sm:$0xff] (!%p1372_p4)   ;;  %v1665_v4 = vld [vmem:[%s2169_s1 + $0x48] sm:$0xff] (!%p1372_p4)   ;;  %v1669_v8 = vld [vmem:[%s2169_s1 + $0x50] sm:$0xff] (!%p1372_p4)   ;;  %vm782_vm0 = vcmask (!%p1372_p4), 523264  }
   0xf   : > { %v1662_v1 = vld [vmem:[%s2169_s1 + $0xc0] sm:$0xff] (!%p1372_p4)   ;;  %1464 = vmatprep.subr.bf16.mxu0 (!%p1372_p4), %v1661_v0  ;;  %v1666_v5 = vld [vmem:[%s2169_s1 + $0xc8] sm:$0xff] (!%p1372_p4)   ;;  %v1670_v9 = vld [vmem:[%s2169_s1 + $0xd0] sm:$0xff] (!%p1372_p4)  }
  0x10   : > { %v1663_v2 = vld [vmem:[%s2169_s1] sm:$0xff] (!%p1372_p4)   ;;  %1528 = vmatprep.subr.bf16.mxu1 (!%p1372_p4), %v1662_v1  ;;  %v1667_v6 = vld [vmem:[%s2169_s1 + $0x8] sm:$0xff] (!%p1372_p4)   ;;  %v1671_v10 = vld [vmem:[%s2169_s1 + $0x10] sm:$0xff] (!%p1372_p4)  }
  0x11   : > { %v1664_v3 = vld [vmem:[%s2169_s1 + $0x80] sm:$0xff] (!%p1372_p4)   ;;  %1465 = vmatpush3.bf16.msra.mxu0 (!%p1372_p4), %v1663_v2  ;;  %v1668_v7 = vld [vmem:[%s2169_s1 + $0x88] sm:$0xff] (!%p1372_p4)   ;;  %v1672_v11 = vld [vmem:[%s2169_s1 + $0x90] sm:$0xff] (!%p1372_p4)  }
  0x12   : > { %1529 = vmatpush3.bf16.msra.mxu1 (!%p1372_p4), %v1664_v3  ;;  %1466 = vmatprep.subr.bf16.mxu0 (!%p1372_p4), %v1665_v4  ;;  %v1673_v12 = vld [vmem:[%s2169_s1 + $0x58] sm:$0xff] (!%p1372_p4)   ;;  %v1677_v16 = vld [vmem:[%s2169_s1 + $0x60] sm:$0xff] (!%p1372_p4)   ;;  %v1681_v20 = vld [vmem:[%s2169_s1 + $0x68] sm:$0xff] (!%p1372_p4)  }
  0x13   : > { %1530 = vmatprep.subr.bf16.mxu1 (!%p1372_p4), %v1666_v5  ;;  %v1674_v13 = vld [vmem:[%s2169_s1 + $0xd8] sm:$0xff] (!%p1372_p4)   ;;  %v1678_v17 = vld [vmem:[%s2169_s1 + $0xe0] sm:$0xff] (!%p1372_p4)   ;;  %v1682_v21 = vld [vmem:[%s2169_s1 + $0xe8] sm:$0xff] (!%p1372_p4)  }
  0x14   : > { %v1675_v14 = vld [vmem:[%s2169_s1 + $0x18] sm:$0xff] (!%p1372_p4)   ;;  %v1679_v18 = vld [vmem:[%s2169_s1 + $0x20] sm:$0xff] (!%p1372_p4)   ;;  %v1683_v22 = vld [vmem:[%s2169_s1 + $0x28] sm:$0xff] (!%p1372_p4)  }
  0x15   : > { %1467 = vmatpush3.bf16.msra.mxu0 %v1667_v6  ;;  %v1676_v15 = vld [vmem:[%s2169_s1 + $0x98] sm:$0xff]   ;;  %v1680_v19 = vld [vmem:[%s2169_s1 + $0xa0] sm:$0xff]   ;;  %v1684_v23 = vld [vmem:[%s2169_s1 + $0xa8] sm:$0xff]  }
  0x16   : > { %1531 = vmatpush3.bf16.msra.mxu1 %v1668_v7  ;;  %1468 = vmatprep.subr.bf16.mxu0 %v1669_v8  ;;  %v1685_v24 = vld [vmem:[%s2169_s1 + $0x70] sm:$0xff]   ;;  %v1689_v28 = vld [vmem:[%s2169_s1 + $0x78] sm:$0xff]   ;;  %v1698_v35 = vld [vmem:[%s2168_s0 + $0xc] ss:$20 sps:$4 sm:$0xff]  }
  0x17   : > { %1532 = vmatprep.subr.bf16.mxu1 %v1670_v9  ;;  %v1686_v25 = vld [vmem:[%s2169_s1 + $0xf0] sm:$0xff]   ;;  %v1690_v29 = vld [vmem:[%s2169_s1 + $0xf8] sm:$0xff]   ;;  %v1699_v36 = vld [vmem:[%s2169_s1 + $0x100] sm:$0xff]   ;;  %936 = vmatprep.mubr.bf16.mxu1 %v1698_v35 }
  0x18   : > { %v1687_v26 = vld [vmem:[%s2169_s1 + $0x30] sm:$0xff]   ;;  %v1691_v30 = vld [vmem:[%s2169_s1 + $0x38] sm:$0xff]   ;;  %v1700_v37 = vld [vmem:[%s2168_s0 + $0x2c] ss:$20 sps:$4 sm:$0xff]  }
  0x19   : > { %1469 = vmatpush3.bf16.msra.mxu0 %v1671_v10  ;;  %v1688_v27 = vld [vmem:[%s2169_s1 + $0xb0] sm:$0xff]   ;;  %v1692_v31 = vld [vmem:[%s2169_s1 + $0xb8] sm:$0xff]   ;;  %v1712_v42 = vld [vmem:[%s2169_s1 + $0x108] sm:$0xff]  }
  0x1a   : > { %1533 = vmatpush3.bf16.msra.mxu1 %v1672_v11  ;;  %1470 = vmatprep.subr.bf16.mxu0 %v1673_v12  ;;  %v1693_v32 = vld [vmem:[%s2168_s0] ss:$20 sps:$4 sm:$0xff]   ;;  %v1695_v33 = vld [vmem:[%s2168_s0 + $0x4] ss:$20 sps:$4 sm:$0xff]   ;;  %v1696_v34 = vld [vmem:[%s2168_s0 + $0x8] ss:$20 sps:$4 sm:$0xff]  }
  0x1b   : > { %1534 = vmatprep.subr.bf16.mxu1 %v1674_v13  ;;  %839 = vmatprep.mubr.bf16.mxu0 %v1695_v33  ;;  %v1702_v38 = vld [vmem:[%s2168_s0 + $0x34] ss:$20 sps:$4 sm:$0xff]   ;;  %v1705_v40 = vld [vmem:[%s2168_s0 + $0x30] ss:$20 sps:$4 sm:$0xff]   ;;  %v1711_v45 = vld [vmem:[%s2168_s0 + $0x58] ss:$20 sps:$4 sm:$0xff]  }
  0x1c   : > { %v1704_v39 = vld [vmem:[%s2168_s0 + $0x28] ss:$20 sps:$4 sm:$0xff]   ;;  %v1710_v44 = vld [vmem:[%s2168_s0 + $0x50] ss:$20 sps:$4 sm:$0xff]   ;;  %v1717_v50 = vld [vmem:[%s2168_s0 + $0x78] ss:$20 sps:$4 sm:$0xff]  }
  0x1d   : > { %1471 = vmatpush3.bf16.msra.mxu0 %v1675_v14  ;;  %v1706_v41 = vld [vmem:[%s2168_s0 + $0x54] ss:$20 sps:$4 sm:$0xff]   ;;  %v1708_v43 = vld [vmem:[%s2168_s0 + $0x5c] ss:$20 sps:$4 sm:$0xff]   ;;  %v1715_v48 = vld [vmem:[%s2168_s0 + $0x84] ss:$20 sps:$4 sm:$0xff]  }
  0x1e   : > { %1535 = vmatpush3.bf16.msra.mxu1 %v1676_v15  ;;  %1472 = vmatprep.subr.bf16.mxu0 %v1677_v16  ;;  %v1725_v46 = vld [vmem:[%s2169_s1 + $0x110] sm:$0xff]   ;;  %v1738_v49 = vld [vmem:[%s2169_s1 + $0x118] sm:$0xff]   ;;  %v1721_v53 = vld [vmem:[%s2168_s0 + $0xac] ss:$20 sps:$4 sm:$0xff]   ;;  %v1779_v12 = vmov 0.0  }
  0x1f   : > { %1536 = vmatprep.subr.bf16.mxu1 %v1678_v17  ;;  %v1713_v47 = vld [vmem:[%s2168_s0 + $0x7c] ss:$20 sps:$4 sm:$0xff]   ;;  %v1718_v51 = vld [vmem:[%s2168_s0 + $0x80] ss:$20 sps:$4 sm:$0xff]   ;;  %v1719_v52 = vld [vmem:[%s2168_s0 + $0xa4] ss:$20 sps:$4 sm:$0xff]  }
  0x20   : > { %v1723_v54 = vld [vmem:[%s2168_s0 + $0xa0] ss:$20 sps:$4 sm:$0xff]   ;;  %v1724_v55 = vld [vmem:[%s2168_s0 + $0xa8] ss:$20 sps:$4 sm:$0xff]   ;;  %v1731_v59 = vld [vmem:[%s2168_s0 + $0xd0] ss:$20 sps:$4 sm:$0xff]  }
  0x21   : > { %1473 = vmatpush3.bf16.msra.mxu0 %v1679_v18  ;;  %v1726_v56 = vld [vmem:[%s2168_s0 + $0xcc] ss:$20 sps:$4 sm:$0xff]   ;;  %v1728_v57 = vld [vmem:[%s2168_s0 + $0xd4] ss:$20 sps:$4 sm:$0xff]   ;;  %v1734_v61 = vld [vmem:[%s2168_s0 + $0xfc] ss:$20 sps:$4 sm:$0xff]  }
  0x22   : > { %1537 = vmatpush3.bf16.msra.mxu1 %v1680_v19  ;;  %1474 = vmatprep.subr.bf16.mxu0 %v1681_v20  ;;  %v1730_v58 = vld [vmem:[%s2168_s0 + $0xc8] ss:$20 sps:$4 sm:$0xff]   ;;  %v1736_v62 = vld [vmem:[%s2168_s0 + $0xf0] ss:$20 sps:$4 sm:$0xff]   ;;  %v1737_v63 = vld [vmem:[%s2168_s0 + $0xf8] ss:$20 sps:$4 sm:$0xff]  }
  0x23   : > { %1538 = vmatprep.subr.bf16.mxu1 %v1682_v21  ;;  %v1732_v60 = vld [vmem:[%s2168_s0 + $0xf4] ss:$20 sps:$4 sm:$0xff]   ;;  %v1739_v0 = vld [vmem:[%s2168_s0 + $0x11c] ss:$20 sps:$4 sm:$0xff]   ;;  %v1741_v1 = vld [vmem:[%s2168_s0 + $0x124] ss:$20 sps:$4 sm:$0xff]  }
  0x24   : > { %v1743_v2 = vld [vmem:[%s2168_s0 + $0x118] ss:$20 sps:$4 sm:$0xff]   ;;  %v1744_v3 = vld [vmem:[%s2168_s0 + $0x120] ss:$20 sps:$4 sm:$0xff]   ;;  %v1745_v4 = vld [vmem:[%s2168_s0 + $0x10] ss:$20 sps:$4 sm:$0xff]  }
  0x25   : > { %1475 = vmatpush3.bf16.msra.mxu0 %v1683_v22  ;;  %v1746_v5 = vld [vmem:[%s2168_s0 + $0xb0] ss:$20 sps:$4 sm:$0xff]   ;;  %v1747_v6 = vld [vmem:[%s2168_s0 + $0x38] ss:$20 sps:$4 sm:$0xff]   ;;  %v1749_v8 = vld [vmem:[%s2168_s0 + $0x60] ss:$20 sps:$4 sm:$0xff]  }
  0x26   : > { %1539 = vmatpush3.bf16.msra.mxu1 %v1684_v23  ;;  %1476 = vmatprep.subr.bf16.mxu0 %v1685_v24  ;;  %v1748_v7 = vld [vmem:[%s2168_s0 + $0xd8] ss:$20 sps:$4 sm:$0xff]   ;;  %v1750_v9 = vld [vmem:[%s2168_s0 + $0x100] ss:$20 sps:$4 sm:$0xff]   ;;  %v1751_v10 = vld [vmem:[%s2168_s0 + $0x88] ss:$20 sps:$4 sm:$0xff]  }
  0x27   : > { %1540 = vmatprep.subr.bf16.mxu1 %v1686_v25  ;;  %v1752_v11 = vld [vmem:[%s2168_s0 + $0x128] ss:$20 sps:$4 sm:$0xff]   ;;  %245 = vst [vmem:[#allocation3] sm:$0xff] %v1779_v12 }
  0x29   : > { %1477 = vmatpush3.bf16.msra.mxu0 %v1687_v26 }
  0x2a   : > { %1541 = vmatpush3.bf16.msra.mxu1 %v1688_v27  ;;  %1478 = vmatprep.subr.bf16.mxu0 %v1689_v28 }
  0x2b   : > { %1542 = vmatprep.subr.bf16.mxu1 %v1690_v29 }
  0x2d   : > { %1479 = vmatpush3.bf16.msra.mxu0 %v1691_v30 }
  0x2e   : > { %1543 = vmatpush3.bf16.msra.mxu1 %v1692_v31  ;;  %1604 = vmatprep.subr.bf16.mxu0 %v1699_v36 }
  0x2f   : > { %1628 = vmatprep.subr.bf16.mxu1 %v1699_v36 }
  0x30   : > { %840 = vmatmul.mubr.bf16.vlgmr.msra.gmra.mrb[0].mxu0 %v1693_v32 }
  0x31   : > { %937 = vmatmul.mubr.bf16.vlgmr.msra.gmra.mrb[0].mxu1 %v1696_v34  ;;  %1605 = vmatpush3.bf16.msra.mxu0 %v1699_v36 }
  0x32   : > { %847 = vmatprep.mubr.bf16.mxu0 %v1700_v37  ;;  %944 = vmatprep.mubr.bf16.mxu1 %v1702_v38 }
  0x33   : > { %1632 = vmatpush3.bf16.msra.mxu1 %v1699_v36  ;;  %1606 = vmatprep.subr.bf16.mxu0 %v1712_v42 }
  0x34   : > { %1629 = vmatprep.subr.bf16.mxu1 %v1712_v42 }
  0x35   : > { %1607 = vmatpush3.bf16.msra.mxu0 %v1712_v42 }
  0x36   : > { %1608 = vmatprep.subr.bf16.mxu0 %v1725_v46 }
  0x37   : > { %1633 = vmatpush3.bf16.msra.mxu1 %v1712_v42 }
  0x38   : > { %848 = vmatmul.mubr.bf16.gmra.mrb[4].mxu0 %v1704_v39  ;;  %1630 = vmatprep.subr.bf16.mxu1 %v1725_v46 }
  0x39   : > { %945 = vmatmul.mubr.bf16.gmra.mrb[4].mxu1 %v1705_v40  ;;  %855 = vmatprep.mubr.bf16.mxu0 %v1706_v41 }
  0x3a   : > { %952 = vmatprep.mubr.bf16.mxu1 %v1708_v43  ;;  %1609 = vmatpush3.bf16.msra.mxu0 %v1725_v46 }
  0x3b   : > { %1634 = vmatpush3.bf16.msra.mxu1 %v1725_v46  ;;  %1610 = vmatprep.subr.bf16.mxu0 %v1738_v49 }
  0x3c   : > { %1631 = vmatprep.subr.bf16.mxu1 %v1738_v49 }
  0x3e   : > { %1611 = vmatpush3.bf16.msra.mxu0 %v1738_v49 }
  0x3f   : > { %1635 = vmatpush3.bf16.msra.mxu1 %v1738_v49 }
  0x40   : > { %856 = vmatmul.mubr.bf16.gmra.mrb[8].mxu0 %v1710_v44 }
  0x41   : > { %953 = vmatmul.mubr.bf16.gmra.mrb[8].mxu1 %v1711_v45  ;;  %863 = vmatprep.mubr.bf16.mxu0 %v1713_v47 }
  0x42   : > { %960 = vmatprep.mubr.bf16.mxu1 %v1715_v48 }
  0x48   : > { %864 = vmatmul.mubr.bf16.gmra.mrb[12].mxu0 %v1717_v50 }
  0x49   : > { %961 = vmatmul.mubr.bf16.gmra.mrb[12].mxu1 %v1718_v51  ;;  %871 = vmatprep.mubr.bf16.mxu0 %v1719_v52 }
  0x4a   : > { %968 = vmatprep.mubr.bf16.mxu1 %v1721_v53 }
  0x50   : > { %872 = vmatmul.mubr.bf16.gmra.mrb[16].mxu0 %v1723_v54 }
  0x51   : > { %969 = vmatmul.mubr.bf16.gmra.mrb[16].mxu1 %v1724_v55  ;;  %879 = vmatprep.mubr.bf16.mxu0 %v1726_v56 }
  0x52   : > { %976 = vmatprep.mubr.bf16.mxu1 %v1728_v57 }
  0x58   : > { %880 = vmatmul.mubr.bf16.gmra.mrb[20].mxu0 %v1730_v58 }
  0x59   : > { %977 = vmatmul.mubr.bf16.gmra.mrb[20].mxu1 %v1731_v59  ;;  %887 = vmatprep.mubr.bf16.mxu0 %v1732_v60 }
  0x5a   : > { %984 = vmatprep.mubr.bf16.mxu1 %v1734_v61 }
  0x60   : > { %888 = vmatmul.mubr.bf16.gmra.mrb[24].mxu0 %v1736_v62 }
  0x61   : > { %985 = vmatmul.mubr.bf16.gmra.mrb[24].mxu1 %v1737_v63  ;;  %895 = vmatprep.mubr.bf16.mxu0 %v1739_v0 }
  0x62   : > { %992 = vmatprep.mubr.bf16.mxu1 %v1741_v1 }
  0x68   : > { %896 = vmatmul.mubr.bf16.gmra.mrb[28].mxu0 %v1743_v2 }
  0x69   : > { %993 = vmatmul.mubr.bf16.gmra.mrb[28].mxu1 %v1744_v3  ;;  %1612 = vmatprep.mubr.msk.bf16.mxu0 %vm782_vm0, %v1745_v4 }
  0x6a   : > { %1620 = vmatprep.mubr.msk.bf16.mxu1 %vm782_vm0, %v1746_v5 }
  0x70   : > { %1613 = vmatmul.mubr.msk.bf16.vlgmr.msra.gmra.mrb[32].mxu0 %vm782_vm0, %v1747_v6 }
  0x71   : > { %1621 = vmatmul.mubr.msk.bf16.vlgmr.msra.gmra.mrb[32].mxu1 %vm782_vm0, %v1748_v7  ;;  %1616 = vmatprep.mubr.msk.bf16.mxu0 %vm782_vm0, %v1749_v8 }
  0x72   : > { %1624 = vmatprep.mubr.msk.bf16.mxu1 %vm782_vm0, %v1750_v9 }
  0x78   : > { %1617 = vmatmul.mubr.msk.bf16.gmra.mrb[36].mxu0 %vm782_vm0, %v1751_v10 }
  0x79   : > { %1625 = vmatmul.mubr.msk.bf16.gmra.mrb[36].mxu1 %vm782_vm0, %v1752_v11 }
 0x103   : > { %v1480_v13 = vpop.f32.mrb[0].mxu0 }
 0x104   : > { %v1544_v14 = vpop.f32.mrb[0].mxu1  ;;  %v1481_v15 = vpop.f32.mrb[1].mxu0 }
 0x105   : > { %v1482_v16 = vadd.f32 %v1481_v15, %v1480_v13  ;;  %v1545_v17 = vpop.f32.mrb[1].mxu1  ;;  %v1483_v18 = vpop.f32.mrb[2].mxu0 }
 0x106   : > { %v1546_v19 = vadd.f32 %v1545_v17, %v1544_v14  ;;  %v1547_v20 = vpop.f32.mrb[2].mxu1  ;;  %v1484_v21 = vpop.f32.mrb[3].mxu0 }
 0x107   : > { %v1485_v22 = vadd.f32 %v1484_v21, %v1483_v18  ;;  %v1548_v23 = vpop.f32.mrb[3].mxu1 }
 0x108   : > { %v1549_v24 = vadd.f32 %v1548_v23, %v1547_v20  ;;  %v2062_v25 = vadd.f32 %v1546_v19, %v1482_v16 }
 0x10a   : > { %v2064_v26 = vadd.f32 %v1549_v24, %v1485_v22 }
 0x10b   : > { %v1486_v27 = vpop.f32.mrb[4].mxu0 }
 0x10c   : > { %v1550_v28 = vpop.f32.mrb[4].mxu1  ;;  %v1487_v29 = vpop.f32.mrb[5].mxu0 }
 0x10d   : > { %v1488_v30 = vadd.f32 %v1487_v29, %v1486_v27  ;;  %v1551_v31 = vpop.f32.mrb[5].mxu1  ;;  %v1489_v32 = vpop.f32.mrb[6].mxu0 }
 0x10e   : > { %v1552_v33 = vadd.f32 %v1551_v31, %v1550_v28  ;;  %v1553_v34 = vpop.f32.mrb[6].mxu1  ;;  %v1490_v35 = vpop.f32.mrb[7].mxu0 }
 0x10f   : > { %v1491_v36 = vadd.f32 %v1490_v35, %v1489_v32  ;;  %v1554_v37 = vpop.f32.mrb[7].mxu1 }
 0x110   : > { %v1555_v38 = vadd.f32 %v1554_v37, %v1553_v34  ;;  %v2066_v39 = vadd.f32 %v1552_v33, %v1488_v30 }
 0x112   : > { %v2068_v40 = vadd.f32 %v1555_v38, %v1491_v36 }
 0x113   : > { %v1492_v41 = vpop.f32.mrb[8].mxu0 }
 0x114   : > { %v1556_v42 = vpop.f32.mrb[8].mxu1  ;;  %v1493_v43 = vpop.f32.mrb[9].mxu0 }
 0x115   : > { %v1494_v44 = vadd.f32 %v1493_v43, %v1492_v41  ;;  %v1557_v45 = vpop.f32.mrb[9].mxu1  ;;  %v1495_v46 = vpop.f32.mrb[10].mxu0 }
 0x116   : > { %v1558_v47 = vadd.f32 %v1557_v45, %v1556_v42  ;;  %v1559_v48 = vpop.f32.mrb[10].mxu1  ;;  %v1496_v49 = vpop.f32.mrb[11].mxu0 }
 0x117   : > { %v1497_v50 = vadd.f32 %v1496_v49, %v1495_v46  ;;  %v1560_v51 = vpop.f32.mrb[11].mxu1 }
 0x118   : > { %v1561_v52 = vadd.f32 %v1560_v51, %v1559_v48  ;;  %v2070_v53 = vadd.f32 %v1558_v47, %v1494_v44 }
 0x11a   : > { %v2072_v54 = vadd.f32 %v1561_v52, %v1497_v50 }
 0x11b   : > { %v1498_v55 = vpop.f32.mrb[12].mxu0 }
 0x11c   : > { %v1562_v56 = vpop.f32.mrb[12].mxu1  ;;  %v1499_v57 = vpop.f32.mrb[13].mxu0 }
 0x11d   : > { %v1500_v58 = vadd.f32 %v1499_v57, %v1498_v55  ;;  %v1563_v59 = vpop.f32.mrb[13].mxu1  ;;  %v1501_v60 = vpop.f32.mrb[14].mxu0 }
 0x11e   : > { %v1564_v61 = vadd.f32 %v1563_v59, %v1562_v56  ;;  %v1565_v62 = vpop.f32.mrb[14].mxu1  ;;  %v1502_v63 = vpop.f32.mrb[15].mxu0 }
 0x11f   : > { %v1503_v0 = vadd.f32 %v1502_v63, %v1501_v60  ;;  %v1566_v1 = vpop.f32.mrb[15].mxu1 }
 0x120   : > { %v1567_v2 = vadd.f32 %v1566_v1, %v1565_v62  ;;  %v2074_v3 = vadd.f32 %v1564_v61, %v1500_v58 }
 0x122   : > { %v2076_v4 = vadd.f32 %v1567_v2, %v1503_v0 }
 0x123   : > { %v1504_v5 = vpop.f32.mrb[16].mxu0 }
 0x124   : > { %v1568_v6 = vpop.f32.mrb[16].mxu1  ;;  %v1505_v7 = vpop.f32.mrb[17].mxu0 }
 0x125   : > { %v1506_v8 = vadd.f32 %v1505_v7, %v1504_v5  ;;  %v1569_v9 = vpop.f32.mrb[17].mxu1  ;;  %v1507_v10 = vpop.f32.mrb[18].mxu0 }
 0x126   : > { %v1570_v11 = vadd.f32 %v1569_v9, %v1568_v6  ;;  %v1571_v12 = vpop.f32.mrb[18].mxu1  ;;  %v1508_v13 = vpop.f32.mrb[19].mxu0 }
 0x127   : > { %v1509_v14 = vadd.f32 %v1508_v13, %v1507_v10  ;;  %v1572_v15 = vpop.f32.mrb[19].mxu1 }
 0x128   : > { %v1573_v16 = vadd.f32 %v1572_v15, %v1571_v12  ;;  %v971_v17 = vadd.f32 %v1570_v11, %v1506_v8 }
 0x12a   : > { %v2078_v18 = vadd.f32 %v1573_v16, %v1509_v14 }
 0x12b   : > { %v1510_v19 = vpop.f32.mrb[20].mxu0 }
 0x12c   : > { %v1574_v20 = vpop.f32.mrb[20].mxu1  ;;  %v1511_v21 = vpop.f32.mrb[21].mxu0 }
 0x12d   : > { %v1512_v22 = vadd.f32 %v1511_v21, %v1510_v19  ;;  %v1575_v23 = vpop.f32.mrb[21].mxu1  ;;  %v1513_v24 = vpop.f32.mrb[22].mxu0 }
 0x12e   : > { %v1576_v27 = vadd.f32 %v1575_v23, %v1574_v20  ;;  %v1577_v28 = vpop.f32.mrb[22].mxu1  ;;  %v1514_v29 = vpop.f32.mrb[23].mxu0 }
 0x12f   : > { %v1515_v30 = vadd.f32 %v1514_v29, %v1513_v24  ;;  %v1578_v31 = vpop.f32.mrb[23].mxu1 }
 0x130   : > { %v1579_v32 = vadd.f32 %v1578_v31, %v1577_v28  ;;  %v979_v33 = vadd.f32 %v1576_v27, %v1512_v22 }
 0x132   : > { %v982_v34 = vadd.f32 %v1579_v32, %v1515_v30 }
 0x133   : > { %v1516_v35 = vpop.f32.mrb[24].mxu0 }
 0x134   : > { %v1580_v36 = vpop.f32.mrb[24].mxu1  ;;  %v1517_v37 = vpop.f32.mrb[25].mxu0 }
 0x135   : > { %v1518_v38 = vadd.f32 %v1517_v37, %v1516_v35  ;;  %v1581_v41 = vpop.f32.mrb[25].mxu1  ;;  %v1519_v42 = vpop.f32.mrb[26].mxu0 }
 0x136   : > { %v1582_v43 = vadd.f32 %v1581_v41, %v1580_v36  ;;  %v1583_v44 = vpop.f32.mrb[26].mxu1  ;;  %v1520_v45 = vpop.f32.mrb[27].mxu0 }
 0x137   : > { %v1521_v46 = vadd.f32 %v1520_v45, %v1519_v42  ;;  %v1584_v47 = vpop.f32.mrb[27].mxu1 }
 0x138   : > { %v1585_v48 = vadd.f32 %v1584_v47, %v1583_v44  ;;  %v987_v49 = vadd.f32 %v1582_v43, %v1518_v38 }
 0x13a   : > { %v2080_v50 = vadd.f32 %v1585_v48, %v1521_v46 }
 0x13b   : > { %v1522_v51 = vpop.f32.mrb[28].mxu0 }
 0x13c   : > { %v1586_v52 = vpop.f32.mrb[28].mxu1  ;;  %v1523_v55 = vpop.f32.mrb[29].mxu0 }
 0x13d   : > { %v1524_v56 = vadd.f32 %v1523_v55, %v1522_v51  ;;  %v1587_v57 = vpop.f32.mrb[29].mxu1  ;;  %v1525_v58 = vpop.f32.mrb[30].mxu0 }
 0x13e   : > { %v1588_v59 = vadd.f32 %v1587_v57, %v1586_v52  ;;  %v1589_v60 = vpop.f32.mrb[30].mxu1  ;;  %v1526_v61 = vpop.f32.mrb[31].mxu0 }
 0x13f   : > { %v1527_v62 = vadd.f32 %v1526_v61, %v1525_v58  ;;  %v1590_v63 = vpop.f32.mrb[31].mxu1 }
 0x140   : > { %v1591_v0 = vadd.f32 %v1590_v63, %v1589_v60  ;;  %v995_v1 = vadd.f32 %v1588_v59, %v1524_v56 }
 0x142   : > { %v998_v2 = vadd.f32 %v1591_v0, %v1527_v62 }
 0x143   : > { %v1614_v5 = vpop.f32.mrb[32].mxu0 }
 0x144   : > { %v1044_v6 = vadd.f32 %v1614_v5, %v2066_v39  ;;  %v1622_v7 = vpop.f32.mrb[32].mxu1  ;;  %v1035_v8 = vpop.f32.mrb[33].mxu0 }
 0x145   : > { %v2083_v9 = vadd.f32 %v1622_v7, %v979_v33  ;;  %v1036_v10 = vadd.f32 %v1035_v8, %v2062_v25  ;;  %v1067_v11 = vpop.f32.mrb[33].mxu1  ;;  %v1615_v12 = vpop.f32.mrb[34].mxu0 }
 0x146   : > { %1101 = vst [vmem:[#allocation2 + $0x10] sm:$0xff] %v1044_v6  ;;  %v1068_v13 = vadd.f32 %v1067_v11, %v971_v17  ;;  %v1047_v14 = vadd.f32 %v1615_v12, %v2068_v40  ;;  %v1623_v15 = vpop.f32.mrb[34].mxu1  ;;  %v1038_v16 = vpop.f32.mrb[35].mxu0  ;;  %v1142_v22 = vmul.f32 %v1044_v6, %v1044_v6 }
 0x147   : > { %1109 = vst [vmem:[#allocation2 + $0x50] sm:$0xff] %v2083_v9  ;;  %1099 = vst [vmem:[#allocation2] sm:$0xff] %v1036_v10  ;;  %v2088_v19 = vadd.f32 %v1623_v15, %v982_v34  ;;  %v1039_v39 = vadd.f32 %v1038_v16, %v2064_v26  ;;  %v1070_v20 = vpop.f32.mrb[35].mxu1  ;;  %v1140_v21 = vmul.f32 %v1036_v10, %v1036_v10 }
 0x148   : > { %1107 = vst [vmem:[#allocation2 + $0x40] sm:$0xff] %v1068_v13  ;;  %1102 = vst [vmem:[#allocation2 + $0x18] sm:$0xff] %v1047_v14  ;;  %v1071_v25 = vadd.f32 %v1070_v20, %v2078_v18  ;;  %v1143_v28 = vmul.f32 %v1047_v14, %v1047_v14  ;;  %v1148_v58 = vmul.f32 %v1068_v13, %v1068_v13 }
 0x149   : > { %1110 = vst [vmem:[#allocation2 + $0x58] sm:$0xff] %v2088_v19  ;;  %1100 = vst [vmem:[#allocation2 + $0x8] sm:$0xff] %v1039_v39  ;;  %v1116_v17 = vadd.f32 %v1039_v39, %v1036_v10  ;;  %v1141_v40 = vmul.f32 %v1039_v39, %v1039_v39 }
 0x14a   : > { %1108 = vst [vmem:[#allocation2 + $0x48] sm:$0xff] %v1071_v25  ;;  %v1149_v61 = vmul.f32 %v1071_v25, %v1071_v25 }
 0x14b   : > { %v1117_v23 = vadd.f32 %v1116_v17, %v1044_v6  ;;  %v1156_v24 = vadd.f32 %v1141_v40, %v1140_v21  ;;  %v1618_v27 = vpop.f32.mrb[36].mxu0 }
 0x14c   : > { %v1060_v29 = vadd.f32 %v1618_v27, %v2074_v3  ;;  %v1626_v26 = vpop.f32.mrb[36].mxu1  ;;  %v1051_v30 = vpop.f32.mrb[37].mxu0 }
 0x14d   : > { %v1157_v31 = vadd.f32 %v1156_v24, %v1142_v22  ;;  %v1092_v32 = vadd.f32 %v1626_v26, %v995_v1  ;;  %v1052_v18 = vadd.f32 %v1051_v30, %v2070_v53  ;;  %v1118_v33 = vadd.f32 %v1117_v23, %v1047_v14  ;;  %v1083_v34 = vpop.f32.mrb[37].mxu1  ;;  %v1619_v35 = vpop.f32.mrb[38].mxu0  ;;  %v1139_v30 = vld [vmem:[#allocation3 + $0x1] sm:$0x1] }
 0x14e   : > { %1105 = vst [vmem:[#allocation2 + $0x30] sm:$0xff] %v1060_v29  ;;  %v1084_v36 = vadd.f32 %v1083_v34, %v987_v49  ;;  %v1063_v37 = vadd.f32 %v1619_v35, %v2076_v4  ;;  %v1627_v38 = vpop.f32.mrb[38].mxu1  ;;  %v1054_v41 = vpop.f32.mrb[39].mxu0  ;;  %v1146_v49 = vmul.f32 %v1060_v29, %v1060_v29  ;;  %v1151_v1 = vmul.f32 %v2088_v19, %v2088_v19 }
 0x14f   : > { %1113 = vst [vmem:[#allocation2 + $0x70] sm:$0xff] %v1092_v32  ;;  %1103 = vst [vmem:[#allocation2 + $0x20] sm:$0xff] %v1052_v18  ;;  %v1119_v42 = vadd.f32 %v1118_v33, %v1052_v18  ;;  %v1144_v43 = vmul.f32 %v1052_v18, %v1052_v18  ;;  %v1158_v3 = vadd.f32 %v1157_v31, %v1143_v28  ;;  %v1086_v44 = vpop.f32.mrb[39].mxu1  ;;  %v1115_v28 = vld [vmem:[#allocation3] sm:$0x1] }
 0x150   : > { %1111 = vst [vmem:[#allocation2 + $0x60] sm:$0xff] %v1084_v36  ;;  %1106 = vst [vmem:[#allocation2 + $0x38] sm:$0xff] %v1063_v37  ;;  %v1095_v45 = vadd.f32 %v1627_v38, %v998_v2  ;;  %v1055_v53 = vadd.f32 %v1054_v41, %v2072_v54  ;;  %v1087_v47 = vadd.f32 %v1086_v44, %v2080_v50 }
 0x151   : > { %v1159_v46 = vadd.f32 %v1158_v3, %v1144_v43  ;;  %v1147_v55 = vmul.f32 %v1063_v37, %v1063_v37  ;;  %v1150_v50 = vmul.f32 %v2083_v9, %v2083_v9  ;;  %v1152_v6 = vmul.f32 %v1084_v36, %v1084_v36 }
 0x152   : > { %1114 = vst [vmem:[#allocation2 + $0x78] sm:$0xff] %v1095_v45  ;;  %1104 = vst [vmem:[#allocation2 + $0x28] sm:$0xff] %v1055_v53  ;;  %v1120_v48 = vadd.f32 %v1119_v42, %v1055_v53  ;;  %v1145_v4 = vmul.f32 %v1055_v53, %v1055_v53  ;;  %v1153_v11 = vmul.f32 %v1087_v47, %v1087_v47 }
 0x153   : > { %1112 = vst [vmem:[#allocation2 + $0x68] sm:$0xff] %v1087_v47  ;;  %v1155_v16 = vmul.f32 %v1095_v45, %v1095_v45 }
 0x154   : > { %v1121_v51 = vadd.f32 %v1120_v48, %v1060_v29  ;;  %v1160_v52 = vadd.f32 %v1159_v46, %v1145_v4 }
 0x156   : > { %v1122_v56 = vadd.f32 %v1121_v51, %v1063_v37  ;;  %v1161_v57 = vadd.f32 %v1160_v52, %v1146_v49 }
 0x158   : > { %v1123_v59 = vadd.f32 %v1122_v56, %v1068_v13  ;;  %v1162_v60 = vadd.f32 %v1161_v57, %v1147_v55  ;;  %v1154_v13 = vmul.f32 %v1092_v32, %v1092_v32 }
 0x15a   : > { %v1163_v62 = vadd.f32 %v1162_v60, %v1148_v58  ;;  %v1124_v54 = vadd.f32 %v1123_v59, %v1071_v25 }
 0x15c   : > { %v1125_v63 = vadd.f32 %v1124_v54, %v2083_v9  ;;  %v1164_v0 = vadd.f32 %v1163_v62, %v1149_v61 }
 0x15e   : > { %v1126_v2 = vadd.f32 %v1125_v63, %v2088_v19  ;;  %v1165_v5 = vadd.f32 %v1164_v0, %v1150_v50 }
 0x160   : > { %v1127_v7 = vadd.f32 %v1126_v2, %v1084_v36  ;;  %v1166_v8 = vadd.f32 %v1165_v5, %v1151_v1 }
 0x162   : > { %v1128_v10 = vadd.f32 %v1127_v7, %v1087_v47  ;;  %v1167_v12 = vadd.f32 %v1166_v8, %v1152_v6 }
 0x164   : > { %v1129_v14 = vadd.f32 %v1128_v10, %v1092_v32  ;;  %v1168_v15 = vadd.f32 %v1167_v12, %v1153_v11 }
 0x166   : > { %v1130_v39 = vadd.f32 %v1129_v14, %v1095_v45  ;;  %v1169_v20 = vadd.f32 %v1168_v15, %v1154_v13 }
 0x168   : > { %v1131_v9 = vrot.slane %v1130_v39, 4  ;;  %v1170_v25 = vadd.f32 %v1169_v20, %v1155_v16 }
 0x16a   : > { %v1132_v21 = vadd.f32 %v1131_v9, %v1130_v39  ;;  %v1171_v17 = vrot.slane %v1170_v25, 4 }
 0x16c   : > { %v1133_v40 = vrot.slane %v1132_v21, 2  ;;  %v1172_v22 = vadd.f32 %v1171_v17, %v1170_v25 }
 0x16e   : > { %v1134_v19 = vadd.f32 %v1133_v40, %v1132_v21  ;;  %v1173_v23 = vrot.slane %v1172_v22, 2 }
 0x170   : > { %v1135_v24 = vrot.slane %v1134_v19, 1  ;;  %v1174_v27 = vadd.f32 %v1173_v23, %v1172_v22 }
 0x172   : > { %v1136_v29 = vadd.f32 %v1135_v24, %v1134_v19  ;;  %v1175_v26 = vrot.slane %v1174_v27, 1 }
 0x174   : > { %v1137_v31 = vadd.f32 %v1136_v29, %v1115_v28  ;;  %v1176_v32 = vadd.f32 %v1175_v26, %v1174_v27 }
 0x176   : > { %1138 = vst [vmem:[#allocation3] sm:$0x1] %v1137_v31  ;;  %v1177_v18 = vadd.f32 %v1176_v32, %v1139_v30 }
 0x178   : > { %1178 = vst [vmem:[#allocation3 + $0x1] sm:$0x1] %v1177_v18 }
 0x179 PF: > { %p1457_p5 = scmp.ne.s32.totalorder %s1769_s15, 1 }
 0x17a   : > { %v1194_v43 = vld [vmem:[%s2170_s2] sm:$0x1] (!%p1457_p5)  ;;  %v1205_v48 = vld [vmem:[#allocation2 + $0x8] sm:$0xff] (!%p1457_p5)  ;;  %v1206_v4 = vld [vmem:[#allocation2 + $0x10] sm:$0xff] (!%p1457_p5) }
 0x17b   : > { %1182 = sbr.rel (%p1457_p5) target bundleno = 429 (0x1ad), region = 48  ;;  %v1199_v45 = vld [vmem:[%s2171_s3] sm:$0x1] (!%p1457_p5)  ;;  %v1207_v49 = vld [vmem:[#allocation2 + $0x18] sm:$0xff] (!%p1457_p5)  ;;  %v1209_v52 = vld [vmem:[#allocation2 + $0x28] sm:$0xff] (!%p1457_p5) }
 0x17c   : > { %v1204_v47 = vld [vmem:[#allocation2] sm:$0xff] (!%p1457_p5)  ;;  %v1210_v55 = vld [vmem:[#allocation2 + $0x30] sm:$0xff] (!%p1457_p5)  ;;  %v1211_v56 = vld [vmem:[#allocation2 + $0x38] sm:$0xff] (!%p1457_p5) }
 0x17d   : > { %v1187_v33 = vld [vmem:[#allocation3] sm:$0x1] (!%p1457_p5)  ;;  %v1213_v58 = vld [vmem:[#allocation2 + $0x48] sm:$0xff] (!%p1457_p5)  ;;  %v1214_v59 = vld [vmem:[#allocation2 + $0x50] sm:$0xff] (!%p1457_p5) }
 0x17e   : > { %v1188_v35 = vmul.f32 (!%p1457_p5), 0.0078125, %v1187_v33  ;;  %v1208_v51 = vld [vmem:[#allocation2 + $0x20] sm:$0xff] (!%p1457_p5)  ;;  %v1215_v61 = vld [vmem:[#allocation2 + $0x58] sm:$0xff] (!%p1457_p5)  ;;  %v1217_v1 = vld [vmem:[#allocation2 + $0x68] sm:$0xff] (!%p1457_p5) }
 0x17f   : > { %v1189_v34 = vld [vmem:[#allocation3 + $0x1] sm:$0x1] (!%p1457_p5)  ;;  %v1218_v2 = vld [vmem:[#allocation2 + $0x70] sm:$0xff] (!%p1457_p5)  ;;  %v1219_v5 = vld [vmem:[#allocation2 + $0x78] sm:$0xff] (!%p1457_p5) }
 0x180   : > { %v1190_v36 = vmul.f32 (!%p1457_p5), 0.0078125, %v1189_v34  ;;  %v1191_v37 = vmul.f32 (!%p1457_p5), %v1188_v35, %v1188_v35  ;;  %v1212_v57 = vld [vmem:[#allocation2 + $0x40] sm:$0xff] (!%p1457_p5) }
 0x181   : > { %v1216_v62 = vld [vmem:[#allocation2 + $0x60] sm:$0xff] (!%p1457_p5) }
 0x182   : > { %v1192_v38 = vsub.f32 %v1190_v36, %v1191_v37 }
 0x184   : > { %v1193_v41 = vmax.f32 %v1192_v38, 0.0 }
 0x186   : > { %v1195_v42 = vadd.f32 0.001, %v1193_v41 }
 0x188   : > { %1753 = vrsqrt.f32 %v1195_v42 }
 0x192   : > { %v1754_v3 = vpop.eup %1753 }
 0x193   : > { %v1197_v44 = vmul.f32 %v1754_v3, %v1194_v43 }
 0x195   : > { %1198 = vst [vmem:[#allocation3 + $0x2] sm:$0x1] %v1197_v44  ;;  %v1200_v53 = vmul.f32 %v1197_v44, %v1188_v35 }
 0x197   : > { %v1201_v46 = vsub.f32 %v1199_v45, %v1200_v53 }
 0x199   : > { %1202 = vst [vmem:[#allocation3 + $0x3] sm:$0x1] %v1201_v46 }
 0x19c   : > { %v1458_v60 = vld [vmem:[#allocation3 + $0x2] ss:$0 sm:$0xff] }
 0x19d   : > { %v1225_v54 = vmul.f32 %v1458_v60, %v1204_v47  ;;  %v1226_v50 = vmul.f32 %v1458_v60, %v1205_v48  ;;  %v1227_v63 = vmul.f32 %v1458_v60, %v1206_v4  ;;  %v1228_v0 = vmul.f32 %v1458_v60, %v1207_v49 }
 0x19e   : > { %v1229_v6 = vmul.f32 %v1458_v60, %v1208_v51  ;;  %v1230_v7 = vmul.f32 %v1458_v60, %v1209_v52  ;;  %v1231_v8 = vmul.f32 %v1458_v60, %v1210_v55  ;;  %v1232_v10 = vmul.f32 %v1458_v60, %v1211_v56 }
 0x19f   : > { %v1233_v11 = vmul.f32 %v1458_v60, %v1212_v57  ;;  %v1234_v12 = vmul.f32 %v1458_v60, %v1213_v58  ;;  %v1235_v13 = vmul.f32 %v1458_v60, %v1214_v59  ;;  %v1236_v14 = vmul.f32 %v1458_v60, %v1215_v61 }
 0x1a0   : > { %v1459_v15 = vld [vmem:[#allocation3 + $0x3] ss:$0 sm:$0xff]  ;;  %v1237_v16 = vmul.f32 %v1458_v60, %v1216_v62  ;;  %v1238_v39 = vmul.f32 %v1458_v60, %v1217_v1  ;;  %v1239_v20 = vmul.f32 %v1458_v60, %v1218_v2  ;;  %v1240_v9 = vmul.f32 %v1458_v60, %v1219_v5 }
 0x1a1   : > { %v1246_v25 = vadd.f32 %v1459_v15, %v1225_v54  ;;  %v1247_v21 = vadd.f32 %v1459_v15, %v1226_v50  ;;  %v1248_v17 = vadd.f32 %v1459_v15, %v1227_v63  ;;  %v1249_v40 = vadd.f32 %v1459_v15, %v1228_v0 }
 0x1a2   : > { %v1250_v22 = vadd.f32 %v1459_v15, %v1229_v6  ;;  %v1251_v19 = vadd.f32 %v1459_v15, %v1230_v7  ;;  %v1252_v23 = vadd.f32 %v1459_v15, %v1231_v8  ;;  %v1253_v24 = vadd.f32 %v1459_v15, %v1232_v10 }
 0x1a3   : > { %v1262_v27 = vmax.f32 %v1246_v25, 0.0  ;;  %v1263_v28 = vmax.f32 %v1247_v21, 0.0  ;;  %v1264_v29 = vmax.f32 %v1248_v17, 0.0  ;;  %v1265_v26 = vmax.f32 %v1249_v40, 0.0 }
 0x1a4   : > { %v1266_v30 = vmax.f32 %v1250_v22, 0.0  ;;  %v1267_v31 = vmax.f32 %v1251_v19, 0.0  ;;  %v1268_v32 = vmax.f32 %v1252_v23, 0.0  ;;  %v1269_v18 = vmax.f32 %v1253_v24, 0.0 }
 0x1a5   : > { %1278 = vst [vmem:[%s2172_s4] sm:$0xff] %v1262_v27  ;;  %1279 = vst [vmem:[%s2172_s4 + $0x8] sm:$0xff] %v1263_v28  ;;  %v1254_v33 = vadd.f32 %v1459_v15, %v1233_v11  ;;  %v1255_v34 = vadd.f32 %v1459_v15, %v1234_v12  ;;  %v1256_v35 = vadd.f32 %v1459_v15, %v1235_v13 }
 0x1a6   : > { %1280 = vst [vmem:[%s2172_s4 + $0x10] sm:$0xff] %v1264_v29  ;;  %1281 = vst [vmem:[%s2172_s4 + $0x18] sm:$0xff] %v1265_v26  ;;  %v1257_v36 = vadd.f32 %v1459_v15, %v1236_v14  ;;  %v1258_v37 = vadd.f32 %v1459_v15, %v1237_v16  ;;  %v1259_v38 = vadd.f32 %v1459_v15, %v1238_v39 }
 0x1a7   : > { %1282 = vst [vmem:[%s2172_s4 + $0x20] sm:$0xff] %v1266_v30  ;;  %1283 = vst [vmem:[%s2172_s4 + $0x28] sm:$0xff] %v1267_v31  ;;  %v1260_v41 = vadd.f32 %v1459_v15, %v1239_v20  ;;  %v1261_v42 = vadd.f32 %v1459_v15, %v1240_v9  ;;  %v1270_v43 = vmax.f32 %v1254_v33, 0.0  ;;  %v1271_v3 = vmax.f32 %v1255_v34, 0.0 }
 0x1a8   : > { %1284 = vst [vmem:[%s2172_s4 + $0x30] sm:$0xff] %v1268_v32  ;;  %1285 = vst [vmem:[%s2172_s4 + $0x38] sm:$0xff] %v1269_v18  ;;  %v1272_v44 = vmax.f32 %v1256_v35, 0.0  ;;  %v1273_v45 = vmax.f32 %v1257_v36, 0.0  ;;  %v1274_v53 = vmax.f32 %v1258_v37, 0.0  ;;  %v1275_v46 = vmax.f32 %v1259_v38, 0.0 }
 0x1a9   : > { %v1276_v47 = vmax.f32 %v1260_v41, 0.0  ;;  %v1277_v48 = vmax.f32 %v1261_v42, 0.0  ;;  %1286 = vst [vmem:[%s2172_s4 + $0x40] sm:$0xff] %v1270_v43  ;;  %1287 = vst [vmem:[%s2172_s4 + $0x48] sm:$0xff] %v1271_v3 }
 0x1aa   : > { %1288 = vst [vmem:[%s2172_s4 + $0x50] sm:$0xff] %v1272_v44  ;;  %1289 = vst [vmem:[%s2172_s4 + $0x58] sm:$0xff] %v1273_v45 }
 0x1ab   : > { %1290 = vst [vmem:[%s2172_s4 + $0x60] sm:$0xff] %v1274_v53  ;;  %1291 = vst [vmem:[%s2172_s4 + $0x68] sm:$0xff] %v1275_v46 }
 0x1ac   : > { %1292 = vst [vmem:[%s2172_s4 + $0x70] sm:$0xff] %v1276_v47  ;;  %1293 = vst [vmem:[%s2172_s4 + $0x78] sm:$0xff] %v1277_v48 }
 0x1ad PF: > { %s14_s17 = sadd.s32 1, %s1777_s17   ;;  %s2173_s15 = smov %s1773_s16 }
 0x1ae   : > { %p11_p6 = scmp.ge.s32.totalorder %s14_s17, 4   ;;  %s2174_s16 = smov %s2176_s18 }
 0x1b0   :  { %13 = sbr.rel (!%p11_p6) target bundleno = 2 (0x2), region = 84 }

</bundles_post_ra>
